<compile_context>
chip_gen: v6e
topology: v6e:2x2x1
jax: 0.10.0
libtpu: 0.0.40
codegen_flags: <defaults>
</compile_context>

<pallas_src>
import jax
import jax.numpy as jnp
from jax.experimental import pallas as pl
from jax.experimental.pallas import tpu as pltpu


# ---------------- B-spline basis + dense basis-adjacency (plain-JAX glue) ----

def spline_basis(pseudo, kernel_size, degree, is_open_spline=True):
    """torch_spline_conv open B-spline basis, degree=2. pseudo: [E, D] in [0,1]."""
    assert degree == 2, "only degree-2 (quadratic) splines implemented"
    E, D = pseudo.shape
    S = (degree + 1) ** D
    s_idx = jnp.arange(S, dtype=jnp.int32)
    d_pow = (degree + 1) ** jnp.arange(D, dtype=jnp.int32)
    k_mod = (s_idx[:, None] // d_pow[None, :]) % (degree + 1)          # [S, D]

    open_flag = 1 if is_open_spline else 0
    v = pseudo * (kernel_size - degree * open_flag)                    # [E, D]
    vf = jnp.floor(v)
    t = (v - vf)[:, None, :]                                           # [E, 1, D]
    km = k_mod[None, :, :]                                             # [1, S, D]
    # quadratic B-spline pieces
    fac = jnp.where(km == 0, 0.5 * t * t - t + 0.5,
          jnp.where(km == 1, -t * t + t + 0.5, 0.5 * t * t))           # [E, S, D]
    basis = jnp.prod(fac, axis=-1)                                     # [E, S]

    offs = kernel_size ** jnp.arange(D, dtype=jnp.int32)               # [D]
    # TODO(synk): pseudo == 1.0 exactly wraps the last open-spline knot to 0;
    # inputs here are in [0, 1) so this boundary case is not exercised.
    wi_d = (vf.astype(jnp.int32)[:, None, :] + km) % kernel_size       # [E, S, D]
    wi = jnp.sum(wi_d * offs[None, None, :], axis=-1)                  # [E, S]
    return basis, wi


def dense_spline_adjacency(edge_index, pseudo, num_nodes, kernel_size=4, degree=2):
    """A[k, dst, src] = sum over edges (src->dst) and basis products s with
    weight index k of the B-spline basis value (SplineConv 'add' aggregation)."""
    src, dst = edge_index[0], edge_index[1]
    basis, wi = spline_basis(pseudo, kernel_size, degree)
    E, S = basis.shape
    K = kernel_size ** pseudo.shape[1]
    a = jnp.zeros((K, num_nodes, num_nodes), jnp.float32)
    a = a.at[wi.reshape(-1),
             jnp.repeat(dst, S),
             jnp.repeat(src, S)].add(basis.reshape(-1))
    return a


# ---------------- fused Pallas kernel ----------------

def _elu(y):
    # ELU(alpha=1); clamp the exp argument so the unselected branch never overflows.
    return jnp.where(y > 0, y, jnp.exp(jnp.minimum(y, 0.0)) - 1.0)


def make_fused_kernel(K1, N, Bt, Fp, C1):
    """K1 = K + 1 (basis slabs + identity/root slab)."""
    rows_a = K1 * N

    def kernel(a_ref, x_ref,
               w1_ref, b1_ref, w2_ref, b2_ref,
               fc1w_ref, fc1b_ref, fc2w_ref, fc2b_ref,
               o_ref, cat1_ref, cat2_ref):
        # ---- SplineConv1 (+ folded BN1 + root fold) ---------------------------
        # Per graph: one aggregation matmul A_aug @ x, then assemble the
        # dst-major [(K+1)*Fp]-wide operand in VMEM scratch, then ONE weight
        # matmul of contraction depth (K+1)*Fp for the whole block of graphs.
        for b in range(Bt):
            a_b = a_ref[b * rows_a:(b + 1) * rows_a, :]            # [(K+1)*N, N] bf16
            x_b = x_ref[b * N:(b + 1) * N, :]                      # [N, Fp]      bf16
            ax = jnp.dot(a_b, x_b, preferred_element_type=jnp.float32)
            for k in range(K1):
                cat1_ref[b * N:(b + 1) * N, k * Fp:(k + 1) * Fp] = \
                    ax[k * N:(k + 1) * N, :]
        h1 = _elu(jnp.dot(cat1_ref[...].astype(jnp.bfloat16), w1_ref[...],
                          preferred_element_type=jnp.float32) + b1_ref[...])
        h1 = h1.astype(jnp.bfloat16)                               # [Bt*N, 32]

        # ---- SplineConv2 (+ folded BN2 + root fold) ---------------------------
        for b in range(Bt):
            a_b = a_ref[b * rows_a:(b + 1) * rows_a, :]
            h1_b = h1[b * N:(b + 1) * N, :]
            ah = jnp.dot(a_b, h1_b, preferred_element_type=jnp.float32)
            for k in range(K1):
                cat2_ref[b * N:(b + 1) * N, k * C1:(k + 1) * C1] = \
                    ah[k * N:(k + 1) * N, :]
        h2 = _elu(jnp.dot(cat2_ref[...].astype(jnp.bfloat16), w2_ref[...],
                          preferred_element_type=jnp.float32) + b2_ref[...])
        h2 = h2.astype(jnp.bfloat16)                               # [Bt*N, 64]

        # ---- fc1 + ELU (full block of graphs: M = Bt*N rows) ------------------
        h3 = _elu(jnp.dot(h2, fc1w_ref[...], preferred_element_type=jnp.float32)
                  + fc1b_ref[...]).astype(jnp.bfloat16)            # [Bt*N, 128]

        # ---- fc2 (lane-dense: padded to 128 output columns, col 0 is real) ----
        o_ref[...] = (jnp.dot(h3, fc2w_ref[...], preferred_element_type=jnp.float32)
                      + fc2b_ref[...])

    return kernel


# ---------------- wrapper ----------------

def splinecnn_forward(params, x, a_bas, graphs_per_block=None):
    """x: [B, N, F] f32, a_bas: [B, K, N, N] f32 -> [B, N, 1] f32."""
    B, N, F = x.shape
    K = a_bas.shape[1]
    K1 = K + 1
    Fp = params["w1"].shape[1]          # padded in-feature dim
    C1 = params["w1"].shape[2]          # 32
    C2 = params["w2"].shape[2]          # 64
    H = params["fc1_w"].shape[1]        # 128
    OUTP = 128                          # lane-dense head width (col 0 real)

    # batch enough graphs per grid step so Bt*N >= 128 (fills MXU rows for FCs)
    if graphs_per_block is None:
        graphs_per_block = min(B, max(1, -(-128 // N)))
    Bt = graphs_per_block
    assert B % Bt == 0, "batch must be divisible by graphs_per_block"
    G = B // Bt
    rows_a = K1 * N

    # --- augment A with an identity slab (folds the root_weight term), flatten
    #     everything to plain 2-D matrices; bf16 MXU operands.
    eye = jnp.broadcast_to(jnp.eye(N, dtype=jnp.float32), (B, 1, N, N))
    a2d = jnp.concatenate([a_bas, eye], axis=1) \
             .reshape(B * rows_a, N).astype(jnp.bfloat16)          # rows = (b, k, dst)

    xp = jnp.zeros((B, N, Fp), jnp.float32).at[:, :, :F].set(x)
    x2d = xp.reshape(B * N, Fp).astype(jnp.bfloat16)

    # --- fold eval-mode BatchNorm; stack per-k weights + root into one matrix
    s1, sh1 = params["bn1"]
    s2, sh2 = params["bn2"]
    w1f = jnp.concatenate(
        [(params["w1"] * s1[None, None, :]).reshape(K * Fp, C1),
         params["root1"] * s1[None, :]], axis=0).astype(jnp.bfloat16)   # [(K+1)*Fp, 32]
    b1 = (params["b1"] * s1 + sh1).reshape(1, C1).astype(jnp.float32)
    w2f = jnp.concatenate(
        [(params["w2"] * s2[None, None, :]).reshape(K * C1, C2),
         params["root2"] * s2[None, :]], axis=0).astype(jnp.bfloat16)   # [(K+1)*32, 64]
    b2 = (params["b2"] * s2 + sh2).reshape(1, C2).astype(jnp.float32)

    fc1w = params["fc1_w"].astype(jnp.bfloat16)
    fc1b = params["fc1_b"].reshape(1, H).astype(jnp.float32)
    fc2w = jnp.zeros((H, OUTP), jnp.float32).at[:, 0:1].set(
        params["fc2_w"]).astype(jnp.bfloat16)
    fc2b = jnp.zeros((1, OUTP), jnp.float32).at[0, 0].set(params["fc2_b"][0])

    def whole(arr):
        return pl.BlockSpec(arr.shape, lambda g: (0, 0))

    flops = 2 * B * (K1 * N * N * Fp + N * K1 * Fp * C1
                     + K1 * N * N * C1 + N * K1 * C1 * C2
                     + N * C2 * H + N * H * OUTP)
    bytes_accessed = ((a2d.size + x2d.size + w1f.size + w2f.size
                       + fc1w.size + fc2w.size) * 2
                      + (b1.size + b2.size + fc1b.size + fc2b.size) * 4
                      + B * N * OUTP * 4)
    cost = pl.CostEstimate(flops=flops,
                           transcendentals=B * N * (C1 + C2 + H),
                           bytes_accessed=bytes_accessed)

    out = pl.pallas_call(
        make_fused_kernel(K1, N, Bt, Fp, C1),
        out_shape=jax.ShapeDtypeStruct((B * N, OUTP), jnp.float32),
        grid=(G,),
        in_specs=[
            pl.BlockSpec((Bt * rows_a, N), lambda g: (g, 0)),
            pl.BlockSpec((Bt * N, Fp), lambda g: (g, 0)),
            whole(w1f), whole(b1), whole(w2f), whole(b2),
            whole(fc1w), whole(fc1b), whole(fc2w), whole(fc2b),
        ],
        out_specs=pl.BlockSpec((Bt * N, OUTP), lambda g: (g, 0)),
        scratch_shapes=[pltpu.VMEM((Bt * N, K1 * Fp), jnp.float32),
                        pltpu.VMEM((Bt * N, K1 * C1), jnp.float32)],
        compiler_params=pltpu.CompilerParams(
            dimension_semantics=("parallel",),
            vmem_limit_bytes=32 * 1024 * 1024,
        ),
        cost_estimate=cost,
    )(a2d, x2d, w1f, b1, w2f, b2, fc1w, fc1b, fc2w, fc2b)

    return out[:, 0:1].reshape(B, N, 1)


# ---------------- parameter init ----------------

def init_params(key, num_features, kernel_size=4, dim=2):
    K = kernel_size ** dim
    Fp = ((num_features + 7) // 8) * 8
    keys = jax.random.split(key, 6)

    def glorot(k, shape, fan_in, fan_out):
        lim = (6.0 / (fan_in + fan_out)) ** 0.5
        return jax.random.uniform(k, shape, jnp.float32, -lim, lim)

    w1 = jnp.zeros((K, Fp, 32), jnp.float32).at[:, :num_features, :].set(
        glorot(keys[0], (K, num_features, 32), num_features, 32))
    root1 = jnp.zeros((Fp, 32), jnp.float32).at[:num_features, :].set(
        glorot(keys[1], (num_features, 32), num_features, 32))
    b1 = jnp.zeros((32,), jnp.float32)

    w2 = glorot(keys[2], (K, 32, 64), 32, 64)
    root2 = glorot(keys[3], (32, 64), 32, 64)
    b2 = jnp.zeros((64,), jnp.float32)

    fc1_w = glorot(keys[4], (64, 128), 64, 128)
    fc1_b = jnp.zeros((128,), jnp.float32)
    fc2_w = glorot(keys[5], (128, 1), 128, 1)
    fc2_b = jnp.zeros((1,), jnp.float32)

    def bn(c, eps=1e-5):
        # PyTorch BatchNorm1d eval defaults: gamma=1, beta=0, mean=0, var=1
        gamma = jnp.ones((c,), jnp.float32)
        beta = jnp.zeros((c,), jnp.float32)
        mean = jnp.zeros((c,), jnp.float32)
        var = jnp.ones((c,), jnp.float32)
        scale = gamma * jax.lax.rsqrt(var + eps)
        shift = beta - mean * scale
        return scale, shift

    return dict(w1=w1, root1=root1, b1=b1, bn1=bn(32),
                w2=w2, root2=root2, b2=b2, bn2=bn(64),
                fc1_w=fc1_w, fc1_b=fc1_b, fc2_w=fc2_w, fc2_b=fc2_b)


if __name__ == "__main__":
    key = jax.random.PRNGKey(0)
    k_x, k_e, k_u, k_p = jax.random.split(key, 4)

    B = 2        # graphs per batch
    N = 64       # superpixel nodes per graph
    F = 5        # node features: (x, y) + 3 interpolated scalar fields
    E = 256      # edges per graph
    KS, DEG, DIM = 4, 2, 2   # SplineConv(kernel_size=4, degree=2, dim=2)

    x = jax.random.normal(k_x, (B, N, F), jnp.float32)
    edge_index = jax.random.randint(k_e, (B, 2, E), 0, N, jnp.int32)
    pseudo = jax.random.uniform(k_u, (B, E, DIM), jnp.float32)   # edge pseudo-coords in [0,1)

    a_bas = jax.vmap(
        lambda ei, ps: dense_spline_adjacency(ei, ps, N, KS, DEG))(edge_index, pseudo)

    params = init_params(k_p, F, KS, DIM)
    out = splinecnn_forward(params, x, a_bas)
    out = jax.block_until_ready(out)

    assert out.shape == (B, N, 1)
    assert bool(jnp.all(jnp.isfinite(out)))
    print("KERNEL_OK")
</pallas_src>

<mosaic_0001>
module attributes {stable_mosaic.version = 11 : i64} {
  func.func @kernel(%arg0: i32, %arg1: memref<2176x64xbf16, #tpu.memory_space<vmem>>, %arg2: memref<128x8xbf16, #tpu.memory_space<vmem>>, %arg3: memref<136x32xbf16, #tpu.memory_space<vmem>>, %arg4: memref<1x32xf32, #tpu.memory_space<vmem>>, %arg5: memref<544x64xbf16, #tpu.memory_space<vmem>>, %arg6: memref<1x64xf32, #tpu.memory_space<vmem>>, %arg7: memref<64x128xbf16, #tpu.memory_space<vmem>>, %arg8: memref<1x128xf32, #tpu.memory_space<vmem>>, %arg9: memref<128x128xbf16, #tpu.memory_space<vmem>>, %arg10: memref<1x128xf32, #tpu.memory_space<vmem>>, %arg11: memref<128x128xf32, #tpu.memory_space<vmem>>, %arg12: memref<128x136xf32, #tpu.memory_space<vmem>>, %arg13: memref<128x544xf32, #tpu.memory_space<vmem>>) attributes {dimension_semantics = [#tpu.dimension_semantics<parallel>], iteration_bounds = array<i64: 1>, scalar_prefetch = 0 : i64, scratch_operands = 2 : i64, tpu.core_type = #tpu.core_type<tc>, window_params = [{transform_indices = @transform_0, window_bounds = array<i64: 2176, 64>}, {transform_indices = @transform_1, window_bounds = array<i64: 128, 8>}, {pipeline_mode = #tpu.pipeline_mode<synchronous>, transform_indices = @transform_2, window_bounds = array<i64: 136, 32>}, {pipeline_mode = #tpu.pipeline_mode<synchronous>, transform_indices = @transform_3, window_bounds = array<i64: 1, 32>}, {pipeline_mode = #tpu.pipeline_mode<synchronous>, transform_indices = @transform_4, window_bounds = array<i64: 544, 64>}, {pipeline_mode = #tpu.pipeline_mode<synchronous>, transform_indices = @transform_5, window_bounds = array<i64: 1, 64>}, {pipeline_mode = #tpu.pipeline_mode<synchronous>, transform_indices = @transform_6, window_bounds = array<i64: 64, 128>}, {pipeline_mode = #tpu.pipeline_mode<synchronous>, transform_indices = @transform_7, window_bounds = array<i64: 1, 128>}, {pipeline_mode = #tpu.pipeline_mode<synchronous>, transform_indices = @transform_8, window_bounds = array<i64: 128, 128>}, {pipeline_mode = #tpu.pipeline_mode<synchronous>, transform_indices = @transform_9, window_bounds = array<i64: 1, 128>}, {transform_indices = @transform_10, window_bounds = array<i64: 128, 128>}]} {
    %c0 = arith.constant 0 : index
    %c0_0 = arith.constant 0 : index
    %0 = vector.load %arg1[%c0, %c0_0] : memref<2176x64xbf16, #tpu.memory_space<vmem>>, vector<1088x64xbf16>
    %c0_1 = arith.constant 0 : index
    %c0_2 = arith.constant 0 : index
    %1 = vector.load %arg2[%c0_1, %c0_2] : memref<128x8xbf16, #tpu.memory_space<vmem>>, vector<64x8xbf16>
    %cst = arith.constant dense<0.000000e+00> : vector<1088x8xf32>
    %2 = tpu.matmul %0, %1, %cst {dimension_numbers = #tpu.dot_dimension_numbers<[1], [0], [0], [1], [0, 0, 1, 1], [], []>} : vector<1088x64xbf16>, vector<64x8xbf16>, vector<1088x8xf32> -> vector<1088x8xf32>
    %3 = vector.extract_strided_slice %2 {offsets = [0, 0], sizes = [64, 8], strides = [1, 1]} : vector<1088x8xf32> to vector<64x8xf32>
    %c0_3 = arith.constant 0 : index
    %c0_4 = arith.constant 0 : index
    %4 = vector.load %arg12[%c0_3, %c0_4] : memref<128x136xf32, #tpu.memory_space<vmem>>, vector<64x8xf32>
    tpu.vector_store %arg12[%c0_3, %c0_4], %3 {strides = array<i32>} : memref<128x136xf32, #tpu.memory_space<vmem>>, vector<64x8xf32>,
    %5 = vector.extract_strided_slice %2 {offsets = [64, 0], sizes = [64, 8], strides = [1, 1]} : vector<1088x8xf32> to vector<64x8xf32>
    %c0_5 = arith.constant 0 : index
    %c8 = arith.constant 8 : index
    %6 = vector.load %arg12[%c0_5, %c8] : memref<128x136xf32, #tpu.memory_space<vmem>>, vector<64x8xf32>
    tpu.vector_store %arg12[%c0_5, %c8], %5 {strides = array<i32>} : memref<128x136xf32, #tpu.memory_space<vmem>>, vector<64x8xf32>,
    %7 = vector.extract_strided_slice %2 {offsets = [128, 0], sizes = [64, 8], strides = [1, 1]} : vector<1088x8xf32> to vector<64x8xf32>
    %c0_6 = arith.constant 0 : index
    %c16 = arith.constant 16 : index
    %8 = vector.load %arg12[%c0_6, %c16] : memref<128x136xf32, #tpu.memory_space<vmem>>, vector<64x8xf32>
    tpu.vector_store %arg12[%c0_6, %c16], %7 {strides = array<i32>} : memref<128x136xf32, #tpu.memory_space<vmem>>, vector<64x8xf32>,
    %9 = vector.extract_strided_slice %2 {offsets = [192, 0], sizes = [64, 8], strides = [1, 1]} : vector<1088x8xf32> to vector<64x8xf32>
    %c0_7 = arith.constant 0 : index
    %c24 = arith.constant 24 : index
    %10 = vector.load %arg12[%c0_7, %c24] : memref<128x136xf32, #tpu.memory_space<vmem>>, vector<64x8xf32>
    tpu.vector_store %arg12[%c0_7, %c24], %9 {strides = array<i32>} : memref<128x136xf32, #tpu.memory_space<vmem>>, vector<64x8xf32>,
    %11 = vector.extract_strided_slice %2 {offsets = [256, 0], sizes = [64, 8], strides = [1, 1]} : vector<1088x8xf32> to vector<64x8xf32>
    %c0_8 = arith.constant 0 : index
    %c32 = arith.constant 32 : index
    %12 = vector.load %arg12[%c0_8, %c32] : memref<128x136xf32, #tpu.memory_space<vmem>>, vector<64x8xf32>
    tpu.vector_store %arg12[%c0_8, %c32], %11 {strides = array<i32>} : memref<128x136xf32, #tpu.memory_space<vmem>>, vector<64x8xf32>,
    %13 = vector.extract_strided_slice %2 {offsets = [320, 0], sizes = [64, 8], strides = [1, 1]} : vector<1088x8xf32> to vector<64x8xf32>
    %c0_9 = arith.constant 0 : index
    %c40 = arith.constant 40 : index
    %14 = vector.load %arg12[%c0_9, %c40] : memref<128x136xf32, #tpu.memory_space<vmem>>, vector<64x8xf32>
    tpu.vector_store %arg12[%c0_9, %c40], %13 {strides = array<i32>} : memref<128x136xf32, #tpu.memory_space<vmem>>, vector<64x8xf32>,
    %15 = vector.extract_strided_slice %2 {offsets = [384, 0], sizes = [64, 8], strides = [1, 1]} : vector<1088x8xf32> to vector<64x8xf32>
    %c0_10 = arith.constant 0 : index
    %c48 = arith.constant 48 : index
    %16 = vector.load %arg12[%c0_10, %c48] : memref<128x136xf32, #tpu.memory_space<vmem>>, vector<64x8xf32>
    tpu.vector_store %arg12[%c0_10, %c48], %15 {strides = array<i32>} : memref<128x136xf32, #tpu.memory_space<vmem>>, vector<64x8xf32>,
    %17 = vector.extract_strided_slice %2 {offsets = [448, 0], sizes = [64, 8], strides = [1, 1]} : vector<1088x8xf32> to vector<64x8xf32>
    %c0_11 = arith.constant 0 : index
    %c56 = arith.constant 56 : index
    %18 = vector.load %arg12[%c0_11, %c56] : memref<128x136xf32, #tpu.memory_space<vmem>>, vector<64x8xf32>
    tpu.vector_store %arg12[%c0_11, %c56], %17 {strides = array<i32>} : memref<128x136xf32, #tpu.memory_space<vmem>>, vector<64x8xf32>,
    %19 = vector.extract_strided_slice %2 {offsets = [512, 0], sizes = [64, 8], strides = [1, 1]} : vector<1088x8xf32> to vector<64x8xf32>
    %c0_12 = arith.constant 0 : index
    %c64 = arith.constant 64 : index
    %20 = vector.load %arg12[%c0_12, %c64] : memref<128x136xf32, #tpu.memory_space<vmem>>, vector<64x8xf32>
    tpu.vector_store %arg12[%c0_12, %c64], %19 {strides = array<i32>} : memref<128x136xf32, #tpu.memory_space<vmem>>, vector<64x8xf32>,
    %21 = vector.extract_strided_slice %2 {offsets = [576, 0], sizes = [64, 8], strides = [1, 1]} : vector<1088x8xf32> to vector<64x8xf32>
    %c0_13 = arith.constant 0 : index
    %c72 = arith.constant 72 : index
    %22 = vector.load %arg12[%c0_13, %c72] : memref<128x136xf32, #tpu.memory_space<vmem>>, vector<64x8xf32>
    tpu.vector_store %arg12[%c0_13, %c72], %21 {strides = array<i32>} : memref<128x136xf32, #tpu.memory_space<vmem>>, vector<64x8xf32>,
    %23 = vector.extract_strided_slice %2 {offsets = [640, 0], sizes = [64, 8], strides = [1, 1]} : vector<1088x8xf32> to vector<64x8xf32>
    %c0_14 = arith.constant 0 : index
    %c80 = arith.constant 80 : index
    %24 = vector.load %arg12[%c0_14, %c80] : memref<128x136xf32, #tpu.memory_space<vmem>>, vector<64x8xf32>
    tpu.vector_store %arg12[%c0_14, %c80], %23 {strides = array<i32>} : memref<128x136xf32, #tpu.memory_space<vmem>>, vector<64x8xf32>,
    %25 = vector.extract_strided_slice %2 {offsets = [704, 0], sizes = [64, 8], strides = [1, 1]} : vector<1088x8xf32> to vector<64x8xf32>
    %c0_15 = arith.constant 0 : index
    %c88 = arith.constant 88 : index
    %26 = vector.load %arg12[%c0_15, %c88] : memref<128x136xf32, #tpu.memory_space<vmem>>, vector<64x8xf32>
    tpu.vector_store %arg12[%c0_15, %c88], %25 {strides = array<i32>} : memref<128x136xf32, #tpu.memory_space<vmem>>, vector<64x8xf32>,
    %27 = vector.extract_strided_slice %2 {offsets = [768, 0], sizes = [64, 8], strides = [1, 1]} : vector<1088x8xf32> to vector<64x8xf32>
    %c0_16 = arith.constant 0 : index
    %c96 = arith.constant 96 : index
    %28 = vector.load %arg12[%c0_16, %c96] : memref<128x136xf32, #tpu.memory_space<vmem>>, vector<64x8xf32>
    tpu.vector_store %arg12[%c0_16, %c96], %27 {strides = array<i32>} : memref<128x136xf32, #tpu.memory_space<vmem>>, vector<64x8xf32>,
    %29 = vector.extract_strided_slice %2 {offsets = [832, 0], sizes = [64, 8], strides = [1, 1]} : vector<1088x8xf32> to vector<64x8xf32>
    %c0_17 = arith.constant 0 : index
    %c104 = arith.constant 104 : index
    %30 = vector.load %arg12[%c0_17, %c104] : memref<128x136xf32, #tpu.memory_space<vmem>>, vector<64x8xf32>
    tpu.vector_store %arg12[%c0_17, %c104], %29 {strides = array<i32>} : memref<128x136xf32, #tpu.memory_space<vmem>>, vector<64x8xf32>,
    %31 = vector.extract_strided_slice %2 {offsets = [896, 0], sizes = [64, 8], strides = [1, 1]} : vector<1088x8xf32> to vector<64x8xf32>
    %c0_18 = arith.constant 0 : index
    %c112 = arith.constant 112 : index
    %32 = vector.load %arg12[%c0_18, %c112] : memref<128x136xf32, #tpu.memory_space<vmem>>, vector<64x8xf32>
    tpu.vector_store %arg12[%c0_18, %c112], %31 {strides = array<i32>} : memref<128x136xf32, #tpu.memory_space<vmem>>, vector<64x8xf32>,
    %33 = vector.extract_strided_slice %2 {offsets = [960, 0], sizes = [64, 8], strides = [1, 1]} : vector<1088x8xf32> to vector<64x8xf32>
    %c0_19 = arith.constant 0 : index
    %c120 = arith.constant 120 : index
    %34 = vector.load %arg12[%c0_19, %c120] : memref<128x136xf32, #tpu.memory_space<vmem>>, vector<64x8xf32>
    tpu.vector_store %arg12[%c0_19, %c120], %33 {strides = array<i32>} : memref<128x136xf32, #tpu.memory_space<vmem>>, vector<64x8xf32>,
    %35 = vector.extract_strided_slice %2 {offsets = [1024, 0], sizes = [64, 8], strides = [1, 1]} : vector<1088x8xf32> to vector<64x8xf32>
    %c0_20 = arith.constant 0 : index
    %c128 = arith.constant 128 : index
    %36 = vector.load %arg12[%c0_20, %c128] : memref<128x136xf32, #tpu.memory_space<vmem>>, vector<64x8xf32>
    tpu.vector_store %arg12[%c0_20, %c128], %35 {strides = array<i32>} : memref<128x136xf32, #tpu.memory_space<vmem>>, vector<64x8xf32>,
    %c1088 = arith.constant 1088 : index
    %c0_21 = arith.constant 0 : index
    %37 = vector.load %arg1[%c1088, %c0_21] : memref<2176x64xbf16, #tpu.memory_space<vmem>>, vector<1088x64xbf16>
    %c64_22 = arith.constant 64 : index
    %c0_23 = arith.constant 0 : index
    %38 = vector.load %arg2[%c64_22, %c0_23] : memref<128x8xbf16, #tpu.memory_space<vmem>>, vector<64x8xbf16>
    %cst_24 = arith.constant dense<0.000000e+00> : vector<1088x8xf32>
    %39 = tpu.matmul %37, %38, %cst_24 {dimension_numbers = #tpu.dot_dimension_numbers<[1], [0], [0], [1], [0, 0, 1, 1], [], []>} : vector<1088x64xbf16>, vector<64x8xbf16>, vector<1088x8xf32> -> vector<1088x8xf32>
    %40 = vector.extract_strided_slice %39 {offsets = [0, 0], sizes = [64, 8], strides = [1, 1]} : vector<1088x8xf32> to vector<64x8xf32>
    %c64_25 = arith.constant 64 : index
    %c0_26 = arith.constant 0 : index
    %41 = vector.load %arg12[%c64_25, %c0_26] : memref<128x136xf32, #tpu.memory_space<vmem>>, vector<64x8xf32>
    tpu.vector_store %arg12[%c64_25, %c0_26], %40 {strides = array<i32>} : memref<128x136xf32, #tpu.memory_space<vmem>>, vector<64x8xf32>,
    %42 = vector.extract_strided_slice %39 {offsets = [64, 0], sizes = [64, 8], strides = [1, 1]} : vector<1088x8xf32> to vector<64x8xf32>
    %c64_27 = arith.constant 64 : index
    %c8_28 = arith.constant 8 : index
    %43 = vector.load %arg12[%c64_27, %c8_28] : memref<128x136xf32, #tpu.memory_space<vmem>>, vector<64x8xf32>
    tpu.vector_store %arg12[%c64_27, %c8_28], %42 {strides = array<i32>} : memref<128x136xf32, #tpu.memory_space<vmem>>, vector<64x8xf32>,
    %44 = vector.extract_strided_slice %39 {offsets = [128, 0], sizes = [64, 8], strides = [1, 1]} : vector<1088x8xf32> to vector<64x8xf32>
    %c64_29 = arith.constant 64 : index
    %c16_30 = arith.constant 16 : index
    %45 = vector.load %arg12[%c64_29, %c16_30] : memref<128x136xf32, #tpu.memory_space<vmem>>, vector<64x8xf32>
    tpu.vector_store %arg12[%c64_29, %c16_30], %44 {strides = array<i32>} : memref<128x136xf32, #tpu.memory_space<vmem>>, vector<64x8xf32>,
    %46 = vector.extract_strided_slice %39 {offsets = [192, 0], sizes = [64, 8], strides = [1, 1]} : vector<1088x8xf32> to vector<64x8xf32>
    %c64_31 = arith.constant 64 : index
    %c24_32 = arith.constant 24 : index
    %47 = vector.load %arg12[%c64_31, %c24_32] : memref<128x136xf32, #tpu.memory_space<vmem>>, vector<64x8xf32>
    tpu.vector_store %arg12[%c64_31, %c24_32], %46 {strides = array<i32>} : memref<128x136xf32, #tpu.memory_space<vmem>>, vector<64x8xf32>,
    %48 = vector.extract_strided_slice %39 {offsets = [256, 0], sizes = [64, 8], strides = [1, 1]} : vector<1088x8xf32> to vector<64x8xf32>
    %c64_33 = arith.constant 64 : index
    %c32_34 = arith.constant 32 : index
    %49 = vector.load %arg12[%c64_33, %c32_34] : memref<128x136xf32, #tpu.memory_space<vmem>>, vector<64x8xf32>
    tpu.vector_store %arg12[%c64_33, %c32_34], %48 {strides = array<i32>} : memref<128x136xf32, #tpu.memory_space<vmem>>, vector<64x8xf32>,
    %50 = vector.extract_strided_slice %39 {offsets = [320, 0], sizes = [64, 8], strides = [1, 1]} : vector<1088x8xf32> to vector<64x8xf32>
    %c64_35 = arith.constant 64 : index
    %c40_36 = arith.constant 40 : index
    %51 = vector.load %arg12[%c64_35, %c40_36] : memref<128x136xf32, #tpu.memory_space<vmem>>, vector<64x8xf32>
    tpu.vector_store %arg12[%c64_35, %c40_36], %50 {strides = array<i32>} : memref<128x136xf32, #tpu.memory_space<vmem>>, vector<64x8xf32>,
    %52 = vector.extract_strided_slice %39 {offsets = [384, 0], sizes = [64, 8], strides = [1, 1]} : vector<1088x8xf32> to vector<64x8xf32>
    %c64_37 = arith.constant 64 : index
    %c48_38 = arith.constant 48 : index
    %53 = vector.load %arg12[%c64_37, %c48_38] : memref<128x136xf32, #tpu.memory_space<vmem>>, vector<64x8xf32>
    tpu.vector_store %arg12[%c64_37, %c48_38], %52 {strides = array<i32>} : memref<128x136xf32, #tpu.memory_space<vmem>>, vector<64x8xf32>,
    %54 = vector.extract_strided_slice %39 {offsets = [448, 0], sizes = [64, 8], strides = [1, 1]} : vector<1088x8xf32> to vector<64x8xf32>
    %c64_39 = arith.constant 64 : index
    %c56_40 = arith.constant 56 : index
    %55 = vector.load %arg12[%c64_39, %c56_40] : memref<128x136xf32, #tpu.memory_space<vmem>>, vector<64x8xf32>
    tpu.vector_store %arg12[%c64_39, %c56_40], %54 {strides = array<i32>} : memref<128x136xf32, #tpu.memory_space<vmem>>, vector<64x8xf32>,
    %56 = vector.extract_strided_slice %39 {offsets = [512, 0], sizes = [64, 8], strides = [1, 1]} : vector<1088x8xf32> to vector<64x8xf32>
    %c64_41 = arith.constant 64 : index
    %c64_42 = arith.constant 64 : index
    %57 = vector.load %arg12[%c64_41, %c64_42] : memref<128x136xf32, #tpu.memory_space<vmem>>, vector<64x8xf32>
    tpu.vector_store %arg12[%c64_41, %c64_42], %56 {strides = array<i32>} : memref<128x136xf32, #tpu.memory_space<vmem>>, vector<64x8xf32>,
    %58 = vector.extract_strided_slice %39 {offsets = [576, 0], sizes = [64, 8], strides = [1, 1]} : vector<1088x8xf32> to vector<64x8xf32>
    %c64_43 = arith.constant 64 : index
    %c72_44 = arith.constant 72 : index
    %59 = vector.load %arg12[%c64_43, %c72_44] : memref<128x136xf32, #tpu.memory_space<vmem>>, vector<64x8xf32>
    tpu.vector_store %arg12[%c64_43, %c72_44], %58 {strides = array<i32>} : memref<128x136xf32, #tpu.memory_space<vmem>>, vector<64x8xf32>,
    %60 = vector.extract_strided_slice %39 {offsets = [640, 0], sizes = [64, 8], strides = [1, 1]} : vector<1088x8xf32> to vector<64x8xf32>
    %c64_45 = arith.constant 64 : index
    %c80_46 = arith.constant 80 : index
    %61 = vector.load %arg12[%c64_45, %c80_46] : memref<128x136xf32, #tpu.memory_space<vmem>>, vector<64x8xf32>
    tpu.vector_store %arg12[%c64_45, %c80_46], %60 {strides = array<i32>} : memref<128x136xf32, #tpu.memory_space<vmem>>, vector<64x8xf32>,
    %62 = vector.extract_strided_slice %39 {offsets = [704, 0], sizes = [64, 8], strides = [1, 1]} : vector<1088x8xf32> to vector<64x8xf32>
    %c64_47 = arith.constant 64 : index
    %c88_48 = arith.constant 88 : index
    %63 = vector.load %arg12[%c64_47, %c88_48] : memref<128x136xf32, #tpu.memory_space<vmem>>, vector<64x8xf32>
    tpu.vector_store %arg12[%c64_47, %c88_48], %62 {strides = array<i32>} : memref<128x136xf32, #tpu.memory_space<vmem>>, vector<64x8xf32>,
    %64 = vector.extract_strided_slice %39 {offsets = [768, 0], sizes = [64, 8], strides = [1, 1]} : vector<1088x8xf32> to vector<64x8xf32>
    %c64_49 = arith.constant 64 : index
    %c96_50 = arith.constant 96 : index
    %65 = vector.load %arg12[%c64_49, %c96_50] : memref<128x136xf32, #tpu.memory_space<vmem>>, vector<64x8xf32>
    tpu.vector_store %arg12[%c64_49, %c96_50], %64 {strides = array<i32>} : memref<128x136xf32, #tpu.memory_space<vmem>>, vector<64x8xf32>,
    %66 = vector.extract_strided_slice %39 {offsets = [832, 0], sizes = [64, 8], strides = [1, 1]} : vector<1088x8xf32> to vector<64x8xf32>
    %c64_51 = arith.constant 64 : index
    %c104_52 = arith.constant 104 : index
    %67 = vector.load %arg12[%c64_51, %c104_52] : memref<128x136xf32, #tpu.memory_space<vmem>>, vector<64x8xf32>
    tpu.vector_store %arg12[%c64_51, %c104_52], %66 {strides = array<i32>} : memref<128x136xf32, #tpu.memory_space<vmem>>, vector<64x8xf32>,
    %68 = vector.extract_strided_slice %39 {offsets = [896, 0], sizes = [64, 8], strides = [1, 1]} : vector<1088x8xf32> to vector<64x8xf32>
    %c64_53 = arith.constant 64 : index
    %c112_54 = arith.constant 112 : index
    %69 = vector.load %arg12[%c64_53, %c112_54] : memref<128x136xf32, #tpu.memory_space<vmem>>, vector<64x8xf32>
    tpu.vector_store %arg12[%c64_53, %c112_54], %68 {strides = array<i32>} : memref<128x136xf32, #tpu.memory_space<vmem>>, vector<64x8xf32>,
    %70 = vector.extract_strided_slice %39 {offsets = [960, 0], sizes = [64, 8], strides = [1, 1]} : vector<1088x8xf32> to vector<64x8xf32>
    %c64_55 = arith.constant 64 : index
    %c120_56 = arith.constant 120 : index
    %71 = vector.load %arg12[%c64_55, %c120_56] : memref<128x136xf32, #tpu.memory_space<vmem>>, vector<64x8xf32>
    tpu.vector_store %arg12[%c64_55, %c120_56], %70 {strides = array<i32>} : memref<128x136xf32, #tpu.memory_space<vmem>>, vector<64x8xf32>,
    %72 = vector.extract_strided_slice %39 {offsets = [1024, 0], sizes = [64, 8], strides = [1, 1]} : vector<1088x8xf32> to vector<64x8xf32>
    %c64_57 = arith.constant 64 : index
    %c128_58 = arith.constant 128 : index
    %73 = vector.load %arg12[%c64_57, %c128_58] : memref<128x136xf32, #tpu.memory_space<vmem>>, vector<64x8xf32>
    tpu.vector_store %arg12[%c64_57, %c128_58], %72 {strides = array<i32>} : memref<128x136xf32, #tpu.memory_space<vmem>>, vector<64x8xf32>,
    %c0_59 = arith.constant 0 : index
    %c0_60 = arith.constant 0 : index
    %74 = vector.load %arg12[%c0_59, %c0_60] : memref<128x136xf32, #tpu.memory_space<vmem>>, vector<128x136xf32>
    %75 = arith.truncf %74 : vector<128x136xf32> to vector<128x136xbf16>
    %c0_61 = arith.constant 0 : index
    %c0_62 = arith.constant 0 : index
    %76 = vector.load %arg3[%c0_61, %c0_62] : memref<136x32xbf16, #tpu.memory_space<vmem>>, vector<136x32xbf16>
    %cst_63 = arith.constant dense<0.000000e+00> : vector<128x32xf32>
    %77 = tpu.matmul %75, %76, %cst_63 {dimension_numbers = #tpu.dot_dimension_numbers<[1], [0], [0], [1], [0, 0, 1, 1], [], []>} : vector<128x136xbf16>, vector<136x32xbf16>, vector<128x32xf32> -> vector<128x32xf32>
    %c0_64 = arith.constant 0 : index
    %c0_65 = arith.constant 0 : index
    %78 = vector.load %arg4[%c0_64, %c0_65] : memref<1x32xf32, #tpu.memory_space<vmem>>, vector<1x32xf32>
    %79 = vector.broadcast %78 : vector<1x32xf32> to vector<128x32xf32>
    %80 = arith.addf %77, %79 : vector<128x32xf32>
    %cst_66 = arith.constant 0.000000e+00 : f32
    %81 = vector.broadcast %cst_66 : f32 to vector<128x32xf32>
    %82 = arith.cmpf ogt, %80, %81 : vector<128x32xf32>
    %cst_67 = arith.constant 0.000000e+00 : f32
    %83 = vector.broadcast %cst_67 : f32 to vector<128x32xf32>
    %84 = arith.minimumf %80, %83 : vector<128x32xf32>
    %85 = math.exp %84 : vector<128x32xf32>
    %cst_68 = arith.constant 1.000000e+00 : f32
    %86 = vector.broadcast %cst_68 : f32 to vector<128x32xf32>
    %87 = arith.subf %85, %86 : vector<128x32xf32>
    %88 = arith.select %82, %80, %87 : vector<128x32xi1>, vector<128x32xf32>
    %89 = arith.truncf %88 : vector<128x32xf32> to vector<128x32xbf16>
    %c0_69 = arith.constant 0 : index
    %c0_70 = arith.constant 0 : index
    %90 = vector.load %arg1[%c0_69, %c0_70] : memref<2176x64xbf16, #tpu.memory_space<vmem>>, vector<1088x64xbf16>
    %91 = vector.extract_strided_slice %89 {offsets = [0, 0], sizes = [64, 32], strides = [1, 1]} : vector<128x32xbf16> to vector<64x32xbf16>
    %cst_71 = arith.constant dense<0.000000e+00> : vector<1088x32xf32>
    %92 = tpu.matmul %90, %91, %cst_71 {dimension_numbers = #tpu.dot_dimension_numbers<[1], [0], [0], [1], [0, 0, 1, 1], [], []>} : vector<1088x64xbf16>, vector<64x32xbf16>, vector<1088x32xf32> -> vector<1088x32xf32>
    %93 = vector.extract_strided_slice %92 {offsets = [0, 0], sizes = [64, 32], strides = [1, 1]} : vector<1088x32xf32> to vector<64x32xf32>
    %c0_72 = arith.constant 0 : index
    %c0_73 = arith.constant 0 : index
    %94 = vector.load %arg13[%c0_72, %c0_73] : memref<128x544xf32, #tpu.memory_space<vmem>>, vector<64x32xf32>
    tpu.vector_store %arg13[%c0_72, %c0_73], %93 {strides = array<i32>} : memref<128x544xf32, #tpu.memory_space<vmem>>, vector<64x32xf32>,
    %95 = vector.extract_strided_slice %92 {offsets = [64, 0], sizes = [64, 32], strides = [1, 1]} : vector<1088x32xf32> to vector<64x32xf32>
    %c0_74 = arith.constant 0 : index
    %c32_75 = arith.constant 32 : index
    %96 = vector.load %arg13[%c0_74, %c32_75] : memref<128x544xf32, #tpu.memory_space<vmem>>, vector<64x32xf32>
    tpu.vector_store %arg13[%c0_74, %c32_75], %95 {strides = array<i32>} : memref<128x544xf32, #tpu.memory_space<vmem>>, vector<64x32xf32>,
    %97 = vector.extract_strided_slice %92 {offsets = [128, 0], sizes = [64, 32], strides = [1, 1]} : vector<1088x32xf32> to vector<64x32xf32>
    %c0_76 = arith.constant 0 : index
    %c64_77 = arith.constant 64 : index
    %98 = vector.load %arg13[%c0_76, %c64_77] : memref<128x544xf32, #tpu.memory_space<vmem>>, vector<64x32xf32>
    tpu.vector_store %arg13[%c0_76, %c64_77], %97 {strides = array<i32>} : memref<128x544xf32, #tpu.memory_space<vmem>>, vector<64x32xf32>,
    %99 = vector.extract_strided_slice %92 {offsets = [192, 0], sizes = [64, 32], strides = [1, 1]} : vector<1088x32xf32> to vector<64x32xf32>
    %c0_78 = arith.constant 0 : index
    %c96_79 = arith.constant 96 : index
    %100 = vector.load %arg13[%c0_78, %c96_79] : memref<128x544xf32, #tpu.memory_space<vmem>>, vector<64x32xf32>
    tpu.vector_store %arg13[%c0_78, %c96_79], %99 {strides = array<i32>} : memref<128x544xf32, #tpu.memory_space<vmem>>, vector<64x32xf32>,
    %101 = vector.extract_strided_slice %92 {offsets = [256, 0], sizes = [64, 32], strides = [1, 1]} : vector<1088x32xf32> to vector<64x32xf32>
    %c0_80 = arith.constant 0 : index
    %c128_81 = arith.constant 128 : index
    %102 = vector.load %arg13[%c0_80, %c128_81] : memref<128x544xf32, #tpu.memory_space<vmem>>, vector<64x32xf32>
    tpu.vector_store %arg13[%c0_80, %c128_81], %101 {strides = array<i32>} : memref<128x544xf32, #tpu.memory_space<vmem>>, vector<64x32xf32>,
    %103 = vector.extract_strided_slice %92 {offsets = [320, 0], sizes = [64, 32], strides = [1, 1]} : vector<1088x32xf32> to vector<64x32xf32>
    %c0_82 = arith.constant 0 : index
    %c160 = arith.constant 160 : index
    %104 = vector.load %arg13[%c0_82, %c160] : memref<128x544xf32, #tpu.memory_space<vmem>>, vector<64x32xf32>
    tpu.vector_store %arg13[%c0_82, %c160], %103 {strides = array<i32>} : memref<128x544xf32, #tpu.memory_space<vmem>>, vector<64x32xf32>,
    %105 = vector.extract_strided_slice %92 {offsets = [384, 0], sizes = [64, 32], strides = [1, 1]} : vector<1088x32xf32> to vector<64x32xf32>
    %c0_83 = arith.constant 0 : index
    %c192 = arith.constant 192 : index
    %106 = vector.load %arg13[%c0_83, %c192] : memref<128x544xf32, #tpu.memory_space<vmem>>, vector<64x32xf32>
    tpu.vector_store %arg13[%c0_83, %c192], %105 {strides = array<i32>} : memref<128x544xf32, #tpu.memory_space<vmem>>, vector<64x32xf32>,
    %107 = vector.extract_strided_slice %92 {offsets = [448, 0], sizes = [64, 32], strides = [1, 1]} : vector<1088x32xf32> to vector<64x32xf32>
    %c0_84 = arith.constant 0 : index
    %c224 = arith.constant 224 : index
    %108 = vector.load %arg13[%c0_84, %c224] : memref<128x544xf32, #tpu.memory_space<vmem>>, vector<64x32xf32>
    tpu.vector_store %arg13[%c0_84, %c224], %107 {strides = array<i32>} : memref<128x544xf32, #tpu.memory_space<vmem>>, vector<64x32xf32>,
    %109 = vector.extract_strided_slice %92 {offsets = [512, 0], sizes = [64, 32], strides = [1, 1]} : vector<1088x32xf32> to vector<64x32xf32>
    %c0_85 = arith.constant 0 : index
    %c256 = arith.constant 256 : index
    %110 = vector.load %arg13[%c0_85, %c256] : memref<128x544xf32, #tpu.memory_space<vmem>>, vector<64x32xf32>
    tpu.vector_store %arg13[%c0_85, %c256], %109 {strides = array<i32>} : memref<128x544xf32, #tpu.memory_space<vmem>>, vector<64x32xf32>,
    %111 = vector.extract_strided_slice %92 {offsets = [576, 0], sizes = [64, 32], strides = [1, 1]} : vector<1088x32xf32> to vector<64x32xf32>
    %c0_86 = arith.constant 0 : index
    %c288 = arith.constant 288 : index
    %112 = vector.load %arg13[%c0_86, %c288] : memref<128x544xf32, #tpu.memory_space<vmem>>, vector<64x32xf32>
    tpu.vector_store %arg13[%c0_86, %c288], %111 {strides = array<i32>} : memref<128x544xf32, #tpu.memory_space<vmem>>, vector<64x32xf32>,
    %113 = vector.extract_strided_slice %92 {offsets = [640, 0], sizes = [64, 32], strides = [1, 1]} : vector<1088x32xf32> to vector<64x32xf32>
    %c0_87 = arith.constant 0 : index
    %c320 = arith.constant 320 : index
    %114 = vector.load %arg13[%c0_87, %c320] : memref<128x544xf32, #tpu.memory_space<vmem>>, vector<64x32xf32>
    tpu.vector_store %arg13[%c0_87, %c320], %113 {strides = array<i32>} : memref<128x544xf32, #tpu.memory_space<vmem>>, vector<64x32xf32>,
    %115 = vector.extract_strided_slice %92 {offsets = [704, 0], sizes = [64, 32], strides = [1, 1]} : vector<1088x32xf32> to vector<64x32xf32>
    %c0_88 = arith.constant 0 : index
    %c352 = arith.constant 352 : index
    %116 = vector.load %arg13[%c0_88, %c352] : memref<128x544xf32, #tpu.memory_space<vmem>>, vector<64x32xf32>
    tpu.vector_store %arg13[%c0_88, %c352], %115 {strides = array<i32>} : memref<128x544xf32, #tpu.memory_space<vmem>>, vector<64x32xf32>,
    %117 = vector.extract_strided_slice %92 {offsets = [768, 0], sizes = [64, 32], strides = [1, 1]} : vector<1088x32xf32> to vector<64x32xf32>
    %c0_89 = arith.constant 0 : index
    %c384 = arith.constant 384 : index
    %118 = vector.load %arg13[%c0_89, %c384] : memref<128x544xf32, #tpu.memory_space<vmem>>, vector<64x32xf32>
    tpu.vector_store %arg13[%c0_89, %c384], %117 {strides = array<i32>} : memref<128x544xf32, #tpu.memory_space<vmem>>, vector<64x32xf32>,
    %119 = vector.extract_strided_slice %92 {offsets = [832, 0], sizes = [64, 32], strides = [1, 1]} : vector<1088x32xf32> to vector<64x32xf32>
    %c0_90 = arith.constant 0 : index
    %c416 = arith.constant 416 : index
    %120 = vector.load %arg13[%c0_90, %c416] : memref<128x544xf32, #tpu.memory_space<vmem>>, vector<64x32xf32>
    tpu.vector_store %arg13[%c0_90, %c416], %119 {strides = array<i32>} : memref<128x544xf32, #tpu.memory_space<vmem>>, vector<64x32xf32>,
    %121 = vector.extract_strided_slice %92 {offsets = [896, 0], sizes = [64, 32], strides = [1, 1]} : vector<1088x32xf32> to vector<64x32xf32>
    %c0_91 = arith.constant 0 : index
    %c448 = arith.constant 448 : index
    %122 = vector.load %arg13[%c0_91, %c448] : memref<128x544xf32, #tpu.memory_space<vmem>>, vector<64x32xf32>
    tpu.vector_store %arg13[%c0_91, %c448], %121 {strides = array<i32>} : memref<128x544xf32, #tpu.memory_space<vmem>>, vector<64x32xf32>,
    %123 = vector.extract_strided_slice %92 {offsets = [960, 0], sizes = [64, 32], strides = [1, 1]} : vector<1088x32xf32> to vector<64x32xf32>
    %c0_92 = arith.constant 0 : index
    %c480 = arith.constant 480 : index
    %124 = vector.load %arg13[%c0_92, %c480] : memref<128x544xf32, #tpu.memory_space<vmem>>, vector<64x32xf32>
    tpu.vector_store %arg13[%c0_92, %c480], %123 {strides = array<i32>} : memref<128x544xf32, #tpu.memory_space<vmem>>, vector<64x32xf32>,
    %125 = vector.extract_strided_slice %92 {offsets = [1024, 0], sizes = [64, 32], strides = [1, 1]} : vector<1088x32xf32> to vector<64x32xf32>
    %c0_93 = arith.constant 0 : index
    %c512 = arith.constant 512 : index
    %126 = vector.load %arg13[%c0_93, %c512] : memref<128x544xf32, #tpu.memory_space<vmem>>, vector<64x32xf32>
    tpu.vector_store %arg13[%c0_93, %c512], %125 {strides = array<i32>} : memref<128x544xf32, #tpu.memory_space<vmem>>, vector<64x32xf32>,
    %c1088_94 = arith.constant 1088 : index
    %c0_95 = arith.constant 0 : index
    %127 = vector.load %arg1[%c1088_94, %c0_95] : memref<2176x64xbf16, #tpu.memory_space<vmem>>, vector<1088x64xbf16>
    %128 = vector.extract_strided_slice %89 {offsets = [64, 0], sizes = [64, 32], strides = [1, 1]} : vector<128x32xbf16> to vector<64x32xbf16>
    %cst_96 = arith.constant dense<0.000000e+00> : vector<1088x32xf32>
    %129 = tpu.matmul %127, %128, %cst_96 {dimension_numbers = #tpu.dot_dimension_numbers<[1], [0], [0], [1], [0, 0, 1, 1], [], []>} : vector<1088x64xbf16>, vector<64x32xbf16>, vector<1088x32xf32> -> vector<1088x32xf32>
    %130 = vector.extract_strided_slice %129 {offsets = [0, 0], sizes = [64, 32], strides = [1, 1]} : vector<1088x32xf32> to vector<64x32xf32>
    %c64_97 = arith.constant 64 : index
    %c0_98 = arith.constant 0 : index
    %131 = vector.load %arg13[%c64_97, %c0_98] : memref<128x544xf32, #tpu.memory_space<vmem>>, vector<64x32xf32>
    tpu.vector_store %arg13[%c64_97, %c0_98], %130 {strides = array<i32>} : memref<128x544xf32, #tpu.memory_space<vmem>>, vector<64x32xf32>,
    %132 = vector.extract_strided_slice %129 {offsets = [64, 0], sizes = [64, 32], strides = [1, 1]} : vector<1088x32xf32> to vector<64x32xf32>
    %c64_99 = arith.constant 64 : index
    %c32_100 = arith.constant 32 : index
    %133 = vector.load %arg13[%c64_99, %c32_100] : memref<128x544xf32, #tpu.memory_space<vmem>>, vector<64x32xf32>
    tpu.vector_store %arg13[%c64_99, %c32_100], %132 {strides = array<i32>} : memref<128x544xf32, #tpu.memory_space<vmem>>, vector<64x32xf32>,
    %134 = vector.extract_strided_slice %129 {offsets = [128, 0], sizes = [64, 32], strides = [1, 1]} : vector<1088x32xf32> to vector<64x32xf32>
    %c64_101 = arith.constant 64 : index
    %c64_102 = arith.constant 64 : index
    %135 = vector.load %arg13[%c64_101, %c64_102] : memref<128x544xf32, #tpu.memory_space<vmem>>, vector<64x32xf32>
    tpu.vector_store %arg13[%c64_101, %c64_102], %134 {strides = array<i32>} : memref<128x544xf32, #tpu.memory_space<vmem>>, vector<64x32xf32>,
    %136 = vector.extract_strided_slice %129 {offsets = [192, 0], sizes = [64, 32], strides = [1, 1]} : vector<1088x32xf32> to vector<64x32xf32>
    %c64_103 = arith.constant 64 : index
    %c96_104 = arith.constant 96 : index
    %137 = vector.load %arg13[%c64_103, %c96_104] : memref<128x544xf32, #tpu.memory_space<vmem>>, vector<64x32xf32>
    tpu.vector_store %arg13[%c64_103, %c96_104], %136 {strides = array<i32>} : memref<128x544xf32, #tpu.memory_space<vmem>>, vector<64x32xf32>,
    %138 = vector.extract_strided_slice %129 {offsets = [256, 0], sizes = [64, 32], strides = [1, 1]} : vector<1088x32xf32> to vector<64x32xf32>
    %c64_105 = arith.constant 64 : index
    %c128_106 = arith.constant 128 : index
    %139 = vector.load %arg13[%c64_105, %c128_106] : memref<128x544xf32, #tpu.memory_space<vmem>>, vector<64x32xf32>
    tpu.vector_store %arg13[%c64_105, %c128_106], %138 {strides = array<i32>} : memref<128x544xf32, #tpu.memory_space<vmem>>, vector<64x32xf32>,
    %140 = vector.extract_strided_slice %129 {offsets = [320, 0], sizes = [64, 32], strides = [1, 1]} : vector<1088x32xf32> to vector<64x32xf32>
    %c64_107 = arith.constant 64 : index
    %c160_108 = arith.constant 160 : index
    %141 = vector.load %arg13[%c64_107, %c160_108] : memref<128x544xf32, #tpu.memory_space<vmem>>, vector<64x32xf32>
    tpu.vector_store %arg13[%c64_107, %c160_108], %140 {strides = array<i32>} : memref<128x544xf32, #tpu.memory_space<vmem>>, vector<64x32xf32>,
    %142 = vector.extract_strided_slice %129 {offsets = [384, 0], sizes = [64, 32], strides = [1, 1]} : vector<1088x32xf32> to vector<64x32xf32>
    %c64_109 = arith.constant 64 : index
    %c192_110 = arith.constant 192 : index
    %143 = vector.load %arg13[%c64_109, %c192_110] : memref<128x544xf32, #tpu.memory_space<vmem>>, vector<64x32xf32>
    tpu.vector_store %arg13[%c64_109, %c192_110], %142 {strides = array<i32>} : memref<128x544xf32, #tpu.memory_space<vmem>>, vector<64x32xf32>,
    %144 = vector.extract_strided_slice %129 {offsets = [448, 0], sizes = [64, 32], strides = [1, 1]} : vector<1088x32xf32> to vector<64x32xf32>
    %c64_111 = arith.constant 64 : index
    %c224_112 = arith.constant 224 : index
    %145 = vector.load %arg13[%c64_111, %c224_112] : memref<128x544xf32, #tpu.memory_space<vmem>>, vector<64x32xf32>
    tpu.vector_store %arg13[%c64_111, %c224_112], %144 {strides = array<i32>} : memref<128x544xf32, #tpu.memory_space<vmem>>, vector<64x32xf32>,
    %146 = vector.extract_strided_slice %129 {offsets = [512, 0], sizes = [64, 32], strides = [1, 1]} : vector<1088x32xf32> to vector<64x32xf32>
    %c64_113 = arith.constant 64 : index
    %c256_114 = arith.constant 256 : index
    %147 = vector.load %arg13[%c64_113, %c256_114] : memref<128x544xf32, #tpu.memory_space<vmem>>, vector<64x32xf32>
    tpu.vector_store %arg13[%c64_113, %c256_114], %146 {strides = array<i32>} : memref<128x544xf32, #tpu.memory_space<vmem>>, vector<64x32xf32>,
    %148 = vector.extract_strided_slice %129 {offsets = [576, 0], sizes = [64, 32], strides = [1, 1]} : vector<1088x32xf32> to vector<64x32xf32>
    %c64_115 = arith.constant 64 : index
    %c288_116 = arith.constant 288 : index
    %149 = vector.load %arg13[%c64_115, %c288_116] : memref<128x544xf32, #tpu.memory_space<vmem>>, vector<64x32xf32>
    tpu.vector_store %arg13[%c64_115, %c288_116], %148 {strides = array<i32>} : memref<128x544xf32, #tpu.memory_space<vmem>>, vector<64x32xf32>,
    %150 = vector.extract_strided_slice %129 {offsets = [640, 0], sizes = [64, 32], strides = [1, 1]} : vector<1088x32xf32> to vector<64x32xf32>
    %c64_117 = arith.constant 64 : index
    %c320_118 = arith.constant 320 : index
    %151 = vector.load %arg13[%c64_117, %c320_118] : memref<128x544xf32, #tpu.memory_space<vmem>>, vector<64x32xf32>
    tpu.vector_store %arg13[%c64_117, %c320_118], %150 {strides = array<i32>} : memref<128x544xf32, #tpu.memory_space<vmem>>, vector<64x32xf32>,
    %152 = vector.extract_strided_slice %129 {offsets = [704, 0], sizes = [64, 32], strides = [1, 1]} : vector<1088x32xf32> to vector<64x32xf32>
    %c64_119 = arith.constant 64 : index
    %c352_120 = arith.constant 352 : index
    %153 = vector.load %arg13[%c64_119, %c352_120] : memref<128x544xf32, #tpu.memory_space<vmem>>, vector<64x32xf32>
    tpu.vector_store %arg13[%c64_119, %c352_120], %152 {strides = array<i32>} : memref<128x544xf32, #tpu.memory_space<vmem>>, vector<64x32xf32>,
    %154 = vector.extract_strided_slice %129 {offsets = [768, 0], sizes = [64, 32], strides = [1, 1]} : vector<1088x32xf32> to vector<64x32xf32>
    %c64_121 = arith.constant 64 : index
    %c384_122 = arith.constant 384 : index
    %155 = vector.load %arg13[%c64_121, %c384_122] : memref<128x544xf32, #tpu.memory_space<vmem>>, vector<64x32xf32>
    tpu.vector_store %arg13[%c64_121, %c384_122], %154 {strides = array<i32>} : memref<128x544xf32, #tpu.memory_space<vmem>>, vector<64x32xf32>,
    %156 = vector.extract_strided_slice %129 {offsets = [832, 0], sizes = [64, 32], strides = [1, 1]} : vector<1088x32xf32> to vector<64x32xf32>
    %c64_123 = arith.constant 64 : index
    %c416_124 = arith.constant 416 : index
    %157 = vector.load %arg13[%c64_123, %c416_124] : memref<128x544xf32, #tpu.memory_space<vmem>>, vector<64x32xf32>
    tpu.vector_store %arg13[%c64_123, %c416_124], %156 {strides = array<i32>} : memref<128x544xf32, #tpu.memory_space<vmem>>, vector<64x32xf32>,
    %158 = vector.extract_strided_slice %129 {offsets = [896, 0], sizes = [64, 32], strides = [1, 1]} : vector<1088x32xf32> to vector<64x32xf32>
    %c64_125 = arith.constant 64 : index
    %c448_126 = arith.constant 448 : index
    %159 = vector.load %arg13[%c64_125, %c448_126] : memref<128x544xf32, #tpu.memory_space<vmem>>, vector<64x32xf32>
    tpu.vector_store %arg13[%c64_125, %c448_126], %158 {strides = array<i32>} : memref<128x544xf32, #tpu.memory_space<vmem>>, vector<64x32xf32>,
    %160 = vector.extract_strided_slice %129 {offsets = [960, 0], sizes = [64, 32], strides = [1, 1]} : vector<1088x32xf32> to vector<64x32xf32>
    %c64_127 = arith.constant 64 : index
    %c480_128 = arith.constant 480 : index
    %161 = vector.load %arg13[%c64_127, %c480_128] : memref<128x544xf32, #tpu.memory_space<vmem>>, vector<64x32xf32>
    tpu.vector_store %arg13[%c64_127, %c480_128], %160 {strides = array<i32>} : memref<128x544xf32, #tpu.memory_space<vmem>>, vector<64x32xf32>,
    %162 = vector.extract_strided_slice %129 {offsets = [1024, 0], sizes = [64, 32], strides = [1, 1]} : vector<1088x32xf32> to vector<64x32xf32>
    %c64_129 = arith.constant 64 : index
    %c512_130 = arith.constant 512 : index
    %163 = vector.load %arg13[%c64_129, %c512_130] : memref<128x544xf32, #tpu.memory_space<vmem>>, vector<64x32xf32>
    tpu.vector_store %arg13[%c64_129, %c512_130], %162 {strides = array<i32>} : memref<128x544xf32, #tpu.memory_space<vmem>>, vector<64x32xf32>,
    %c0_131 = arith.constant 0 : index
    %c0_132 = arith.constant 0 : index
    %164 = vector.load %arg13[%c0_131, %c0_132] : memref<128x544xf32, #tpu.memory_space<vmem>>, vector<128x544xf32>
    %165 = arith.truncf %164 : vector<128x544xf32> to vector<128x544xbf16>
    %c0_133 = arith.constant 0 : index
    %c0_134 = arith.constant 0 : index
    %166 = vector.load %arg5[%c0_133, %c0_134] : memref<544x64xbf16, #tpu.memory_space<vmem>>, vector<544x64xbf16>
    %cst_135 = arith.constant dense<0.000000e+00> : vector<128x64xf32>
    %167 = tpu.matmul %165, %166, %cst_135 {dimension_numbers = #tpu.dot_dimension_numbers<[1], [0], [0], [1], [0, 0, 1, 1], [], []>} : vector<128x544xbf16>, vector<544x64xbf16>, vector<128x64xf32> -> vector<128x64xf32>
    %c0_136 = arith.constant 0 : index
    %c0_137 = arith.constant 0 : index
    %168 = vector.load %arg6[%c0_136, %c0_137] : memref<1x64xf32, #tpu.memory_space<vmem>>, vector<1x64xf32>
    %169 = vector.broadcast %168 : vector<1x64xf32> to vector<128x64xf32>
    %170 = arith.addf %167, %169 : vector<128x64xf32>
    %cst_138 = arith.constant 0.000000e+00 : f32
    %171 = vector.broadcast %cst_138 : f32 to vector<128x64xf32>
    %172 = arith.cmpf ogt, %170, %171 : vector<128x64xf32>
    %cst_139 = arith.constant 0.000000e+00 : f32
    %173 = vector.broadcast %cst_139 : f32 to vector<128x64xf32>
    %174 = arith.minimumf %170, %173 : vector<128x64xf32>
    %175 = math.exp %174 : vector<128x64xf32>
    %cst_140 = arith.constant 1.000000e+00 : f32
    %176 = vector.broadcast %cst_140 : f32 to vector<128x64xf32>
    %177 = arith.subf %175, %176 : vector<128x64xf32>
    %178 = arith.select %172, %170, %177 : vector<128x64xi1>, vector<128x64xf32>
    %179 = arith.truncf %178 : vector<128x64xf32> to vector<128x64xbf16>
    %c0_141 = arith.constant 0 : index
    %c0_142 = arith.constant 0 : index
    %180 = vector.load %arg7[%c0_141, %c0_142] : memref<64x128xbf16, #tpu.memory_space<vmem>>, vector<64x128xbf16>
    %cst_143 = arith.constant dense<0.000000e+00> : vector<128x128xf32>
    %181 = tpu.matmul %179, %180, %cst_143 {dimension_numbers = #tpu.dot_dimension_numbers<[1], [0], [0], [1], [0, 0, 1, 1], [], []>} : vector<128x64xbf16>, vector<64x128xbf16>, vector<128x128xf32> -> vector<128x128xf32>
    %c0_144 = arith.constant 0 : index
    %c0_145 = arith.constant 0 : index
    %182 = vector.load %arg8[%c0_144, %c0_145] : memref<1x128xf32, #tpu.memory_space<vmem>>, vector<1x128xf32>
    %183 = vector.broadcast %182 : vector<1x128xf32> to vector<128x128xf32>
    %184 = arith.addf %181, %183 : vector<128x128xf32>
    %cst_146 = arith.constant 0.000000e+00 : f32
    %185 = vector.broadcast %cst_146 : f32 to vector<128x128xf32>
    %186 = arith.cmpf ogt, %184, %185 : vector<128x128xf32>
    %cst_147 = arith.constant 0.000000e+00 : f32
    %187 = vector.broadcast %cst_147 : f32 to vector<128x128xf32>
    %188 = arith.minimumf %184, %187 : vector<128x128xf32>
    %189 = math.exp %188 : vector<128x128xf32>
    %cst_148 = arith.constant 1.000000e+00 : f32
    %190 = vector.broadcast %cst_148 : f32 to vector<128x128xf32>
    %191 = arith.subf %189, %190 : vector<128x128xf32>
    %192 = arith.select %186, %184, %191 : vector<128x128xi1>, vector<128x128xf32>
    %193 = arith.truncf %192 : vector<128x128xf32> to vector<128x128xbf16>
    %c0_149 = arith.constant 0 : index
    %c0_150 = arith.constant 0 : index
    %194 = vector.load %arg9[%c0_149, %c0_150] : memref<128x128xbf16, #tpu.memory_space<vmem>>, vector<128x128xbf16>
    %cst_151 = arith.constant dense<0.000000e+00> : vector<128x128xf32>
    %195 = tpu.matmul %193, %194, %cst_151 {dimension_numbers = #tpu.dot_dimension_numbers<[1], [0], [0], [1], [0, 0, 1, 1], [], []>} : vector<128x128xbf16>, vector<128x128xbf16>, vector<128x128xf32> -> vector<128x128xf32>
    %c0_152 = arith.constant 0 : index
    %c0_153 = arith.constant 0 : index
    %196 = vector.load %arg10[%c0_152, %c0_153] : memref<1x128xf32, #tpu.memory_space<vmem>>, vector<1x128xf32>
    %197 = vector.broadcast %196 : vector<1x128xf32> to vector<128x128xf32>
    %198 = arith.addf %195, %197 : vector<128x128xf32>
    %c0_154 = arith.constant 0 : index
    %c0_155 = arith.constant 0 : index
    %199 = vector.load %arg11[%c0_154, %c0_155] : memref<128x128xf32, #tpu.memory_space<vmem>>, vector<128x128xf32>
    tpu.vector_store %arg11[%c0_154, %c0_155], %198 {strides = array<i32>} : memref<128x128xf32, #tpu.memory_space<vmem>>, vector<128x128xf32>,
    return
  }
  func.func @transform_0(%arg0: i32) -> (i32, i32) {
    %c0_i32 = arith.constant 0 : i32
    %c0_i32_0 = arith.constant 0 : i32
    return %arg0, %c0_i32 : i32, i32
  }
  func.func @transform_1(%arg0: i32) -> (i32, i32) {
    %c0_i32 = arith.constant 0 : i32
    %c0_i32_0 = arith.constant 0 : i32
    return %arg0, %c0_i32 : i32, i32
  }
  func.func @transform_2(%arg0: i32) -> (i32, i32) {
    %c0_i32 = arith.constant 0 : i32
    %c0_i32_0 = arith.constant 0 : i32
    %c0_i32_1 = arith.constant 0 : i32
    return %c0_i32, %c0_i32_0 : i32, i32
  }
  func.func @transform_3(%arg0: i32) -> (i32, i32) {
    %c0_i32 = arith.constant 0 : i32
    %c0_i32_0 = arith.constant 0 : i32
    %c0_i32_1 = arith.constant 0 : i32
    return %c0_i32, %c0_i32_0 : i32, i32
  }
  func.func @transform_4(%arg0: i32) -> (i32, i32) {
    %c0_i32 = arith.constant 0 : i32
    %c0_i32_0 = arith.constant 0 : i32
    %c0_i32_1 = arith.constant 0 : i32
    return %c0_i32, %c0_i32_0 : i32, i32
  }
  func.func @transform_5(%arg0: i32) -> (i32, i32) {
    %c0_i32 = arith.constant 0 : i32
    %c0_i32_0 = arith.constant 0 : i32
    %c0_i32_1 = arith.constant 0 : i32
    return %c0_i32, %c0_i32_0 : i32, i32
  }
  func.func @transform_6(%arg0: i32) -> (i32, i32) {
    %c0_i32 = arith.constant 0 : i32
    %c0_i32_0 = arith.constant 0 : i32
    %c0_i32_1 = arith.constant 0 : i32
    return %c0_i32, %c0_i32_0 : i32, i32
  }
  func.func @transform_7(%arg0: i32) -> (i32, i32) {
    %c0_i32 = arith.constant 0 : i32
    %c0_i32_0 = arith.constant 0 : i32
    %c0_i32_1 = arith.constant 0 : i32
    return %c0_i32, %c0_i32_0 : i32, i32
  }
  func.func @transform_8(%arg0: i32) -> (i32, i32) {
    %c0_i32 = arith.constant 0 : i32
    %c0_i32_0 = arith.constant 0 : i32
    %c0_i32_1 = arith.constant 0 : i32
    return %c0_i32, %c0_i32_0 : i32, i32
  }
  func.func @transform_9(%arg0: i32) -> (i32, i32) {
    %c0_i32 = arith.constant 0 : i32
    %c0_i32_0 = arith.constant 0 : i32
    %c0_i32_1 = arith.constant 0 : i32
    return %c0_i32, %c0_i32_0 : i32, i32
  }
  func.func @transform_10(%arg0: i32) -> (i32, i32) {
    %c0_i32 = arith.constant 0 : i32
    %c0_i32_0 = arith.constant 0 : i32
    return %arg0, %c0_i32 : i32, i32
  }
}

</mosaic_0001>

<bundles_post_ra>
// kernel: tpu_custom_call.1
= control target key start
LH: loop header
LB: loop body
LE: loop exit
PB: predicated region body
PF: predicated region fallthrough
CT: control target
= control target key end

     0   :  { %vm545_vm0 = vcmask 523264   ;;  %vm1327_vm1 = vcmask 64512   ;;  %s11324_s26 = smov 8   ;;  %s11325_s22 = smov 16   ;;  %s14584_s0 = inlined_call_operand.vmem [shape: bf16[2176,64], index: 0, kind: input, shape index: {}]   ;;  %s14585_s1 = inlined_call_operand.vmem [shape: bf16[128,8], index: 1, kind: input, shape index: {}]   ;;  %s14586_s2 = inlined_call_operand.vmem [shape: bf16[136,32], index: 2, kind: input, shape index: {}]   ;;  %s14587_s3 = inlined_call_operand.vmem [shape: f32[1,32], index: 3, kind: input, shape index: {}]   ;;  %s14588_s4 = inlined_call_operand.vmem [shape: bf16[544,64], index: 4, kind: input, shape index: {}]   ;;  %s14589_s5 = inlined_call_operand.vmem [shape: f32[1,64], index: 5, kind: input, shape index: {}]   ;;  %s14590_s6 = inlined_call_operand.vmem [shape: bf16[64,128], index: 6, kind: input, shape index: {}]   ;;  %s14591_s7 = inlined_call_operand.vmem [shape: f32[1,128], index: 7, kind: input, shape index: {}]   ;;  %s14592_s8 = inlined_call_operand.vmem [shape: bf16[128,128], index: 8, kind: input, shape index: {}]   ;;  %s14593_s9 = inlined_call_operand.vmem [shape: f32[1,128], index: 9, kind: input, shape index: {}]   ;;  %s14594_s10 = inlined_call_operand.hbm [shape: f32[128,128], index: 10, kind: output, shape index: {}]  }
   0x1   :  { %v10871_v0 = vld [vmem:[%s14585_s1 + $0x18] sm:$0xff]   ;;  %v10872_v1 = vld [vmem:[%s14585_s1 + $0x10] sm:$0xff]   ;;  %v10873_v2 = vld [vmem:[%s14585_s1 + $0x8] sm:$0xff]  }
   0x2   :  { %10193 = vmatprep.subr.bf16.mxu0 %v10871_v0  ;;  %10845 = vmatprep.subr.bf16.mxu1 %v10871_v0  ;;  %v10875_v3 = vld [vmem:[%s14584_s0] sm:$0xff]   ;;  %v10876_v6 = vld [vmem:[%s14584_s0 + $0x8] sm:$0xff]   ;;  %v10879_v7 = vld [vmem:[%s14585_s1 + $0x38] sm:$0xff]  }
   0x3   :  { %10194 = vmatpush3.bf16.msra.mxu0 %v10871_v0  ;;  %10849 = vmatpush3.bf16.msra.mxu1 %v10871_v0  ;;  %v10877_v4 = vld [vmem:[%s14584_s0 + $0x200] sm:$0xff]   ;;  %v10878_v8 = vld [vmem:[%s14584_s0 + $0x208] sm:$0xff]   ;;  %v10880_v9 = vld [vmem:[%s14585_s1 + $0x30] sm:$0xff]  }
   0x4   :  { %10195 = vmatprep.subr.bf16.mxu0 %v10872_v1  ;;  %10846 = vmatprep.subr.bf16.mxu1 %v10872_v1  ;;  %v10874_v5 = vld [vmem:[%s14585_s1] sm:$0xff]   ;;  %v10881_v10 = vld [vmem:[%s14584_s0 + $0x10] sm:$0xff]   ;;  %v10882_v12 = vld [vmem:[%s14584_s0 + $0x18] sm:$0xff]  }
   0x5   :  { %10201 = vmatprep.mubr.msk.bf16.mxu0 %vm545_vm0, %v10875_v3  ;;  %10329 = vmatprep.mubr.msk.bf16.mxu1 %vm545_vm0, %v10877_v4  ;;  %v10883_v11 = vld [vmem:[%s14584_s0 + $0x210] sm:$0xff]   ;;  %v10885_v13 = vld [vmem:[%s14585_s1 + $0x28] sm:$0xff]   ;;  %v10884_v14 = vld [vmem:[%s14584_s0 + $0x218] sm:$0xff]  }
   0x6   :  { %v10886_v15 = vld [vmem:[%s14585_s1 + $0x20] sm:$0xff]   ;;  %v10888_v18 = vld [vmem:[%s14584_s0 + $0x28] sm:$0xff]   ;;  %v10891_v20 = vld [vmem:[%s14584_s0 + $0x30] sm:$0xff]  }
   0x7   :  { %10196 = vmatpush3.bf16.msra.mxu0 %v10872_v1  ;;  %10850 = vmatpush3.bf16.msra.mxu1 %v10872_v1  ;;  %v10887_v16 = vld [vmem:[%s14584_s0 + $0x20] sm:$0xff]   ;;  %v10890_v19 = vld [vmem:[%s14584_s0 + $0x228] sm:$0xff]   ;;  %v10893_v21 = vld [vmem:[%s14584_s0 + $0x230] sm:$0xff]  }
   0x8   :  { %10197 = vmatprep.subr.bf16.mxu0 %v10873_v2  ;;  %10847 = vmatprep.subr.bf16.mxu1 %v10873_v2  ;;  %v10889_v17 = vld [vmem:[%s14584_s0 + $0x220] sm:$0xff]   ;;  %v10892_v22 = vld [vmem:[%s14584_s0 + $0x38] sm:$0xff]   ;;  %v10896_v26 = vld [vmem:[%s14584_s0 + $0x48] sm:$0xff]  }
   0x9   :  { %v10894_v23 = vld [vmem:[%s14584_s0 + $0x238] sm:$0xff]   ;;  %v10895_v24 = vld [vmem:[%s14584_s0 + $0x40] sm:$0xff]   ;;  %v10898_v27 = vld [vmem:[%s14584_s0 + $0x248] sm:$0xff]  }
   0xa   :  { %v10897_v25 = vld [vmem:[%s14584_s0 + $0x240] sm:$0xff]   ;;  %v10899_v28 = vld [vmem:[%s14584_s0 + $0x50] sm:$0xff]   ;;  %v10900_v30 = vld [vmem:[%s14584_s0 + $0x58] sm:$0xff]  }
   0xb   :  { %10198 = vmatpush3.bf16.msra.mxu0 %v10873_v2  ;;  %10851 = vmatpush3.bf16.msra.mxu1 %v10873_v2  ;;  %v10903_v29 = vld [vmem:[%s14584_s0 + $0x250] sm:$0xff]   ;;  %v10901_v31 = vld [vmem:[%s14584_s0 + $0x60] sm:$0xff]   ;;  %v10904_v32 = vld [vmem:[%s14584_s0 + $0x258] sm:$0xff]  }
   0xc   :  { %10199 = vmatprep.subr.bf16.mxu0 %v10874_v5  ;;  %10848 = vmatprep.subr.bf16.mxu1 %v10874_v5  ;;  %v10909_v33 = vld [vmem:[%s14584_s0 + $0x260] sm:$0xff]   ;;  %v10902_v34 = vld [vmem:[%s14584_s0 + $0x68] sm:$0xff]   ;;  %v10905_v35 = vld [vmem:[%s14584_s0 + $0x70] sm:$0xff]  }
   0xd   :  { %v10910_v36 = vld [vmem:[%s14584_s0 + $0x268] sm:$0xff]   ;;  %v10915_v37 = vld [vmem:[%s14584_s0 + $0x270] sm:$0xff]   ;;  %v10906_v38 = vld [vmem:[%s14584_s0 + $0x78] sm:$0xff]  }
   0xe   :  { %v10907_v39 = vld [vmem:[%s14584_s0 + $0x80] sm:$0xff]   ;;  %v10916_v40 = vld [vmem:[%s14584_s0 + $0x278] sm:$0xff]   ;;  %v10908_v42 = vld [vmem:[%s14584_s0 + $0x88] sm:$0xff]  }
   0xf   :  { %10200 = vmatpush3.bf16.msra.mxu0 %v10874_v5  ;;  %10852 = vmatpush3.bf16.msra.mxu1 %v10874_v5  ;;  %v10921_v41 = vld [vmem:[%s14584_s0 + $0x280] sm:$0xff]   ;;  %v10911_v43 = vld [vmem:[%s14584_s0 + $0x90] sm:$0xff]   ;;  %v10922_v44 = vld [vmem:[%s14584_s0 + $0x288] sm:$0xff]  }
  0x10   :  { %10337 = vmatprep.subr.bf16.mxu1 %v10879_v7  ;;  %v10927_v45 = vld [vmem:[%s14584_s0 + $0x290] sm:$0xff]   ;;  %v10912_v46 = vld [vmem:[%s14584_s0 + $0x98] sm:$0xff]   ;;  %v10913_v47 = vld [vmem:[%s14584_s0 + $0xa0] sm:$0xff]  }
  0x11   :  { %v10928_v48 = vld [vmem:[%s14584_s0 + $0x298] sm:$0xff]   ;;  %v10933_v49 = vld [vmem:[%s14584_s0 + $0x2a0] sm:$0xff]   ;;  %v10914_v50 = vld [vmem:[%s14584_s0 + $0xa8] sm:$0xff]  }
  0x12   :  { %10202 = vmatmul.mubr.msk.bf16.vlgmr.msra.gmra.mxu0 %vm545_vm0, %v10876_v6  ;;  %10330 = vmatmul.mubr.msk.bf16.vlgmr.msra.gmra.mxu1 %vm545_vm0, %v10878_v8  ;;  %v10934_v51 = vld [vmem:[%s14584_s0 + $0x2a8] sm:$0xff]   ;;  %v10917_v52 = vld [vmem:[%s14584_s0 + $0xb0] sm:$0xff]   ;;  %v10918_v54 = vld [vmem:[%s14584_s0 + $0xb8] sm:$0xff]  }
  0x13   :  { %10338 = vmatpush3.bf16.msra.mxu1 %v10879_v7  ;;  %10205 = vmatprep.mubr.msk.bf16.mxu0 %vm545_vm0, %v10881_v10  ;;  %v10939_v53 = vld [vmem:[%s14584_s0 + $0x2b0] sm:$0xff]   ;;  %v10940_v55 = vld [vmem:[%s14584_s0 + $0x2b8] sm:$0xff]   ;;  %v10919_v56 = vld [vmem:[%s14584_s0 + $0xc0] sm:$0xff]  }
  0x14   :  { %10339 = vmatprep.subr.bf16.mxu1 %v10880_v9  ;;  %10333 = vmatprep.mubr.msk.bf16.mxu1 %vm545_vm0, %v10883_v11  ;;  %v10945_v57 = vld [vmem:[%s14584_s0 + $0x2c0] sm:$0xff]   ;;  %v10920_v58 = vld [vmem:[%s14584_s0 + $0xc8] sm:$0xff]   ;;  %v10923_v60 = vld [vmem:[%s14584_s0 + $0xd0] sm:$0xff]  }
  0x15   :  { %v10946_v59 = vld [vmem:[%s14584_s0 + $0x2c8] sm:$0xff]   ;;  %v10951_v61 = vld [vmem:[%s14584_s0 + $0x2d0] sm:$0xff]   ;;  %v10924_v62 = vld [vmem:[%s14584_s0 + $0xd8] sm:$0xff]  }
  0x16   :  { %v10925_v63 = vld [vmem:[%s14584_s0 + $0xe0] sm:$0xff]   ;;  %v10952_v0 = vld [vmem:[%s14584_s0 + $0x2d8] sm:$0xff]   ;;  %v10926_v2 = vld [vmem:[%s14584_s0 + $0xe8] sm:$0xff]  }
  0x17   :  { %10340 = vmatpush3.bf16.msra.mxu1 %v10880_v9  ;;  %v10957_v1 = vld [vmem:[%s14584_s0 + $0x2e0] sm:$0xff]   ;;  %v10958_v3 = vld [vmem:[%s14584_s0 + $0x2e8] sm:$0xff]   ;;  %v10929_v4 = vld [vmem:[%s14584_s0 + $0xf0] sm:$0xff]  }
  0x18   :  { %10341 = vmatprep.subr.bf16.mxu1 %v10885_v13  ;;  %v10963_v5 = vld [vmem:[%s14584_s0 + $0x2f0] sm:$0xff]   ;;  %v10930_v6 = vld [vmem:[%s14584_s0 + $0xf8] sm:$0xff]   ;;  %v10931_v8 = vld [vmem:[%s14584_s0 + $0x100] sm:$0xff]  }
  0x19   :  { %v10964_v7 = vld [vmem:[%s14584_s0 + $0x2f8] sm:$0xff]   ;;  %v10969_v9 = vld [vmem:[%s14584_s0 + $0x300] sm:$0xff]   ;;  %v10932_v10 = vld [vmem:[%s14584_s0 + $0x108] sm:$0xff]  }
  0x1a   :  { %10206 = vmatmul.mubr.msk.bf16.gmra.mxu0 %vm545_vm0, %v10882_v12  ;;  %10334 = vmatmul.mubr.msk.bf16.gmra.mxu1 %vm545_vm0, %v10884_v14  ;;  %v10970_v11 = vld [vmem:[%s14584_s0 + $0x308] sm:$0xff]   ;;  %v10935_v12 = vld [vmem:[%s14584_s0 + $0x110] sm:$0xff]   ;;  %v10936_v14 = vld [vmem:[%s14584_s0 + $0x118] sm:$0xff]  }
  0x1b   :  { %10342 = vmatpush3.bf16.msra.mxu1 %v10885_v13  ;;  %10209 = vmatprep.mubr.msk.bf16.mxu0 %vm545_vm0, %v10887_v16  ;;  %v10975_v13 = vld [vmem:[%s14584_s0 + $0x310] sm:$0xff]   ;;  %v10937_v16 = vld [vmem:[%s14584_s0 + $0x120] sm:$0xff]  }
  0x1c   :  { %10343 = vmatprep.subr.bf16.mxu1 %v10886_v15  ;;  %10345 = vmatprep.mubr.msk.bf16.mxu1 %vm545_vm0, %v10889_v17  ;;  %v10979_v17 = vld [vmem:[%s14584_s0 + $0x320] sm:$0xff]  }
  0x1f   :  { %10344 = vmatpush3.bf16.msra.mxu1 %v10886_v15  ;;  %v10976_v15 = vld [vmem:[%s14584_s0 + $0x318] sm:$0xff]  }
  0x22   :  { %10210 = vmatmul.mubr.msk.bf16.gmra.mxu0 %vm545_vm0, %v10888_v18  ;;  %10346 = vmatmul.mubr.msk.bf16.vlgmr.msra.gmra.mxu1 %vm545_vm0, %v10890_v19  ;;  %v10938_v18 = vld [vmem:[%s14584_s0 + $0x128] sm:$0xff]  }
  0x23   :  { %10213 = vmatprep.mubr.msk.bf16.mxu0 %vm545_vm0, %v10891_v20  ;;  %10349 = vmatprep.mubr.msk.bf16.mxu1 %vm545_vm0, %v10893_v21  ;;  %v10980_v19 = vld [vmem:[%s14584_s0 + $0x328] sm:$0xff]   ;;  %v10941_v20 = vld [vmem:[%s14584_s0 + $0x130] sm:$0xff]  }
  0x24   :  { %v10981_v21 = vld [vmem:[%s14584_s0 + $0x330] sm:$0xff]  }
  0x2a   :  { %10214 = vmatmul.mubr.msk.bf16.gmra.mxu0 %vm545_vm0, %v10892_v22  ;;  %10350 = vmatmul.mubr.msk.bf16.gmra.mxu1 %vm545_vm0, %v10894_v23  ;;  %v10942_v22 = vld [vmem:[%s14584_s0 + $0x138] sm:$0xff]  }
  0x2b   :  { %10217 = vmatprep.mubr.msk.bf16.mxu0 %vm545_vm0, %v10895_v24  ;;  %10353 = vmatprep.mubr.msk.bf16.mxu1 %vm545_vm0, %v10897_v25  ;;  %v10982_v23 = vld [vmem:[%s14584_s0 + $0x338] sm:$0xff]   ;;  %v10943_v24 = vld [vmem:[%s14584_s0 + $0x140] sm:$0xff]   ;;  %v10944_v25 = vld [vmem:[%s14584_s0 + $0x148] sm:$0xff]  }
  0x32   :  { %10218 = vmatmul.mubr.msk.bf16.gmra.mxu0 %vm545_vm0, %v10896_v26  ;;  %10354 = vmatmul.mubr.msk.bf16.gmra.mxu1 %vm545_vm0, %v10898_v27  ;;  %v10947_v26 = vld [vmem:[%s14584_s0 + $0x150] sm:$0xff]   ;;  %v10983_v27 = vld [vmem:[%s14584_s0 + $0x340] sm:$0xff]  }
  0x33   :  { %10221 = vmatprep.mubr.msk.bf16.mxu0 %vm545_vm0, %v10899_v28  ;;  %10357 = vmatprep.mubr.msk.bf16.mxu1 %vm545_vm0, %v10903_v29  ;;  %v10984_v28 = vld [vmem:[%s14584_s0 + $0x348] sm:$0xff]   ;;  %v10948_v29 = vld [vmem:[%s14584_s0 + $0x158] sm:$0xff]  }
  0x3a   :  { %10222 = vmatmul.mubr.msk.bf16.gmra.mxu0 %vm545_vm0, %v10900_v30  ;;  %10358 = vmatmul.mubr.msk.bf16.gmra.mxu1 %vm545_vm0, %v10904_v32  ;;  %v10949_v30 = vld [vmem:[%s14584_s0 + $0x160] sm:$0xff]   ;;  %v10953_v32 = vld [vmem:[%s14584_s0 + $0x170] sm:$0xff]  }
  0x3b   :  { %10225 = vmatprep.mubr.msk.bf16.mxu0 %vm545_vm0, %v10901_v31  ;;  %10361 = vmatprep.mubr.msk.bf16.mxu1 %vm545_vm0, %v10909_v33  ;;  %v10950_v31 = vld [vmem:[%s14584_s0 + $0x168] sm:$0xff]   ;;  %v10954_v33 = vld [vmem:[%s14584_s0 + $0x178] sm:$0xff]  }
  0x42   :  { %10226 = vmatmul.mubr.msk.bf16.gmra.mxu0 %vm545_vm0, %v10902_v34  ;;  %10362 = vmatmul.mubr.msk.bf16.gmra.mxu1 %vm545_vm0, %v10910_v36  ;;  %v10985_v34 = vld [vmem:[%s14584_s0 + $0x350] sm:$0xff]   ;;  %v10955_v36 = vld [vmem:[%s14584_s0 + $0x180] sm:$0xff]  }
  0x43   :  { %10229 = vmatprep.mubr.msk.bf16.mxu0 %vm545_vm0, %v10905_v35  ;;  %10365 = vmatprep.mubr.msk.bf16.mxu1 %vm545_vm0, %v10915_v37  ;;  %v10986_v35 = vld [vmem:[%s14584_s0 + $0x358] sm:$0xff]   ;;  %v10956_v37 = vld [vmem:[%s14584_s0 + $0x188] sm:$0xff]  }
  0x4a   :  { %10230 = vmatmul.mubr.msk.bf16.gmra.mxu0 %vm545_vm0, %v10906_v38  ;;  %10366 = vmatmul.mubr.msk.bf16.gmra.mxu1 %vm545_vm0, %v10916_v40  ;;  %v10987_v38 = vld [vmem:[%s14584_s0 + $0x360] sm:$0xff]   ;;  %v10988_v40 = vld [vmem:[%s14584_s0 + $0x368] sm:$0xff]  }
  0x4b   :  { %10233 = vmatprep.mubr.msk.bf16.mxu0 %vm545_vm0, %v10907_v39  ;;  %10369 = vmatprep.mubr.msk.bf16.mxu1 %vm545_vm0, %v10921_v41  ;;  %v10959_v39 = vld [vmem:[%s14584_s0 + $0x190] sm:$0xff]  }
  0x52   :  { %10234 = vmatmul.mubr.msk.bf16.gmra.mxu0 %vm545_vm0, %v10908_v42  ;;  %10370 = vmatmul.mubr.msk.bf16.gmra.mxu1 %vm545_vm0, %v10922_v44 }
  0x53   :  { %10237 = vmatprep.mubr.msk.bf16.mxu0 %vm545_vm0, %v10911_v43  ;;  %10373 = vmatprep.mubr.msk.bf16.mxu1 %vm545_vm0, %v10927_v45  ;;  %v10960_v45 = vld [vmem:[%s14584_s0 + $0x198] sm:$0xff]  }
  0x5a   :  { %10238 = vmatmul.mubr.msk.bf16.gmra.mxu0 %vm545_vm0, %v10912_v46  ;;  %10374 = vmatmul.mubr.msk.bf16.gmra.mxu1 %vm545_vm0, %v10928_v48  ;;  %v10961_v46 = vld [vmem:[%s14584_s0 + $0x1a0] sm:$0xff]  }
  0x5b   :  { %10241 = vmatprep.mubr.msk.bf16.mxu0 %vm545_vm0, %v10913_v47  ;;  %10377 = vmatprep.mubr.msk.bf16.mxu1 %vm545_vm0, %v10933_v49 }
  0x62   :  { %10242 = vmatmul.mubr.msk.bf16.gmra.mxu0 %vm545_vm0, %v10914_v50  ;;  %10378 = vmatmul.mubr.msk.bf16.gmra.mxu1 %vm545_vm0, %v10934_v51 }
  0x63   :  { %10245 = vmatprep.mubr.msk.bf16.mxu0 %vm545_vm0, %v10917_v52  ;;  %10381 = vmatprep.mubr.msk.bf16.mxu1 %vm545_vm0, %v10939_v53 }
  0x6a   :  { %10246 = vmatmul.mubr.msk.bf16.gmra.mxu0 %vm545_vm0, %v10918_v54  ;;  %10382 = vmatmul.mubr.msk.bf16.gmra.mxu1 %vm545_vm0, %v10940_v55  ;;  %v10962_v55 = vld [vmem:[%s14584_s0 + $0x1a8] sm:$0xff]  }
  0x6b   :  { %10249 = vmatprep.mubr.msk.bf16.mxu0 %vm545_vm0, %v10919_v56  ;;  %10385 = vmatprep.mubr.msk.bf16.mxu1 %vm545_vm0, %v10945_v57 }
  0x72   :  { %10250 = vmatmul.mubr.msk.bf16.gmra.mxu0 %vm545_vm0, %v10920_v58  ;;  %10386 = vmatmul.mubr.msk.bf16.gmra.mxu1 %vm545_vm0, %v10946_v59  ;;  %v10965_v58 = vld [vmem:[%s14584_s0 + $0x1b0] sm:$0xff]  }
  0x73   :  { %10253 = vmatprep.mubr.msk.bf16.mxu0 %vm545_vm0, %v10923_v60  ;;  %10389 = vmatprep.mubr.msk.bf16.mxu1 %vm545_vm0, %v10951_v61  ;;  %v10989_v61 = vld [vmem:[%s14584_s0 + $0x370] sm:$0xff]  }
  0x7a   :  { %10254 = vmatmul.mubr.msk.bf16.gmra.mxu0 %vm545_vm0, %v10924_v62  ;;  %10390 = vmatmul.mubr.msk.bf16.gmra.mxu1 %vm545_vm0, %v10952_v0  ;;  %v10990_v62 = vld [vmem:[%s14584_s0 + $0x378] sm:$0xff]  }
  0x7b   :  { %10257 = vmatprep.mubr.msk.bf16.mxu0 %vm545_vm0, %v10925_v63  ;;  %10393 = vmatprep.mubr.msk.bf16.mxu1 %vm545_vm0, %v10957_v1 }
  0x82   :  { %10258 = vmatmul.mubr.msk.bf16.gmra.mxu0 %vm545_vm0, %v10926_v2  ;;  %10394 = vmatmul.mubr.msk.bf16.gmra.mxu1 %vm545_vm0, %v10958_v3  ;;  %v10966_v3 = vld [vmem:[%s14584_s0 + $0x1b8] sm:$0xff]  }
  0x83   :  { %10261 = vmatprep.mubr.msk.bf16.mxu0 %vm545_vm0, %v10929_v4  ;;  %10397 = vmatprep.mubr.msk.bf16.mxu1 %vm545_vm0, %v10963_v5 }
  0x8a   :  { %10262 = vmatmul.mubr.msk.bf16.gmra.mxu0 %vm545_vm0, %v10930_v6  ;;  %10398 = vmatmul.mubr.msk.bf16.gmra.mxu1 %vm545_vm0, %v10964_v7  ;;  %v10967_v6 = vld [vmem:[%s14584_s0 + $0x1c0] sm:$0xff]  }
  0x8b   :  { %10265 = vmatprep.mubr.msk.bf16.mxu0 %vm545_vm0, %v10931_v8  ;;  %10401 = vmatprep.mubr.msk.bf16.mxu1 %vm545_vm0, %v10969_v9 }
  0x92   :  { %10266 = vmatmul.mubr.msk.bf16.gmra.mxu0 %vm545_vm0, %v10932_v10  ;;  %10402 = vmatmul.mubr.msk.bf16.gmra.mxu1 %vm545_vm0, %v10970_v11  ;;  %v10991_v11 = vld [vmem:[%s14584_s0 + $0x380] sm:$0xff]  }
  0x93   :  { %10269 = vmatprep.mubr.msk.bf16.mxu0 %vm545_vm0, %v10935_v12  ;;  %10405 = vmatprep.mubr.msk.bf16.mxu1 %vm545_vm0, %v10975_v13  ;;  %v10992_v12 = vld [vmem:[%s14584_s0 + $0x388] sm:$0xff]  }
  0x9a   :  { %10270 = vmatmul.mubr.msk.bf16.gmra.mxu0 %vm545_vm0, %v10936_v14  ;;  %10406 = vmatmul.mubr.msk.bf16.gmra.mxu1 %vm545_vm0, %v10976_v15  ;;  %v10968_v15 = vld [vmem:[%s14584_s0 + $0x1c8] sm:$0xff]  }
  0x9b   :  { %10273 = vmatprep.mubr.msk.bf16.mxu0 %vm545_vm0, %v10937_v16  ;;  %10409 = vmatprep.mubr.msk.bf16.mxu1 %vm545_vm0, %v10979_v17 }
  0xa2   :  { %10274 = vmatmul.mubr.msk.bf16.gmra.mxu0 %vm545_vm0, %v10938_v18  ;;  %10410 = vmatmul.mubr.msk.bf16.gmra.mxu1 %vm545_vm0, %v10980_v19  ;;  %v10971_v18 = vld [vmem:[%s14584_s0 + $0x1d0] sm:$0xff]  }
  0xa3   :  { %10277 = vmatprep.mubr.msk.bf16.mxu0 %vm545_vm0, %v10941_v20  ;;  %10413 = vmatprep.mubr.msk.bf16.mxu1 %vm545_vm0, %v10981_v21 }
  0xaa   :  { %10278 = vmatmul.mubr.msk.bf16.gmra.mxu0 %vm545_vm0, %v10942_v22  ;;  %10414 = vmatmul.mubr.msk.bf16.gmra.mxu1 %vm545_vm0, %v10982_v23  ;;  %v10972_v22 = vld [vmem:[%s14584_s0 + $0x1d8] sm:$0xff]  }
  0xab   :  { %10281 = vmatprep.mubr.msk.bf16.mxu0 %vm545_vm0, %v10943_v24  ;;  %10417 = vmatprep.mubr.msk.bf16.mxu1 %vm545_vm0, %v10983_v27 }
  0xb2   :  { %10282 = vmatmul.mubr.msk.bf16.gmra.mxu0 %vm545_vm0, %v10944_v25  ;;  %10418 = vmatmul.mubr.msk.bf16.gmra.mxu1 %vm545_vm0, %v10984_v28  ;;  %v10973_v25 = vld [vmem:[%s14584_s0 + $0x1e0] sm:$0xff]   ;;  %v10974_v28 = vld [vmem:[%s14584_s0 + $0x1e8] sm:$0xff]  }
  0xb3   :  { %10285 = vmatprep.mubr.msk.bf16.mxu0 %vm545_vm0, %v10947_v26  ;;  %10421 = vmatprep.mubr.msk.bf16.mxu1 %vm545_vm0, %v10985_v34 }
  0xba   :  { %10286 = vmatmul.mubr.msk.bf16.gmra.mxu0 %vm545_vm0, %v10948_v29  ;;  %10422 = vmatmul.mubr.msk.bf16.gmra.mxu1 %vm545_vm0, %v10986_v35  ;;  %v10993_v29 = vld [vmem:[%s14584_s0 + $0x390] sm:$0xff]  }
  0xbb   :  { %10289 = vmatprep.mubr.msk.bf16.mxu0 %vm545_vm0, %v10949_v30  ;;  %10425 = vmatprep.mubr.msk.bf16.mxu1 %vm545_vm0, %v10987_v38  ;;  %v10994_v30 = vld [vmem:[%s14584_s0 + $0x398] sm:$0xff]  }
  0xc2   :  { %10290 = vmatmul.mubr.msk.bf16.gmra.mxu0 %vm545_vm0, %v10950_v31  ;;  %10426 = vmatmul.mubr.msk.bf16.gmra.mxu1 %vm545_vm0, %v10988_v40  ;;  %v10995_v40 = vld [vmem:[%s14584_s0 + $0x3a0] sm:$0xff]  }
  0xc3   :  { %10293 = vmatprep.mubr.msk.bf16.mxu0 %vm545_vm0, %v10953_v32  ;;  %10429 = vmatprep.mubr.msk.bf16.mxu1 %vm545_vm0, %v10989_v61  ;;  %v10977_v32 = vld [vmem:[%s14584_s0 + $0x1f0] sm:$0xff]  }
  0xca   :  { %10294 = vmatmul.mubr.msk.bf16.gmra.mxu0 %vm545_vm0, %v10954_v33  ;;  %10430 = vmatmul.mubr.msk.bf16.gmra.mxu1 %vm545_vm0, %v10990_v62 }
  0xcb   :  { %10297 = vmatprep.mubr.msk.bf16.mxu0 %vm545_vm0, %v10955_v36  ;;  %10433 = vmatprep.mubr.msk.bf16.mxu1 %vm545_vm0, %v10991_v11 }
  0xd2   :  { %v10203_v41 = vpop.f32.mrf.mxu0  ;;  %10298 = vmatmul.mubr.msk.bf16.gmra.mxu0 %vm545_vm0, %v10956_v37  ;;  %v10331_v42 = vpop.f32.mrf.mxu1  ;;  %10434 = vmatmul.mubr.msk.bf16.gmra.mxu1 %vm545_vm0, %v10992_v12  ;;  %v10978_v37 = vld [vmem:[%s14584_s0 + $0x1f8] sm:$0xff]  }
  0xd3   :  { %1330 = vst.msk [vmem:[#allocation2 + $0x20] sm:$0xff] %vm1327_vm1, %v10203_v41  ;;  %1953 = vst.msk [vmem:[#allocation2 + $0x28] sm:$0xff] %vm1327_vm1, %v10331_v42  ;;  %10301 = vmatprep.mubr.msk.bf16.mxu0 %vm545_vm0, %v10959_v39  ;;  %10437 = vmatprep.mubr.msk.bf16.mxu1 %vm545_vm0, %v10993_v29  ;;  %v10996_v42 = vld [vmem:[%s14584_s0 + $0x3a8] sm:$0xff]  }
  0xd4   :  { %v784_v43 = vpop.f32.mrf.mxu0  ;;  %v1296_v44 = vpop.f32.mrf.mxu1 }
  0xd5   :  { %1328 = vst.msk [vmem:[#allocation2] sm:$0xff] %vm1327_vm1, %v784_v43  ;;  %1951 = vst.msk [vmem:[#allocation2 + $0x8] sm:$0xff] %vm1327_vm1, %v1296_v44 }
  0xd6   :  { %v10204_v47 = vpop.f32.mrf.mxu0  ;;  %v10332_v48 = vpop.f32.mrf.mxu1 }
  0xd7   :  { %1331 = vst.msk [vmem:[#allocation2 + $0x30] sm:$0xff] %vm1327_vm1, %v10204_v47  ;;  %1954 = vst.msk [vmem:[#allocation2 + $0x38] sm:$0xff] %vm1327_vm1, %v10332_v48 }
  0xd8   :  { %v787_v49 = vpop.f32.mrf.mxu0  ;;  %v1299_v50 = vpop.f32.mrf.mxu1 }
  0xd9   :  { %1329 = vst.msk [vmem:[#allocation2 + $0x10] sm:$0xff] %vm1327_vm1, %v787_v49  ;;  %1952 = vst.msk [vmem:[#allocation2 + $0x18] sm:$0xff] %vm1327_vm1, %v1299_v50 }
  0xda   :  { %v10207_v51 = vpop.f32.mrf.mxu0  ;;  %10302 = vmatmul.mubr.msk.bf16.gmra.mxu0 %vm545_vm0, %v10960_v45  ;;  %v10335_v52 = vpop.f32.mrf.mxu1  ;;  %10438 = vmatmul.mubr.msk.bf16.gmra.mxu1 %vm545_vm0, %v10994_v30 }
  0xdb   :  { %1334 = vst.msk [vmem:[#allocation2 + $0x60] sm:$0xff] %vm1327_vm1, %v10207_v51  ;;  %1957 = vst.msk [vmem:[#allocation2 + $0x68] sm:$0xff] %vm1327_vm1, %v10335_v52  ;;  %10305 = vmatprep.mubr.msk.bf16.mxu0 %vm545_vm0, %v10961_v46  ;;  %10441 = vmatprep.mubr.msk.bf16.mxu1 %vm545_vm0, %v10995_v40 }
  0xdc   :  { %v800_v53 = vpop.f32.mrf.mxu0  ;;  %v1312_v54 = vpop.f32.mrf.mxu1  ;;  %v3865_v38 = vld [vmem:[#allocation2 + $0x8] sm:$0xff] }
  0xdd   :  { %1332 = vst.msk [vmem:[#allocation2 + $0x40] sm:$0xff] %vm1327_vm1, %v800_v53  ;;  %1955 = vst.msk [vmem:[#allocation2 + $0x48] sm:$0xff] %vm1327_vm1, %v1312_v54 }
  0xde   :  { %v10208_v56 = vpop.f32.mrf.mxu0  ;;  %v10336_v57 = vpop.f32.mrf.mxu1 }
  0xdf   :  { %1335 = vst.msk [vmem:[#allocation2 + $0x70] sm:$0xff] %vm1327_vm1, %v10208_v56  ;;  %1958 = vst.msk [vmem:[#allocation2 + $0x78] sm:$0xff] %vm1327_vm1, %v10336_v57 }
  0xe0   :  { %v803_v59 = vpop.f32.mrf.mxu0  ;;  %v1315_v60 = vpop.f32.mrf.mxu1  ;;  %v3867_v39 = vld [vmem:[#allocation2 + $0x18] sm:$0xff] }
  0xe1   :  { %1333 = vst.msk [vmem:[#allocation2 + $0x50] sm:$0xff] %vm1327_vm1, %v803_v59  ;;  %1956 = vst.msk [vmem:[#allocation2 + $0x58] sm:$0xff] %vm1327_vm1, %v1315_v60  ;;  %v3897_v44 = vpack.c.bf16 %v3867_v39, %v3865_v38 }
  0xe2   :  { %v10211_v63 = vpop.f32.mrf.mxu0  ;;  %10306 = vmatmul.mubr.msk.bf16.gmra.mxu0 %vm545_vm0, %v10962_v55  ;;  %v10347_v0 = vpop.f32.mrf.mxu1  ;;  %10442 = vmatmul.mubr.msk.bf16.gmra.mxu1 %vm545_vm0, %v10996_v42 }
  0xe3   :  { %1348 = vrot.lane.b32.xlu0 %v10211_v63, %s11324_s26  ;;  %3250 = vst.msk [vmem:[#allocation2 + $0xa0] sm:$0xff] %vm1327_vm1, %v10347_v0  ;;  %10309 = vmatprep.mubr.msk.bf16.mxu0 %vm545_vm0, %v10965_v58 }
  0xe4   :  { %v816_v1 = vpop.f32.mrf.mxu0  ;;  %v2705_v2 = vpop.f32.mrf.mxu1 }
  0xe5   :  { %3248 = vst.msk [vmem:[#allocation2 + $0x80] sm:$0xff] %vm1327_vm1, %v2705_v2 }
  0xe6   :  { %v10212_v4 = vpop.f32.mrf.mxu0  ;;  %v10348_v5 = vpop.f32.mrf.mxu1 }
  0xe7   :  { %1344 = vrot.lane.b32.xlu0 %v816_v1, %s11324_s26  ;;  %1350 = vrot.lane.b32.xlu1 %v10212_v4, %s11324_s26  ;;  %3251 = vst.msk [vmem:[#allocation2 + $0xb0] sm:$0xff] %vm1327_vm1, %v10348_v5 }
  0xe8   :  { %v819_v7 = vpop.f32.mrf.mxu0  ;;  %v2708_v8 = vpop.f32.mrf.mxu1 }
  0xe9   :  { %3249 = vst.msk [vmem:[#allocation2 + $0x90] sm:$0xff] %vm1327_vm1, %v2708_v8 }
  0xea   :  { %v10215_v9 = vpop.f32.mrf.mxu0  ;;  %10310 = vmatmul.mubr.msk.bf16.gmra.mxu0 %vm545_vm0, %v10966_v3  ;;  %v10351_v10 = vpop.f32.mrf.mxu1 }
  0xeb   :  { %1346 = vrot.lane.b32.xlu0 %v819_v7, %s11324_s26  ;;  %3254 = vst.msk [vmem:[#allocation2 + $0xe0] sm:$0xff] %vm1327_vm1, %v10351_v10  ;;  %10313 = vmatprep.mubr.msk.bf16.mxu0 %vm545_vm0, %v10967_v6 }
  0xec   :  { %v832_v13 = vpop.f32.mrf.mxu0  ;;  %v2721_v14 = vpop.f32.mrf.mxu1 }
  0xed   :  { %3252 = vst.msk [vmem:[#allocation2 + $0xc0] sm:$0xff] %vm1327_vm1, %v2721_v14 }
  0xee   :  { %v10216_v16 = vpop.f32.mrf.mxu0  ;;  %v10352_v17 = vpop.f32.mrf.mxu1 }
  0xef   :  { %1356 = vrot.lane.b32.xlu0 %v10215_v9, %s11324_s26  ;;  %1358 = vrot.lane.b32.xlu1 %v10216_v16, %s11324_s26  ;;  %3255 = vst.msk [vmem:[#allocation2 + $0xf0] sm:$0xff] %vm1327_vm1, %v10352_v17 }
  0xf0   :  { %v835_v19 = vpop.f32.mrf.mxu0  ;;  %v2724_v20 = vpop.f32.mrf.mxu1 }
  0xf1   :  { %3253 = vst.msk [vmem:[#allocation2 + $0xd0] sm:$0xff] %vm1327_vm1, %v2724_v20 }
  0xf2   :  { %v10219_v21 = vpop.f32.mrf.mxu0  ;;  %10314 = vmatmul.mubr.msk.bf16.gmra.mxu0 %vm545_vm0, %v10968_v15  ;;  %v10355_v24 = vpop.f32.mrf.mxu1 }
  0xf3   :  { %1352 = vrot.lane.b32.xlu0 %v832_v13, %s11324_s26  ;;  %1354 = vrot.lane.b32.xlu1 %v835_v19, %s11324_s26 }
  0xf4   :  { %10317 = vmatprep.mubr.msk.bf16.mxu0 %vm545_vm0, %v10971_v18  ;;  %v848_v23 = vpop.f32.mrf.mxu0  ;;  %v2737_v27 = vpop.f32.mrf.mxu1 }
  0xf6   :  { %v10220_v26 = vpop.f32.mrf.mxu0  ;;  %v10356_v31 = vpop.f32.mrf.mxu1 }
  0xf7   :  { %1389 = vrot.lane.b32.xlu0 %v10219_v21, %s11325_s22  ;;  %1385 = vrot.lane.b32.xlu1 %v848_v23, %s11325_s22 }
  0xf8   :  { %v851_v33 = vpop.f32.mrf.mxu0  ;;  %v2740_v34 = vpop.f32.mrf.mxu1 }
  0xfa   :  { %10318 = vmatmul.mubr.msk.bf16.gmra.mxu0 %vm545_vm0, %v10972_v22  ;;  %v10223_v35 = vpop.f32.mrf.mxu0  ;;  %v10359_v36 = vpop.f32.mrf.mxu1 }
  0xfb   :  { %3268 = vrot.lane.b32.xlu0 %v10355_v24, %s11324_s26  ;;  %1391 = vrot.lane.b32.xlu1 %v10220_v26, %s11325_s22 }
  0xfc   :  { %10321 = vmatprep.mubr.msk.bf16.mxu0 %vm545_vm0, %v10973_v25  ;;  %v864_v41 = vpop.f32.mrf.mxu0  ;;  %v2753_v43 = vpop.f32.mrf.mxu1 }
  0xfe   :  { %v10224_v45 = vpop.f32.mrf.mxu0  ;;  %v10360_v46 = vpop.f32.mrf.mxu1 }
  0xff   :  { %3264 = vrot.lane.b32.xlu0 %v2737_v27, %s11324_s26  ;;  %3270 = vrot.lane.b32.xlu1 %v10356_v31, %s11324_s26 }
 0x102   :  { %10322 = vmatmul.mubr.msk.bf16.gmra.mxu0 %vm545_vm0, %v10974_v28 }
 0x103   :  { %1387 = vrot.lane.b32.xlu1 %v851_v33, %s11325_s22  ;;  %1397 = vrot.lane.b32.xlu0 %v10223_v35, %s11325_s22 }
 0x104   :  { %10325 = vmatprep.mubr.msk.bf16.mxu0 %vm545_vm0, %v10977_v32 }
 0x107   :  { %3266 = vrot.lane.b32.xlu1 %v2740_v34, %s11324_s26  ;;  %3276 = vrot.lane.b32.xlu0 %v10359_v36, %s11324_s26 }
 0x10a   :  { %10326 = vmatmul.mubr.msk.bf16.gmra.mxu0 %vm545_vm0, %v10978_v37 }
 0x10b   :  { %9346 = vmatprep.mubr.msk.bf16.mxu0 %vm1327_vm1, %v3897_v44  ;;  %1393 = vrot.lane.b32.xlu0 %v864_v41, %s11325_s22 }
 0x10c   :  { %1399 = vrot.lane.b32.xlu1 %v10224_v45, %s11325_s22 }
 0x10f   :  { %3272 = vrot.lane.b32.xlu0 %v2753_v43, %s11324_s26 }
 0x110   :  { %15 = vsyncpa [#allocation5], 0  ;;  %v867_v47 = vpop.f32.mrf.mxu0  ;;  %v2756_v48 = vpop.f32.mrf.mxu1  ;;  %3278 = vrot.lane.b32.xlu1 %v10360_v46, %s11324_s26  ;;  %s11326_s17 = smov 24   ;;  %v10997_v53 = vld [vmem:[%s14584_s0 + $0x3b0] sm:$0xff]   ;;  %v10998_v54 = vld [vmem:[%s14584_s0 + $0x3b8] sm:$0xff]   ;;  %s11327_s28 = smov 32  }
 0x111   :  { %10445 = vmatprep.mubr.msk.bf16.mxu1 %vm545_vm0, %v10997_v53  ;;  %v10999_v61 = vld [vmem:[%s14584_s0 + $0x3c0] sm:$0xff]   ;;  %v11000_v62 = vld [vmem:[%s14584_s0 + $0x3c8] sm:$0xff]   ;;  %v11001_v8 = vld [vmem:[%s14584_s0 + $0x3d0] sm:$0xff]   ;;  %vm1368_vm2 = vcmask 130112   ;;  %vm1409_vm3 = vcmask 195712   ;;  %s11329_s29 = smov 48  }
 0x112   :  { %v10227_v49 = vpop.f32.mrf.mxu0  ;;  %v10363_v50 = vpop.f32.mrf.mxu1  ;;  %10446 = vmatmul.mubr.msk.bf16.gmra.mxu1 %vm545_vm0, %v10998_v54  ;;  %v11002_v9 = vld [vmem:[%s14584_s0 + $0x3d8] sm:$0xff]   ;;  %v11003_v15 = vld [vmem:[%s14584_s0 + $0x3e0] sm:$0xff]   ;;  %v11004_v16 = vld [vmem:[%s14584_s0 + $0x3e8] sm:$0xff]   ;;  %vm1450_vm4 = vcmask 261312   ;;  %s11330_s11 = smov 56   ;;  %vm1491_vm5 = vcmask 326912  }
 0x113   :  { %1430 = vrot.lane.b32.xlu0 %v10227_v49, %s11326_s17  ;;  %10449 = vmatprep.mubr.msk.bf16.mxu1 %vm545_vm0, %v10999_v61  ;;  %v11005_v33 = vld [vmem:[%s14584_s0 + $0x3f0] sm:$0xff]   ;;  %v11006_v36 = vld [vmem:[%s14584_s0 + $0x3f8] sm:$0xff]   ;;  %v11007_v42 = vld [vmem:[%s14584_s0 + $0x400] sm:$0xff]   ;;  %s11331_s12 = smov 64   ;;  %vm1532_vm6 = vcmask 392512   ;;  %s11332_s13 = smov 72  }
 0x114   :  { %1395 = vrot.lane.b32.xlu1 %v867_v47, %s11325_s22  ;;  %v2769_v51 = vpop.f32.mrf.mxu1  ;;  %v880_v52 = vpop.f32.mrf.mxu0  ;;  %v11008_v45 = vld [vmem:[%s14584_s0 + $0x408] sm:$0xff]   ;;  %vm1573_vm7 = vcmask 458112   ;;  %s11333_s21 = smov 80   ;;  %vm1614_vm8 = vcmask 523712   ;;  %s11334_s23 = smov 88   ;;  %vm1655_vm9 = vcmask 589312  }
 0x115   :  { %s11335_s24 = smov 96   ;;  %vm1696_vm10 = vcmask 654912   ;;  %s11336_s25 = smov 104   ;;  %vm1737_vm11 = vcmask 720512   ;;  %vm1778_vm12 = vcmask 786112   ;;  %vm4011_vm13 = vcmask 1043456  }
 0x116   :  { %v10364_v55 = vpop.f32.mrf.mxu1  ;;  %v10228_v56 = vpop.f32.mrf.mxu0  ;;  %s11337_s27 = smov 112   ;;  %vm1819_vm14 = vcmask 851712   ;;  %vm1860_vm15 = vcmask 917312  }
 0x117   :  { %3308 = vrot.lane.b32.xlu0 %v10363_v50, %s11325_s22 }
 0x118   :  { %3274 = vrot.lane.b32.xlu1 %v2756_v48, %s11324_s26  ;;  %v2772_v57 = vpop.f32.mrf.mxu1  ;;  %v883_v58 = vpop.f32.mrf.mxu0 }
 0x11a   :  { %v10367_v59 = vpop.f32.mrf.mxu1  ;;  %v10231_v60 = vpop.f32.mrf.mxu0  ;;  %10450 = vmatmul.mubr.msk.bf16.gmra.mxu1 %vm545_vm0, %v11000_v62 }
 0x11b   :  { %1426 = vrot.lane.b32.xlu0 %v880_v52, %s11326_s17  ;;  %10453 = vmatprep.mubr.msk.bf16.mxu1 %vm545_vm0, %v11001_v8 }
 0x11c   :  { %1432 = vrot.lane.b32.xlu1 %v10228_v56, %s11326_s17  ;;  %v2785_v63 = vpop.f32.mrf.mxu1  ;;  %v896_v0 = vpop.f32.mrf.mxu0 }
 0x11e   :  { %v10368_v1 = vpop.f32.mrf.mxu1  ;;  %v10232_v2 = vpop.f32.mrf.mxu0 }
 0x11f   :  { %3304 = vrot.lane.b32.xlu0 %v2769_v51, %s11325_s22 }
 0x120   :  { %3310 = vrot.lane.b32.xlu1 %v10364_v55, %s11325_s22  ;;  %v2788_v3 = vpop.f32.mrf.mxu1  ;;  %v899_v5 = vpop.f32.mrf.mxu0 }
 0x122   :  { %v10371_v4 = vpop.f32.mrf.mxu1  ;;  %v10235_v6 = vpop.f32.mrf.mxu0  ;;  %10454 = vmatmul.mubr.msk.bf16.gmra.mxu1 %vm545_vm0, %v11002_v9 }
 0x123   :  { %1438 = vrot.lane.b32.xlu0 %v10231_v60, %s11326_s17  ;;  %10457 = vmatprep.mubr.msk.bf16.mxu1 %vm545_vm0, %v11003_v15 }
 0x124   :  { %1428 = vrot.lane.b32.xlu1 %v883_v58, %s11326_s17  ;;  %v2801_v7 = vpop.f32.mrf.mxu1  ;;  %v912_v11 = vpop.f32.mrf.mxu0 }
 0x126   :  { %v10372_v10 = vpop.f32.mrf.mxu1  ;;  %v10236_v13 = vpop.f32.mrf.mxu0 }
 0x127   :  { %3316 = vrot.lane.b32.xlu0 %v10367_v59, %s11325_s22 }
 0x128   :  { %3306 = vrot.lane.b32.xlu1 %v2772_v57, %s11325_s22  ;;  %v2804_v12 = vpop.f32.mrf.mxu1  ;;  %v915_v17 = vpop.f32.mrf.mxu0 }
 0x12a   :  { %v10375_v14 = vpop.f32.mrf.mxu1  ;;  %10458 = vmatmul.mubr.msk.bf16.gmra.mxu1 %vm545_vm0, %v11004_v16  ;;  %v10239_v19 = vpop.f32.mrf.mxu0 }
 0x12b   :  { %1434 = vrot.lane.b32.xlu0 %v896_v0, %s11326_s17  ;;  %10461 = vmatprep.mubr.msk.bf16.mxu1 %vm545_vm0, %v11005_v33  ;;  %v11009_v0 = vld [vmem:[%s14584_s0 + $0x410] sm:$0xff]  }
 0x12c   :  { %1440 = vrot.lane.b32.xlu1 %v10232_v2, %s11326_s17  ;;  %v2817_v18 = vpop.f32.mrf.mxu1  ;;  %v928_v21 = vpop.f32.mrf.mxu0 }
 0x12e   :  { %v10376_v20 = vpop.f32.mrf.mxu1  ;;  %v10240_v24 = vpop.f32.mrf.mxu0 }
 0x12f   :  { %3312 = vrot.lane.b32.xlu0 %v2785_v63, %s11325_s22 }
 0x130   :  { %3318 = vrot.lane.b32.xlu1 %v10368_v1, %s11325_s22  ;;  %v2820_v22 = vpop.f32.mrf.mxu1  ;;  %v931_v26 = vpop.f32.mrf.mxu0  ;;  %v11010_v1 = vld [vmem:[%s14584_s0 + $0x418] sm:$0xff]  }
 0x132   :  { %v10379_v23 = vpop.f32.mrf.mxu1  ;;  %v10243_v27 = vpop.f32.mrf.mxu0  ;;  %10462 = vmatmul.mubr.msk.bf16.gmra.mxu1 %vm545_vm0, %v11006_v36 }
 0x133   :  { %1471 = vrot.lane.b32.xlu0 %v10235_v6, %s11327_s28  ;;  %10465 = vmatprep.mubr.msk.bf16.mxu1 %vm545_vm0, %v11007_v42 }
 0x134   :  { %1436 = vrot.lane.b32.xlu1 %v899_v5, %s11326_s17  ;;  %v2833_v25 = vpop.f32.mrf.mxu1  ;;  %v944_v31 = vpop.f32.mrf.mxu0 }
 0x136   :  { %v10380_v28 = vpop.f32.mrf.mxu1  ;;  %v10244_v37 = vpop.f32.mrf.mxu0 }
 0x137   :  { %3348 = vrot.lane.b32.xlu0 %v10371_v4, %s11326_s17 }
 0x138   :  { %3314 = vrot.lane.b32.xlu1 %v2788_v3, %s11325_s22  ;;  %s11328_s22 = smov 40   ;;  %v2836_v30 = vpop.f32.mrf.mxu1  ;;  %v947_v40 = vpop.f32.mrf.mxu0 }
 0x13a   :  { %v10383_v32 = vpop.f32.mrf.mxu1  ;;  %v10247_v46 = vpop.f32.mrf.mxu0  ;;  %10466 = vmatmul.mubr.msk.bf16.gmra.mxu1 %vm545_vm0, %v11008_v45 }
 0x13b   :  { %1467 = vrot.lane.b32.xlu0 %v912_v11, %s11327_s28  ;;  %10469 = vmatprep.mubr.msk.bf16.mxu1 %vm545_vm0, %v11009_v0 }
 0x13c   :  { %1473 = vrot.lane.b32.xlu1 %v10236_v13, %s11327_s28  ;;  %v2849_v38 = vpop.f32.mrf.mxu1  ;;  %v960_v51 = vpop.f32.mrf.mxu0 }
 0x13e   :  { %v10384_v41 = vpop.f32.mrf.mxu1  ;;  %v10248_v55 = vpop.f32.mrf.mxu0 }
 0x13f   :  { %3344 = vrot.lane.b32.xlu0 %v2801_v7, %s11326_s17 }
 0x140   :  { %3350 = vrot.lane.b32.xlu1 %v10372_v10, %s11326_s17  ;;  %v2852_v47 = vpop.f32.mrf.mxu1  ;;  %v963_v59 = vpop.f32.mrf.mxu0 }
 0x142   :  { %v10387_v50 = vpop.f32.mrf.mxu1  ;;  %v10251_v62 = vpop.f32.mrf.mxu0  ;;  %10470 = vmatmul.mubr.msk.bf16.gmra.mxu1 %vm545_vm0, %v11010_v1 }
 0x143   :  { %1479 = vrot.lane.b32.xlu0 %v10239_v19, %s11327_s28 }
 0x144   :  { %1469 = vrot.lane.b32.xlu1 %v915_v17, %s11327_s28  ;;  %v2865_v54 = vpop.f32.mrf.mxu1  ;;  %v976_v5 = vpop.f32.mrf.mxu0 }
 0x146   :  { %v10388_v58 = vpop.f32.mrf.mxu1  ;;  %v10252_v9 = vpop.f32.mrf.mxu0 }
 0x147   :  { %3356 = vrot.lane.b32.xlu0 %v10375_v14, %s11326_s17 }
 0x148   :  { %3346 = vrot.lane.b32.xlu1 %v2804_v12, %s11326_s17  ;;  %v2868_v63 = vpop.f32.mrf.mxu1  ;;  %v979_v13 = vpop.f32.mrf.mxu0 }
 0x14a   :  { %v10391_v2 = vpop.f32.mrf.mxu1  ;;  %v10255_v16 = vpop.f32.mrf.mxu0 }
 0x14b   :  { %1475 = vrot.lane.b32.xlu0 %v928_v21, %s11327_s28 }
 0x14c   :  { %1481 = vrot.lane.b32.xlu1 %v10240_v24, %s11327_s28  ;;  %v2881_v6 = vpop.f32.mrf.mxu1  ;;  %v992_v21 = vpop.f32.mrf.mxu0 }
 0x14e   :  { %v10392_v11 = vpop.f32.mrf.mxu1 }
 0x14f   :  { %3352 = vrot.lane.b32.xlu0 %v2817_v18, %s11326_s17 }
 0x150   :  { %3358 = vrot.lane.b32.xlu1 %v10376_v20, %s11326_s17  ;;  %v2884_v15 = vpop.f32.mrf.mxu1 }
 0x152   :  { %v10395_v18 = vpop.f32.mrf.mxu1 }
 0x153   :  { %1512 = vrot.lane.b32.xlu0 %v10243_v27, %s11328_s22 }
 0x154   :  { %1477 = vrot.lane.b32.xlu1 %v931_v26, %s11327_s28 }
 0x155   :  { %v1349_v29 = vpop.permute.xlu0 %1348 }
 0x156   :  { %1371 = vst.msk [vmem:[#allocation2 + $0x20] sm:$0xff] %vm1368_vm2, %v1349_v29 }
 0x157   :  { %3388 = vrot.lane.b32.xlu0 %v10379_v23, %s11327_s28 }
 0x158   :  { %3354 = vrot.lane.b32.xlu1 %v2820_v22, %s11326_s17  ;;  %v2897_v22 = vpop.f32.mrf.mxu1 }
 0x159   :  { %v1345_v34 = vpop.permute.xlu0 %1344  ;;  %v1351_v35 = vpop.permute.xlu1 %1350 }
 0x15a   :  { %1369 = vst.msk [vmem:[#allocation2] sm:$0xff] %vm1368_vm2, %v1345_v34  ;;  %1372 = vst.msk [vmem:[#allocation2 + $0x30] sm:$0xff] %vm1368_vm2, %v1351_v35  ;;  %v10396_v26 = vpop.f32.mrf.mxu1 }
 0x15b   :  { %1508 = vrot.lane.b32.xlu0 %v944_v31, %s11328_s22 }
 0x15c   :  { %1514 = vrot.lane.b32.xlu1 %v10244_v37, %s11328_s22  ;;  %v2900_v29 = vpop.f32.mrf.mxu1 }
 0x15d   :  { %v1347_v39 = vpop.permute.xlu0 %1346 }
 0x15e   :  { %1370 = vst.msk [vmem:[#allocation2 + $0x10] sm:$0xff] %vm1368_vm2, %v1347_v39 }
 0x15f   :  { %3384 = vrot.lane.b32.xlu0 %v2833_v25, %s11327_s28  ;;  %v10256_v25 = vpop.f32.mrf.mxu0 }
 0x160   :  { %3390 = vrot.lane.b32.xlu1 %v10380_v28, %s11327_s28 }
 0x161   :  { %v1357_v43 = vpop.permute.xlu0 %1356  ;;  %v1359_v44 = vpop.permute.xlu1 %1358 }
 0x162   :  { %1375 = vst.msk [vmem:[#allocation2 + $0x60] sm:$0xff] %vm1368_vm2, %v1357_v43  ;;  %1376 = vst.msk [vmem:[#allocation2 + $0x70] sm:$0xff] %vm1368_vm2, %v1359_v44 }
 0x163   :  { %1520 = vrot.lane.b32.xlu0 %v10247_v46, %s11328_s22 }
 0x164   :  { %1510 = vrot.lane.b32.xlu1 %v947_v40, %s11328_s22 }
 0x165   :  { %v1353_v48 = vpop.permute.xlu0 %1352  ;;  %v1355_v49 = vpop.permute.xlu1 %1354 }
 0x166   :  { %1373 = vst.msk [vmem:[#allocation2 + $0x40] sm:$0xff] %vm1368_vm2, %v1353_v48  ;;  %1374 = vst.msk [vmem:[#allocation2 + $0x50] sm:$0xff] %vm1368_vm2, %v1355_v49 }
 0x167   :  { %3396 = vrot.lane.b32.xlu0 %v10383_v32, %s11327_s28  ;;  %v10399_v32 = vpop.f32.mrf.mxu1 }
 0x168   :  { %3386 = vrot.lane.b32.xlu1 %v2836_v30, %s11327_s28  ;;  %v995_v30 = vpop.f32.mrf.mxu0 }
 0x169   :  { %v1390_v52 = vpop.permute.xlu0 %1389  ;;  %v1386_v53 = vpop.permute.xlu1 %1385 }
 0x16a   :  { %1412 = vst.msk [vmem:[#allocation2 + $0x20] sm:$0xff] %vm1409_vm3, %v1390_v52  ;;  %1410 = vst.msk [vmem:[#allocation2] sm:$0xff] %vm1409_vm3, %v1386_v53  ;;  %v10259_v33 = vpop.f32.mrf.mxu0  ;;  %v2913_v36 = vpop.f32.mrf.mxu1 }
 0x16b   :  { %1516 = vrot.lane.b32.xlu0 %v960_v51, %s11328_s22 }
 0x16c   :  { %1522 = vrot.lane.b32.xlu1 %v10248_v55, %s11328_s22  ;;  %v10400_v40 = vpop.f32.mrf.mxu1 }
 0x16d   :  { %v3269_v56 = vpop.permute.xlu0 %3268  ;;  %v1392_v57 = vpop.permute.xlu1 %1391 }
 0x16e   :  { %3290 = vst.msk [vmem:[#allocation2 + $0xa0] sm:$0xff] %vm1368_vm2, %v3269_v56  ;;  %v2916_v44 = vpop.f32.mrf.mxu1 }
 0x16f   :  { %1413 = vst.msk [vmem:[#allocation2 + $0x30] sm:$0xff] %vm1409_vm3, %v1392_v57  ;;  %3392 = vrot.lane.b32.xlu0 %v2849_v38, %s11327_s28  ;;  %v1008_v38 = vpop.f32.mrf.mxu0 }
 0x170   :  { %3398 = vrot.lane.b32.xlu1 %v10384_v41, %s11327_s28  ;;  %v10403_v46 = vpop.f32.mrf.mxu1 }
 0x171   :  { %v3265_v60 = vpop.permute.xlu0 %3264  ;;  %v3271_v61 = vpop.permute.xlu1 %3270 }
 0x172   :  { %3288 = vst.msk [vmem:[#allocation2 + $0x80] sm:$0xff] %vm1368_vm2, %v3265_v60  ;;  %3291 = vst.msk [vmem:[#allocation2 + $0xb0] sm:$0xff] %vm1368_vm2, %v3271_v61  ;;  %v10260_v42 = vpop.f32.mrf.mxu0  ;;  %v2929_v51 = vpop.f32.mrf.mxu1 }
 0x173   :  { %1553 = vrot.lane.b32.xlu0 %v10251_v62, %s11329_s29 }
 0x174   :  { %1518 = vrot.lane.b32.xlu1 %v963_v59, %s11328_s22  ;;  %v10404_v55 = vpop.f32.mrf.mxu1 }
 0x175   :  { %v1388_v3 = vpop.permute.xlu1 %1387  ;;  %v1398_v4 = vpop.permute.xlu0 %1397 }
 0x176   :  { %1411 = vst.msk [vmem:[#allocation2 + $0x10] sm:$0xff] %vm1409_vm3, %v1388_v3  ;;  %1416 = vst.msk [vmem:[#allocation2 + $0x60] sm:$0xff] %vm1409_vm3, %v1398_v4  ;;  %v2932_v59 = vpop.f32.mrf.mxu1 }
 0x177   :  { %3428 = vrot.lane.b32.xlu0 %v10387_v50, %s11328_s22 }
 0x178   :  { %3394 = vrot.lane.b32.xlu1 %v2852_v47, %s11327_s28  ;;  %v1011_v47 = vpop.f32.mrf.mxu0  ;;  %v10407_v61 = vpop.f32.mrf.mxu1 }
 0x179   :  { %v3267_v7 = vpop.permute.xlu1 %3266  ;;  %v3277_v8 = vpop.permute.xlu0 %3276 }
 0x17a   :  { %3289 = vst.msk [vmem:[#allocation2 + $0x90] sm:$0xff] %vm1368_vm2, %v3267_v7  ;;  %3294 = vst.msk [vmem:[#allocation2 + $0xe0] sm:$0xff] %vm1368_vm2, %v3277_v8  ;;  %v10263_v49 = vpop.f32.mrf.mxu0  ;;  %v12120_v1 = vpop.f32.mrf.mxu1 }
 0x17b   :  { %1549 = vrot.lane.b32.xlu0 %v976_v5, %s11329_s29 }
 0x17c   :  { %1555 = vrot.lane.b32.xlu1 %v10252_v9, %s11329_s29  ;;  %v10408_v5 = vpop.f32.mrf.mxu1 }
 0x17d   :  { %v1394_v10 = vpop.permute.xlu0 %1393 }
 0x17e   :  { %1414 = vst.msk [vmem:[#allocation2 + $0x40] sm:$0xff] %vm1409_vm3, %v1394_v10  ;;  %v1400_v12 = vpop.permute.xlu1 %1399  ;;  %v12130_v9 = vpop.f32.mrf.mxu1 }
 0x17f   :  { %1417 = vst.msk [vmem:[#allocation2 + $0x70] sm:$0xff] %vm1409_vm3, %v1400_v12  ;;  %3424 = vrot.lane.b32.xlu0 %v2865_v54, %s11328_s22  ;;  %v1024_v54 = vpop.f32.mrf.mxu0 }
 0x180   :  { %3430 = vrot.lane.b32.xlu1 %v10388_v58, %s11328_s22  ;;  %v10411_v12 = vpop.f32.mrf.mxu1 }
 0x181   :  { %v3273_v14 = vpop.permute.xlu0 %3272  ;;  %v10264_v58 = vpop.f32.mrf.mxu0 }
 0x182   :  { %3292 = vst.msk [vmem:[#allocation2 + $0xc0] sm:$0xff] %vm1368_vm2, %v3273_v14  ;;  %v3279_v17 = vpop.permute.xlu1 %3278 }
 0x183   :  { %3295 = vst.msk [vmem:[#allocation2 + $0xf0] sm:$0xff] %vm1368_vm2, %v3279_v17  ;;  %1561 = vrot.lane.b32.xlu0 %v10255_v16, %s11329_s29 }
 0x184   :  { %1551 = vrot.lane.b32.xlu1 %v979_v13, %s11329_s29 }
 0x185   :  { %v1431_v19 = vpop.permute.xlu0 %1430 }
 0x186   :  { %v1396_v20 = vpop.permute.xlu1 %1395  ;;  %1453 = vst.msk [vmem:[#allocation2 + $0x20] sm:$0xff] %vm1450_vm4, %v1431_v19 }
 0x187   :  { %1415 = vst.msk [vmem:[#allocation2 + $0x50] sm:$0xff] %vm1409_vm3, %v1396_v20  ;;  %3436 = vrot.lane.b32.xlu0 %v10391_v2, %s11328_s22 }
 0x188   :  { %3426 = vrot.lane.b32.xlu1 %v2868_v63, %s11328_s22  ;;  %v1027_v63 = vpop.f32.mrf.mxu0 }
 0x189   :  { %v3309_v23 = vpop.permute.xlu0 %3308 }
 0x18a   :  { %v3275_v24 = vpop.permute.xlu1 %3274  ;;  %3330 = vst.msk [vmem:[#allocation2 + $0xa0] sm:$0xff] %vm1409_vm3, %v3309_v23  ;;  %v10267_v2 = vpop.f32.mrf.mxu0 }
 0x18b   :  { %3293 = vst.msk [vmem:[#allocation2 + $0xd0] sm:$0xff] %vm1368_vm2, %v3275_v24  ;;  %1557 = vrot.lane.b32.xlu0 %v992_v21, %s11329_s29  ;;  %vm1901_vm2 = vcmask 982912  }
 0x18c   :  { %1563 = vrot.lane.b32.xlu1 %v10256_v25, %s11329_s29  ;;  %v1040_v7 = vpop.f32.mrf.mxu0 }
 0x18d   :  { %v1427_v27 = vpop.permute.xlu0 %1426 }
 0x18e   :  { %1451 = vst.msk [vmem:[#allocation2] sm:$0xff] %vm1450_vm4, %v1427_v27  ;;  %v1433_v28 = vpop.permute.xlu1 %1432 }
 0x18f   :  { %1454 = vst.msk [vmem:[#allocation2 + $0x30] sm:$0xff] %vm1450_vm4, %v1433_v28  ;;  %3432 = vrot.lane.b32.xlu0 %v2881_v6, %s11328_s22 }
 0x190   :  { %3438 = vrot.lane.b32.xlu1 %v10392_v11, %s11328_s22  ;;  %v10268_v11 = vpop.f32.mrf.mxu0 }
 0x191   :  { %v3305_v31 = vpop.permute.xlu0 %3304 }
 0x192   :  { %3328 = vst.msk [vmem:[#allocation2 + $0x80] sm:$0xff] %vm1409_vm3, %v3305_v31  ;;  %v3311_v34 = vpop.permute.xlu1 %3310  ;;  %v1043_v16 = vpop.f32.mrf.mxu0 }
 0x193   :  { %3331 = vst.msk [vmem:[#allocation2 + $0xb0] sm:$0xff] %vm1409_vm3, %v3311_v34  ;;  %1594 = vrot.lane.b32.xlu0 %v10259_v33, %s11330_s11 }
 0x194   :  { %1559 = vrot.lane.b32.xlu1 %v995_v30, %s11329_s29 }
 0x195   :  { %v1439_v35 = vpop.permute.xlu0 %1438 }
 0x196   :  { %v1429_v37 = vpop.permute.xlu1 %1428  ;;  %1457 = vst.msk [vmem:[#allocation2 + $0x60] sm:$0xff] %vm1450_vm4, %v1439_v35 }
 0x197   :  { %1452 = vst.msk [vmem:[#allocation2 + $0x10] sm:$0xff] %vm1450_vm4, %v1429_v37  ;;  %3468 = vrot.lane.b32.xlu0 %v10395_v18, %s11329_s29  ;;  %v10271_v18 = vpop.f32.mrf.mxu0 }
 0x198   :  { %3434 = vrot.lane.b32.xlu1 %v2884_v15, %s11328_s22  ;;  %v12139_v15 = vpop.f32.mrf.mxu1 }
 0x199   :  { %v3317_v39 = vpop.permute.xlu0 %3316  ;;  %v1056_v23 = vpop.f32.mrf.mxu0 }
 0x19a   :  { %v3307_v41 = vpop.permute.xlu1 %3306  ;;  %3334 = vst.msk [vmem:[#allocation2 + $0xe0] sm:$0xff] %vm1409_vm3, %v3317_v39  ;;  %v10412_v20 = vpop.f32.mrf.mxu1 }
 0x19b   :  { %3329 = vst.msk [vmem:[#allocation2 + $0x90] sm:$0xff] %vm1409_vm3, %v3307_v41  ;;  %1590 = vrot.lane.b32.xlu0 %v1008_v38, %s11330_s11  ;;  %v10272_v28 = vpop.f32.mrf.mxu0 }
 0x19c   :  { %1596 = vrot.lane.b32.xlu1 %v10260_v42, %s11330_s11  ;;  %v12149_v24 = vpop.f32.mrf.mxu1 }
 0x19d   :  { %v1435_v43 = vpop.permute.xlu0 %1434 }
 0x19e   :  { %1455 = vst.msk [vmem:[#allocation2 + $0x40] sm:$0xff] %vm1450_vm4, %v1435_v43  ;;  %v1441_v45 = vpop.permute.xlu1 %1440  ;;  %v11012_v43 = vld [vmem:[%s14584_s0 + $0x428] sm:$0xff]  }
 0x19f   :  { %1458 = vst.msk [vmem:[#allocation2 + $0x70] sm:$0xff] %vm1450_vm4, %v1441_v45  ;;  %3464 = vrot.lane.b32.xlu0 %v2897_v22, %s11329_s29 }
 0x1a0   :  { %3470 = vrot.lane.b32.xlu1 %v10396_v26, %s11329_s29  ;;  %v12152_v26 = vpop.f32.mrf.mxu1 }
 0x1a1   :  { %v3313_v48 = vpop.permute.xlu0 %3312 }
 0x1a2   :  { %3332 = vst.msk [vmem:[#allocation2 + $0xc0] sm:$0xff] %vm1409_vm3, %v3313_v48  ;;  %v3319_v50 = vpop.permute.xlu1 %3318  ;;  %v12158_v30 = vpop.f32.mrf.mxu1 }
 0x1a3   :  { %3335 = vst.msk [vmem:[#allocation2 + $0xf0] sm:$0xff] %vm1409_vm3, %v3319_v50  ;;  %1602 = vrot.lane.b32.xlu0 %v10263_v49, %s11330_s11 }
 0x1a4   :  { %1592 = vrot.lane.b32.xlu1 %v1011_v47, %s11330_s11  ;;  %v12165_v34 = vpop.f32.mrf.mxu1 }
 0x1a5   :  { %v1472_v52 = vpop.permute.xlu0 %1471 }
 0x1a6   :  { %v1437_v53 = vpop.permute.xlu1 %1436  ;;  %1494 = vst.msk [vmem:[#allocation2 + $0x20] sm:$0xff] %vm1491_vm5, %v1472_v52  ;;  %v12171_v38 = vpop.f32.mrf.mxu1 }
 0x1a7   :  { %1456 = vst.msk [vmem:[#allocation2 + $0x50] sm:$0xff] %vm1450_vm4, %v1437_v53  ;;  %3476 = vrot.lane.b32.xlu0 %v10399_v32, %s11329_s29  ;;  %v1059_v32 = vpop.f32.mrf.mxu0 }
 0x1a8   :  { %3466 = vrot.lane.b32.xlu1 %v2900_v29, %s11329_s29  ;;  %v12179_v42 = vpop.f32.mrf.mxu1 }
 0x1a9   :  { %v3349_v56 = vpop.permute.xlu0 %3348  ;;  %v10275_v35 = vpop.f32.mrf.mxu0 }
 0x1aa   :  { %v3315_v57 = vpop.permute.xlu1 %3314  ;;  %3370 = vst.msk [vmem:[#allocation2 + $0xa0] sm:$0xff] %vm1450_vm4, %v3349_v56  ;;  %v12191_v47 = vpop.f32.mrf.mxu1 }
 0x1ab   :  { %3333 = vst.msk [vmem:[#allocation2 + $0xd0] sm:$0xff] %vm1409_vm3, %v3315_v57  ;;  %1598 = vrot.lane.b32.xlu0 %v1024_v54, %s11330_s11  ;;  %v1072_v41 = vpop.f32.mrf.mxu0  ;;  %vm1942_vm3 = vcmask 1048512  }
 0x1ac   :  { %1604 = vrot.lane.b32.xlu1 %v10264_v58, %s11330_s11  ;;  %v12198_v50 = vpop.f32.mrf.mxu1 }
 0x1ad   :  { %v1468_v60 = vpop.permute.xlu0 %1467 }
 0x1ae   :  { %1492 = vst.msk [vmem:[#allocation2] sm:$0xff] %vm1491_vm5, %v1468_v60  ;;  %v1474_v62 = vpop.permute.xlu1 %1473 }
 0x1af   :  { %1495 = vst.msk [vmem:[#allocation2 + $0x30] sm:$0xff] %vm1491_vm5, %v1474_v62  ;;  %3472 = vrot.lane.b32.xlu0 %v2913_v36, %s11329_s29 }
 0x1b0   :  { %3478 = vrot.lane.b32.xlu1 %v10400_v40, %s11329_s29  ;;  %v11011_v40 = vld [vmem:[%s14584_s0 + $0x420] sm:$0xff]  }
 0x1b1   :  { %v3345_v0 = vpop.permute.xlu0 %3344  ;;  %10473 = vmatprep.mubr.msk.bf16.mxu1 %vm545_vm0, %v11011_v40 }
 0x1b2   :  { %3368 = vst.msk [vmem:[#allocation2 + $0x80] sm:$0xff] %vm1450_vm4, %v3345_v0  ;;  %v3351_v3 = vpop.permute.xlu1 %3350  ;;  %10474 = vmatmul.mubr.msk.bf16.gmra.mxu1 %vm545_vm0, %v11012_v43 }
 0x1b3   :  { %3371 = vst.msk [vmem:[#allocation2 + $0xb0] sm:$0xff] %vm1450_vm4, %v3351_v3  ;;  %1635 = vrot.lane.b32.xlu0 %v10267_v2, %s11331_s12 }
 0x1b4   :  { %1600 = vrot.lane.b32.xlu1 %v1027_v63, %s11330_s11 }
 0x1b5   :  { %v1480_v4 = vpop.permute.xlu0 %1479 }
 0x1b6   :  { %v1470_v6 = vpop.permute.xlu1 %1469  ;;  %1498 = vst.msk [vmem:[#allocation2 + $0x60] sm:$0xff] %vm1491_vm5, %v1480_v4 }
 0x1b7   :  { %1493 = vst.msk [vmem:[#allocation2 + $0x10] sm:$0xff] %vm1491_vm5, %v1470_v6  ;;  %3508 = vrot.lane.b32.xlu0 %v10403_v46, %s11330_s11  ;;  %v10276_v46 = vpop.f32.mrf.mxu0 }
 0x1b8   :  { %3474 = vrot.lane.b32.xlu1 %v2916_v44, %s11329_s29  ;;  %s11339_s29 = smov 120  }
 0x1b9   :  { %v3357_v8 = vpop.permute.xlu0 %3356 }
 0x1ba   :  { %v3347_v10 = vpop.permute.xlu1 %3346  ;;  %3374 = vst.msk [vmem:[#allocation2 + $0xe0] sm:$0xff] %vm1450_vm4, %v3357_v8 }
 0x1bb   :  { %3369 = vst.msk [vmem:[#allocation2 + $0x90] sm:$0xff] %vm1450_vm4, %v3347_v10  ;;  %1631 = vrot.lane.b32.xlu0 %v1040_v7, %s11331_s12 }
 0x1bc   :  { %1637 = vrot.lane.b32.xlu1 %v10268_v11, %s11331_s12 }
 0x1bd   :  { %v1476_v13 = vpop.permute.xlu0 %1475 }
 0x1be   :  { %1496 = vst.msk [vmem:[#allocation2 + $0x40] sm:$0xff] %vm1491_vm5, %v1476_v13  ;;  %v1482_v14 = vpop.permute.xlu1 %1481 }
 0x1bf   :  { %1499 = vst.msk [vmem:[#allocation2 + $0x70] sm:$0xff] %vm1491_vm5, %v1482_v14  ;;  %3504 = vrot.lane.b32.xlu0 %v2929_v51, %s11330_s11  ;;  %v1075_v51 = vpop.f32.mrf.mxu0 }
 0x1c0   :  { %3510 = vrot.lane.b32.xlu1 %v10404_v55, %s11330_s11  ;;  %v12204_v55 = vpop.f32.mrf.mxu1 }
 0x1c1   :  { %v3353_v17 = vpop.permute.xlu0 %3352  ;;  %v10279_v53 = vpop.f32.mrf.mxu0 }
 0x1c2   :  { %3372 = vst.msk [vmem:[#allocation2 + $0xc0] sm:$0xff] %vm1450_vm4, %v3353_v17  ;;  %v3359_v19 = vpop.permute.xlu1 %3358  ;;  %v12207_v57 = vpop.f32.mrf.mxu1 }
 0x1c3   :  { %3375 = vst.msk [vmem:[#allocation2 + $0xf0] sm:$0xff] %vm1450_vm4, %v3359_v19  ;;  %1643 = vrot.lane.b32.xlu0 %v10271_v18, %s11331_s12  ;;  %v1088_v60 = vpop.f32.mrf.mxu0 }
 0x1c4   :  { %1633 = vrot.lane.b32.xlu1 %v1043_v16, %s11331_s12  ;;  %v12222_v63 = vpop.f32.mrf.mxu1 }
 0x1c5   :  { %v1513_v21 = vpop.permute.xlu0 %1512 }
 0x1c6   :  { %v1478_v22 = vpop.permute.xlu1 %1477  ;;  %1535 = vst.msk [vmem:[#allocation2 + $0x20] sm:$0xff] %vm1532_vm6, %v1513_v21  ;;  %v12229_v3 = vpop.f32.mrf.mxu1 }
 0x1c7   :  { %1497 = vst.msk [vmem:[#allocation2 + $0x50] sm:$0xff] %vm1491_vm5, %v1478_v22  ;;  %3516 = vrot.lane.b32.xlu0 %v10407_v61, %s11330_s11  ;;  %v11014_v61 = vld [vmem:[%s14584_s0 + $0x438] sm:$0xff]  }
 0x1c8   :  { %3506 = vrot.lane.b32.xlu1 %v2932_v59, %s11330_s11  ;;  %v11013_v59 = vld [vmem:[%s14584_s0 + $0x430] sm:$0xff]   ;;  %v12237_v7 = vpop.f32.mrf.mxu1 }
 0x1c9   :  { %v3389_v25 = vpop.permute.xlu0 %3388  ;;  %10477 = vmatprep.mubr.msk.bf16.mxu1 %vm545_vm0, %v11013_v59 }
 0x1ca   :  { %v3355_v27 = vpop.permute.xlu1 %3354  ;;  %3410 = vst.msk [vmem:[#allocation2 + $0xa0] sm:$0xff] %vm1491_vm5, %v3389_v25  ;;  %10478 = vmatmul.mubr.msk.bf16.gmra.mxu1 %vm545_vm0, %v11014_v61  ;;  %v12242_v10 = vpop.f32.mrf.mxu1 }
 0x1cb   :  { %3373 = vst.msk [vmem:[#allocation2 + $0xd0] sm:$0xff] %vm1450_vm4, %v3355_v27  ;;  %1639 = vrot.lane.b32.xlu0 %v1056_v23, %s11331_s12 }
 0x1cc   :  { %1645 = vrot.lane.b32.xlu1 %v10272_v28, %s11331_s12  ;;  %v12249_v14 = vpop.f32.mrf.mxu1 }
 0x1cd   :  { %v1509_v29 = vpop.permute.xlu0 %1508 }
 0x1ce   :  { %1533 = vst.msk [vmem:[#allocation2] sm:$0xff] %vm1532_vm6, %v1509_v29  ;;  %v1515_v31 = vpop.permute.xlu1 %1514  ;;  %v12256_v18 = vpop.f32.mrf.mxu1 }
 0x1cf   :  { %1536 = vst.msk [vmem:[#allocation2 + $0x30] sm:$0xff] %vm1532_vm6, %v1515_v31  ;;  %3512 = vrot.lane.b32.xlu0 %v12120_v1, %s11330_s11  ;;  %v10280_v1 = vpop.f32.mrf.mxu0 }
 0x1d0   :  { %3518 = vrot.lane.b32.xlu1 %v10408_v5, %s11330_s11  ;;  %v12263_v22 = vpop.f32.mrf.mxu1 }
 0x1d1   :  { %v3385_v33 = vpop.permute.xlu0 %3384  ;;  %v1091_v5 = vpop.f32.mrf.mxu0 }
 0x1d2   :  { %3408 = vst.msk [vmem:[#allocation2 + $0x80] sm:$0xff] %vm1491_vm5, %v3385_v33  ;;  %v3391_v36 = vpop.permute.xlu1 %3390  ;;  %v12267_v25 = vpop.f32.mrf.mxu1 }
 0x1d3   :  { %3411 = vst.msk [vmem:[#allocation2 + $0xb0] sm:$0xff] %vm1491_vm5, %v3391_v36  ;;  %1676 = vrot.lane.b32.xlu0 %v10275_v35, %s11332_s13  ;;  %v10283_v8 = vpop.f32.mrf.mxu0 }
 0x1d4   :  { %1641 = vrot.lane.b32.xlu1 %v1059_v32, %s11331_s12  ;;  %v12273_v29 = vpop.f32.mrf.mxu1 }
 0x1d5   :  { %v1521_v37 = vpop.permute.xlu0 %1520 }
 0x1d6   :  { %v1511_v39 = vpop.permute.xlu1 %1510  ;;  %1539 = vst.msk [vmem:[#allocation2 + $0x60] sm:$0xff] %vm1532_vm6, %v1521_v37  ;;  %v12280_v33 = vpop.f32.mrf.mxu1 }
 0x1d7   :  { %1534 = vst.msk [vmem:[#allocation2 + $0x10] sm:$0xff] %vm1532_vm6, %v1511_v39  ;;  %3548 = vrot.lane.b32.xlu0 %v10411_v12, %s11331_s12  ;;  %v1104_v12 = vpop.f32.mrf.mxu0 }
 0x1d8   :  { %3514 = vrot.lane.b32.xlu1 %v12130_v9, %s11330_s11  ;;  %v12287_v37 = vpop.f32.mrf.mxu1 }
 0x1d9   :  { %v3397_v44 = vpop.permute.xlu0 %3396  ;;  %v10284_v16 = vpop.f32.mrf.mxu0 }
 0x1da   :  { %v3387_v45 = vpop.permute.xlu1 %3386  ;;  %3414 = vst.msk [vmem:[#allocation2 + $0xe0] sm:$0xff] %vm1491_vm5, %v3397_v44  ;;  %v12292_v40 = vpop.f32.mrf.mxu1 }
 0x1db   :  { %3409 = vst.msk [vmem:[#allocation2 + $0x90] sm:$0xff] %vm1491_vm5, %v3387_v45  ;;  %1672 = vrot.lane.b32.xlu0 %v1072_v41, %s11332_s13 }
 0x1dc   :  { %1678 = vrot.lane.b32.xlu1 %v10276_v46, %s11332_s13  ;;  %v12299_v44 = vpop.f32.mrf.mxu1 }
 0x1dd   :  { %v1517_v48 = vpop.permute.xlu0 %1516 }
 0x1de   :  { %1537 = vst.msk [vmem:[#allocation2 + $0x40] sm:$0xff] %vm1532_vm6, %v1517_v48  ;;  %v1523_v49 = vpop.permute.xlu1 %1522  ;;  %v12306_v48 = vpop.f32.mrf.mxu1 }
 0x1df   :  { %1540 = vst.msk [vmem:[#allocation2 + $0x70] sm:$0xff] %vm1532_vm6, %v1523_v49  ;;  %3544 = vrot.lane.b32.xlu0 %v12139_v15, %s11331_s12 }
 0x1e0   :  { %3550 = vrot.lane.b32.xlu1 %v10412_v20, %s11331_s12  ;;  %v1107_v20 = vpop.f32.mrf.mxu0 }
 0x1e1   :  { %v3393_v52 = vpop.permute.xlu0 %3392 }
 0x1e2   :  { %3412 = vst.msk [vmem:[#allocation2 + $0xc0] sm:$0xff] %vm1491_vm5, %v3393_v52  ;;  %v3399_v54 = vpop.permute.xlu1 %3398  ;;  %v10287_v23 = vpop.f32.mrf.mxu0 }
 0x1e3   :  { %3415 = vst.msk [vmem:[#allocation2 + $0xf0] sm:$0xff] %vm1491_vm5, %v3399_v54  ;;  %1684 = vrot.lane.b32.xlu0 %v10279_v53, %s11332_s13  ;;  %v12313_v52 = vpop.f32.mrf.mxu1 }
 0x1e4   :  { %1674 = vrot.lane.b32.xlu1 %v1075_v51, %s11332_s13  ;;  %v1120_v27 = vpop.f32.mrf.mxu0 }
 0x1e5   :  { %v1554_v56 = vpop.permute.xlu0 %1553 }
 0x1e6   :  { %v1519_v58 = vpop.permute.xlu1 %1518  ;;  %1576 = vst.msk [vmem:[#allocation2 + $0x20] sm:$0xff] %vm1573_vm7, %v1554_v56  ;;  %v10288_v31 = vpop.f32.mrf.mxu0 }
 0x1e7   :  { %1538 = vst.msk [vmem:[#allocation2 + $0x50] sm:$0xff] %vm1532_vm6, %v1519_v58  ;;  %3556 = vrot.lane.b32.xlu0 %v12152_v26, %s11331_s12 }
 0x1e8   :  { %3546 = vrot.lane.b32.xlu1 %v12149_v24, %s11331_s12  ;;  %v1123_v35 = vpop.f32.mrf.mxu0 }
 0x1e9   :  { %v3429_v62 = vpop.permute.xlu0 %3428 }
 0x1ea   :  { %v3395_v0 = vpop.permute.xlu1 %3394  ;;  %3450 = vst.msk [vmem:[#allocation2 + $0xa0] sm:$0xff] %vm1532_vm6, %v3429_v62 }
 0x1eb   :  { %3413 = vst.msk [vmem:[#allocation2 + $0xd0] sm:$0xff] %vm1491_vm5, %v3395_v0  ;;  %1680 = vrot.lane.b32.xlu0 %v1088_v60, %s11332_s13 }
 0x1ec   :  { %1686 = vrot.lane.b32.xlu1 %v10280_v1, %s11332_s13 }
 0x1ed   :  { %v1550_v2 = vpop.permute.xlu0 %1549 }
 0x1ee   :  { %1574 = vst.msk [vmem:[#allocation2] sm:$0xff] %vm1573_vm7, %v1550_v2  ;;  %v1556_v4 = vpop.permute.xlu1 %1555 }
 0x1ef   :  { %1577 = vst.msk [vmem:[#allocation2 + $0x30] sm:$0xff] %vm1573_vm7, %v1556_v4  ;;  %3552 = vrot.lane.b32.xlu0 %v12158_v30, %s11331_s12 }
 0x1f0   :  { %3558 = vrot.lane.b32.xlu1 %v12165_v34, %s11331_s12 }
 0x1f1   :  { %v3425_v6 = vpop.permute.xlu0 %3424 }
 0x1f2   :  { %3448 = vst.msk [vmem:[#allocation2 + $0x80] sm:$0xff] %vm1532_vm6, %v3425_v6  ;;  %v3431_v9 = vpop.permute.xlu1 %3430 }
 0x1f3   :  { %3451 = vst.msk [vmem:[#allocation2 + $0xb0] sm:$0xff] %vm1532_vm6, %v3431_v9  ;;  %1717 = vrot.lane.b32.xlu0 %v10283_v8, %s11333_s21 }
 0x1f4   :  { %1682 = vrot.lane.b32.xlu1 %v1091_v5, %s11332_s13 }
 0x1f5   :  { %v1562_v11 = vpop.permute.xlu0 %1561 }
 0x1f6   :  { %v1552_v13 = vpop.permute.xlu1 %1551  ;;  %1580 = vst.msk [vmem:[#allocation2 + $0x60] sm:$0xff] %vm1573_vm7, %v1562_v11 }
 0x1f7   :  { %1575 = vst.msk [vmem:[#allocation2 + $0x10] sm:$0xff] %vm1573_vm7, %v1552_v13  ;;  %3588 = vrot.lane.b32.xlu0 %v12179_v42, %s11332_s13 }
 0x1f8   :  { %3554 = vrot.lane.b32.xlu1 %v12171_v38, %s11331_s12  ;;  %v10291_v38 = vpop.f32.mrf.mxu0 }
 0x1f9   :  { %v3437_v15 = vpop.permute.xlu0 %3436 }
 0x1fa   :  { %v3427_v17 = vpop.permute.xlu1 %3426  ;;  %3454 = vst.msk [vmem:[#allocation2 + $0xe0] sm:$0xff] %vm1532_vm6, %v3437_v15  ;;  %v1136_v42 = vpop.f32.mrf.mxu0 }
 0x1fb   :  { %3449 = vst.msk [vmem:[#allocation2 + $0x90] sm:$0xff] %vm1532_vm6, %v3427_v17  ;;  %1713 = vrot.lane.b32.xlu0 %v1104_v12, %s11333_s21 }
 0x1fc   :  { %1719 = vrot.lane.b32.xlu1 %v10284_v16, %s11333_s21  ;;  %v10292_v46 = vpop.f32.mrf.mxu0 }
 0x1fd   :  { %v1558_v19 = vpop.permute.xlu0 %1557 }
 0x1fe   :  { %1578 = vst.msk [vmem:[#allocation2 + $0x40] sm:$0xff] %vm1573_vm7, %v1558_v19  ;;  %v1564_v21 = vpop.permute.xlu1 %1563 }
 0x1ff   :  { %1581 = vst.msk [vmem:[#allocation2 + $0x70] sm:$0xff] %vm1573_vm7, %v1564_v21  ;;  %3584 = vrot.lane.b32.xlu0 %v12191_v47, %s11332_s13 }
 0x200   :  { %3590 = vrot.lane.b32.xlu1 %v12198_v50, %s11332_s13  ;;  %v1139_v50 = vpop.f32.mrf.mxu0 }
 0x201   :  { %v3433_v24 = vpop.permute.xlu0 %3432 }
 0x202   :  { %3452 = vst.msk [vmem:[#allocation2 + $0xc0] sm:$0xff] %vm1532_vm6, %v3433_v24  ;;  %v3439_v26 = vpop.permute.xlu1 %3438  ;;  %v10295_v53 = vpop.f32.mrf.mxu0 }
 0x203   :  { %3455 = vst.msk [vmem:[#allocation2 + $0xf0] sm:$0xff] %vm1532_vm6, %v3439_v26  ;;  %1725 = vrot.lane.b32.xlu0 %v10287_v23, %s11333_s21 }
 0x204   :  { %1715 = vrot.lane.b32.xlu1 %v1107_v20, %s11333_s21  ;;  %v1152_v58 = vpop.f32.mrf.mxu0 }
 0x205   :  { %v1595_v28 = vpop.permute.xlu0 %1594 }
 0x206   :  { %v1560_v30 = vpop.permute.xlu1 %1559  ;;  %1617 = vst.msk [vmem:[#allocation2 + $0x20] sm:$0xff] %vm1614_vm8, %v1595_v28  ;;  %v10296_v62 = vpop.f32.mrf.mxu0 }
 0x207   :  { %1579 = vst.msk [vmem:[#allocation2 + $0x50] sm:$0xff] %vm1573_vm7, %v1560_v30  ;;  %1721 = vrot.lane.b32.xlu0 %v1120_v27, %s11333_s21 }
 0x208   :  { %3586 = vrot.lane.b32.xlu1 %v12204_v55, %s11332_s13  ;;  %v12317_v55 = vpop.f32.mrf.mxu1  ;;  %v1155_v2 = vpop.f32.mrf.mxu0 }
 0x209   :  { %v3469_v32 = vpop.permute.xlu0 %3468 }
 0x20a   :  { %v3435_v34 = vpop.permute.xlu1 %3434  ;;  %3490 = vst.msk [vmem:[#allocation2 + $0xa0] sm:$0xff] %vm1573_vm7, %v3469_v32  ;;  %v12323_v60 = vpop.f32.mrf.mxu1 }
 0x20b   :  { %3453 = vst.msk [vmem:[#allocation2 + $0xd0] sm:$0xff] %vm1532_vm6, %v3435_v34  ;;  %3592 = vrot.lane.b32.xlu0 %v12222_v63, %s11332_s13  ;;  %v10299_v6 = vpop.f32.mrf.mxu0 }
 0x20c   :  { %1727 = vrot.lane.b32.xlu1 %v10288_v31, %s11333_s21  ;;  %v12330_v0 = vpop.f32.mrf.mxu1 }
 0x20d   :  { %v1591_v36 = vpop.permute.xlu0 %1590 }
 0x20e   :  { %1615 = vst.msk [vmem:[#allocation2] sm:$0xff] %vm1614_vm8, %v1591_v36  ;;  %v1597_v39 = vpop.permute.xlu1 %1596  ;;  %v12337_v5 = vpop.f32.mrf.mxu1 }
 0x20f   :  { %1618 = vst.msk [vmem:[#allocation2 + $0x30] sm:$0xff] %vm1614_vm8, %v1597_v39  ;;  %1758 = vrot.lane.b32.xlu0 %v10291_v38, %s11334_s23 }
 0x210   :  { %1723 = vrot.lane.b32.xlu1 %v1123_v35, %s11333_s21  ;;  %v12342_v8 = vpop.f32.mrf.mxu1 }
 0x211   :  { %v3465_v41 = vpop.permute.xlu0 %3464 }
 0x212   :  { %3488 = vst.msk [vmem:[#allocation2 + $0x80] sm:$0xff] %vm1573_vm7, %v3465_v41  ;;  %v3471_v43 = vpop.permute.xlu1 %3470  ;;  %v12349_v12 = vpop.f32.mrf.mxu1 }
 0x213   :  { %3491 = vst.msk [vmem:[#allocation2 + $0xb0] sm:$0xff] %vm1573_vm7, %v3471_v43  ;;  %3628 = vrot.lane.b32.xlu0 %v12242_v10, %s11333_s21  ;;  %v1168_v10 = vpop.f32.mrf.mxu0 }
 0x214   :  { %3594 = vrot.lane.b32.xlu1 %v12237_v7, %s11332_s13  ;;  %v12356_v16 = vpop.f32.mrf.mxu1 }
 0x215   :  { %v1603_v45 = vpop.permute.xlu0 %1602 }
 0x216   :  { %v1593_v47 = vpop.permute.xlu1 %1592  ;;  %1621 = vst.msk [vmem:[#allocation2 + $0x60] sm:$0xff] %vm1614_vm8, %v1603_v45  ;;  %v12363_v20 = vpop.f32.mrf.mxu1 }
 0x217   :  { %1616 = vst.msk [vmem:[#allocation2 + $0x10] sm:$0xff] %vm1614_vm8, %v1593_v47  ;;  %1754 = vrot.lane.b32.xlu0 %v1136_v42, %s11334_s23 }
 0x218   :  { %1760 = vrot.lane.b32.xlu1 %v10292_v46, %s11334_s23  ;;  %v12367_v23 = vpop.f32.mrf.mxu1 }
 0x219   :  { %v3477_v49 = vpop.permute.xlu0 %3476 }
 0x21a   :  { %v3467_v51 = vpop.permute.xlu1 %3466  ;;  %3494 = vst.msk [vmem:[#allocation2 + $0xe0] sm:$0xff] %vm1573_vm7, %v3477_v49  ;;  %v12373_v28 = vpop.f32.mrf.mxu1 }
 0x21b   :  { %3489 = vst.msk [vmem:[#allocation2 + $0x90] sm:$0xff] %vm1573_vm7, %v3467_v51  ;;  %3624 = vrot.lane.b32.xlu0 %v12249_v14, %s11333_s21  ;;  %v10300_v14 = vpop.f32.mrf.mxu0 }
 0x21c   :  { %3630 = vrot.lane.b32.xlu1 %v12256_v18, %s11333_s21  ;;  %v12380_v32 = vpop.f32.mrf.mxu1 }
 0x21d   :  { %v1599_v54 = vpop.permute.xlu0 %1598  ;;  %v1171_v18 = vpop.f32.mrf.mxu0 }
 0x21e   :  { %1619 = vst.msk [vmem:[#allocation2 + $0x40] sm:$0xff] %vm1614_vm8, %v1599_v54  ;;  %v1605_v56 = vpop.permute.xlu1 %1604 }
 0x21f   :  { %1622 = vst.msk [vmem:[#allocation2 + $0x70] sm:$0xff] %vm1614_vm8, %v1605_v56  ;;  %1766 = vrot.lane.b32.xlu0 %v10295_v53, %s11334_s23  ;;  %v10303_v21 = vpop.f32.mrf.mxu0 }
 0x220   :  { %1756 = vrot.lane.b32.xlu1 %v1139_v50, %s11334_s23 }
 0x221   :  { %v3473_v59 = vpop.permute.xlu0 %3472  ;;  %v1184_v26 = vpop.f32.mrf.mxu0 }
 0x222   :  { %3492 = vst.msk [vmem:[#allocation2 + $0xc0] sm:$0xff] %vm1573_vm7, %v3473_v59  ;;  %v3479_v61 = vpop.permute.xlu1 %3478 }
 0x223   :  { %3495 = vst.msk [vmem:[#allocation2 + $0xf0] sm:$0xff] %vm1573_vm7, %v3479_v61  ;;  %1762 = vrot.lane.b32.xlu0 %v1152_v58, %s11334_s23  ;;  %v10304_v30 = vpop.f32.mrf.mxu0 }
 0x224   :  { %3626 = vrot.lane.b32.xlu1 %v12263_v22, %s11333_s21 }
 0x225   :  { %v1636_v63 = vpop.permute.xlu0 %1635  ;;  %v1187_v35 = vpop.f32.mrf.mxu0 }
 0x226   :  { %v1601_v1 = vpop.permute.xlu1 %1600  ;;  %1658 = vst.msk [vmem:[#allocation2 + $0x20] sm:$0xff] %vm1655_vm9, %v1636_v63 }
 0x227   :  { %1620 = vst.msk [vmem:[#allocation2 + $0x50] sm:$0xff] %vm1614_vm8, %v1601_v1  ;;  %3632 = vrot.lane.b32.xlu0 %v12273_v29, %s11333_s21  ;;  %v10307_v38 = vpop.f32.mrf.mxu0 }
 0x228   :  { %1768 = vrot.lane.b32.xlu1 %v10296_v62, %s11334_s23 }
 0x229   :  { %v3509_v4 = vpop.permute.xlu0 %3508  ;;  %v1200_v42 = vpop.f32.mrf.mxu0 }
 0x22a   :  { %v3475_v7 = vpop.permute.xlu1 %3474  ;;  %3530 = vst.msk [vmem:[#allocation2 + $0xa0] sm:$0xff] %vm1614_vm8, %v3509_v4 }
 0x22b   :  { %3493 = vst.msk [vmem:[#allocation2 + $0xd0] sm:$0xff] %vm1573_vm7, %v3475_v7  ;;  %1799 = vrot.lane.b32.xlu0 %v10299_v6, %s11335_s24  ;;  %v10308_v46 = vpop.f32.mrf.mxu0 }
 0x22c   :  { %1764 = vrot.lane.b32.xlu1 %v1155_v2, %s11334_s23 }
 0x22d   :  { %v1632_v9 = vpop.permute.xlu0 %1631  ;;  %v1203_v50 = vpop.f32.mrf.mxu0 }
 0x22e   :  { %1656 = vst.msk [vmem:[#allocation2] sm:$0xff] %vm1655_vm9, %v1632_v9  ;;  %v1638_v11 = vpop.permute.xlu1 %1637 }
 0x22f   :  { %1659 = vst.msk [vmem:[#allocation2 + $0x30] sm:$0xff] %vm1655_vm9, %v1638_v11  ;;  %3668 = vrot.lane.b32.xlu0 %v12292_v40, %s11334_s23  ;;  %v10311_v53 = vpop.f32.mrf.mxu0 }
 0x230   :  { %3634 = vrot.lane.b32.xlu1 %v12287_v37, %s11333_s21  ;;  %v12387_v37 = vpop.f32.mrf.mxu1 }
 0x231   :  { %v3505_v13 = vpop.permute.xlu0 %3504  ;;  %v1216_v59 = vpop.f32.mrf.mxu0 }
 0x232   :  { %3528 = vst.msk [vmem:[#allocation2 + $0x80] sm:$0xff] %vm1614_vm8, %v3505_v13  ;;  %v3511_v15 = vpop.permute.xlu1 %3510  ;;  %v12392_v40 = vpop.f32.mrf.mxu1 }
 0x233   :  { %3531 = vst.msk [vmem:[#allocation2 + $0xb0] sm:$0xff] %vm1614_vm8, %v3511_v15  ;;  %1795 = vrot.lane.b32.xlu0 %v1168_v10, %s11335_s24  ;;  %v10312_v63 = vpop.f32.mrf.mxu0  ;;  %v11015_v15 = vld [vmem:[%s14586_s2 + $0x38] sm:$0xff]  }
 0x234   :  { %1801 = vrot.lane.b32.xlu1 %v10300_v14, %s11335_s24 }
 0x235   :  { %v1644_v17 = vpop.permute.xlu0 %1643 }
 0x236   :  { %v1634_v19 = vpop.permute.xlu1 %1633  ;;  %1662 = vst.msk [vmem:[#allocation2 + $0x60] sm:$0xff] %vm1655_vm9, %v1644_v17 }
 0x237   :  { %1657 = vst.msk [vmem:[#allocation2 + $0x10] sm:$0xff] %vm1655_vm9, %v1634_v19  ;;  %3664 = vrot.lane.b32.xlu0 %v12299_v44, %s11334_s23  ;;  %v12399_v44 = vpop.f32.mrf.mxu1 }
 0x238   :  { %3670 = vrot.lane.b32.xlu1 %v12306_v48, %s11334_s23 }
 0x239   :  { %v3517_v22 = vpop.permute.xlu0 %3516  ;;  %v12406_v48 = vpop.f32.mrf.mxu1 }
 0x23a   :  { %v3507_v24 = vpop.permute.xlu1 %3506  ;;  %3534 = vst.msk [vmem:[#allocation2 + $0xe0] sm:$0xff] %vm1614_vm8, %v3517_v22 }
 0x23b   :  { %3529 = vst.msk [vmem:[#allocation2 + $0x90] sm:$0xff] %vm1614_vm8, %v3507_v24  ;;  %1807 = vrot.lane.b32.xlu0 %v10303_v21, %s11335_s24  ;;  %v11016_v21 = vld [vmem:[%s14586_s2 + $0x30] sm:$0xff]  }
 0x23c   :  { %1797 = vrot.lane.b32.xlu1 %v1171_v18, %s11335_s24 }
 0x23d   :  { %v1640_v27 = vpop.permute.xlu0 %1639 }
 0x23e   :  { %1660 = vst.msk [vmem:[#allocation2 + $0x40] sm:$0xff] %vm1655_vm9, %v1640_v27  ;;  %v1646_v29 = vpop.permute.xlu1 %1645 }
 0x23f   :  { %1663 = vst.msk [vmem:[#allocation2 + $0x70] sm:$0xff] %vm1655_vm9, %v1646_v29  ;;  %1803 = vrot.lane.b32.xlu0 %v1184_v26, %s11335_s24 }
 0x240   :  { %3666 = vrot.lane.b32.xlu1 %v12313_v52, %s11334_s23  ;;  %v12413_v52 = vpop.f32.mrf.mxu1 }
 0x241   :  { %v3513_v31 = vpop.permute.xlu0 %3512 }
 0x242   :  { %3532 = vst.msk [vmem:[#allocation2 + $0xc0] sm:$0xff] %vm1614_vm8, %v3513_v31  ;;  %v3519_v34 = vpop.permute.xlu1 %3518  ;;  %v12417_v56 = vpop.f32.mrf.mxu1 }
 0x243   :  { %3535 = vst.msk [vmem:[#allocation2 + $0xf0] sm:$0xff] %vm1614_vm8, %v3519_v34  ;;  %3672 = vrot.lane.b32.xlu0 %v12323_v60, %s11334_s23 }
 0x244   :  { %1809 = vrot.lane.b32.xlu1 %v10304_v30, %s11335_s24  ;;  %v12423_v61 = vpop.f32.mrf.mxu1 }
 0x245   :  { %v1677_v36 = vpop.permute.xlu0 %1676 }
 0x246   :  { %v1642_v39 = vpop.permute.xlu1 %1641  ;;  %1699 = vst.msk [vmem:[#allocation2 + $0x20] sm:$0xff] %vm1696_vm10, %v1677_v36  ;;  %v12430_v2 = vpop.f32.mrf.mxu1 }
 0x247   :  { %1661 = vst.msk [vmem:[#allocation2 + $0x50] sm:$0xff] %vm1655_vm9, %v1642_v39  ;;  %1840 = vrot.lane.b32.xlu0 %v10307_v38, %s11336_s25 }
 0x248   :  { %1805 = vrot.lane.b32.xlu1 %v1187_v35, %s11335_s24  ;;  %v12437_v7 = vpop.f32.mrf.mxu1  ;;  %v11018_v35 = vld [vmem:[%s14586_s2 + $0x20] sm:$0xff]  }
 0x249   :  { %v3549_v41 = vpop.permute.xlu0 %3548 }
 0x24a   :  { %v3515_v43 = vpop.permute.xlu1 %3514  ;;  %3570 = vst.msk [vmem:[#allocation2 + $0xa0] sm:$0xff] %vm1655_vm9, %v3549_v41  ;;  %v12442_v10 = vpop.f32.mrf.mxu1 }
 0x24b   :  { %3533 = vst.msk [vmem:[#allocation2 + $0xd0] sm:$0xff] %vm1614_vm8, %v3515_v43  ;;  %3708 = vrot.lane.b32.xlu0 %v12342_v8, %s11335_s24 }
 0x24c   :  { %3674 = vrot.lane.b32.xlu1 %v12337_v5, %s11334_s23  ;;  %v1219_v5 = vpop.f32.mrf.mxu0  ;;  %v12449_v14 = vpop.f32.mrf.mxu1 }
 0x24d   :  { %v1673_v45 = vpop.permute.xlu0 %1672 }
 0x24e   :  { %1697 = vst.msk [vmem:[#allocation2] sm:$0xff] %vm1696_vm10, %v1673_v45  ;;  %v1679_v47 = vpop.permute.xlu1 %1678  ;;  %v10315_v8 = vpop.f32.mrf.mxu0  ;;  %v11020_v45 = vld [vmem:[%s14586_s2 + $0x10] sm:$0xff]  }
 0x24f   :  { %1700 = vst.msk [vmem:[#allocation2 + $0x30] sm:$0xff] %vm1696_vm10, %v1679_v47  ;;  %1836 = vrot.lane.b32.xlu0 %v1200_v42, %s11336_s25 }
 0x250   :  { %1842 = vrot.lane.b32.xlu1 %v10308_v46, %s11336_s25 }
 0x251   :  { %v3545_v49 = vpop.permute.xlu0 %3544 }
 0x252   :  { %3568 = vst.msk [vmem:[#allocation2 + $0x80] sm:$0xff] %vm1655_vm9, %v3545_v49  ;;  %v3551_v51 = vpop.permute.xlu1 %3550 }
 0x253   :  { %3571 = vst.msk [vmem:[#allocation2 + $0xb0] sm:$0xff] %vm1655_vm9, %v3551_v51  ;;  %3704 = vrot.lane.b32.xlu0 %v12349_v12, %s11335_s24  ;;  %v1232_v12 = vpop.f32.mrf.mxu0  ;;  %v11021_v51 = vld [vmem:[%s14586_s2 + $0x8] sm:$0xff]  }
 0x254   :  { %3710 = vrot.lane.b32.xlu1 %v12356_v16, %s11335_s24  ;;  %v11338_v16 = vmov 0  }
 0x255   :  { %v1685_v54 = vpop.permute.xlu0 %1684  ;;  %4015 = vmatprep.subr.bf16.mxu0 %v11338_v16  ;;  %v10316_v18 = vpop.f32.mrf.mxu0 }
 0x256   :  { %v1675_v58 = vpop.permute.xlu1 %1674  ;;  %1703 = vst.msk [vmem:[#allocation2 + $0x60] sm:$0xff] %vm1696_vm10, %v1685_v54  ;;  %4016 = vmatpush1.bf16.msra.mxu0 %v11015_v15 }
 0x257   :  { %1698 = vst.msk [vmem:[#allocation2 + $0x10] sm:$0xff] %vm1696_vm10, %v1675_v58  ;;  %1848 = vrot.lane.b32.xlu0 %v10311_v53, %s11336_s25  ;;  %4017 = vmatprep.subr.bf16.mxu0 %v11338_v16  ;;  %v1235_v24 = vpop.f32.mrf.mxu0 }
 0x258   :  { %1838 = vrot.lane.b32.xlu1 %v1203_v50, %s11336_s25 }
 0x259   :  { %v3557_v60 = vpop.permute.xlu0 %3556  ;;  %v10319_v29 = vpop.f32.mrf.mxu0 }
 0x25a   :  { %v3547_v62 = vpop.permute.xlu1 %3546  ;;  %3574 = vst.msk [vmem:[#allocation2 + $0xe0] sm:$0xff] %vm1655_vm9, %v3557_v60  ;;  %4018 = vmatpush1.bf16.msra.mxu0 %v11016_v21  ;;  %v11022_v60 = vld [vmem:[%s14586_s2] sm:$0xff]  }
 0x25b   :  { %3569 = vst.msk [vmem:[#allocation2 + $0x90] sm:$0xff] %vm1655_vm9, %v3547_v62  ;;  %1844 = vrot.lane.b32.xlu0 %v1216_v59, %s11336_s25  ;;  %4019 = vmatprep.subr.bf16.mxu0 %v11338_v16  ;;  %v1248_v36 = vpop.f32.mrf.mxu0 }
 0x25c   :  { %3706 = vrot.lane.b32.xlu1 %v12363_v20, %s11335_s24  ;;  %v12461_v20 = vpop.f32.mrf.mxu1 }
 0x25d   :  { %v1681_v1 = vpop.permute.xlu0 %1680  ;;  %v10320_v41 = vpop.f32.mrf.mxu0 }
 0x25e   :  { %1701 = vst.msk [vmem:[#allocation2 + $0x40] sm:$0xff] %vm1696_vm10, %v1681_v1  ;;  %v1687_v4 = vpop.permute.xlu1 %1686  ;;  %v12472_v27 = vpop.f32.mrf.mxu1 }
 0x25f   :  { %1704 = vst.msk [vmem:[#allocation2 + $0x70] sm:$0xff] %vm1696_vm10, %v1687_v4  ;;  %3712 = vrot.lane.b32.xlu0 %v12373_v28, %s11335_s24  ;;  %v11017_v28 = vld [vmem:[%s14586_s2 + $0x28] sm:$0xff]   ;;  %v1251_v46 = vpop.f32.mrf.mxu0  ;;  %v11023_v4 = vld [vmem:[%s14586_s2 + $0x40] ss:$0 sps:$4 sm:$0xff]  }
 0x260   :  { %1850 = vrot.lane.b32.xlu1 %v10312_v63, %s11336_s25  ;;  %v12479_v31 = vpop.f32.mrf.mxu1  ;;  %4020 = vmatpush1.bf16.msra.mxu0 %v11017_v28 }
 0x261   :  { %v3553_v6 = vpop.permute.xlu0 %3552  ;;  %4021 = vmatprep.subr.bf16.mxu0 %v11338_v16  ;;  %v10323_v49 = vpop.f32.mrf.mxu0 }
 0x262   :  { %3572 = vst.msk [vmem:[#allocation2 + $0xc0] sm:$0xff] %vm1655_vm9, %v3553_v6  ;;  %v3559_v9 = vpop.permute.xlu1 %3558  ;;  %v12489_v38 = vpop.f32.mrf.mxu1  ;;  %v4013_v6 = vsel %vm4011_vm13, %v11023_v4, 0 }
 0x263   :  { %3575 = vst.msk [vmem:[#allocation2 + $0xf0] sm:$0xff] %vm1655_vm9, %v3559_v9  ;;  %1881 = vrot.lane.b32.xlu0 %v10315_v8, %s11337_s27  ;;  %v1264_v58 = vpop.f32.mrf.mxu0 }
 0x264   :  { %1846 = vrot.lane.b32.xlu1 %v1219_v5, %s11336_s25  ;;  %4022 = vmatpush1.bf16.msra.mxu0 %v11018_v35  ;;  %v12500_v43 = vpop.f32.mrf.mxu1 }
 0x265   :  { %v1718_v11 = vpop.permute.xlu0 %1717  ;;  %4023 = vmatprep.subr.bf16.mxu0 %v11338_v16  ;;  %v10324_v63 = vpop.f32.mrf.mxu0 }
 0x266   :  { %v1683_v13 = vpop.permute.xlu1 %1682  ;;  %1740 = vst.msk [vmem:[#allocation2 + $0x20] sm:$0xff] %vm1737_vm11, %v1718_v11 }
 0x267   :  { %1702 = vst.msk [vmem:[#allocation2 + $0x50] sm:$0xff] %vm1696_vm10, %v1683_v13  ;;  %3748 = vrot.lane.b32.xlu0 %v12392_v40, %s11336_s25  ;;  %v11019_v40 = vld [vmem:[%s14586_s2 + $0x18] sm:$0xff]  }
 0x268   :  { %3714 = vrot.lane.b32.xlu1 %v12387_v37, %s11335_s24  ;;  %4024 = vmatpush1.bf16.msra.mxu0 %v11019_v40 }
 0x269   :  { %v3589_v17 = vpop.permute.xlu0 %3588  ;;  %4025 = vmatprep.subr.bf16.mxu0 %v11338_v16 }
 0x26a   :  { %v3555_v19 = vpop.permute.xlu1 %3554  ;;  %3610 = vst.msk [vmem:[#allocation2 + $0xa0] sm:$0xff] %vm1696_vm10, %v3589_v17 }
 0x26b   :  { %3573 = vst.msk [vmem:[#allocation2 + $0xd0] sm:$0xff] %vm1655_vm9, %v3555_v19  ;;  %1877 = vrot.lane.b32.xlu0 %v1232_v12, %s11337_s27  ;;  %v1267_v12 = vpop.f32.mrf.mxu0 }
 0x26c   :  { %1883 = vrot.lane.b32.xlu1 %v10316_v18, %s11337_s27  ;;  %4026 = vmatpush1.bf16.msra.mxu0 %v11020_v45 }
 0x26d   :  { %v1714_v22 = vpop.permute.xlu0 %1713  ;;  %4027 = vmatprep.subr.bf16.mxu0 %v11338_v16  ;;  %v10327_v15 = vpop.f32.mrf.mxu0 }
 0x26e   :  { %1738 = vst.msk [vmem:[#allocation2] sm:$0xff] %vm1737_vm11, %v1714_v22  ;;  %v1720_v26 = vpop.permute.xlu1 %1719 }
 0x26f   :  { %1741 = vst.msk [vmem:[#allocation2 + $0x30] sm:$0xff] %vm1737_vm11, %v1720_v26  ;;  %3744 = vrot.lane.b32.xlu0 %v12399_v44, %s11336_s25 }
 0x270   :  { %3750 = vrot.lane.b32.xlu1 %v12406_v48, %s11336_s25  ;;  %v12511_v48 = vpop.f32.mrf.mxu1  ;;  %4028 = vmatpush1.bf16.msra.mxu0 %v11021_v51 }
 0x271   :  { %v3585_v30 = vpop.permute.xlu0 %3584  ;;  %4029 = vmatprep.subr.bf16.mxu0 %v11338_v16 }
 0x272   :  { %3608 = vst.msk [vmem:[#allocation2 + $0x80] sm:$0xff] %vm1696_vm10, %v3585_v30  ;;  %v3591_v34 = vpop.permute.xlu1 %3590  ;;  %v12521_v53 = vpop.f32.mrf.mxu1 }
 0x273   :  { %3611 = vst.msk [vmem:[#allocation2 + $0xb0] sm:$0xff] %vm1696_vm10, %v3591_v34  ;;  %1889 = vrot.lane.b32.xlu0 %v10319_v29, %s11337_s27 }
 0x274   :  { %1879 = vrot.lane.b32.xlu1 %v1235_v24, %s11337_s27  ;;  %v12528_v59 = vpop.f32.mrf.mxu1  ;;  %4030 = vmatpush1.bf16.msra.mxu0 %v11022_v60 }
 0x275   :  { %v1726_v37 = vpop.permute.xlu0 %1725  ;;  %4045 = vmatprep.subr.bf16.mxu0 %v11338_v16 }
 0x276   :  { %v1716_v39 = vpop.permute.xlu1 %1715  ;;  %1744 = vst.msk [vmem:[#allocation2 + $0x60] sm:$0xff] %vm1737_vm11, %v1726_v37  ;;  %v12539_v1 = vpop.f32.mrf.mxu1 }
 0x277   :  { %1739 = vst.msk [vmem:[#allocation2 + $0x10] sm:$0xff] %vm1737_vm11, %v1716_v39  ;;  %1885 = vrot.lane.b32.xlu0 %v1248_v36, %s11337_s27 }
 0x278   :  { %3746 = vrot.lane.b32.xlu1 %v12413_v52, %s11336_s25  ;;  %4046 = vmatpush2.bf16.msra.mxu0 %v4013_v6  ;;  %v12549_v8 = vpop.f32.mrf.mxu1 }
 0x279   :  { %v1722_v42 = vpop.permute.xlu0 %1721 }
 0x27a   :  { %v3587_v44 = vpop.permute.xlu1 %3586  ;;  %1742 = vst.msk [vmem:[#allocation2 + $0x40] sm:$0xff] %vm1737_vm11, %v1722_v42 }
 0x27b   :  { %3609 = vst.msk [vmem:[#allocation2 + $0x90] sm:$0xff] %vm1696_vm10, %v3587_v44  ;;  %3752 = vrot.lane.b32.xlu0 %v12423_v61, %s11336_s25 }
 0x27c   :  { %1891 = vrot.lane.b32.xlu1 %v10320_v41, %s11337_s27 }
 0x27d   :  { %v3593_v47 = vpop.permute.xlu0 %3592 }
 0x27e   :  { %3612 = vst.msk [vmem:[#allocation2 + $0xc0] sm:$0xff] %vm1696_vm10, %v3593_v47  ;;  %v1728_v50 = vpop.permute.xlu1 %1727 }
 0x27f   :  { %1745 = vst.msk [vmem:[#allocation2 + $0x70] sm:$0xff] %vm1737_vm11, %v1728_v50  ;;  %1922 = vrot.lane.b32.xlu0 %v10323_v49, %s11339_s29 }
 0x280   :  { %1887 = vrot.lane.b32.xlu1 %v1251_v46, %s11337_s27 }
 0x281   :  { %v1759_v52 = vpop.permute.xlu0 %1758 }
 0x282   :  { %v1724_v54 = vpop.permute.xlu1 %1723  ;;  %1781 = vst.msk [vmem:[#allocation2 + $0x20] sm:$0xff] %vm1778_vm12, %v1759_v52 }
 0x283   :  { %1743 = vst.msk [vmem:[#allocation2 + $0x50] sm:$0xff] %vm1737_vm11, %v1724_v54  ;;  %3788 = vrot.lane.b32.xlu0 %v12442_v10, %s11337_s27  ;;  %v12553_v10 = vpop.f32.mrf.mxu1 }
 0x284   :  { %3754 = vrot.lane.b32.xlu1 %v12437_v7, %s11336_s25 }
 0x285   :  { %v3629_v61 = vpop.permute.xlu0 %3628  ;;  %v12560_v13 = vpop.f32.mrf.mxu1 }
 0x286   :  { %v3595_v62 = vpop.permute.xlu1 %3594  ;;  %3650 = vst.msk [vmem:[#allocation2 + $0xa0] sm:$0xff] %vm1737_vm11, %v3629_v61 }
 0x287   :  { %3613 = vst.msk [vmem:[#allocation2 + $0xd0] sm:$0xff] %vm1696_vm10, %v3595_v62  ;;  %1918 = vrot.lane.b32.xlu0 %v1264_v58, %s11339_s29  ;;  %v12565_v17 = vpop.f32.mrf.mxu1 }
 0x288   :  { %1924 = vrot.lane.b32.xlu1 %v10324_v63, %s11339_s29 }
 0x289   :  { %v1755_v5 = vpop.permute.xlu0 %1754 }
 0x28a   :  { %1779 = vst.msk [vmem:[#allocation2] sm:$0xff] %vm1778_vm12, %v1755_v5  ;;  %v1761_v7 = vpop.permute.xlu1 %1760 }
 0x28b   :  { %1782 = vst.msk [vmem:[#allocation2 + $0x30] sm:$0xff] %vm1778_vm12, %v1761_v7  ;;  %3596 = vrot.lane.b32.xlu0 %v12207_v57, %s11332_s13 }
 0x28c   :  { %3790 = vrot.lane.b32.xlu1 %v12461_v20, %s11337_s27  ;;  %v12572_v20 = vpop.f32.mrf.mxu1 }
 0x28d   :  { %v3625_v9 = vpop.permute.xlu0 %3624 }
 0x28e   :  { %3648 = vst.msk [vmem:[#allocation2 + $0x80] sm:$0xff] %vm1737_vm11, %v3625_v9  ;;  %v3631_v11 = vpop.permute.xlu1 %3630  ;;  %v10475_v22 = vpop.f32.mrf.mxu1 }
 0x28f   :  { %3651 = vst.msk [vmem:[#allocation2 + $0xb0] sm:$0xff] %vm1737_vm11, %v3631_v11  ;;  %3784 = vrot.lane.b32.xlu0 %v12449_v14, %s11337_s27  ;;  %v1280_v14 = vpop.f32.mrf.mxu0 }
 0x290   :  { %1920 = vrot.lane.b32.xlu1 %v1267_v12, %s11339_s29  ;;  %3858 = vst.msk [vmem:[#allocation2 + $0xa8] sm:$0xff] %vm1327_vm1, %v10475_v22  ;;  %v3217_v26 = vpop.f32.mrf.mxu1 }
 0x291   :  { %v1767_v57 = vpop.permute.xlu0 %1766  ;;  %3856 = vst.msk [vmem:[#allocation2 + $0x88] sm:$0xff] %vm1327_vm1, %v3217_v26  ;;  %v3871_v26 = vld [vmem:[#allocation2 + $0x38] sm:$0xff] }
 0x292   :  { %v1757_v16 = vpop.permute.xlu1 %1756  ;;  %1785 = vst.msk [vmem:[#allocation2 + $0x60] sm:$0xff] %vm1778_vm12, %v1767_v57  ;;  %v10476_v28 = vpop.f32.mrf.mxu1 }
 0x293   :  { %1780 = vst.msk [vmem:[#allocation2 + $0x10] sm:$0xff] %vm1778_vm12, %v1757_v16  ;;  %1930 = vrot.lane.b32.xlu0 %v10327_v15, %s11339_s29 }
 0x294   :  { %3598 = vrot.lane.b32.xlu1 %v12229_v3, %s11332_s13  ;;  %v10328_v3 = vpop.f32.mrf.mxu0  ;;  %3859 = vst.msk [vmem:[#allocation2 + $0xb8] sm:$0xff] %vm1327_vm1, %v10476_v28 }
 0x295   :  { %v1763_v18 = vpop.permute.xlu0 %1762 }
 0x296   :  { %v3627_v19 = vpop.permute.xlu1 %3626  ;;  %1783 = vst.msk [vmem:[#allocation2 + $0x40] sm:$0xff] %vm1778_vm12, %v1763_v18  ;;  %v1283_v30 = vpop.f32.mrf.mxu0 }
 0x297   :  { %3649 = vst.msk [vmem:[#allocation2 + $0x90] sm:$0xff] %vm1737_vm11, %v3627_v19  ;;  %1926 = vrot.lane.b32.xlu0 %v1280_v14, %s11339_s29 }
 0x298   :  { %3786 = vrot.lane.b32.xlu1 %v12472_v27, %s11337_s27 }
 0x299   :  { %v3633_v21 = vpop.permute.xlu0 %3632 }
 0x29a   :  { %3652 = vst.msk [vmem:[#allocation2 + $0xc0] sm:$0xff] %vm1737_vm11, %v3633_v21  ;;  %v1769_v24 = vpop.permute.xlu1 %1768 }
 0x29b   :  { %1786 = vst.msk [vmem:[#allocation2 + $0x70] sm:$0xff] %vm1778_vm12, %v1769_v24  ;;  %3636 = vrot.lane.b32.xlu0 %v12267_v25, %s11333_s21  ;;  %v3220_v25 = vpop.f32.mrf.mxu1 }
 0x29c   :  { %1932 = vrot.lane.b32.xlu1 %v10328_v3, %s11339_s29  ;;  %3857 = vst.msk [vmem:[#allocation2 + $0x98] sm:$0xff] %vm1327_vm1, %v3220_v25  ;;  %v3869_v3 = vld [vmem:[#allocation2 + $0x28] sm:$0xff] }
 0x29d   :  { %v1800_v27 = vpop.permute.xlu0 %1799  ;;  %v10479_v39 = vpop.f32.mrf.mxu1  ;;  %v3899_v25 = vpack.c.bf16 %v3871_v26, %v3869_v3 }
 0x29e   :  { %v1765_v29 = vpop.permute.xlu1 %1764  ;;  %1822 = vst.msk [vmem:[#allocation2 + $0x20] sm:$0xff] %vm1819_vm14, %v1800_v27 }
 0x29f   :  { %1784 = vst.msk [vmem:[#allocation2 + $0x50] sm:$0xff] %vm1778_vm12, %v1765_v29  ;;  %3792 = vrot.lane.b32.xlu0 %v12489_v38, %s11337_s27 }
 0x2a0   :  { %1928 = vrot.lane.b32.xlu1 %v1283_v30, %s11339_s29  ;;  %3862 = vst.msk [vmem:[#allocation2 + $0xe8] sm:$0xff] %vm1327_vm1, %v10479_v39  ;;  %v3875_v39 = vld [vmem:[#allocation2 + $0x58] sm:$0xff] }
 0x2a1   :  { %v3669_v34 = vpop.permute.xlu0 %3668 }
 0x2a2   :  { %v3635_v35 = vpop.permute.xlu1 %3634  ;;  %3690 = vst.msk [vmem:[#allocation2 + $0xa0] sm:$0xff] %vm1778_vm12, %v3669_v34 }
 0x2a3   :  { %3653 = vst.msk [vmem:[#allocation2 + $0xd0] sm:$0xff] %vm1737_vm11, %v3635_v35  ;;  %3828 = vrot.lane.b32.xlu0 %v12521_v53, %s11339_s29 }
 0x2a4   :  { %3638 = vrot.lane.b32.xlu1 %v12280_v33, %s11333_s21  ;;  %v3233_v33 = vpop.f32.mrf.mxu1 }
 0x2a5   :  { %v1796_v36 = vpop.permute.xlu0 %1795  ;;  %3860 = vst.msk [vmem:[#allocation2 + $0xc8] sm:$0xff] %vm1327_vm1, %v3233_v33 }
 0x2a6   :  { %1820 = vst.msk [vmem:[#allocation2] sm:$0xff] %vm1819_vm14, %v1796_v36  ;;  %v1802_v37 = vpop.permute.xlu1 %1801  ;;  %v10480_v42 = vpop.f32.mrf.mxu1 }
 0x2a7   :  { %1823 = vst.msk [vmem:[#allocation2 + $0x30] sm:$0xff] %vm1819_vm14, %v1802_v37  ;;  %3824 = vrot.lane.b32.xlu0 %v12528_v59, %s11339_s29 }
 0x2a8   :  { %3794 = vrot.lane.b32.xlu1 %v12511_v48, %s11337_s27  ;;  %3863 = vst.msk [vmem:[#allocation2 + $0xf8] sm:$0xff] %vm1327_vm1, %v10480_v42  ;;  %v3236_v45 = vpop.f32.mrf.mxu1 }
 0x2a9   :  { %v3665_v38 = vpop.permute.xlu0 %3664  ;;  %3861 = vst.msk [vmem:[#allocation2 + $0xd8] sm:$0xff] %vm1327_vm1, %v3236_v45 }
 0x2aa   :  { %3688 = vst.msk [vmem:[#allocation2 + $0x80] sm:$0xff] %vm1778_vm12, %v3665_v38  ;;  %v3671_v40 = vpop.permute.xlu1 %3670  ;;  %v3873_v38 = vld [vmem:[#allocation2 + $0x48] sm:$0xff] }
 0x2ab   :  { %3691 = vst.msk [vmem:[#allocation2 + $0xb0] sm:$0xff] %vm1778_vm12, %v3671_v40  ;;  %3676 = vrot.lane.b32.xlu0 %v12317_v55, %s11334_s23  ;;  %v3901_v42 = vpack.c.bf16 %v3875_v39, %v3873_v38 }
 0x2ac   :  { %3830 = vrot.lane.b32.xlu1 %v12539_v1, %s11339_s29 }
 0x2ad   :  { %v1808_v41 = vpop.permute.xlu0 %1807 }
 0x2ae   :  { %v1798_v44 = vpop.permute.xlu1 %1797  ;;  %1826 = vst.msk [vmem:[#allocation2 + $0x60] sm:$0xff] %vm1819_vm14, %v1808_v41 }
 0x2af   :  { %1821 = vst.msk [vmem:[#allocation2 + $0x10] sm:$0xff] %vm1819_vm14, %v1798_v44  ;;  %3716 = vrot.lane.b32.xlu0 %v12367_v23, %s11335_s24 }
 0x2b0   :  { %3826 = vrot.lane.b32.xlu1 %v12549_v8, %s11339_s29 }
 0x2b1   :  { %v1804_v55 = vpop.permute.xlu0 %1803 }
 0x2b2   :  { %v3667_v46 = vpop.permute.xlu1 %3666  ;;  %1824 = vst.msk [vmem:[#allocation2 + $0x40] sm:$0xff] %vm1819_vm14, %v1804_v55 }
 0x2b3   :  { %3689 = vst.msk [vmem:[#allocation2 + $0x90] sm:$0xff] %vm1778_vm12, %v3667_v46  ;;  %3756 = vrot.lane.b32.xlu0 %v12417_v56, %s11336_s25  ;;  %v3877_v46 = vld [vmem:[#allocation2 + $0x68] sm:$0xff] }
 0x2b4   :  { %3678 = vrot.lane.b32.xlu1 %v12330_v0, %s11334_s23 }
 0x2b5   :  { %v3673_v47 = vpop.permute.xlu0 %3672 }
 0x2b6   :  { %3692 = vst.msk [vmem:[#allocation2 + $0xc0] sm:$0xff] %vm1778_vm12, %v3673_v47  ;;  %v1810_v23 = vpop.permute.xlu1 %1809  ;;  %v3879_v47 = vld [vmem:[#allocation2 + $0x78] sm:$0xff] }
 0x2b7   :  { %1827 = vst.msk [vmem:[#allocation2 + $0x70] sm:$0xff] %vm1819_vm14, %v1810_v23  ;;  %3832 = vrot.lane.b32.xlu0 %v12560_v13, %s11339_s29 }
 0x2b8   :  { %3718 = vrot.lane.b32.xlu1 %v12380_v32, %s11335_s24 }
 0x2b9   :  { %v1841_v48 = vpop.permute.xlu0 %1840 }
 0x2ba   :  { %v1806_v49 = vpop.permute.xlu1 %1805  ;;  %1863 = vst.msk [vmem:[#allocation2 + $0x20] sm:$0xff] %vm1860_vm15, %v1841_v48 }
 0x2bb   :  { %1825 = vst.msk [vmem:[#allocation2 + $0x50] sm:$0xff] %vm1819_vm14, %v1806_v49  ;;  %3796 = vrot.lane.b32.xlu0 %v12479_v31, %s11337_s27 }
 0x2bc   :  { %3758 = vrot.lane.b32.xlu1 %v12430_v2, %s11336_s25 }
 0x2bd   :  { %v3709_v0 = vpop.permute.xlu0 %3708 }
 0x2be   :  { %v3675_v56 = vpop.permute.xlu1 %3674  ;;  %3730 = vst.msk [vmem:[#allocation2 + $0xa0] sm:$0xff] %vm1819_vm14, %v3709_v0 }
 0x2bf   :  { %3693 = vst.msk [vmem:[#allocation2 + $0xd0] sm:$0xff] %vm1778_vm12, %v3675_v56  ;;  %3836 = vrot.lane.b32.xlu0 %v12553_v10, %s11339_s29  ;;  %v3903_v56 = vpack.c.bf16 %v3879_v47, %v3877_v46 }
 0x2c0   :  { %3834 = vrot.lane.b32.xlu1 %v12572_v20, %s11339_s29 }
 0x2c1   :  { %v1837_v32 = vpop.permute.xlu0 %1836 }
 0x2c2   :  { %1861 = vst.msk [vmem:[#allocation2] sm:$0xff] %vm1860_vm15, %v1837_v32  ;;  %v1843_v50 = vpop.permute.xlu1 %1842 }
 0x2c3   :  { %1864 = vst.msk [vmem:[#allocation2 + $0x30] sm:$0xff] %vm1860_vm15, %v1843_v50 }
 0x2c4   :  { %3798 = vrot.lane.b32.xlu1 %v12500_v43, %s11337_s27 }
 0x2c5   :  { %v3705_v2 = vpop.permute.xlu0 %3704 }
 0x2c6   :  { %3728 = vst.msk [vmem:[#allocation2 + $0x80] sm:$0xff] %vm1819_vm14, %v3705_v2  ;;  %v3711_v31 = vpop.permute.xlu1 %3710  ;;  %v3881_v2 = vld [vmem:[#allocation2 + $0x88] sm:$0xff] }
 0x2c7   :  { %3731 = vst.msk [vmem:[#allocation2 + $0xb0] sm:$0xff] %vm1819_vm14, %v3711_v31  ;;  %v3883_v31 = vld [vmem:[#allocation2 + $0x98] sm:$0xff] }
 0x2c8   :  { %3838 = vrot.lane.b32.xlu1 %v12565_v17, %s11339_s29 }
 0x2c9   :  { %v1849_v51 = vpop.permute.xlu0 %1848 }
 0x2ca   :  { %v1839_v52 = vpop.permute.xlu1 %1838  ;;  %1867 = vst.msk [vmem:[#allocation2 + $0x60] sm:$0xff] %vm1860_vm15, %v1849_v51 }
 0x2cb   :  { %1862 = vst.msk [vmem:[#allocation2 + $0x10] sm:$0xff] %vm1860_vm15, %v1839_v52 }
 0x2cd   :  { %v1845_v53 = vpop.permute.xlu0 %1844 }
 0x2ce   :  { %v3707_v54 = vpop.permute.xlu1 %3706  ;;  %1865 = vst.msk [vmem:[#allocation2 + $0x40] sm:$0xff] %vm1860_vm15, %v1845_v53 }
 0x2cf   :  { %3729 = vst.msk [vmem:[#allocation2 + $0x90] sm:$0xff] %vm1819_vm14, %v3707_v54 }
 0x2d1   :  { %v3713_v43 = vpop.permute.xlu0 %3712 }
 0x2d2   :  { %3732 = vst.msk [vmem:[#allocation2 + $0xc0] sm:$0xff] %vm1819_vm14, %v3713_v43  ;;  %v1851_v58 = vpop.permute.xlu1 %1850  ;;  %v3905_v43 = vpack.c.bf16 %v3883_v31, %v3881_v2 }
 0x2d3   :  { %1868 = vst.msk [vmem:[#allocation2 + $0x70] sm:$0xff] %vm1860_vm15, %v1851_v58 }
 0x2d5   :  { %v1882_v59 = vpop.permute.xlu0 %1881 }
 0x2d6   :  { %v1847_v60 = vpop.permute.xlu1 %1846  ;;  %1904 = vst.msk [vmem:[#allocation2 + $0x20] sm:$0xff] %vm1901_vm2, %v1882_v59 }
 0x2d7   :  { %1866 = vst.msk [vmem:[#allocation2 + $0x50] sm:$0xff] %vm1860_vm15, %v1847_v60 }
 0x2d9   :  { %v3749_v61 = vpop.permute.xlu0 %3748 }
 0x2da   :  { %v3715_v62 = vpop.permute.xlu1 %3714  ;;  %3770 = vst.msk [vmem:[#allocation2 + $0xa0] sm:$0xff] %vm1860_vm15, %v3749_v61 }
 0x2db   :  { %3733 = vst.msk [vmem:[#allocation2 + $0xd0] sm:$0xff] %vm1819_vm14, %v3715_v62  ;;  %v3885_v62 = vld [vmem:[#allocation2 + $0xa8] sm:$0xff] }
 0x2dd   :  { %v1878_v63 = vpop.permute.xlu0 %1877 }
 0x2de   :  { %1902 = vst.msk [vmem:[#allocation2] sm:$0xff] %vm1901_vm2, %v1878_v63  ;;  %v1884_v1 = vpop.permute.xlu1 %1883  ;;  %v3887_v63 = vld [vmem:[#allocation2 + $0xb8] sm:$0xff] }
 0x2df   :  { %1905 = vst.msk [vmem:[#allocation2 + $0x30] sm:$0xff] %vm1901_vm2, %v1884_v1 }
 0x2e1   :  { %v3745_v4 = vpop.permute.xlu0 %3744 }
 0x2e2   :  { %3768 = vst.msk [vmem:[#allocation2 + $0x80] sm:$0xff] %vm1860_vm15, %v3745_v4  ;;  %v3751_v5 = vpop.permute.xlu1 %3750 }
 0x2e3   :  { %3771 = vst.msk [vmem:[#allocation2 + $0xb0] sm:$0xff] %vm1860_vm15, %v3751_v5 }
 0x2e5   :  { %v1890_v6 = vpop.permute.xlu0 %1889 }
 0x2e6   :  { %v1880_v7 = vpop.permute.xlu1 %1879  ;;  %1908 = vst.msk [vmem:[#allocation2 + $0x60] sm:$0xff] %vm1901_vm2, %v1890_v6 }
 0x2e7   :  { %1903 = vst.msk [vmem:[#allocation2 + $0x10] sm:$0xff] %vm1901_vm2, %v1880_v7  ;;  %v3907_v7 = vpack.c.bf16 %v3887_v63, %v3885_v62 }
 0x2e9   :  { %v1886_v8 = vpop.permute.xlu0 %1885 }
 0x2ea   :  { %v3747_v9 = vpop.permute.xlu1 %3746  ;;  %1906 = vst.msk [vmem:[#allocation2 + $0x40] sm:$0xff] %vm1901_vm2, %v1886_v8 }
 0x2eb   :  { %3769 = vst.msk [vmem:[#allocation2 + $0x90] sm:$0xff] %vm1860_vm15, %v3747_v9 }
 0x2ed   :  { %v3753_v10 = vpop.permute.xlu0 %3752 }
 0x2ee   :  { %3772 = vst.msk [vmem:[#allocation2 + $0xc0] sm:$0xff] %vm1860_vm15, %v3753_v10  ;;  %v1892_v11 = vpop.permute.xlu1 %1891  ;;  %v3889_v10 = vld [vmem:[#allocation2 + $0xc8] sm:$0xff] }
 0x2ef   :  { %1909 = vst.msk [vmem:[#allocation2 + $0x70] sm:$0xff] %vm1901_vm2, %v1892_v11  ;;  %v3891_v11 = vld [vmem:[#allocation2 + $0xd8] sm:$0xff] }
 0x2f1   :  { %v1923_v12 = vpop.permute.xlu0 %1922 }
 0x2f2   :  { %v1888_v57 = vpop.permute.xlu1 %1887  ;;  %1945 = vst.msk [vmem:[#allocation2 + $0x20] sm:$0xff] %vm1942_vm3, %v1923_v12 }
 0x2f3   :  { %1907 = vst.msk [vmem:[#allocation2 + $0x50] sm:$0xff] %vm1901_vm2, %v1888_v57 }
 0x2f5   :  { %v3789_v13 = vpop.permute.xlu0 %3788 }
 0x2f6   :  { %v3755_v15 = vpop.permute.xlu1 %3754  ;;  %3810 = vst.msk [vmem:[#allocation2 + $0xa0] sm:$0xff] %vm1901_vm2, %v3789_v13 }
 0x2f7   :  { %3773 = vst.msk [vmem:[#allocation2 + $0xd0] sm:$0xff] %vm1860_vm15, %v3755_v15 }
 0x2f9   :  { %v1919_v16 = vpop.permute.xlu0 %1918  ;;  %v3868_v33 = vld [vmem:[#allocation2 + $0x20] sm:$0xff] }
 0x2fa   :  { %1943 = vst.msk [vmem:[#allocation2] sm:$0xff] %vm1942_vm3, %v1919_v16  ;;  %v1925_v17 = vpop.permute.xlu1 %1924  ;;  %v3909_v16 = vpack.c.bf16 %v3891_v11, %v3889_v10 }
 0x2fb   :  { %1946 = vst.msk [vmem:[#allocation2 + $0x30] sm:$0xff] %vm1942_vm3, %v1925_v17 }
 0x2fd   :  { %v3597_v18 = vpop.permute.xlu0 %3596 }
 0x2fe   :  { %3614 = vst.msk [vmem:[#allocation2 + $0xe0] sm:$0xff] %vm1696_vm10, %v3597_v18  ;;  %v3791_v14 = vpop.permute.xlu1 %3790 }
 0x2ff   :  { %3811 = vst.msk [vmem:[#allocation2 + $0xb0] sm:$0xff] %vm1901_vm2, %v3791_v14  ;;  %v3893_v14 = vld [vmem:[#allocation2 + $0xe8] sm:$0xff] }
 0x301   :  { %v3785_v19 = vpop.permute.xlu0 %3784  ;;  %v3864_v28 = vld [vmem:[#allocation2] sm:$0xff] }
 0x302   :  { %3808 = vst.msk [vmem:[#allocation2 + $0x80] sm:$0xff] %vm1901_vm2, %v3785_v19  ;;  %v1921_v20 = vpop.permute.xlu1 %1920  ;;  %v3870_v36 = vld [vmem:[#allocation2 + $0x30] sm:$0xff]  ;;  %v3895_v19 = vld [vmem:[#allocation2 + $0xf8] sm:$0xff] }
 0x303   :  { %1944 = vst.msk [vmem:[#allocation2 + $0x10] sm:$0xff] %vm1942_vm3, %v1921_v20  ;;  %v3898_v41 = vpack.c.bf16 %v3870_v36, %v3868_v33  ;;  %v3911_v3 = vpack.c.bf16 %v3895_v19, %v3893_v14 }
 0x305   :  { %v1931_v21 = vpop.permute.xlu0 %1930 }
 0x306   :  { %v3599_v22 = vpop.permute.xlu1 %3598  ;;  %1949 = vst.msk [vmem:[#allocation2 + $0x60] sm:$0xff] %vm1942_vm3, %v1931_v21 }
 0x307   :  { %3615 = vst.msk [vmem:[#allocation2 + $0xf0] sm:$0xff] %vm1696_vm10, %v3599_v22 }
 0x309   :  { %v1927_v24 = vpop.permute.xlu0 %1926 }
 0x30a   :  { %v3787_v27 = vpop.permute.xlu1 %3786  ;;  %1947 = vst.msk [vmem:[#allocation2 + $0x40] sm:$0xff] %vm1942_vm3, %v1927_v24  ;;  %v3866_v29 = vld [vmem:[#allocation2 + $0x10] sm:$0xff] }
 0x30b   :  { %3809 = vst.msk [vmem:[#allocation2 + $0x90] sm:$0xff] %vm1901_vm2, %v3787_v27  ;;  %v3896_v30 = vpack.c.bf16 %v3866_v29, %v3864_v28  ;;  %v11024_v29 = vld [vmem:[%s14584_s0] sm:$0xff]  }
 0x30c   :  { %10489 = vmatprep.mubr.msk.bf16.mxu1 %vm545_vm0, %v11024_v29 }
 0x30d   :  { %4048 = vmatmul.mubr.bf16.vlgmr.msra.gmra.mxu0 %v3896_v30  ;;  %v3637_v34 = vpop.permute.xlu0 %3636  ;;  %v3876_v54 = vld [vmem:[#allocation2 + $0x60] sm:$0xff] }
 0x30e   :  { %9347 = vmatprep.mubr.msk.bf16.mxu0 %vm1327_vm1, %v3899_v25  ;;  %3654 = vst.msk [vmem:[#allocation2 + $0xe0] sm:$0xff] %vm1737_vm11, %v3637_v34  ;;  %v1933_v35 = vpop.permute.xlu1 %1932  ;;  %v11034_v30 = vld [vmem:[%s14584_s0 + $0x220] sm:$0xff]  }
 0x30f   :  { %1950 = vst.msk [vmem:[#allocation2 + $0x70] sm:$0xff] %vm1942_vm3, %v1933_v35 }
 0x311   :  { %v3793_v37 = vpop.permute.xlu0 %3792  ;;  %v3872_v48 = vld [vmem:[#allocation2 + $0x40] sm:$0xff] }
 0x312   :  { %3812 = vst.msk [vmem:[#allocation2 + $0xc0] sm:$0xff] %vm1901_vm2, %v3793_v37  ;;  %v1929_v40 = vpop.permute.xlu1 %1928 }
 0x313   :  { %1948 = vst.msk [vmem:[#allocation2 + $0x50] sm:$0xff] %vm1942_vm3, %v1929_v40 }
 0x315   :  { %4056 = vmatmul.mubr.bf16.gmra.mxu0 %v3898_v41  ;;  %v3829_v44 = vpop.permute.xlu0 %3828 }
 0x316   :  { %9348 = vmatprep.mubr.msk.bf16.mxu0 %vm1327_vm1, %v3901_v42  ;;  %3850 = vst.msk [vmem:[#allocation2 + $0xa0] sm:$0xff] %vm1942_vm3, %v3829_v44  ;;  %v3639_v45 = vpop.permute.xlu1 %3638  ;;  %v3878_v51 = vld [vmem:[#allocation2 + $0x70] sm:$0xff]  ;;  %v12724_v42 = vld [vmem:[%s14587_s3] ss:$0 sm:$0xff] }
 0x317   :  { %3655 = vst.msk [vmem:[#allocation2 + $0xf0] sm:$0xff] %vm1737_vm11, %v3639_v45  ;;  %v3902_v58 = vpack.c.bf16 %v3878_v51, %v3876_v54 }
 0x319   :  { %v3825_v55 = vpop.permute.xlu0 %3824 }
 0x31a   :  { %3848 = vst.msk [vmem:[#allocation2 + $0x80] sm:$0xff] %vm1942_vm3, %v3825_v55  ;;  %v3795_v23 = vpop.permute.xlu1 %3794  ;;  %v3874_v49 = vld [vmem:[#allocation2 + $0x50] sm:$0xff] }
 0x31b   :  { %3813 = vst.msk [vmem:[#allocation2 + $0xd0] sm:$0xff] %vm1901_vm2, %v3795_v23  ;;  %v3900_v0 = vpack.c.bf16 %v3874_v49, %v3872_v48 }
 0x31d   :  { %4064 = vmatmul.mubr.bf16.gmra.mxu0 %v3900_v0  ;;  %v3677_v32 = vpop.permute.xlu0 %3676  ;;  %v3884_v12 = vld [vmem:[#allocation2 + $0xa0] sm:$0xff] }
 0x31e   :  { %3694 = vst.msk [vmem:[#allocation2 + $0xe0] sm:$0xff] %vm1778_vm12, %v3677_v32  ;;  %9349 = vmatprep.mubr.msk.bf16.mxu0 %vm1327_vm1, %v3903_v56  ;;  %v3831_v50 = vpop.permute.xlu1 %3830 }
 0x31f   :  { %3851 = vst.msk [vmem:[#allocation2 + $0xb0] sm:$0xff] %vm1942_vm3, %v3831_v50 }
 0x321   :  { %v3717_v52 = vpop.permute.xlu0 %3716  ;;  %v3880_v4 = vld [vmem:[#allocation2 + $0x80] sm:$0xff] }
 0x322   :  { %3734 = vst.msk [vmem:[#allocation2 + $0xe0] sm:$0xff] %vm1819_vm14, %v3717_v52  ;;  %v3827_v53 = vpop.permute.xlu1 %3826 }
 0x323   :  { %3849 = vst.msk [vmem:[#allocation2 + $0x90] sm:$0xff] %vm1942_vm3, %v3827_v53 }
 0x325   :  { %4072 = vmatmul.mubr.bf16.gmra.mxu0 %v3902_v58  ;;  %v3757_v59 = vpop.permute.xlu0 %3756 }
 0x326   :  { %3774 = vst.msk [vmem:[#allocation2 + $0xe0] sm:$0xff] %vm1860_vm15, %v3757_v59  ;;  %v3679_v60 = vpop.permute.xlu1 %3678  ;;  %9350 = vmatprep.mubr.msk.bf16.mxu0 %vm1327_vm1, %v3905_v43  ;;  %v3886_v57 = vld [vmem:[#allocation2 + $0xb0] sm:$0xff] }
 0x327   :  { %3695 = vst.msk [vmem:[#allocation2 + $0xf0] sm:$0xff] %vm1778_vm12, %v3679_v60  ;;  %v3906_v17 = vpack.c.bf16 %v3886_v57, %v3884_v12 }
 0x329   :  { %v3833_v61 = vpop.permute.xlu0 %3832 }
 0x32a   :  { %v3719_v1 = vpop.permute.xlu1 %3718  ;;  %v3882_v5 = vld [vmem:[#allocation2 + $0x90] sm:$0xff]  ;;  %3852 = vst.msk [vmem:[#allocation2 + $0xc0] sm:$0xff] %vm1942_vm3, %v3833_v61 }
 0x32b   :  { %3735 = vst.msk [vmem:[#allocation2 + $0xf0] sm:$0xff] %vm1819_vm14, %v3719_v1  ;;  %v3904_v6 = vpack.c.bf16 %v3882_v5, %v3880_v4 }
 0x32d   :  { %4080 = vmatmul.mubr.bf16.gmra.mxu0 %v3904_v6  ;;  %v3797_v8 = vpop.permute.xlu0 %3796 }
 0x32e   :  { %v3759_v9 = vpop.permute.xlu1 %3758  ;;  %9351 = vmatprep.mubr.msk.bf16.mxu0 %vm1327_vm1, %v3907_v7  ;;  %3814 = vst.msk [vmem:[#allocation2 + $0xe0] sm:$0xff] %vm1901_vm2, %v3797_v8 }
 0x32f   :  { %3775 = vst.msk [vmem:[#allocation2 + $0xf0] sm:$0xff] %vm1860_vm15, %v3759_v9 }
 0x331   :  { %v3837_v13 = vpop.permute.xlu0 %3836  ;;  %v3888_v21 = vld [vmem:[#allocation2 + $0xc0] sm:$0xff] }
 0x332   :  { %v3835_v15 = vpop.permute.xlu1 %3834  ;;  %3854 = vst.msk [vmem:[#allocation2 + $0xe0] sm:$0xff] %vm1942_vm3, %v3837_v13 }
 0x333   :  { %3853 = vst.msk [vmem:[#allocation2 + $0xd0] sm:$0xff] %vm1942_vm3, %v3835_v15 }
 0x335   :  { %4088 = vmatmul.mubr.bf16.gmra.mxu0 %v3906_v17 }
 0x336   :  { %v3799_v18 = vpop.permute.xlu1 %3798  ;;  %9352 = vmatprep.mubr.msk.bf16.mxu0 %vm1327_vm1, %v3909_v16 }
 0x337   :  { %3815 = vst.msk [vmem:[#allocation2 + $0xf0] sm:$0xff] %vm1901_vm2, %v3799_v18 }
 0x339   :  { %v3892_v26 = vld [vmem:[#allocation2 + $0xe0] sm:$0xff] }
 0x33a   :  { %v3839_v20 = vpop.permute.xlu1 %3838  ;;  %v3890_v22 = vld [vmem:[#allocation2 + $0xd0] sm:$0xff] }
 0x33b   :  { %3855 = vst.msk [vmem:[#allocation2 + $0xf0] sm:$0xff] %vm1942_vm3, %v3839_v20  ;;  %v3908_v24 = vpack.c.bf16 %v3890_v22, %v3888_v21 }
 0x33d   :  { %4096 = vmatmul.mubr.bf16.gmra.mxu0 %v3908_v24 }
 0x33e   :  { %9353 = vmatprep.mubr.msk.bf16.mxu0 %vm1327_vm1, %v3911_v3 }
 0x342   :  { %v3894_v27 = vld [vmem:[#allocation2 + $0xf0] sm:$0xff] }
 0x343   :  { %v3910_v28 = vpack.c.bf16 %v3894_v27, %v3892_v26 }
 0x345   :  { %4104 = vmatmul.mubr.bf16.gmra.mxu0 %v3910_v28 }
 0x346   :  { %10633 = vmatprep.mubr.msk.bf16.mxu0 %vm545_vm0, %v11034_v30 }
 0x3cd   :  { %v4049_v25 = vpop.f32.mrf.mxu0 }
 0x3ce   :  { %v12743_v52 = vadd.f32 %v12724_v42, %v4049_v25 }
 0x3cf   :  { %v4051_v34 = vpop.f32.mrf.mxu0 }
 0x3d0   :  { %v4128_v1 = vmin.f32 %v12743_v52, 0.0  ;;  %vm4112_vm10 = vcmp.gt.f32.partialorder %v12743_v52, 0.0 }
 0x3d1   :  { %v4052_v35 = vpop.f32.mrf.mxu0 }
 0x3d2   :  { %v12740_v31 = vadd.f32 %v12724_v42, %v4052_v35  ;;  %v4144_v9 = vmul.f32 1.442695, %v4128_v1 }
 0x3d3   :  { %v4054_v36 = vpop.f32.mrf.mxu0 }
 0x3d4   :  { %v4129_v62 = vmin.f32 %v12740_v31, 0.0  ;;  %vm4113_vm9 = vcmp.gt.f32.partialorder %v12740_v31, 0.0 }
 0x3d5   :  { %v4057_v37 = vpop.f32.mrf.mxu0 }
 0x3d6   :  { %v12734_v49 = vadd.f32 %v12724_v42, %v4057_v37  ;;  %v4146_v8 = vmul.f32 1.442695, %v4129_v62 }
 0x3d7   :  { %v4059_v38 = vpop.f32.mrf.mxu0 }
 0x3d8   :  { %v4130_v54 = vmin.f32 %v12734_v49, 0.0  ;;  %vm4114_vm8 = vcmp.gt.f32.partialorder %v12734_v49, 0.0 }
 0x3d9   :  { %v4060_v39 = vpop.f32.mrf.mxu0 }
 0x3da   :  { %v12731_v46 = vadd.f32 %v12724_v42, %v4060_v39  ;;  %v4148_v5 = vmul.f32 1.442695, %v4130_v54 }
 0x3db   :  { %v4062_v40 = vpop.f32.mrf.mxu0 }
 0x3dc   :  { %v4131_v32 = vmin.f32 %v12731_v46, 0.0  ;;  %vm4115_vm7 = vcmp.gt.f32.partialorder %v12731_v46, 0.0 }
 0x3dd   :  { %v4065_v33 = vpop.f32.mrf.mxu0 }
 0x3de   :  { %v12727_v45 = vadd.f32 %v12724_v42, %v4065_v33  ;;  %v4150_v60 = vmul.f32 1.442695, %v4131_v32 }
 0x3df   :  { %v4067_v41 = vpop.f32.mrf.mxu0 }
 0x3e0   :  { %v4132_v0 = vmin.f32 %v12727_v45, 0.0  ;;  %vm4116_vm6 = vcmp.gt.f32.partialorder %v12727_v45, 0.0 }
 0x3e1   :  { %v4068_v44 = vpop.f32.mrf.mxu0 }
 0x3e2   :  { %v4069_v55 = vadd.f32 %v12724_v42, %v4068_v44  ;;  %v4152_v43 = vmul.f32 1.442695, %v4132_v0 }
 0x3e3   :  { %v4070_v47 = vpop.f32.mrf.mxu0 }
 0x3e4   :  { %v4133_v23 = vmin.f32 %v4069_v55, 0.0  ;;  %vm4117_vm1 = vcmp.gt.f32.partialorder %v4069_v55, 0.0 }
 0x3e5   :  { %v4073_v48 = vpop.f32.mrf.mxu0 }
 0x3e6   :  { %v4074_v56 = vadd.f32 %v12724_v42, %v4073_v48  ;;  %v4154_v50 = vmul.f32 1.442695, %v4133_v23 }
 0x3e7   :  { %v4075_v2 = vpop.f32.mrf.mxu0 }
 0x3e8   :  { %v4134_v51 = vmin.f32 %v4074_v56, 0.0  ;;  %11206 = vpow2.f32 %v4154_v50  ;;  %vm4118_vm4 = vcmp.gt.f32.partialorder %v4074_v56, 0.0 }
 0x3e9   :  { %v4076_v53 = vpop.f32.mrf.mxu0 }
 0x3ea   :  { %v4156_v58 = vmul.f32 1.442695, %v4134_v51  ;;  %v4077_v59 = vadd.f32 %v12724_v42, %v4076_v53 }
 0x3eb   :  { %v4078_v61 = vpop.f32.mrf.mxu0 }
 0x3ec   :  { %11208 = vpow2.f32 %v4156_v58  ;;  %v4135_v63 = vmin.f32 %v4077_v59, 0.0  ;;  %vm4119_vm5 = vcmp.gt.f32.partialorder %v4077_v59, 0.0 }
 0x3ed   :  { %v12749_v4 = vpop.f32.mrf.mxu0  ;;  %11210 = vpow2.f32 %v4152_v43 }
 0x3ee   :  { %v4158_v6 = vmul.f32 1.442695, %v4135_v63  ;;  %11212 = vpow2.f32 %v4150_v60 }
 0x3ef   :  { %v4083_v7 = vpop.f32.mrf.mxu0 }
 0x3f0   :  { %11214 = vpow2.f32 %v4158_v6 }
 0x3f1   :  { %v4084_v10 = vpop.f32.mrf.mxu0  ;;  %11216 = vpow2.f32 %v4148_v5 }
 0x3f2   :  { %11218 = vpow2.f32 %v4146_v8  ;;  %v12778_v43 = vadd.f32 %v12724_v42, %v4084_v10 }
 0x3f3   :  { %v4086_v11 = vpop.f32.mrf.mxu0  ;;  %11220 = vpow2.f32 %v4144_v9 }
 0x3f4   :  { %vm4121_vm3 = vcmp.gt.f32.partialorder %v12778_v43, 0.0 }
 0x3f5   :  { %v4089_v12 = vpop.f32.mrf.mxu0  ;;  %v11207_v13 = vpop.eup %11206 }
 0x3f6   :  { %v9359_v20 = vadd.f32 -1.0, %v11207_v13  ;;  %v11027_v13 = vld [vmem:[%s14584_s0 + $0x18] sm:$0xff]  }
 0x3f7   :  { %v4091_v57 = vpop.f32.mrf.mxu0 }
 0x3f8   :  { %v4197_v30 = vsel %vm4117_vm1, %v4069_v55, %v9359_v20 }
 0x3f9   :  { %v11209_v15 = vpop.eup %11208  ;;  %v4092_v16 = vpop.f32.mrf.mxu0 }
 0x3fa   :  { %v11211_v17 = vpop.eup %11210  ;;  %v9360_v19 = vadd.f32 -1.0, %v11209_v15  ;;  %v12761_v41 = vadd.f32 %v12724_v42, %v4092_v16  ;;  %v11028_v16 = vld [vmem:[%s14584_s0 + $0x20] sm:$0xff]  }
 0x3fb   :  { %v4094_v18 = vpop.f32.mrf.mxu0  ;;  %v11213_v14 = vpop.eup %11212  ;;  %v9358_v3 = vadd.f32 -1.0, %v11211_v17 }
 0x3fc   :  { %v4198_v28 = vsel %vm4118_vm4, %v4074_v56, %v9360_v19  ;;  %v9357_v25 = vadd.f32 -1.0, %v11213_v14  ;;  %v12767_v56 = vadd.f32 %v12724_v42, %v4089_v12  ;;  %v11026_v12 = vld [vmem:[%s14584_s0 + $0x10] sm:$0xff]   ;;  %vm4123_vm15 = vcmp.gt.f32.partialorder %v12761_v41, 0.0 }
 0x3fd   :  { %v11215_v21 = vpop.eup %11214  ;;  %v4097_v22 = vpop.f32.mrf.mxu0  ;;  %v4196_v40 = vsel %vm4116_vm6, %v12727_v45, %v9358_v3  ;;  %vm5473_vm4 = vcmask 261120   ;;  %vm5555_vm6 = vcmask 785920  }
 0x3fe   :  { %v9361_v24 = vadd.f32 -1.0, %v11215_v21  ;;  %v11217_v26 = vpop.eup %11216  ;;  %v12753_v38 = vadd.f32 %v12724_v42, %v4097_v22  ;;  %v4210_v44 = vpack.c.bf16 %v4197_v30, %v4196_v40  ;;  %v4195_v23 = vsel %vm4115_vm7, %v12731_v46, %v9357_v25 }
 0x3ff   :  { %v4099_v27 = vpop.f32.mrf.mxu0  ;;  %v11219_v34 = vpop.eup %11218  ;;  %v9356_v33 = vadd.f32 -1.0, %v11217_v26  ;;  %v4139_v46 = vmin.f32 %v12761_v41, 0.0  ;;  %v4138_v62 = vmin.f32 %v12767_v56, 0.0  ;;  %v11029_v26 = vld [vmem:[%s14584_s0 + $0x28] sm:$0xff]   ;;  %vm4122_vm2 = vcmp.gt.f32.partialorder %v12767_v56, 0.0 }
 0x400   :  { %v4199_v29 = vsel %vm4119_vm5, %v4077_v59, %v9361_v24  ;;  %v11221_v37 = vpop.eup %11220  ;;  %v9355_v48 = vadd.f32 -1.0, %v11219_v34  ;;  %v4140_v32 = vmin.f32 %v12753_v38, 0.0  ;;  %vm4124_vm14 = vcmp.gt.f32.partialorder %v12753_v38, 0.0 }
 0x401   :  { %v4211_v35 = vpack.c.bf16 %v4199_v29, %v4198_v28  ;;  %v4100_v36 = vpop.f32.mrf.mxu0  ;;  %v9354_v45 = vadd.f32 -1.0, %v11221_v37  ;;  %v4194_v2 = vsel %vm4114_vm8, %v12734_v49, %v9356_v33  ;;  %v12784_v49 = vadd.f32 %v12724_v42, %v12749_v4  ;;  %v11030_v29 = vld [vmem:[%s14584_s0 + $0x30] sm:$0xff]  }
 0x402   :  { %v12756_v39 = vadd.f32 %v12724_v42, %v4100_v36  ;;  %v4209_v53 = vpack.c.bf16 %v4195_v23, %v4194_v2  ;;  %v4193_v59 = vsel %vm4113_vm9, %v12740_v31, %v9355_v48  ;;  %v4168_v63 = vmul.f32 1.442695, %v4140_v32  ;;  %v11032_v48 = vld [vmem:[%s14584_s0 + $0x40] sm:$0xff]   ;;  %v11035_v32 = vld [vmem:[%s14584_s0 + $0x228] sm:$0xff]   ;;  %v11038_v2 = vld [vmem:[%s14584_s0 + $0x230] sm:$0xff]  }
 0x403   :  { %10481 = vmatprep.subr.bf16.mxu1 %v4211_v35  ;;  %v4102_v55 = vpop.f32.mrf.mxu0  ;;  %v4192_v61 = vsel %vm4112_vm10, %v12743_v52, %v9354_v45  ;;  %v4166_v6 = vmul.f32 1.442695, %v4139_v46  ;;  %v4137_v31 = vmin.f32 %v12778_v43, 0.0  ;;  %v4136_v9 = vmin.f32 %v12784_v49, 0.0  ;;  %v11037_v46 = vld [vmem:[%s14584_s0 + $0x58] sm:$0xff]  }
 0x404   :  { %10482 = vmatpush3.bf16.msra.mxu1 %v4211_v35  ;;  %v4141_v47 = vmin.f32 %v12756_v39, 0.0  ;;  %v4208_v7 = vpack.c.bf16 %v4193_v59, %v4192_v61  ;;  %v4164_v10 = vmul.f32 1.442695, %v4138_v62  ;;  %vm4125_vm11 = vcmp.gt.f32.partialorder %v12756_v39, 0.0  ;;  %v11044_v59 = vld [vmem:[%s14584_s0 + $0x70] sm:$0xff]   ;;  %v11047_v61 = vld [vmem:[%s14584_s0 + $0x258] sm:$0xff]  }
 0x405   :  { %10483 = vmatprep.subr.bf16.mxu1 %v4210_v44  ;;  %v4105_v0 = vpop.f32.mrf.mxu0  ;;  %v4162_v11 = vmul.f32 1.442695, %v4137_v31  ;;  %v4160_v57 = vmul.f32 1.442695, %v4136_v9  ;;  %vm4120_vm1 = vcmp.gt.f32.partialorder %v12784_v49, 0.0  ;;  %v11048_v62 = vld [vmem:[%s14584_s0 + $0x80] sm:$0xff]  }
 0x406   :  { %v12771_v50 = vadd.f32 %v12724_v42, %v4105_v0  ;;  %v4170_v51 = vmul.f32 1.442695, %v4141_v47  ;;  %v11031_v47 = vld [vmem:[%s14584_s0 + $0x38] sm:$0xff]   ;;  %v11058_v9 = vld [vmem:[%s14584_s0 + $0x280] sm:$0xff]   ;;  %vm5514_vm5 = vcmask 523520   ;;  %vm5596_vm7 = vcmask 1048320  }
 0x407   :  { %v4107_v54 = vpop.f32.mrf.mxu0  ;;  %v11055_v31 = vld [vmem:[%s14584_s0 + $0x278] sm:$0xff]  }
 0x408   :  { %10484 = vmatpush3.bf16.msra.mxu1 %v4210_v44  ;;  %v4142_v58 = vmin.f32 %v12771_v50, 0.0  ;;  %11222 = vpow2.f32 %v4170_v51  ;;  %vm4126_vm12 = vcmp.gt.f32.partialorder %v12771_v50, 0.0  ;;  %v11039_v51 = vld [vmem:[%s14584_s0 + $0x238] sm:$0xff]   ;;  %v11042_v54 = vld [vmem:[%s14584_s0 + $0x240] sm:$0xff]  }
 0x409   :  { %10485 = vmatprep.subr.bf16.mxu1 %v4209_v53  ;;  %v4108_v60 = vpop.f32.mrf.mxu0 }
 0x40a   :  { %v4172_v1 = vmul.f32 1.442695, %v4142_v58  ;;  %v4109_v5 = vadd.f32 %v12724_v42, %v4108_v60  ;;  %v11025_v42 = vld [vmem:[%s14584_s0 + $0x8] sm:$0xff]   ;;  %v11045_v60 = vld [vmem:[%s14584_s0 + $0x78] sm:$0xff]  }
 0x40b   :  { %v4110_v8 = vpop.f32.mrf.mxu0  ;;  %v11043_v58 = vld [vmem:[%s14584_s0 + $0x248] sm:$0xff]  }
 0x40c   :  { %11224 = vpow2.f32 %v4172_v1  ;;  %10486 = vmatpush3.bf16.msra.mxu1 %v4209_v53  ;;  %v4143_v4 = vmin.f32 %v4109_v5, 0.0  ;;  %vm4127_vm13 = vcmp.gt.f32.partialorder %v4109_v5, 0.0  ;;  %v11040_v53 = vld [vmem:[%s14584_s0 + $0x60] sm:$0xff]   ;;  %v11050_v1 = vld [vmem:[%s14584_s0 + $0x88] sm:$0xff]   ;;  %v11054_v8 = vld [vmem:[%s14584_s0 + $0x98] sm:$0xff]  }
 0x40d   :  { %10487 = vmatprep.subr.bf16.mxu1 %v4208_v7  ;;  %11226 = vpow2.f32 %v4168_v63  ;;  %v11049_v63 = vld [vmem:[%s14584_s0 + $0x260] sm:$0xff]  }
 0x40e   :  { %v4174_v52 = vmul.f32 1.442695, %v4143_v4  ;;  %11228 = vpow2.f32 %v4166_v6  ;;  %v11052_v6 = vld [vmem:[%s14584_s0 + $0x90] sm:$0xff]   ;;  %v11056_v4 = vld [vmem:[%s14584_s0 + $0xa0] sm:$0xff]  }
 0x410   :  { %11230 = vpow2.f32 %v4174_v52  ;;  %10488 = vmatpush3.bf16.msra.mxu1 %v4208_v7  ;;  %v11053_v7 = vld [vmem:[%s14584_s0 + $0x270] sm:$0xff]   ;;  %v11059_v52 = vld [vmem:[%s14584_s0 + $0x288] sm:$0xff]  }
 0x411   :  { %11232 = vpow2.f32 %v4164_v10  ;;  %v11057_v10 = vld [vmem:[%s14584_s0 + $0xa8] sm:$0xff]  }
 0x412   :  { %11234 = vpow2.f32 %v4162_v11  ;;  %v11062_v11 = vld [vmem:[%s14584_s0 + $0x290] sm:$0xff]  }
 0x413   :  { %10490 = vmatmul.mubr.msk.bf16.vlgmr.msra.gmra.mxu1 %vm545_vm0, %v11025_v42  ;;  %11236 = vpow2.f32 %v4160_v57  ;;  %v11060_v42 = vld [vmem:[%s14584_s0 + $0xb0] sm:$0xff]   ;;  %v11063_v57 = vld [vmem:[%s14584_s0 + $0x298] sm:$0xff]  }
 0x414   :  { %10493 = vmatprep.mubr.msk.bf16.mxu1 %vm545_vm0, %v11026_v12  ;;  %v11061_v12 = vld [vmem:[%s14584_s0 + $0xb8] sm:$0xff]  }
 0x415   :  { %v11223_v15 = vpop.eup %11222 }
 0x416   :  { %v9367_v20 = vadd.f32 -1.0, %v11223_v15  ;;  %v11066_v15 = vld [vmem:[%s14584_s0 + $0x2a0] sm:$0xff]  }
 0x418   :  { %v4205_v30 = vsel %vm4125_vm11, %v12756_v39, %v9367_v20  ;;  %v11071_v20 = vld [vmem:[%s14584_s0 + $0x2b8] sm:$0xff]  }
 0x419   :  { %v11225_v17 = vpop.eup %11224 }
 0x41a   :  { %v11227_v18 = vpop.eup %11226  ;;  %v9368_v19 = vadd.f32 -1.0, %v11225_v17  ;;  %v11067_v17 = vld [vmem:[%s14584_s0 + $0x2a8] sm:$0xff]  }
 0x41b   :  { %10494 = vmatmul.mubr.msk.bf16.gmra.mxu1 %vm545_vm0, %v11027_v13  ;;  %v11229_v14 = vpop.eup %11228  ;;  %v9366_v24 = vadd.f32 -1.0, %v11227_v18  ;;  %v11064_v13 = vld [vmem:[%s14584_s0 + $0xc0] sm:$0xff]   ;;  %v11068_v18 = vld [vmem:[%s14584_s0 + $0xd0] sm:$0xff]  }
 0x41c   :  { %10497 = vmatprep.mubr.msk.bf16.mxu1 %vm545_vm0, %v11028_v16  ;;  %v4206_v27 = vsel %vm4126_vm12, %v12771_v50, %v9368_v19  ;;  %v9365_v25 = vadd.f32 -1.0, %v11229_v14  ;;  %v11036_v50 = vld [vmem:[%s14584_s0 + $0x50] sm:$0xff]   ;;  %v11065_v16 = vld [vmem:[%s14584_s0 + $0xc8] sm:$0xff]   ;;  %v11069_v19 = vld [vmem:[%s14584_s0 + $0xd8] sm:$0xff]  }
 0x41d   :  { %v11231_v21 = vpop.eup %11230  ;;  %v4204_v36 = vsel %vm4124_vm14, %v12753_v38, %v9366_v24  ;;  %v11070_v14 = vld [vmem:[%s14584_s0 + $0x2b0] sm:$0xff]   ;;  %v11073_v24 = vld [vmem:[%s14584_s0 + $0xe8] sm:$0xff]  }
 0x41e   :  { %v9369_v22 = vadd.f32 -1.0, %v11231_v21  ;;  %v11233_v3 = vpop.eup %11232  ;;  %v4214_v33 = vpack.c.bf16 %v4205_v30, %v4204_v36  ;;  %v4203_v39 = vsel %vm4123_vm15, %v12761_v41, %v9365_v25  ;;  %v11072_v21 = vld [vmem:[%s14584_s0 + $0xe0] sm:$0xff]   ;;  %v11084_v36 = vld [vmem:[%s14584_s0 + $0x110] sm:$0xff]  }
 0x41f   :  { %v11235_v34 = vpop.eup %11234  ;;  %v9364_v37 = vadd.f32 -1.0, %v11233_v3  ;;  %v11075_v3 = vld [vmem:[%s14584_s0 + $0x2c8] sm:$0xff]   ;;  %v11080_v30 = vld [vmem:[%s14584_s0 + $0x100] sm:$0xff]  }
 0x420   :  { %v4207_v28 = vsel %vm4127_vm13, %v4109_v5, %v9369_v22  ;;  %v11237_v40 = vpop.eup %11236  ;;  %v9363_v44 = vadd.f32 -1.0, %v11235_v34  ;;  %v11051_v5 = vld [vmem:[%s14584_s0 + $0x268] sm:$0xff]   ;;  %v11074_v22 = vld [vmem:[%s14584_s0 + $0x2c0] sm:$0xff]  }
 0x421   :  { %v4215_v35 = vpack.c.bf16 %v4207_v28, %v4206_v27  ;;  %v4202_v55 = vsel %vm4122_vm2, %v12767_v56, %v9364_v37  ;;  %v9362_v38 = vadd.f32 -1.0, %v11237_v40  ;;  %v11033_v56 = vld [vmem:[%s14584_s0 + $0x48] sm:$0xff]   ;;  %v11078_v27 = vld [vmem:[%s14584_s0 + $0x2d0] sm:$0xff]   ;;  %v11077_v28 = vld [vmem:[%s14584_s0 + $0xf8] sm:$0xff]  }
 0x422   :  { %v4213_v23 = vpack.c.bf16 %v4203_v39, %v4202_v55  ;;  %v4201_v41 = vsel %vm4121_vm3, %v12778_v43, %v9363_v44  ;;  %v11041_v43 = vld [vmem:[%s14584_s0 + $0x68] sm:$0xff]   ;;  %v11081_v25 = vld [vmem:[%s14584_s0 + $0x2e0] sm:$0xff]   ;;  %v11085_v37 = vld [vmem:[%s14584_s0 + $0x2f0] sm:$0xff]  }
 0x423   :  { %10498 = vmatmul.mubr.msk.bf16.gmra.mxu1 %vm545_vm0, %v11029_v26  ;;  %10625 = vmatprep.subr.bf16.mxu0 %v4215_v35  ;;  %v4200_v0 = vsel %vm4120_vm1, %v12784_v49, %v9362_v38  ;;  %v11046_v49 = vld [vmem:[%s14584_s0 + $0x250] sm:$0xff]   ;;  %v11082_v34 = vld [vmem:[%s14584_s0 + $0x108] sm:$0xff]   ;;  %v11086_v40 = vld [vmem:[%s14584_s0 + $0x118] sm:$0xff]  }
 0x424   :  { %10626 = vmatpush3.bf16.msra.mxu0 %v4215_v35  ;;  %10501 = vmatprep.mubr.msk.bf16.mxu1 %vm545_vm0, %v11030_v29  ;;  %v4212_v45 = vpack.c.bf16 %v4201_v41, %v4200_v0  ;;  %v11076_v26 = vld [vmem:[%s14584_s0 + $0xf0] sm:$0xff]   ;;  %v11079_v29 = vld [vmem:[%s14584_s0 + $0x2d8] sm:$0xff]   ;;  %v11083_v35 = vld [vmem:[%s14584_s0 + $0x2e8] sm:$0xff]  }
 0x425   :  { %10627 = vmatprep.subr.bf16.mxu0 %v4214_v33  ;;  %v11088_v39 = vld [vmem:[%s14584_s0 + $0x120] sm:$0xff]   ;;  %v11089_v55 = vld [vmem:[%s14584_s0 + $0x128] sm:$0xff]   ;;  %v11095_v41 = vld [vmem:[%s14584_s0 + $0x318] sm:$0xff]  }
 0x426   :  { %v11090_v44 = vld [vmem:[%s14584_s0 + $0x300] sm:$0xff]   ;;  %v11091_v38 = vld [vmem:[%s14584_s0 + $0x308] sm:$0xff]  }
 0x427   :  { %v11096_v0 = vld [vmem:[%s14584_s0 + $0x140] sm:$0xff]  }
 0x428   :  { %10628 = vmatpush3.bf16.msra.mxu0 %v4214_v33  ;;  %v11087_v33 = vld [vmem:[%s14584_s0 + $0x2f8] sm:$0xff]  }
 0x429   :  { %10629 = vmatprep.subr.bf16.mxu0 %v4213_v23 }
 0x42b   :  { %10502 = vmatmul.mubr.msk.bf16.gmra.mxu1 %vm545_vm0, %v11031_v47  ;;  %v11092_v47 = vld [vmem:[%s14584_s0 + $0x130] sm:$0xff]  }
 0x42c   :  { %10630 = vmatpush3.bf16.msra.mxu0 %v4213_v23  ;;  %10505 = vmatprep.mubr.msk.bf16.mxu1 %vm545_vm0, %v11032_v48  ;;  %v11094_v23 = vld [vmem:[%s14584_s0 + $0x310] sm:$0xff]   ;;  %v11093_v48 = vld [vmem:[%s14584_s0 + $0x138] sm:$0xff]  }
 0x42d   :  { %10631 = vmatprep.subr.bf16.mxu0 %v4212_v45 }
 0x430   :  { %10632 = vmatpush3.bf16.msra.mxu0 %v4212_v45  ;;  %v11098_v45 = vld [vmem:[%s14584_s0 + $0x320] sm:$0xff]  }
 0x433   :  { %10506 = vmatmul.mubr.msk.bf16.gmra.mxu1 %vm545_vm0, %v11033_v56  ;;  %10634 = vmatmul.mubr.msk.bf16.vlgmr.msra.gmra.mxu0 %vm545_vm0, %v11035_v32  ;;  %v11097_v56 = vld [vmem:[%s14584_s0 + $0x148] sm:$0xff]  }
 0x434   :  { %10509 = vmatprep.mubr.msk.bf16.mxu1 %vm545_vm0, %v11036_v50  ;;  %10637 = vmatprep.mubr.msk.bf16.mxu0 %vm545_vm0, %v11038_v2  ;;  %v11099_v32 = vld [vmem:[%s14584_s0 + $0x328] sm:$0xff]   ;;  %v11100_v50 = vld [vmem:[%s14584_s0 + $0x150] sm:$0xff]  }
 0x435   :  { %v11102_v2 = vld [vmem:[%s14584_s0 + $0x330] sm:$0xff]  }
 0x43b   :  { %10510 = vmatmul.mubr.msk.bf16.gmra.mxu1 %vm545_vm0, %v11037_v46  ;;  %10638 = vmatmul.mubr.msk.bf16.gmra.mxu0 %vm545_vm0, %v11039_v51  ;;  %v11101_v46 = vld [vmem:[%s14584_s0 + $0x158] sm:$0xff]  }
 0x43c   :  { %10513 = vmatprep.mubr.msk.bf16.mxu1 %vm545_vm0, %v11040_v53  ;;  %10641 = vmatprep.mubr.msk.bf16.mxu0 %vm545_vm0, %v11042_v54  ;;  %v11103_v51 = vld [vmem:[%s14584_s0 + $0x338] sm:$0xff]   ;;  %v11104_v53 = vld [vmem:[%s14584_s0 + $0x160] sm:$0xff]  }
 0x43d   :  { %v11106_v54 = vld [vmem:[%s14584_s0 + $0x340] sm:$0xff]  }
 0x443   :  { %10514 = vmatmul.mubr.msk.bf16.gmra.mxu1 %vm545_vm0, %v11041_v43  ;;  %10642 = vmatmul.mubr.msk.bf16.gmra.mxu0 %vm545_vm0, %v11043_v58  ;;  %v11105_v43 = vld [vmem:[%s14584_s0 + $0x168] sm:$0xff]  }
 0x444   :  { %10517 = vmatprep.mubr.msk.bf16.mxu1 %vm545_vm0, %v11044_v59  ;;  %10645 = vmatprep.mubr.msk.bf16.mxu0 %vm545_vm0, %v11046_v49  ;;  %v11107_v58 = vld [vmem:[%s14584_s0 + $0x348] sm:$0xff]   ;;  %v11108_v59 = vld [vmem:[%s14584_s0 + $0x170] sm:$0xff]  }
 0x445   :  { %v11110_v49 = vld [vmem:[%s14584_s0 + $0x350] sm:$0xff]  }
 0x44b   :  { %10518 = vmatmul.mubr.msk.bf16.gmra.mxu1 %vm545_vm0, %v11045_v60  ;;  %10646 = vmatmul.mubr.msk.bf16.gmra.mxu0 %vm545_vm0, %v11047_v61  ;;  %v11109_v60 = vld [vmem:[%s14584_s0 + $0x178] sm:$0xff]  }
 0x44c   :  { %10521 = vmatprep.mubr.msk.bf16.mxu1 %vm545_vm0, %v11048_v62  ;;  %10649 = vmatprep.mubr.msk.bf16.mxu0 %vm545_vm0, %v11049_v63  ;;  %v11111_v61 = vld [vmem:[%s14584_s0 + $0x358] sm:$0xff]   ;;  %v11112_v62 = vld [vmem:[%s14584_s0 + $0x180] sm:$0xff]  }
 0x44d   :  { %v11114_v63 = vld [vmem:[%s14584_s0 + $0x360] sm:$0xff]  }
 0x453   :  { %10522 = vmatmul.mubr.msk.bf16.gmra.mxu1 %vm545_vm0, %v11050_v1  ;;  %10650 = vmatmul.mubr.msk.bf16.gmra.mxu0 %vm545_vm0, %v11051_v5  ;;  %v11113_v1 = vld [vmem:[%s14584_s0 + $0x188] sm:$0xff]  }
 0x454   :  { %10525 = vmatprep.mubr.msk.bf16.mxu1 %vm545_vm0, %v11052_v6  ;;  %10653 = vmatprep.mubr.msk.bf16.mxu0 %vm545_vm0, %v11053_v7  ;;  %v11115_v5 = vld [vmem:[%s14584_s0 + $0x368] sm:$0xff]   ;;  %v11116_v6 = vld [vmem:[%s14584_s0 + $0x190] sm:$0xff]  }
 0x455   :  { %v11118_v7 = vld [vmem:[%s14584_s0 + $0x370] sm:$0xff]  }
 0x45b   :  { %10526 = vmatmul.mubr.msk.bf16.gmra.mxu1 %vm545_vm0, %v11054_v8  ;;  %10654 = vmatmul.mubr.msk.bf16.gmra.mxu0 %vm545_vm0, %v11055_v31 }
 0x45c   :  { %10529 = vmatprep.mubr.msk.bf16.mxu1 %vm545_vm0, %v11056_v4  ;;  %10657 = vmatprep.mubr.msk.bf16.mxu0 %vm545_vm0, %v11058_v9  ;;  %v11117_v9 = vld [vmem:[%s14584_s0 + $0x198] sm:$0xff]  }
 0x463   :  { %10530 = vmatmul.mubr.msk.bf16.gmra.mxu1 %vm545_vm0, %v11057_v10  ;;  %10658 = vmatmul.mubr.msk.bf16.gmra.mxu0 %vm545_vm0, %v11059_v52  ;;  %v11119_v10 = vld [vmem:[%s14584_s0 + $0x378] sm:$0xff]   ;;  %v11120_v52 = vld [vmem:[%s14584_s0 + $0x1a0] sm:$0xff]  }
 0x464   :  { %10533 = vmatprep.mubr.msk.bf16.mxu1 %vm545_vm0, %v11060_v42  ;;  %10661 = vmatprep.mubr.msk.bf16.mxu0 %vm545_vm0, %v11062_v11  ;;  %v11122_v42 = vld [vmem:[%s14584_s0 + $0x380] sm:$0xff]  }
 0x46b   :  { %10534 = vmatmul.mubr.msk.bf16.gmra.mxu1 %vm545_vm0, %v11061_v12  ;;  %10662 = vmatmul.mubr.msk.bf16.gmra.mxu0 %vm545_vm0, %v11063_v57 }
 0x46c   :  { %10537 = vmatprep.mubr.msk.bf16.mxu1 %vm545_vm0, %v11064_v13  ;;  %10665 = vmatprep.mubr.msk.bf16.mxu0 %vm545_vm0, %v11066_v15  ;;  %v11121_v15 = vld [vmem:[%s14584_s0 + $0x1a8] sm:$0xff]  }
 0x473   :  { %10538 = vmatmul.mubr.msk.bf16.gmra.mxu1 %vm545_vm0, %v11065_v16  ;;  %10666 = vmatmul.mubr.msk.bf16.gmra.mxu0 %vm545_vm0, %v11067_v17  ;;  %v11123_v16 = vld [vmem:[%s14584_s0 + $0x388] sm:$0xff]   ;;  %v11124_v17 = vld [vmem:[%s14584_s0 + $0x1b0] sm:$0xff]  }
 0x474   :  { %10541 = vmatprep.mubr.msk.bf16.mxu1 %vm545_vm0, %v11068_v18  ;;  %10669 = vmatprep.mubr.msk.bf16.mxu0 %vm545_vm0, %v11070_v14  ;;  %v11126_v14 = vld [vmem:[%s14584_s0 + $0x390] sm:$0xff]  }
 0x47b   :  { %10542 = vmatmul.mubr.msk.bf16.gmra.mxu1 %vm545_vm0, %v11069_v19  ;;  %10670 = vmatmul.mubr.msk.bf16.gmra.mxu0 %vm545_vm0, %v11071_v20 }
 0x47c   :  { %10545 = vmatprep.mubr.msk.bf16.mxu1 %vm545_vm0, %v11072_v21  ;;  %10673 = vmatprep.mubr.msk.bf16.mxu0 %vm545_vm0, %v11074_v22  ;;  %v11125_v22 = vld [vmem:[%s14584_s0 + $0x1b8] sm:$0xff]  }
 0x483   :  { %10546 = vmatmul.mubr.msk.bf16.gmra.mxu1 %vm545_vm0, %v11073_v24  ;;  %10674 = vmatmul.mubr.msk.bf16.gmra.mxu0 %vm545_vm0, %v11075_v3  ;;  %v11127_v24 = vld [vmem:[%s14584_s0 + $0x398] sm:$0xff]  }
 0x484   :  { %10549 = vmatprep.mubr.msk.bf16.mxu1 %vm545_vm0, %v11076_v26  ;;  %10677 = vmatprep.mubr.msk.bf16.mxu0 %vm545_vm0, %v11078_v27  ;;  %v11128_v26 = vld [vmem:[%s14584_s0 + $0x1c0] sm:$0xff]  }
 0x485   :  { %v11130_v27 = vld [vmem:[%s14584_s0 + $0x3a0] sm:$0xff]  }
 0x48b   :  { %10550 = vmatmul.mubr.msk.bf16.gmra.mxu1 %vm545_vm0, %v11077_v28  ;;  %10678 = vmatmul.mubr.msk.bf16.gmra.mxu0 %vm545_vm0, %v11079_v29 }
 0x48c   :  { %10553 = vmatprep.mubr.msk.bf16.mxu1 %vm545_vm0, %v11080_v30  ;;  %10681 = vmatprep.mubr.msk.bf16.mxu0 %vm545_vm0, %v11081_v25  ;;  %v11129_v25 = vld [vmem:[%s14584_s0 + $0x1c8] sm:$0xff]  }
 0x493   :  { %10554 = vmatmul.mubr.msk.bf16.gmra.mxu1 %vm545_vm0, %v11082_v34  ;;  %10682 = vmatmul.mubr.msk.bf16.gmra.mxu0 %vm545_vm0, %v11083_v35  ;;  %v11131_v34 = vld [vmem:[%s14584_s0 + $0x3a8] sm:$0xff]  }
 0x494   :  { %10557 = vmatprep.mubr.msk.bf16.mxu1 %vm545_vm0, %v11084_v36  ;;  %10685 = vmatprep.mubr.msk.bf16.mxu0 %vm545_vm0, %v11085_v37  ;;  %v11132_v36 = vld [vmem:[%s14584_s0 + $0x1d0] sm:$0xff]  }
 0x495   :  { %v11134_v37 = vld [vmem:[%s14584_s0 + $0x3b0] sm:$0xff]  }
 0x49b   :  { %10558 = vmatmul.mubr.msk.bf16.gmra.mxu1 %vm545_vm0, %v11086_v40  ;;  %10686 = vmatmul.mubr.msk.bf16.gmra.mxu0 %vm545_vm0, %v11087_v33 }
 0x49c   :  { %10561 = vmatprep.mubr.msk.bf16.mxu1 %vm545_vm0, %v11088_v39  ;;  %10689 = vmatprep.mubr.msk.bf16.mxu0 %vm545_vm0, %v11090_v44 }
 0x4a3   :  { %10562 = vmatmul.mubr.msk.bf16.gmra.mxu1 %vm545_vm0, %v11089_v55  ;;  %10690 = vmatmul.mubr.msk.bf16.gmra.mxu0 %vm545_vm0, %v11091_v38 }
 0x4a4   :  { %10565 = vmatprep.mubr.msk.bf16.mxu1 %vm545_vm0, %v11092_v47  ;;  %10693 = vmatprep.mubr.msk.bf16.mxu0 %vm545_vm0, %v11094_v23  ;;  %v11133_v47 = vld [vmem:[%s14584_s0 + $0x1d8] sm:$0xff]  }
 0x4a5   :  { %v11135_v23 = vld [vmem:[%s14584_s0 + $0x3b8] sm:$0xff]  }
 0x4ab   :  { %10566 = vmatmul.mubr.msk.bf16.gmra.mxu1 %vm545_vm0, %v11093_v48  ;;  %10694 = vmatmul.mubr.msk.bf16.gmra.mxu0 %vm545_vm0, %v11095_v41 }
 0x4ac   :  { %10569 = vmatprep.mubr.msk.bf16.mxu1 %vm545_vm0, %v11096_v0  ;;  %10697 = vmatprep.mubr.msk.bf16.mxu0 %vm545_vm0, %v11098_v45  ;;  %v11136_v0 = vld [vmem:[%s14584_s0 + $0x1e0] sm:$0xff]  }
 0x4ad   :  { %v11138_v45 = vld [vmem:[%s14584_s0 + $0x3c0] sm:$0xff]  }
 0x4b3   :  { %10570 = vmatmul.mubr.msk.bf16.gmra.mxu1 %vm545_vm0, %v11097_v56  ;;  %10698 = vmatmul.mubr.msk.bf16.gmra.mxu0 %vm545_vm0, %v11099_v32 }
 0x4b4   :  { %10573 = vmatprep.mubr.msk.bf16.mxu1 %vm545_vm0, %v11100_v50  ;;  %10701 = vmatprep.mubr.msk.bf16.mxu0 %vm545_vm0, %v11102_v2 }
 0x4bb   :  { %10574 = vmatmul.mubr.msk.bf16.gmra.mxu1 %vm545_vm0, %v11101_v46  ;;  %10702 = vmatmul.mubr.msk.bf16.gmra.mxu0 %vm545_vm0, %v11103_v51 }
 0x4bc   :  { %10577 = vmatprep.mubr.msk.bf16.mxu1 %vm545_vm0, %v11104_v53  ;;  %10705 = vmatprep.mubr.msk.bf16.mxu0 %vm545_vm0, %v11106_v54  ;;  %v11137_v53 = vld [vmem:[%s14584_s0 + $0x1e8] sm:$0xff]  }
 0x4bd   :  { %v11139_v54 = vld [vmem:[%s14584_s0 + $0x3c8] sm:$0xff]  }
 0x4c3   :  { %10578 = vmatmul.mubr.msk.bf16.gmra.mxu1 %vm545_vm0, %v11105_v43  ;;  %10706 = vmatmul.mubr.msk.bf16.gmra.mxu0 %vm545_vm0, %v11107_v58 }
 0x4c4   :  { %10581 = vmatprep.mubr.msk.bf16.mxu1 %vm545_vm0, %v11108_v59  ;;  %10709 = vmatprep.mubr.msk.bf16.mxu0 %vm545_vm0, %v11110_v49  ;;  %v11140_v59 = vld [vmem:[%s14584_s0 + $0x1f0] sm:$0xff]  }
 0x4c5   :  { %v11141_v49 = vld [vmem:[%s14584_s0 + $0x3d0] sm:$0xff]  }
 0x4cb   :  { %10582 = vmatmul.mubr.msk.bf16.gmra.mxu1 %vm545_vm0, %v11109_v60  ;;  %10710 = vmatmul.mubr.msk.bf16.gmra.mxu0 %vm545_vm0, %v11111_v61 }
 0x4cc   :  { %10585 = vmatprep.mubr.msk.bf16.mxu1 %vm545_vm0, %v11112_v62  ;;  %10713 = vmatprep.mubr.msk.bf16.mxu0 %vm545_vm0, %v11114_v63 }
 0x4d3   :  { %v10491_v8 = vpop.f32.mrf.mxu1  ;;  %10586 = vmatmul.mubr.msk.bf16.gmra.mxu1 %vm545_vm0, %v11113_v1  ;;  %10714 = vmatmul.mubr.msk.bf16.gmra.mxu0 %vm545_vm0, %v11115_v5 }
 0x4d4   :  { %5476 = vst.msk [vmem:[#allocation3 + $0x50] sm:$0xff] %vm5473_vm4, %v10491_v8  ;;  %10589 = vmatprep.mubr.msk.bf16.mxu1 %vm545_vm0, %v11116_v6  ;;  %10717 = vmatprep.mubr.msk.bf16.mxu0 %vm545_vm0, %v11118_v7  ;;  %v11142_v6 = vld [vmem:[%s14584_s0 + $0x1f8] sm:$0xff]  }
 0x4d5   :  { %v4930_v31 = vpop.f32.mrf.mxu1  ;;  %v11143_v7 = vld [vmem:[%s14584_s0 + $0x3d8] sm:$0xff]  }
 0x4d6   :  { %5474 = vst.msk [vmem:[#allocation3] sm:$0xff] %vm5473_vm4, %v4930_v31 }
 0x4d7   :  { %v10492_v4 = vpop.f32.mrf.mxu1 }
 0x4d8   :  { %5477 = vst.msk [vmem:[#allocation3 + $0x78] sm:$0xff] %vm5473_vm4, %v10492_v4  ;;  %v11144_v4 = vld [vmem:[%s14584_s0 + $0x3e0] sm:$0xff]  }
 0x4d9   :  { %v4933_v11 = vpop.f32.mrf.mxu1 }
 0x4da   :  { %5475 = vst.msk [vmem:[#allocation3 + $0x28] sm:$0xff] %vm5473_vm4, %v4933_v11 }
 0x4db   :  { %v10495_v12 = vpop.f32.mrf.mxu1  ;;  %10590 = vmatmul.mubr.msk.bf16.gmra.mxu1 %vm545_vm0, %v11117_v9  ;;  %10718 = vmatmul.mubr.msk.bf16.gmra.mxu0 %vm545_vm0, %v11119_v10 }
 0x4dc   :  { %5480 = vst.msk [vmem:[#allocation3 + $0xf0] sm:$0xff] %vm5473_vm4, %v10495_v12  ;;  %10593 = vmatprep.mubr.msk.bf16.mxu1 %vm545_vm0, %v11120_v52  ;;  %10721 = vmatprep.mubr.msk.bf16.mxu0 %vm545_vm0, %v11122_v42 }
 0x4dd   :  { %v4946_v57 = vpop.f32.mrf.mxu1 }
 0x4de   :  { %5478 = vst.msk [vmem:[#allocation3 + $0xa0] sm:$0xff] %vm5473_vm4, %v4946_v57  ;;  %v11145_v57 = vld [vmem:[%s14584_s0 + $0x3e8] sm:$0xff]  }
 0x4df   :  { %v10496_v13 = vpop.f32.mrf.mxu1 }
 0x4e0   :  { %5481 = vst.msk [vmem:[#allocation3 + $0x118] sm:$0xff] %vm5473_vm4, %v10496_v13 }
 0x4e1   :  { %v4949_v18 = vpop.f32.mrf.mxu1 }
 0x4e2   :  { %5479 = vst.msk [vmem:[#allocation3 + $0xc8] sm:$0xff] %vm5473_vm4, %v4949_v18 }
 0x4e3   :  { %v10499_v19 = vpop.f32.mrf.mxu1  ;;  %10594 = vmatmul.mubr.msk.bf16.gmra.mxu1 %vm545_vm0, %v11121_v15  ;;  %10722 = vmatmul.mubr.msk.bf16.gmra.mxu0 %vm545_vm0, %v11123_v16  ;;  %v11146_v16 = vld [vmem:[%s14584_s0 + $0x3f0] sm:$0xff]  }
 0x4e4   :  { %5494 = vrot.lane.b32.xlu0 %v10499_v19, %s11327_s28  ;;  %10597 = vmatprep.mubr.msk.bf16.mxu1 %vm545_vm0, %v11124_v17 }
 0x4e5   :  { %v4962_v20 = vpop.f32.mrf.mxu1  ;;  %10725 = vmatprep.mubr.msk.bf16.mxu0 %vm545_vm0, %v11126_v14 }
 0x4e7   :  { %v10500_v21 = vpop.f32.mrf.mxu1 }
 0x4e8   :  { %5496 = vrot.lane.b32.xlu1 %v10500_v21, %s11327_s28  ;;  %5490 = vrot.lane.b32.xlu0 %v4962_v20, %s11327_s28 }
 0x4e9   :  { %v4965_v3 = vpop.f32.mrf.mxu1 }
 0x4eb   :  { %v10503_v28 = vpop.f32.mrf.mxu1  ;;  %10598 = vmatmul.mubr.msk.bf16.gmra.mxu1 %vm545_vm0, %v11125_v22  ;;  %10726 = vmatmul.mubr.msk.bf16.gmra.mxu0 %vm545_vm0, %v11127_v24  ;;  %v11147_v22 = vld [vmem:[%s14584_s0 + $0x3f8] sm:$0xff]  }
 0x4ec   :  { %5492 = vrot.lane.b32.xlu1 %v4965_v3, %s11327_s28  ;;  %5502 = vrot.lane.b32.xlu0 %v10503_v28, %s11327_s28 }
 0x4ed   :  { %v4978_v29 = vpop.f32.mrf.mxu1  ;;  %10601 = vmatprep.mubr.msk.bf16.mxu1 %vm545_vm0, %v11128_v26  ;;  %10729 = vmatprep.mubr.msk.bf16.mxu0 %vm545_vm0, %v11130_v27  ;;  %v11148_v26 = vld [vmem:[%s14584_s0 + $0x400] sm:$0xff]  }
 0x4ef   :  { %v10504_v30 = vpop.f32.mrf.mxu1 }
 0x4f0   :  { %5504 = vrot.lane.b32.xlu1 %v10504_v30, %s11327_s28  ;;  %5498 = vrot.lane.b32.xlu0 %v4978_v29, %s11327_s28 }
 0x4f1   :  { %v4981_v35 = vpop.f32.mrf.mxu1 }
 0x4f3   :  { %v10507_v40 = vpop.f32.mrf.mxu1  ;;  %v10635_v33 = vpop.f32.mrf.mxu0  ;;  %10602 = vmatmul.mubr.msk.bf16.gmra.mxu1 %vm545_vm0, %v11129_v25  ;;  %10730 = vmatmul.mubr.msk.bf16.gmra.mxu0 %vm545_vm0, %v11131_v34 }
 0x4f4   :  { %5500 = vrot.lane.b32.xlu1 %v4981_v35, %s11327_s28  ;;  %7256 = vst.msk [vmem:[#allocation3 + $0x190] sm:$0xff] %vm5473_vm4, %v10635_v33  ;;  %5535 = vrot.lane.b32.xlu0 %v10507_v40, %s11331_s12  ;;  %v11149_v35 = vld [vmem:[%s14584_s0 + $0x408] sm:$0xff]   ;;  %v11150_v40 = vld [vmem:[%s14584_s0 + $0x410] sm:$0xff]  }
 0x4f5   :  { %v4994_v39 = vpop.f32.mrf.mxu1  ;;  %v6711_v44 = vpop.f32.mrf.mxu0  ;;  %10605 = vmatprep.mubr.msk.bf16.mxu1 %vm545_vm0, %v11132_v36  ;;  %10733 = vmatprep.mubr.msk.bf16.mxu0 %vm545_vm0, %v11134_v37 }
 0x4f6   :  { %7254 = vst.msk [vmem:[#allocation3 + $0x140] sm:$0xff] %vm5473_vm4, %v6711_v44 }
 0x4f7   :  { %v10508_v55 = vpop.f32.mrf.mxu1  ;;  %v10636_v38 = vpop.f32.mrf.mxu0 }
 0x4f8   :  { %5537 = vrot.lane.b32.xlu1 %v10508_v55, %s11331_s12  ;;  %7257 = vst.msk [vmem:[#allocation3 + $0x1b8] sm:$0xff] %vm5473_vm4, %v10636_v38  ;;  %5531 = vrot.lane.b32.xlu0 %v4994_v39, %s11331_s12 }
 0x4f9   :  { %v4997_v48 = vpop.f32.mrf.mxu1  ;;  %v6714_v41 = vpop.f32.mrf.mxu0 }
 0x4fa   :  { %7255 = vst.msk [vmem:[#allocation3 + $0x168] sm:$0xff] %vm5473_vm4, %v6714_v41 }
 0x4fb   :  { %v10511_v56 = vpop.f32.mrf.mxu1  ;;  %v10639_v32 = vpop.f32.mrf.mxu0  ;;  %10606 = vmatmul.mubr.msk.bf16.gmra.mxu1 %vm545_vm0, %v11133_v47  ;;  %10734 = vmatmul.mubr.msk.bf16.gmra.mxu0 %vm545_vm0, %v11135_v23  ;;  %v11151_v23 = vld [vmem:[%s14584_s0 + $0x418] sm:$0xff]  }
 0x4fc   :  { %5533 = vrot.lane.b32.xlu1 %v4997_v48, %s11331_s12  ;;  %7260 = vst.msk [vmem:[#allocation3 + $0x230] sm:$0xff] %vm5473_vm4, %v10639_v32  ;;  %5543 = vrot.lane.b32.xlu0 %v10511_v56, %s11331_s12 }
 0x4fd   :  { %v5010_v50 = vpop.f32.mrf.mxu1  ;;  %v6727_v2 = vpop.f32.mrf.mxu0  ;;  %10609 = vmatprep.mubr.msk.bf16.mxu1 %vm545_vm0, %v11136_v0  ;;  %10737 = vmatprep.mubr.msk.bf16.mxu0 %vm545_vm0, %v11138_v45 }
 0x4fe   :  { %7258 = vst.msk [vmem:[#allocation3 + $0x1e0] sm:$0xff] %vm5473_vm4, %v6727_v2 }
 0x4ff   :  { %v10512_v46 = vpop.f32.mrf.mxu1  ;;  %v10640_v51 = vpop.f32.mrf.mxu0 }
 0x500   :  { %5545 = vrot.lane.b32.xlu1 %v10512_v46, %s11331_s12  ;;  %7261 = vst.msk [vmem:[#allocation3 + $0x258] sm:$0xff] %vm5473_vm4, %v10640_v51  ;;  %5539 = vrot.lane.b32.xlu0 %v5010_v50, %s11331_s12 }
 0x501   :  { %v5013_v43 = vpop.f32.mrf.mxu1  ;;  %v6730_v58 = vpop.f32.mrf.mxu0 }
 0x502   :  { %7259 = vst.msk [vmem:[#allocation3 + $0x208] sm:$0xff] %vm5473_vm4, %v6730_v58 }
 0x503   :  { %v10515_v60 = vpop.f32.mrf.mxu1  ;;  %v10643_v61 = vpop.f32.mrf.mxu0  ;;  %10610 = vmatmul.mubr.msk.bf16.gmra.mxu1 %vm545_vm0, %v11137_v53  ;;  %10738 = vmatmul.mubr.msk.bf16.gmra.mxu0 %vm545_vm0, %v11139_v54 }
 0x504   :  { %5541 = vrot.lane.b32.xlu1 %v5013_v43, %s11331_s12  ;;  %5576 = vrot.lane.b32.xlu0 %v10515_v60, %s11335_s24 }
 0x505   :  { %v5026_v62 = vpop.f32.mrf.mxu1  ;;  %v6743_v63 = vpop.f32.mrf.mxu0  ;;  %10613 = vmatprep.mubr.msk.bf16.mxu1 %vm545_vm0, %v11140_v59  ;;  %10741 = vmatprep.mubr.msk.bf16.mxu0 %vm545_vm0, %v11141_v49 }
 0x507   :  { %v10516_v1 = vpop.f32.mrf.mxu1  ;;  %v10644_v5 = vpop.f32.mrf.mxu0 }
 0x508   :  { %5578 = vrot.lane.b32.xlu1 %v10516_v1, %s11335_s24  ;;  %7274 = vrot.lane.b32.xlu0 %v10643_v61, %s11327_s28 }
 0x509   :  { %v5029_v8 = vpop.f32.mrf.mxu1  ;;  %v6746_v31 = vpop.f32.mrf.mxu0 }
 0x50b   :  { %v10519_v9 = vpop.f32.mrf.mxu1  ;;  %v10647_v10 = vpop.f32.mrf.mxu0  ;;  %10614 = vmatmul.mubr.msk.bf16.gmra.mxu1 %vm545_vm0, %v11142_v6  ;;  %10742 = vmatmul.mubr.msk.bf16.gmra.mxu0 %vm545_vm0, %v11143_v7 }
 0x50c   :  { %7276 = vrot.lane.b32.xlu1 %v10644_v5, %s11327_s28  ;;  %5572 = vrot.lane.b32.xlu0 %v5026_v62, %s11335_s24 }
 0x50d   :  { %v5042_v52 = vpop.f32.mrf.mxu1  ;;  %v6759_v42 = vpop.f32.mrf.mxu0  ;;  %10745 = vmatprep.mubr.msk.bf16.mxu0 %vm545_vm0, %v11144_v4 }
 0x50f   :  { %v10520_v11 = vpop.f32.mrf.mxu1  ;;  %v10648_v12 = vpop.f32.mrf.mxu0 }
 0x510   :  { %5574 = vrot.lane.b32.xlu1 %v5029_v8, %s11335_s24  ;;  %7270 = vrot.lane.b32.xlu0 %v6743_v63, %s11327_s28 }
 0x511   :  { %v5045_v13 = vpop.f32.mrf.mxu1  ;;  %v6762_v15 = vpop.f32.mrf.mxu0 }
 0x513   :  { %v10523_v17 = vpop.f32.mrf.mxu1  ;;  %v10651_v18 = vpop.f32.mrf.mxu0  ;;  %10746 = vmatmul.mubr.msk.bf16.gmra.mxu0 %vm545_vm0, %v11145_v57 }
 0x514   :  { %7272 = vrot.lane.b32.xlu1 %v6746_v31, %s11327_s28  ;;  %5584 = vrot.lane.b32.xlu0 %v10519_v9, %s11335_s24  ;;  %5607 = vst.msk [vmem:[#allocation3 + $0x58] sm:$0xff] %vm5473_vm4, %v10523_v17 }
 0x515   :  { %v5058_v14 = vpop.f32.mrf.mxu1  ;;  %v6775_v19 = vpop.f32.mrf.mxu0  ;;  %10749 = vmatprep.mubr.msk.bf16.mxu0 %vm545_vm0, %v11146_v16  ;;  %v11160_v16 = vld [vmem:[%s14588_s4 + $0x78] sm:$0xff]  }
 0x516   :  { %5605 = vst.msk [vmem:[#allocation3 + $0x8] sm:$0xff] %vm5473_vm4, %v5058_v14  ;;  %v11161_v14 = vld [vmem:[%s14588_s4 + $0x38] sm:$0xff]   ;;  %10027 = vmatprep.subr.bf16.mxu1 %v11160_v16  ;;  %v11174_v16 = vld [vmem:[%s14588_s4 + $0x40] sm:$0xff]  }
 0x517   :  { %v10524_v20 = vpop.f32.mrf.mxu1  ;;  %v10652_v21 = vpop.f32.mrf.mxu0  ;;  %10028 = vmatpush3.bf16.msra.mxu1 %v11161_v14 }
 0x518   :  { %5586 = vrot.lane.b32.xlu1 %v10520_v11, %s11335_s24  ;;  %7282 = vrot.lane.b32.xlu0 %v10647_v10, %s11327_s28  ;;  %5608 = vst.msk [vmem:[#allocation3 + $0x80] sm:$0xff] %vm5473_vm4, %v10524_v20 }
 0x519   :  { %v5061_v24 = vpop.f32.mrf.mxu1  ;;  %v6778_v3 = vpop.f32.mrf.mxu0 }
 0x51a   :  { %5606 = vst.msk [vmem:[#allocation3 + $0x30] sm:$0xff] %vm5473_vm4, %v5061_v24 }
 0x51b   :  { %v10527_v27 = vpop.f32.mrf.mxu1  ;;  %v10655_v28 = vpop.f32.mrf.mxu0  ;;  %10750 = vmatmul.mubr.msk.bf16.gmra.mxu0 %vm545_vm0, %v11147_v22 }
 0x51c   :  { %7284 = vrot.lane.b32.xlu1 %v10648_v12, %s11327_s28  ;;  %5580 = vrot.lane.b32.xlu0 %v5042_v52, %s11335_s24  ;;  %5611 = vst.msk [vmem:[#allocation3 + $0xf8] sm:$0xff] %vm5473_vm4, %v10527_v27  ;;  %v11153_v27 = vld [vmem:[%s14584_s0 + $0x208] sm:$0xff]  }
 0x51d   :  { %v5074_v29 = vpop.f32.mrf.mxu1  ;;  %v6791_v30 = vpop.f32.mrf.mxu0  ;;  %10753 = vmatprep.mubr.msk.bf16.mxu0 %vm545_vm0, %v11148_v26  ;;  %v11163_v26 = vld [vmem:[%s14588_s4 + $0x30] sm:$0xff]  }
 0x51e   :  { %5609 = vst.msk [vmem:[#allocation3 + $0xa8] sm:$0xff] %vm5473_vm4, %v5074_v29 }
 0x51f   :  { %v10528_v25 = vpop.f32.mrf.mxu1  ;;  %v10656_v34 = vpop.f32.mrf.mxu0 }
 0x520   :  { %5582 = vrot.lane.b32.xlu1 %v5045_v13, %s11335_s24  ;;  %7278 = vrot.lane.b32.xlu0 %v6759_v42, %s11327_s28  ;;  %5612 = vst.msk [vmem:[#allocation3 + $0x120] sm:$0xff] %vm5473_vm4, %v10528_v25 }
 0x521   :  { %v5077_v36 = vpop.f32.mrf.mxu1  ;;  %v6794_v37 = vpop.f32.mrf.mxu0 }
 0x522   :  { %5610 = vst.msk [vmem:[#allocation3 + $0xd0] sm:$0xff] %vm5473_vm4, %v5077_v36 }
 0x523   :  { %v10531_v33 = vpop.f32.mrf.mxu1  ;;  %v10659_v39 = vpop.f32.mrf.mxu0  ;;  %10754 = vmatmul.mubr.msk.bf16.gmra.mxu0 %vm545_vm0, %v11149_v35  ;;  %v11165_v35 = vld [vmem:[%s14588_s4 + $0x28] sm:$0xff]  }
 0x524   :  { %7280 = vrot.lane.b32.xlu1 %v6762_v15, %s11327_s28  ;;  %7314 = vrot.lane.b32.xlu0 %v10651_v18, %s11331_s12 }
 0x525   :  { %v5090_v44 = vpop.f32.mrf.mxu1  ;;  %v6807_v55 = vpop.f32.mrf.mxu0  ;;  %10757 = vmatprep.mubr.msk.bf16.mxu0 %vm545_vm0, %v11150_v40 }
 0x527   :  { %v10532_v38 = vpop.f32.mrf.mxu1  ;;  %v10660_v47 = vpop.f32.mrf.mxu0 }
 0x528   :  { %7316 = vrot.lane.b32.xlu1 %v10652_v21, %s11331_s12  ;;  %7310 = vrot.lane.b32.xlu0 %v6775_v19, %s11331_s12  ;;  %v11162_v21 = vld [vmem:[%s14588_s4 + $0x70] sm:$0xff]  }
 0x529   :  { %v5093_v48 = vpop.f32.mrf.mxu1  ;;  %v6810_v41 = vpop.f32.mrf.mxu0  ;;  %10029 = vmatprep.subr.bf16.mxu1 %v11162_v21 }
 0x52a   :  { %10030 = vmatpush3.bf16.msra.mxu1 %v11163_v26 }
 0x52b   :  { %v10535_v0 = vpop.f32.mrf.mxu1  ;;  %v10663_v45 = vpop.f32.mrf.mxu0  ;;  %10758 = vmatmul.mubr.msk.bf16.gmra.mxu0 %vm545_vm0, %v11151_v23 }
 0x52c   :  { %7312 = vrot.lane.b32.xlu1 %v6778_v3, %s11331_s12  ;;  %7322 = vrot.lane.b32.xlu0 %v10655_v28, %s11331_s12  ;;  %v11152_v3 = vld [vmem:[%s14584_s0 + $0x200] sm:$0xff]  }
 0x52d   :  { %v5106_v56 = vpop.f32.mrf.mxu1  ;;  %v13370_v32 = vpop.f32.mrf.mxu0  ;;  %10617 = vmatprep.mubr.msk.bf16.mxu1 %vm545_vm0, %v11152_v3  ;;  %v11175_v3 = vld [vmem:[%s14588_s4] sm:$0xff]  }
 0x52e   :  { %10618 = vmatmul.mubr.msk.bf16.gmra.mxu1 %vm545_vm0, %v11153_v27 }
 0x52f   :  { %v10536_v50 = vpop.f32.mrf.mxu1  ;;  %v10664_v2 = vpop.f32.mrf.mxu0 }
 0x530   :  { %7324 = vrot.lane.b32.xlu1 %v10656_v34, %s11331_s12  ;;  %7318 = vrot.lane.b32.xlu0 %v6791_v30, %s11331_s12  ;;  %v11164_v30 = vld [vmem:[%s14588_s4 + $0x68] sm:$0xff]  }
 0x531   :  { %v5109_v46 = vpop.f32.mrf.mxu1  ;;  %v13374_v51 = vpop.f32.mrf.mxu0  ;;  %10031 = vmatprep.subr.bf16.mxu1 %v11164_v30 }
 0x532   :  { %10032 = vmatpush3.bf16.msra.mxu1 %v11165_v35 }
 0x533   :  { %v13376_v53 = vpop.f32.mrf.mxu1  ;;  %v10667_v54 = vpop.f32.mrf.mxu0 }
 0x534   :  { %7320 = vrot.lane.b32.xlu1 %v6794_v37, %s11331_s12  ;;  %5625 = vrot.lane.b32.xlu0 %v10531_v33, %s11327_s28  ;;  %7384 = vst.msk [vmem:[#allocation3 + $0x198] sm:$0xff] %vm5473_vm4, %v10667_v54  ;;  %v11166_v33 = vld [vmem:[%s14588_s4 + $0x60] sm:$0xff]  }
 0x535   :  { %v13381_v43 = vpop.f32.mrf.mxu1  ;;  %v6839_v58 = vpop.f32.mrf.mxu0  ;;  %10033 = vmatprep.subr.bf16.mxu1 %v11166_v33 }
 0x536   :  { %7382 = vst.msk [vmem:[#allocation3 + $0x148] sm:$0xff] %vm5473_vm4, %v6839_v58  ;;  %v11171_v58 = vld [vmem:[%s14588_s4 + $0x10] sm:$0xff]  }
 0x537   :  { %v13384_v59 = vpop.f32.mrf.mxu1  ;;  %v10668_v49 = vpop.f32.mrf.mxu0 }
 0x538   :  { %5627 = vrot.lane.b32.xlu1 %v10532_v38, %s11327_s28  ;;  %7354 = vrot.lane.b32.xlu0 %v10659_v39, %s11335_s24  ;;  %7385 = vst.msk [vmem:[#allocation3 + $0x1c0] sm:$0xff] %vm5473_vm4, %v10668_v49 }
 0x539   :  { %v13389_v60 = vpop.f32.mrf.mxu1  ;;  %v6842_v61 = vpop.f32.mrf.mxu0 }
 0x53a   :  { %7383 = vst.msk [vmem:[#allocation3 + $0x170] sm:$0xff] %vm5473_vm4, %v6842_v61 }
 0x53b   :  { %v13392_v62 = vpop.f32.mrf.mxu1  ;;  %v10671_v63 = vpop.f32.mrf.mxu0 }
 0x53c   :  { %7356 = vrot.lane.b32.xlu1 %v10660_v47, %s11335_s24  ;;  %5621 = vrot.lane.b32.xlu0 %v5090_v44, %s11327_s28  ;;  %7388 = vst.msk [vmem:[#allocation3 + $0x238] sm:$0xff] %vm5473_vm4, %v10671_v63  ;;  %v11172_v63 = vld [vmem:[%s14588_s4 + $0x48] sm:$0xff]  }
 0x53d   :  { %v13397_v1 = vpop.f32.mrf.mxu1  ;;  %v6855_v5 = vpop.f32.mrf.mxu0 }
 0x53e   :  { %7386 = vst.msk [vmem:[#allocation3 + $0x1e8] sm:$0xff] %vm5473_vm4, %v6855_v5 }
 0x53f   :  { %v13400_v6 = vpop.f32.mrf.mxu1  ;;  %v10672_v7 = vpop.f32.mrf.mxu0 }
 0x540   :  { %5623 = vrot.lane.b32.xlu1 %v5093_v48, %s11327_s28  ;;  %7350 = vrot.lane.b32.xlu0 %v6807_v55, %s11335_s24  ;;  %7389 = vst.msk [vmem:[#allocation3 + $0x260] sm:$0xff] %vm5473_vm4, %v10672_v7  ;;  %v11167_v55 = vld [vmem:[%s14588_s4 + $0x20] sm:$0xff]  }
 0x541   :  { %v13405_v8 = vpop.f32.mrf.mxu1  ;;  %v6858_v31 = vpop.f32.mrf.mxu0  ;;  %10034 = vmatpush3.bf16.msra.mxu1 %v11167_v55 }
 0x542   :  { %7387 = vst.msk [vmem:[#allocation3 + $0x210] sm:$0xff] %vm5473_vm4, %v6858_v31 }
 0x543   :  { %v13408_v4 = vpop.f32.mrf.mxu1  ;;  %v13410_v9 = vpop.f32.mrf.mxu0 }
 0x544   :  { %7352 = vrot.lane.b32.xlu1 %v6810_v41, %s11335_s24  ;;  %5633 = vrot.lane.b32.xlu0 %v10535_v0, %s11327_s28  ;;  %v11168_v41 = vld [vmem:[%s14588_s4 + $0x58] sm:$0xff]  }
 0x545   :  { %v13414_v10 = vpop.f32.mrf.mxu1  ;;  %v13416_v52 = vpop.f32.mrf.mxu0  ;;  %10035 = vmatprep.subr.bf16.mxu1 %v11168_v41 }
 0x547   :  { %v13418_v42 = vpop.f32.mrf.mxu1  ;;  %v13420_v11 = vpop.f32.mrf.mxu0 }
 0x548   :  { %5635 = vrot.lane.b32.xlu1 %v10536_v50, %s11327_s28  ;;  %7362 = vrot.lane.b32.xlu0 %v10663_v45, %s11335_s24 }
 0x549   :  { %v13424_v12 = vpop.f32.mrf.mxu1  ;;  %v13426_v57 = vpop.f32.mrf.mxu0 }
 0x54b   :  { %v13428_v13 = vpop.f32.mrf.mxu1  ;;  %v13430_v15 = vpop.f32.mrf.mxu0 }
 0x54c   :  { %7364 = vrot.lane.b32.xlu1 %v10664_v2, %s11335_s24  ;;  %5629 = vrot.lane.b32.xlu0 %v5106_v56, %s11327_s28  ;;  %v11169_v56 = vld [vmem:[%s14588_s4 + $0x18] sm:$0xff]  }
 0x54d   :  { %v13437_v17 = vpop.f32.mrf.mxu1  ;;  %v13439_v18 = vpop.f32.mrf.mxu0  ;;  %10036 = vmatpush3.bf16.msra.mxu1 %v11169_v56 }
 0x54f   :  { %v13444_v19 = vpop.f32.mrf.mxu1  ;;  %v13446_v20 = vpop.f32.mrf.mxu0 }
 0x550   :  { %5631 = vrot.lane.b32.xlu1 %v5109_v46, %s11327_s28  ;;  %7358 = vrot.lane.b32.xlu0 %v13370_v32, %s11335_s24 }
 0x551   :  { %v13454_v22 = vpop.f32.mrf.mxu1  ;;  %v13456_v24 = vpop.f32.mrf.mxu0 }
 0x553   :  { %v10555_v28 = vpop.f32.mrf.mxu1  ;;  %v13467_v29 = vpop.f32.mrf.mxu0 }
 0x554   :  { %7360 = vrot.lane.b32.xlu1 %v13374_v51, %s11335_s24  ;;  %5665 = vrot.lane.b32.xlu0 %v13376_v53, %s11331_s12  ;;  %5735 = vst.msk [vmem:[#allocation3 + $0x60] sm:$0xff] %vm5473_vm4, %v10555_v28  ;;  %v11170_v51 = vld [vmem:[%s14588_s4 + $0x50] sm:$0xff]  }
 0x555   :  { %v5186_v25 = vpop.f32.mrf.mxu1  ;;  %v13478_v34 = vpop.f32.mrf.mxu0  ;;  %10037 = vmatprep.subr.bf16.mxu1 %v11170_v51 }
 0x556   :  { %v5495_v36 = vpop.permute.xlu0 %5494  ;;  %5733 = vst.msk [vmem:[#allocation3 + $0x10] sm:$0xff] %vm5473_vm4, %v5186_v25  ;;  %10038 = vmatpush3.bf16.msra.mxu1 %v11171_v58 }
 0x557   :  { %5517 = vst.msk [vmem:[#allocation3 + $0x50] sm:$0xff] %vm5514_vm5, %v5495_v36  ;;  %v10556_v37 = vpop.f32.mrf.mxu1  ;;  %v13486_v40 = vpop.f32.mrf.mxu0  ;;  %10039 = vmatprep.subr.bf16.mxu1 %v11172_v63 }
 0x558   :  { %5667 = vrot.lane.b32.xlu1 %v13384_v59, %s11331_s12  ;;  %5661 = vrot.lane.b32.xlu0 %v13381_v43, %s11331_s12  ;;  %5736 = vst.msk [vmem:[#allocation3 + $0x88] sm:$0xff] %vm5473_vm4, %v10556_v37  ;;  %v11154_v43 = vld [vmem:[%s14584_s0 + $0x210] sm:$0xff]  }
 0x559   :  { %v5189_v39 = vpop.f32.mrf.mxu1  ;;  %v13496_v44 = vpop.f32.mrf.mxu0  ;;  %10621 = vmatprep.mubr.msk.bf16.mxu1 %vm545_vm0, %v11154_v43 }
 0x55a   :  { %v5497_v38 = vpop.permute.xlu1 %5496  ;;  %v5491_v47 = vpop.permute.xlu0 %5490  ;;  %5734 = vst.msk [vmem:[#allocation3 + $0x38] sm:$0xff] %vm5473_vm4, %v5189_v39 }
 0x55b   :  { %5518 = vst.msk [vmem:[#allocation3 + $0x78] sm:$0xff] %vm5514_vm5, %v5497_v38  ;;  %5515 = vst.msk [vmem:[#allocation3] sm:$0xff] %vm5514_vm5, %v5491_v47  ;;  %v10559_v23 = vpop.f32.mrf.mxu1  ;;  %v13504_v48 = vpop.f32.mrf.mxu0  ;;  %v11156_v47 = vld [vmem:[%s14584_s0 + $0x420] sm:$0xff]  }
 0x55c   :  { %5663 = vrot.lane.b32.xlu1 %v13389_v60, %s11331_s12  ;;  %5673 = vrot.lane.b32.xlu0 %v13392_v62, %s11331_s12  ;;  %5739 = vst.msk [vmem:[#allocation3 + $0x100] sm:$0xff] %vm5473_vm4, %v10559_v23  ;;  %v11155_v60 = vld [vmem:[%s14584_s0 + $0x218] sm:$0xff]  }
 0x55d   :  { %v5202_v0 = vpop.f32.mrf.mxu1  ;;  %v13514_v45 = vpop.f32.mrf.mxu0  ;;  %10622 = vmatmul.mubr.msk.bf16.gmra.mxu1 %vm545_vm0, %v11155_v60  ;;  %10761 = vmatprep.mubr.msk.bf16.mxu0 %vm545_vm0, %v11156_v47 }
 0x55e   :  { %v5493_v32 = vpop.permute.xlu1 %5492  ;;  %v5503_v50 = vpop.permute.xlu0 %5502  ;;  %5737 = vst.msk [vmem:[#allocation3 + $0xb0] sm:$0xff] %vm5473_vm4, %v5202_v0 }
 0x55f   :  { %5516 = vst.msk [vmem:[#allocation3 + $0x28] sm:$0xff] %vm5514_vm5, %v5493_v32  ;;  %5521 = vst.msk [vmem:[#allocation3 + $0xf0] sm:$0xff] %vm5514_vm5, %v5503_v50  ;;  %v10560_v2 = vpop.f32.mrf.mxu1  ;;  %v13522_v46 = vpop.f32.mrf.mxu0 }
 0x560   :  { %5675 = vrot.lane.b32.xlu1 %v13400_v6, %s11331_s12  ;;  %5669 = vrot.lane.b32.xlu0 %v13397_v1, %s11331_s12  ;;  %5740 = vst.msk [vmem:[#allocation3 + $0x128] sm:$0xff] %vm5473_vm4, %v10560_v2  ;;  %v11173_v6 = vld [vmem:[%s14588_s4 + $0x8] sm:$0xff]  }
 0x561   :  { %v5205_v53 = vpop.f32.mrf.mxu1  ;;  %v13532_v54 = vpop.f32.mrf.mxu0  ;;  %10040 = vmatpush3.bf16.msra.mxu1 %v11173_v6  ;;  %v11158_v6 = vld [vmem:[%s14584_s0 + $0x430] sm:$0xff]  }
 0x562   :  { %v5505_v59 = vpop.permute.xlu1 %5504  ;;  %v5499_v49 = vpop.permute.xlu0 %5498  ;;  %5738 = vst.msk [vmem:[#allocation3 + $0xd8] sm:$0xff] %vm5473_vm4, %v5205_v53  ;;  %10041 = vmatprep.subr.bf16.mxu1 %v11174_v16 }
 0x563   :  { %5522 = vst.msk [vmem:[#allocation3 + $0x118] sm:$0xff] %vm5514_vm5, %v5505_v59  ;;  %5519 = vst.msk [vmem:[#allocation3 + $0xa0] sm:$0xff] %vm5514_vm5, %v5499_v49  ;;  %v13546_v61 = vpop.f32.mrf.mxu1  ;;  %v13548_v62 = vpop.f32.mrf.mxu0 }
 0x564   :  { %5671 = vrot.lane.b32.xlu1 %v13405_v8, %s11331_s12  ;;  %5705 = vrot.lane.b32.xlu0 %v13408_v4, %s11335_s24 }
 0x565   :  { %v13558_v1 = vpop.f32.mrf.mxu1  ;;  %v13560_v5 = vpop.f32.mrf.mxu0  ;;  %10042 = vmatpush3.bf16.msra.mxu1 %v11175_v3 }
 0x566   :  { %v5501_v7 = vpop.permute.xlu1 %5500  ;;  %v5536_v8 = vpop.permute.xlu0 %5535 }
 0x567   :  { %5520 = vst.msk [vmem:[#allocation3 + $0xc8] sm:$0xff] %vm5514_vm5, %v5501_v7  ;;  %v13568_v31 = vpop.f32.mrf.mxu1  ;;  %v13570_v4 = vpop.f32.mrf.mxu0  ;;  %v11159_v7 = vld [vmem:[%s14584_s0 + $0x438] sm:$0xff]  }
 0x568   :  { %5558 = vst.msk [vmem:[#allocation3 + $0x50] sm:$0xff] %vm5555_vm6, %v5536_v8  ;;  %5707 = vrot.lane.b32.xlu1 %v13418_v42, %s11335_s24  ;;  %7402 = vrot.lane.b32.xlu0 %v13410_v9, %s11327_s28 }
 0x569   :  { %v13579_v14 = vpop.f32.mrf.mxu1  ;;  %v13581_v21 = vpop.f32.mrf.mxu0 }
 0x56a   :  { %v5538_v26 = vpop.permute.xlu1 %5537  ;;  %v5532_v27 = vpop.permute.xlu0 %5531 }
 0x56b   :  { %5559 = vst.msk [vmem:[#allocation3 + $0x78] sm:$0xff] %vm5555_vm6, %v5538_v26  ;;  %5556 = vst.msk [vmem:[#allocation3] sm:$0xff] %vm5555_vm6, %v5532_v27  ;;  %v13588_v9 = vpop.f32.mrf.mxu1  ;;  %v13590_v42 = vpop.f32.mrf.mxu0 }
 0x56c   :  { %7404 = vrot.lane.b32.xlu1 %v13420_v11, %s11327_s28  ;;  %5701 = vrot.lane.b32.xlu0 %v13414_v10, %s11335_s24 }
 0x56d   :  { %v13596_v28 = vpop.f32.mrf.mxu1  ;;  %v13598_v30 = vpop.f32.mrf.mxu0 }
 0x56e   :  { %v5534_v25 = vpop.permute.xlu1 %5533  ;;  %v5544_v35 = vpop.permute.xlu0 %5543 }
 0x56f   :  { %5557 = vst.msk [vmem:[#allocation3 + $0x28] sm:$0xff] %vm5555_vm6, %v5534_v25  ;;  %5562 = vst.msk [vmem:[#allocation3 + $0xf0] sm:$0xff] %vm5555_vm6, %v5544_v35  ;;  %v13602_v36 = vpop.f32.mrf.mxu1  ;;  %v13604_v37 = vpop.f32.mrf.mxu0 }
 0x570   :  { %5703 = vrot.lane.b32.xlu1 %v13424_v12, %s11335_s24  ;;  %7398 = vrot.lane.b32.xlu0 %v13416_v52, %s11327_s28 }
 0x571   :  { %v13610_v10 = vpop.f32.mrf.mxu1  ;;  %v13612_v11 = vpop.f32.mrf.mxu0 }
 0x572   :  { %v5546_v33 = vpop.permute.xlu1 %5545  ;;  %v5540_v39 = vpop.permute.xlu0 %5539 }
 0x573   :  { %5563 = vst.msk [vmem:[#allocation3 + $0x118] sm:$0xff] %vm5555_vm6, %v5546_v33  ;;  %5560 = vst.msk [vmem:[#allocation3 + $0xa0] sm:$0xff] %vm5555_vm6, %v5540_v39  ;;  %v13616_v55 = vpop.f32.mrf.mxu1  ;;  %v10699_v38 = vpop.f32.mrf.mxu0 }
 0x574   :  { %7400 = vrot.lane.b32.xlu1 %v13426_v57, %s11327_s28  ;;  %5713 = vrot.lane.b32.xlu0 %v13428_v13, %s11335_s24  ;;  %7512 = vst.msk [vmem:[#allocation3 + $0x1a0] sm:$0xff] %vm5473_vm4, %v10699_v38  ;;  %v11157_v57 = vld [vmem:[%s14584_s0 + $0x428] sm:$0xff]  }
 0x575   :  { %v13623_v52 = vpop.f32.mrf.mxu1  ;;  %v6967_v12 = vpop.f32.mrf.mxu0  ;;  %10762 = vmatmul.mubr.msk.bf16.gmra.mxu0 %vm545_vm0, %v11157_v57 }
 0x576   :  { %v5542_v23 = vpop.permute.xlu1 %5541  ;;  %v5577_v41 = vpop.permute.xlu0 %5576  ;;  %7510 = vst.msk [vmem:[#allocation3 + $0x150] sm:$0xff] %vm5473_vm4, %v6967_v12  ;;  %10765 = vmatprep.mubr.msk.bf16.mxu0 %vm545_vm0, %v11158_v6 }
 0x577   :  { %5561 = vst.msk [vmem:[#allocation3 + $0xc8] sm:$0xff] %vm5555_vm6, %v5542_v23  ;;  %v13634_v13 = vpop.f32.mrf.mxu1  ;;  %v10700_v0 = vpop.f32.mrf.mxu0 }
 0x578   :  { %5599 = vst.msk [vmem:[#allocation3 + $0x50] sm:$0xff] %vm5596_vm7, %v5577_v41  ;;  %5715 = vrot.lane.b32.xlu1 %v13444_v19, %s11335_s24  ;;  %7410 = vrot.lane.b32.xlu0 %v13430_v15, %s11327_s28 }
 0x579   :  { %7513 = vst.msk [vmem:[#allocation3 + $0x1c8] sm:$0xff] %vm5473_vm4, %v10700_v0  ;;  %v13642_v56 = vpop.f32.mrf.mxu1  ;;  %v6970_v32 = vpop.f32.mrf.mxu0 }
 0x57a   :  { %v5579_v50 = vpop.permute.xlu1 %5578  ;;  %v7275_v2 = vpop.permute.xlu0 %7274  ;;  %7511 = vst.msk [vmem:[#allocation3 + $0x178] sm:$0xff] %vm5473_vm4, %v6970_v32 }
 0x57b   :  { %5600 = vst.msk [vmem:[#allocation3 + $0x78] sm:$0xff] %vm5596_vm7, %v5579_v50  ;;  %v13648_v51 = vpop.f32.mrf.mxu1  ;;  %v10703_v19 = vpop.f32.mrf.mxu0 }
 0x57c   :  { %7296 = vst.msk [vmem:[#allocation3 + $0x190] sm:$0xff] %vm5514_vm5, %v7275_v2  ;;  %7412 = vrot.lane.b32.xlu1 %v13446_v20, %s11327_s28  ;;  %5709 = vrot.lane.b32.xlu0 %v13437_v17, %s11335_s24 }
 0x57d   :  { %7516 = vst.msk [vmem:[#allocation3 + $0x240] sm:$0xff] %vm5473_vm4, %v10703_v19  ;;  %v13655_v15 = vpop.f32.mrf.mxu1  ;;  %v6983_v53 = vpop.f32.mrf.mxu0  ;;  %10766 = vmatmul.mubr.msk.bf16.gmra.mxu0 %vm545_vm0, %v11159_v7 }
 0x57e   :  { %v7277_v43 = vpop.permute.xlu1 %7276  ;;  %v5573_v58 = vpop.permute.xlu0 %5572  ;;  %7514 = vst.msk [vmem:[#allocation3 + $0x1f0] sm:$0xff] %vm5473_vm4, %v6983_v53 }
 0x57f   :  { %7297 = vst.msk [vmem:[#allocation3 + $0x1b8] sm:$0xff] %vm5514_vm5, %v7277_v43  ;;  %v13660_v59 = vpop.f32.mrf.mxu1  ;;  %v10704_v49 = vpop.f32.mrf.mxu0 }
 0x580   :  { %5597 = vst.msk [vmem:[#allocation3] sm:$0xff] %vm5596_vm7, %v5573_v58  ;;  %5711 = vrot.lane.b32.xlu1 %v13454_v22, %s11335_s24  ;;  %7406 = vrot.lane.b32.xlu0 %v13439_v18, %s11327_s28 }
 0x581   :  { %7517 = vst.msk [vmem:[#allocation3 + $0x268] sm:$0xff] %vm5473_vm4, %v10704_v49  ;;  %v13667_v17 = vpop.f32.mrf.mxu1  ;;  %v6986_v20 = vpop.f32.mrf.mxu0 }
 0x582   :  { %v5575_v60 = vpop.permute.xlu1 %5574  ;;  %v7271_v63 = vpop.permute.xlu0 %7270  ;;  %7515 = vst.msk [vmem:[#allocation3 + $0x218] sm:$0xff] %vm5473_vm4, %v6986_v20 }
 0x583   :  { %5598 = vst.msk [vmem:[#allocation3 + $0x28] sm:$0xff] %vm5596_vm7, %v5575_v60  ;;  %v13675_v22 = vpop.f32.mrf.mxu1  ;;  %v13677_v18 = vpop.f32.mrf.mxu0 }
 0x584   :  { %7294 = vst.msk [vmem:[#allocation3 + $0x140] sm:$0xff] %vm5514_vm5, %v7271_v63  ;;  %7408 = vrot.lane.b32.xlu1 %v13456_v24, %s11327_s28  ;;  %7442 = vrot.lane.b32.xlu0 %v13467_v29, %s11331_s12 }
 0x585   :  { %v13686_v8 = vpop.f32.mrf.mxu1  ;;  %v13688_v16 = vpop.f32.mrf.mxu0 }
 0x586   :  { %v7273_v3 = vpop.permute.xlu1 %7272  ;;  %v5585_v26 = vpop.permute.xlu0 %5584 }
 0x587   :  { %7295 = vst.msk [vmem:[#allocation3 + $0x168] sm:$0xff] %vm5514_vm5, %v7273_v3  ;;  %v13694_v27 = vpop.f32.mrf.mxu1  ;;  %v13696_v24 = vpop.f32.mrf.mxu0 }
 0x588   :  { %5603 = vst.msk [vmem:[#allocation3 + $0xf0] sm:$0xff] %vm5596_vm7, %v5585_v26  ;;  %7444 = vrot.lane.b32.xlu1 %v13486_v40, %s11331_s12  ;;  %7438 = vrot.lane.b32.xlu0 %v13478_v34, %s11331_s12 }
 0x589   :  { %v13702_v29 = vpop.f32.mrf.mxu1  ;;  %v13704_v25 = vpop.f32.mrf.mxu0 }
 0x58a   :  { %v5587_v35 = vpop.permute.xlu1 %5586  ;;  %v7283_v33 = vpop.permute.xlu0 %7282 }
 0x58b   :  { %5604 = vst.msk [vmem:[#allocation3 + $0x118] sm:$0xff] %vm5596_vm7, %v5587_v35  ;;  %v13708_v39 = vpop.f32.mrf.mxu1  ;;  %v13710_v38 = vpop.f32.mrf.mxu0 }
 0x58c   :  { %7300 = vst.msk [vmem:[#allocation3 + $0x230] sm:$0xff] %vm5514_vm5, %v7283_v33  ;;  %7440 = vrot.lane.b32.xlu1 %v13496_v44, %s11331_s12  ;;  %7450 = vrot.lane.b32.xlu0 %v13504_v48, %s11331_s12 }
 0x58d   :  { %v13716_v34 = vpop.f32.mrf.mxu1  ;;  %v13718_v40 = vpop.f32.mrf.mxu0 }
 0x58e   :  { %v7285_v12 = vpop.permute.xlu1 %7284  ;;  %v5581_v47 = vpop.permute.xlu0 %5580 }
 0x58f   :  { %7301 = vst.msk [vmem:[#allocation3 + $0x258] sm:$0xff] %vm5514_vm5, %v7285_v12  ;;  %v13722_v23 = vpop.f32.mrf.mxu1  ;;  %v13724_v41 = vpop.f32.mrf.mxu0 }
 0x590   :  { %5601 = vst.msk [vmem:[#allocation3 + $0xa0] sm:$0xff] %vm5596_vm7, %v5581_v47  ;;  %7452 = vrot.lane.b32.xlu1 %v13522_v46, %s11331_s12  ;;  %7446 = vrot.lane.b32.xlu0 %v13514_v45, %s11331_s12 }
 0x591   :  { %v13730_v44 = vpop.f32.mrf.mxu1  ;;  %v13732_v48 = vpop.f32.mrf.mxu0 }
 0x592   :  { %v5583_v57 = vpop.permute.xlu1 %5582  ;;  %v7279_v0 = vpop.permute.xlu0 %7278 }
 0x593   :  { %5602 = vst.msk [vmem:[#allocation3 + $0xc8] sm:$0xff] %vm5596_vm7, %v5583_v57  ;;  %v10587_v32 = vpop.f32.mrf.mxu1  ;;  %v13736_v50 = vpop.f32.mrf.mxu0 }
 0x594   :  { %7298 = vst.msk [vmem:[#allocation3 + $0x1e0] sm:$0xff] %vm5514_vm5, %v7279_v0  ;;  %7448 = vrot.lane.b32.xlu1 %v13532_v54, %s11331_s12  ;;  %5753 = vrot.lane.b32.xlu0 %v13546_v61, %s11327_s28 }
 0x595   :  { %5863 = vst.msk [vmem:[#allocation3 + $0x68] sm:$0xff] %vm5473_vm4, %v10587_v32  ;;  %v5314_v45 = vpop.f32.mrf.mxu1  ;;  %v13743_v46 = vpop.f32.mrf.mxu0 }
 0x596   :  { %v7281_v2 = vpop.permute.xlu1 %7280  ;;  %v7315_v19 = vpop.permute.xlu0 %7314  ;;  %5861 = vst.msk [vmem:[#allocation3 + $0x18] sm:$0xff] %vm5473_vm4, %v5314_v45 }
 0x597   :  { %7299 = vst.msk [vmem:[#allocation3 + $0x208] sm:$0xff] %vm5514_vm5, %v7281_v2  ;;  %v10588_v53 = vpop.f32.mrf.mxu1  ;;  %v13748_v43 = vpop.f32.mrf.mxu0 }
 0x598   :  { %7336 = vst.msk [vmem:[#allocation3 + $0x190] sm:$0xff] %vm5555_vm6, %v7315_v19  ;;  %5755 = vrot.lane.b32.xlu1 %v13568_v31, %s11327_s28  ;;  %7482 = vrot.lane.b32.xlu0 %v13548_v62, %s11335_s24 }
 0x599   :  { %5864 = vst.msk [vmem:[#allocation3 + $0x90] sm:$0xff] %vm5473_vm4, %v10588_v53  ;;  %v5317_v54 = vpop.f32.mrf.mxu1  ;;  %v13755_v61 = vpop.f32.mrf.mxu0 }
 0x59a   :  { %v7317_v58 = vpop.permute.xlu1 %7316  ;;  %v7311_v49 = vpop.permute.xlu0 %7310  ;;  %5862 = vst.msk [vmem:[#allocation3 + $0x40] sm:$0xff] %vm5473_vm4, %v5317_v54 }
 0x59b   :  { %7337 = vst.msk [vmem:[#allocation3 + $0x1b8] sm:$0xff] %vm5555_vm6, %v7317_v58  ;;  %7334 = vst.msk [vmem:[#allocation3 + $0x140] sm:$0xff] %vm5555_vm6, %v7311_v49  ;;  %v10591_v20 = vpop.f32.mrf.mxu1  ;;  %v13760_v60 = vpop.f32.mrf.mxu0 }
 0x59c   :  { %7484 = vrot.lane.b32.xlu1 %v13570_v4, %s11335_s24  ;;  %5749 = vrot.lane.b32.xlu0 %v13558_v1, %s11327_s28  ;;  %5867 = vst.msk [vmem:[#allocation3 + $0x108] sm:$0xff] %vm5473_vm4, %v10591_v20 }
 0x59d   :  { %v5330_v62 = vpop.f32.mrf.mxu1  ;;  %v13767_v31 = vpop.f32.mrf.mxu0 }
 0x59e   :  { %v7313_v63 = vpop.permute.xlu1 %7312  ;;  %v7323_v6 = vpop.permute.xlu0 %7322  ;;  %5865 = vst.msk [vmem:[#allocation3 + $0xb8] sm:$0xff] %vm5473_vm4, %v5330_v62 }
 0x59f   :  { %7335 = vst.msk [vmem:[#allocation3 + $0x168] sm:$0xff] %vm5555_vm6, %v7313_v63  ;;  %7340 = vst.msk [vmem:[#allocation3 + $0x230] sm:$0xff] %vm5555_vm6, %v7323_v6  ;;  %v10592_v7 = vpop.f32.mrf.mxu1  ;;  %v13772_v3 = vpop.f32.mrf.mxu0 }
 0x5a0   :  { %5751 = vrot.lane.b32.xlu1 %v13579_v14, %s11327_s28  ;;  %7478 = vrot.lane.b32.xlu0 %v13560_v5, %s11335_s24  ;;  %5868 = vst.msk [vmem:[#allocation3 + $0x130] sm:$0xff] %vm5473_vm4, %v10592_v7 }
 0x5a1   :  { %v5333_v1 = vpop.f32.mrf.mxu1  ;;  %v13779_v4 = vpop.f32.mrf.mxu0 }
 0x5a2   :  { %v7325_v26 = vpop.permute.xlu1 %7324  ;;  %v7319_v35 = vpop.permute.xlu0 %7318  ;;  %5866 = vst.msk [vmem:[#allocation3 + $0xe0] sm:$0xff] %vm5473_vm4, %v5333_v1 }
 0x5a3   :  { %7341 = vst.msk [vmem:[#allocation3 + $0x258] sm:$0xff] %vm5555_vm6, %v7325_v26  ;;  %7338 = vst.msk [vmem:[#allocation3 + $0x1e0] sm:$0xff] %vm5555_vm6, %v7319_v35  ;;  %v13784_v33 = vpop.f32.mrf.mxu0 }
 0x5a4   :  { %7480 = vrot.lane.b32.xlu1 %v13581_v21, %s11335_s24  ;;  %5761 = vrot.lane.b32.xlu0 %v13588_v9, %s11327_s28 }
 0x5a5   :  { %v13790_v5 = vpop.f32.mrf.mxu0 }
 0x5a6   :  { %v7321_v14 = vpop.permute.xlu1 %7320  ;;  %v5626_v12 = vpop.permute.xlu0 %5625 }
 0x5a7   :  { %7339 = vst.msk [vmem:[#allocation3 + $0x208] sm:$0xff] %vm5555_vm6, %v7321_v14  ;;  %v13794_v47 = vpop.f32.mrf.mxu0 }
 0x5a8   :  { %5647 = vst.msk [vmem:[#allocation3 + $0x58] sm:$0xff] %vm5514_vm5, %v5626_v12  ;;  %5763 = vrot.lane.b32.xlu1 %v13602_v36, %s11327_s28  ;;  %7490 = vrot.lane.b32.xlu0 %v13590_v42, %s11335_s24 }
 0x5a9   :  { %v13800_v21 = vpop.f32.mrf.mxu0 }
 0x5aa   :  { %v5628_v57 = vpop.permute.xlu1 %5627  ;;  %v7355_v9 = vpop.permute.xlu0 %7354 }
 0x5ab   :  { %5648 = vst.msk [vmem:[#allocation3 + $0x80] sm:$0xff] %vm5514_vm5, %v5628_v57  ;;  %v13804_v0 = vpop.f32.mrf.mxu0 }
 0x5ac   :  { %7376 = vst.msk [vmem:[#allocation3 + $0x190] sm:$0xff] %vm5596_vm7, %v7355_v9  ;;  %7492 = vrot.lane.b32.xlu1 %v13604_v37, %s11335_s24  ;;  %5757 = vrot.lane.b32.xlu0 %v13596_v28, %s11327_s28 }
 0x5ad   :  { %v13810_v36 = vpop.f32.mrf.mxu0 }
 0x5ae   :  { %v7357_v32 = vpop.permute.xlu1 %7356  ;;  %v5622_v42 = vpop.permute.xlu0 %5621 }
 0x5af   :  { %7377 = vst.msk [vmem:[#allocation3 + $0x1b8] sm:$0xff] %vm5596_vm7, %v7357_v32  ;;  %v13814_v45 = vpop.f32.mrf.mxu0 }
 0x5b0   :  { %5645 = vst.msk [vmem:[#allocation3 + $0x8] sm:$0xff] %vm5514_vm5, %v5622_v42  ;;  %5759 = vrot.lane.b32.xlu1 %v13610_v10, %s11327_s28  ;;  %7486 = vrot.lane.b32.xlu0 %v13598_v30, %s11335_s24 }
 0x5b1   :  { %v13820_v37 = vpop.f32.mrf.mxu0 }
 0x5b2   :  { %v5624_v2 = vpop.permute.xlu1 %5623  ;;  %v7351_v28 = vpop.permute.xlu0 %7350 }
 0x5b3   :  { %5646 = vst.msk [vmem:[#allocation3 + $0x30] sm:$0xff] %vm5514_vm5, %v5624_v2  ;;  %v10731_v19 = vpop.f32.mrf.mxu0 }
 0x5b4   :  { %7374 = vst.msk [vmem:[#allocation3 + $0x140] sm:$0xff] %vm5596_vm7, %v7351_v28  ;;  %7488 = vrot.lane.b32.xlu1 %v13612_v11, %s11335_s24  ;;  %5793 = vrot.lane.b32.xlu0 %v13616_v55, %s11331_s12 }
 0x5b5   :  { %7640 = vst.msk [vmem:[#allocation3 + $0x1a8] sm:$0xff] %vm5473_vm4, %v10731_v19  ;;  %v7095_v10 = vpop.f32.mrf.mxu0 }
 0x5b6   :  { %v7353_v53 = vpop.permute.xlu1 %7352  ;;  %v5634_v30 = vpop.permute.xlu0 %5633  ;;  %7638 = vst.msk [vmem:[#allocation3 + $0x158] sm:$0xff] %vm5473_vm4, %v7095_v10 }
 0x5b7   :  { %7375 = vst.msk [vmem:[#allocation3 + $0x168] sm:$0xff] %vm5596_vm7, %v7353_v53  ;;  %v10732_v54 = vpop.f32.mrf.mxu0  ;;  %v7779_v53 = vld [vmem:[#allocation3 + $0x28] sm:$0xff] }
 0x5b8   :  { %5651 = vst.msk [vmem:[#allocation3 + $0xf8] sm:$0xff] %vm5514_vm5, %v5634_v30  ;;  %5795 = vrot.lane.b32.xlu1 %v13634_v13, %s11331_s12  ;;  %5789 = vrot.lane.b32.xlu0 %v13623_v52, %s11331_s12  ;;  %v13845_v52 = vpop.f32.mrf.mxu1 }
 0x5b9   :  { %7641 = vst.msk [vmem:[#allocation3 + $0x1d0] sm:$0xff] %vm5473_vm4, %v10732_v54  ;;  %v7098_v11 = vpop.f32.mrf.mxu0 }
 0x5ba   :  { %v5636_v55 = vpop.permute.xlu1 %5635  ;;  %v7363_v58 = vpop.permute.xlu0 %7362  ;;  %7639 = vst.msk [vmem:[#allocation3 + $0x180] sm:$0xff] %vm5473_vm4, %v7098_v11 }
 0x5bb   :  { %5652 = vst.msk [vmem:[#allocation3 + $0x120] sm:$0xff] %vm5514_vm5, %v5636_v55  ;;  %v10735_v49 = vpop.f32.mrf.mxu0 }
 0x5bc   :  { %7380 = vst.msk [vmem:[#allocation3 + $0x230] sm:$0xff] %vm5596_vm7, %v7363_v58  ;;  %5791 = vrot.lane.b32.xlu1 %v13642_v56, %s11331_s12  ;;  %5801 = vrot.lane.b32.xlu0 %v13648_v51, %s11331_s12  ;;  %v13855_v56 = vpop.f32.mrf.mxu1 }
 0x5bd   :  { %7644 = vst.msk [vmem:[#allocation3 + $0x248] sm:$0xff] %vm5473_vm4, %v10735_v49  ;;  %v7111_v13 = vpop.f32.mrf.mxu0 }
 0x5be   :  { %v7365_v20 = vpop.permute.xlu1 %7364  ;;  %v5630_v62 = vpop.permute.xlu0 %5629  ;;  %7642 = vst.msk [vmem:[#allocation3 + $0x1f8] sm:$0xff] %vm5473_vm4, %v7111_v13  ;;  %v7774_v13 = vld [vmem:[#allocation3] sm:$0xff] }
 0x5bf   :  { %7381 = vst.msk [vmem:[#allocation3 + $0x258] sm:$0xff] %vm5596_vm7, %v7365_v20  ;;  %v10736_v63 = vpop.f32.mrf.mxu0 }
 0x5c0   :  { %5649 = vst.msk [vmem:[#allocation3 + $0xa8] sm:$0xff] %vm5514_vm5, %v5630_v62  ;;  %5803 = vrot.lane.b32.xlu1 %v13660_v59, %s11331_s12  ;;  %5797 = vrot.lane.b32.xlu0 %v13655_v15, %s11331_s12  ;;  %v13864_v15 = vpop.f32.mrf.mxu1 }
 0x5c1   :  { %7645 = vst.msk [vmem:[#allocation3 + $0x270] sm:$0xff] %vm5473_vm4, %v10736_v63  ;;  %v7114_v51 = vpop.f32.mrf.mxu0 }
 0x5c2   :  { %v5632_v6 = vpop.permute.xlu1 %5631  ;;  %v7359_v7 = vpop.permute.xlu0 %7358  ;;  %7643 = vst.msk [vmem:[#allocation3 + $0x220] sm:$0xff] %vm5473_vm4, %v7114_v51 }
 0x5c3   :  { %5650 = vst.msk [vmem:[#allocation3 + $0xd0] sm:$0xff] %vm5514_vm5, %v5632_v6  ;;  %v13872_v26 = vpop.f32.mrf.mxu1 }
 0x5c4   :  { %7378 = vst.msk [vmem:[#allocation3 + $0x1e0] sm:$0xff] %vm5596_vm7, %v7359_v7  ;;  %5799 = vrot.lane.b32.xlu1 %v13667_v17, %s11331_s12  ;;  %5833 = vrot.lane.b32.xlu0 %v13675_v22, %s11335_s24  ;;  %v7789_v7 = vld [vmem:[#allocation3 + $0x78] sm:$0xff] }
 0x5c5   :  { %v13876_v22 = vpop.f32.mrf.mxu1 }
 0x5c6   :  { %v7361_v59 = vpop.permute.xlu1 %7360  ;;  %v5666_v1 = vpop.permute.xlu0 %5665 }
 0x5c7   :  { %7379 = vst.msk [vmem:[#allocation3 + $0x208] sm:$0xff] %vm5596_vm7, %v7361_v59 }
 0x5c8   :  { %5687 = vst.msk [vmem:[#allocation3 + $0x58] sm:$0xff] %vm5555_vm6, %v5666_v1  ;;  %5835 = vrot.lane.b32.xlu1 %v13694_v27, %s11335_s24  ;;  %7530 = vrot.lane.b32.xlu0 %v13677_v18, %s11327_s28  ;;  %v13884_v18 = vpop.f32.mrf.mxu1 }
 0x5ca   :  { %v5668_v17 = vpop.permute.xlu1 %5667  ;;  %v5662_v35 = vpop.permute.xlu0 %5661 }
 0x5cb   :  { %5688 = vst.msk [vmem:[#allocation3 + $0x80] sm:$0xff] %vm5555_vm6, %v5668_v17  ;;  %5685 = vst.msk [vmem:[#allocation3 + $0x8] sm:$0xff] %vm5555_vm6, %v5662_v35  ;;  %v7784_v17 = vld [vmem:[#allocation3 + $0x50] sm:$0xff] }
 0x5cc   :  { %7532 = vrot.lane.b32.xlu1 %v13696_v24, %s11327_s28  ;;  %5829 = vrot.lane.b32.xlu0 %v13686_v8, %s11335_s24  ;;  %v13892_v8 = vpop.f32.mrf.mxu1 }
 0x5ce   :  { %v5664_v27 = vpop.permute.xlu1 %5663  ;;  %v5674_v14 = vpop.permute.xlu0 %5673 }
 0x5cf   :  { %5686 = vst.msk [vmem:[#allocation3 + $0x30] sm:$0xff] %vm5555_vm6, %v5664_v27  ;;  %5691 = vst.msk [vmem:[#allocation3 + $0xf8] sm:$0xff] %vm5555_vm6, %v5674_v14 }
 0x5d0   :  { %5831 = vrot.lane.b32.xlu1 %v13702_v29, %s11335_s24  ;;  %7526 = vrot.lane.b32.xlu0 %v13688_v16, %s11327_s28  ;;  %v13900_v16 = vpop.f32.mrf.mxu1 }
 0x5d2   :  { %v5676_v12 = vpop.permute.xlu1 %5675  ;;  %v5670_v57 = vpop.permute.xlu0 %5669 }
 0x5d3   :  { %5692 = vst.msk [vmem:[#allocation3 + $0x120] sm:$0xff] %vm5555_vm6, %v5676_v12  ;;  %5689 = vst.msk [vmem:[#allocation3 + $0xa8] sm:$0xff] %vm5555_vm6, %v5670_v57  ;;  %v13906_v29 = vpop.f32.mrf.mxu1  ;;  %v7799_v12 = vld [vmem:[#allocation3 + $0xc8] sm:$0xff] }
 0x5d4   :  { %7528 = vrot.lane.b32.xlu1 %v13704_v25, %s11327_s28  ;;  %5841 = vrot.lane.b32.xlu0 %v13708_v39, %s11335_s24 }
 0x5d5   :  { %v13914_v39 = vpop.f32.mrf.mxu1 }
 0x5d6   :  { %v5672_v24 = vpop.permute.xlu1 %5671  ;;  %v5706_v9 = vpop.permute.xlu0 %5705 }
 0x5d7   :  { %5690 = vst.msk [vmem:[#allocation3 + $0xd0] sm:$0xff] %vm5555_vm6, %v5672_v24 }
 0x5d8   :  { %5727 = vst.msk [vmem:[#allocation3 + $0x58] sm:$0xff] %vm5596_vm7, %v5706_v9  ;;  %5843 = vrot.lane.b32.xlu1 %v13722_v23, %s11335_s24  ;;  %5837 = vrot.lane.b32.xlu0 %v13716_v34, %s11335_s24  ;;  %v13918_v34 = vpop.f32.mrf.mxu0 }
 0x5da   :  { %v5708_v25 = vpop.permute.xlu1 %5707  ;;  %v7403_v32 = vpop.permute.xlu0 %7402 }
 0x5db   :  { %5728 = vst.msk [vmem:[#allocation3 + $0x80] sm:$0xff] %vm5596_vm7, %v5708_v25  ;;  %v13928_v28 = vpop.f32.mrf.mxu0 }
 0x5dc   :  { %7424 = vst.msk [vmem:[#allocation3 + $0x198] sm:$0xff] %vm5514_vm5, %v7403_v32  ;;  %5839 = vrot.lane.b32.xlu1 %v13730_v44, %s11335_s24  ;;  %7534 = vrot.lane.b32.xlu0 %v13718_v40, %s11327_s28  ;;  %v13924_v44 = vpop.f32.mrf.mxu1 }
 0x5dd   :  { %v13938_v10 = vpop.f32.mrf.mxu0 }
 0x5de   :  { %v7405_v23 = vpop.permute.xlu1 %7404  ;;  %v5702_v42 = vpop.permute.xlu0 %5701 }
 0x5df   :  { %7425 = vst.msk [vmem:[#allocation3 + $0x1c0] sm:$0xff] %vm5514_vm5, %v7405_v23  ;;  %v13948_v58 = vpop.f32.mrf.mxu0 }
 0x5e0   :  { %5725 = vst.msk [vmem:[#allocation3 + $0x8] sm:$0xff] %vm5596_vm7, %v5702_v42  ;;  %7536 = vrot.lane.b32.xlu1 %v13732_v48, %s11327_s28  ;;  %7570 = vrot.lane.b32.xlu0 %v13736_v50, %s11331_s12  ;;  %v13934_v48 = vpop.f32.mrf.mxu1  ;;  %v7794_v42 = vld [vmem:[#allocation3 + $0xa0] sm:$0xff] }
 0x5e1   :  { %v13956_v62 = vpop.f32.mrf.mxu0 }
 0x5e2   :  { %v5704_v2 = vpop.permute.xlu1 %5703  ;;  %v7399_v40 = vpop.permute.xlu0 %7398  ;;  %v7790_v55 = vld [vmem:[#allocation3 + $0x80] sm:$0xff] }
 0x5e3   :  { %5726 = vst.msk [vmem:[#allocation3 + $0x30] sm:$0xff] %vm5596_vm7, %v5704_v2 }
 0x5e4   :  { %7422 = vst.msk [vmem:[#allocation3 + $0x148] sm:$0xff] %vm5514_vm5, %v7399_v40  ;;  %7572 = vrot.lane.b32.xlu1 %v13748_v43, %s11331_s12  ;;  %7566 = vrot.lane.b32.xlu0 %v13743_v46, %s11331_s12  ;;  %v13944_v43 = vpop.f32.mrf.mxu1 }
 0x5e6   :  { %v7401_v19 = vpop.permute.xlu1 %7400  ;;  %v5714_v50 = vpop.permute.xlu0 %5713 }
 0x5e7   :  { %7423 = vst.msk [vmem:[#allocation3 + $0x170] sm:$0xff] %vm5514_vm5, %v7401_v19  ;;  %v7775_v54 = vld [vmem:[#allocation3 + $0x8] sm:$0xff]  ;;  %v13954_v20 = vpop.f32.mrf.mxu1 }
 0x5e8   :  { %5731 = vst.msk [vmem:[#allocation3 + $0xf8] sm:$0xff] %vm5596_vm7, %v5714_v50  ;;  %7568 = vrot.lane.b32.xlu1 %v13755_v61, %s11331_s12  ;;  %7574 = vrot.lane.b32.xlu0 %v13767_v31, %s11331_s12  ;;  %v7854_v61 = vpack.c.bf16 %v7779_v53, %v7774_v13  ;;  %v7785_v31 = vld [vmem:[#allocation3 + $0x58] sm:$0xff] }
 0x5e9   :  { %v7860_v63 = vpack.c.bf16 %v7790_v55, %v7785_v31  ;;  %v11179_v31 = vld [vmem:[%s14588_s4 + $0xb0] sm:$0xff]  }
 0x5ea   :  { %v5716_v46 = vpop.permute.xlu1 %5715  ;;  %v7411_v30 = vpop.permute.xlu0 %7410  ;;  %v7780_v11 = vld [vmem:[#allocation3 + $0x30] sm:$0xff] }
 0x5eb   :  { %5732 = vst.msk [vmem:[#allocation3 + $0x120] sm:$0xff] %vm5596_vm7, %v5716_v46  ;;  %v7855_v49 = vpack.c.bf16 %v7780_v11, %v7775_v54  ;;  %v11177_v54 = vld [vmem:[%s14588_s4 + $0xb8] sm:$0xff]  }
 0x5ec   :  { %7428 = vst.msk [vmem:[#allocation3 + $0x238] sm:$0xff] %vm5514_vm5, %v7411_v30  ;;  %7576 = vrot.lane.b32.xlu1 %v13779_v4, %s11331_s12  ;;  %5881 = vrot.lane.b32.xlu0 %v13845_v52, %s11327_s28  ;;  %v13964_v4 = vpop.f32.mrf.mxu1  ;;  %v13966_v52 = vpop.f32.mrf.mxu0  ;;  %v7809_v30 = vld [vmem:[#allocation3 + $0x118] sm:$0xff] }
 0x5ed   :  { %8229 = vmatprep.mubr.bf16.mxu1 %v7855_v49 }
 0x5ee   :  { %v7413_v51 = vpop.permute.xlu1 %7412  ;;  %v5710_v6 = vpop.permute.xlu0 %5709  ;;  %8230 = vmatmul.mubr.bf16.vlgmr.msra.gmra.mxu1 %v7854_v61 }
 0x5ef   :  { %7429 = vst.msk [vmem:[#allocation3 + $0x260] sm:$0xff] %vm5514_vm5, %v7413_v51  ;;  %8237 = vmatprep.mubr.bf16.mxu1 %v7860_v63  ;;  %v13976_v35 = vpop.f32.mrf.mxu0 }
 0x5f0   :  { %5729 = vst.msk [vmem:[#allocation3 + $0xa8] sm:$0xff] %vm5596_vm7, %v5710_v6  ;;  %5883 = vrot.lane.b32.xlu1 %v13864_v15, %s11327_s28  ;;  %7610 = vrot.lane.b32.xlu0 %v13784_v33, %s11335_s24  ;;  %v7859_v15 = vpack.c.bf16 %v7789_v7, %v7784_v17  ;;  %v13974_v33 = vpop.f32.mrf.mxu1  ;;  %v11181_v7 = vld [vmem:[%s14588_s4 + $0xa8] sm:$0xff]  }
 0x5f2   :  { %v5712_v59 = vpop.permute.xlu1 %5711  ;;  %v7407_v1 = vpop.permute.xlu0 %7406  ;;  %v7810_v32 = vld [vmem:[#allocation3 + $0x120] sm:$0xff] }
 0x5f3   :  { %5730 = vst.msk [vmem:[#allocation3 + $0xd0] sm:$0xff] %vm5596_vm7, %v5712_v59 }
 0x5f4   :  { %7426 = vst.msk [vmem:[#allocation3 + $0x1e8] sm:$0xff] %vm5514_vm5, %v7407_v1  ;;  %7612 = vrot.lane.b32.xlu1 %v13794_v47, %s11335_s24  ;;  %5877 = vrot.lane.b32.xlu0 %v13855_v56, %s11327_s28  ;;  %v13984_v47 = vpop.f32.mrf.mxu1  ;;  %v13986_v56 = vpop.f32.mrf.mxu0 }
 0x5f6   :  { %v7409_v27 = vpop.permute.xlu1 %7408  ;;  %v7443_v14 = vpop.permute.xlu0 %7442  ;;  %8238 = vmatmul.mubr.bf16.gmra.mxu1 %v7859_v15  ;;  %v11183_v15 = vld [vmem:[%s14588_s4 + $0xa0] sm:$0xff]  }
 0x5f7   :  { %7427 = vst.msk [vmem:[#allocation3 + $0x210] sm:$0xff] %vm5514_vm5, %v7409_v27  ;;  %v7795_v9 = vld [vmem:[#allocation3 + $0xa8] sm:$0xff]  ;;  %v13994_v2 = vpop.f32.mrf.mxu1  ;;  %v13996_v40 = vpop.f32.mrf.mxu0 }
 0x5f8   :  { %7464 = vst.msk [vmem:[#allocation3 + $0x198] sm:$0xff] %vm5555_vm6, %v7443_v14  ;;  %5879 = vrot.lane.b32.xlu1 %v13872_v26, %s11327_s28  ;;  %7606 = vrot.lane.b32.xlu0 %v13790_v5, %s11335_s24  ;;  %v7864_v5 = vpack.c.bf16 %v7799_v12, %v7794_v42  ;;  %v7805_v26 = vld [vmem:[#allocation3 + $0xf8] sm:$0xff] }
 0x5f9   :  { %v7870_v19 = vpack.c.bf16 %v7810_v32, %v7805_v26  ;;  %v14009_v46 = vpop.f32.mrf.mxu0 }
 0x5fa   :  { %v7445_v57 = vpop.permute.xlu1 %7444  ;;  %v7439_v24 = vpop.permute.xlu0 %7438  ;;  %v7800_v25 = vld [vmem:[#allocation3 + $0xd0] sm:$0xff] }
 0x5fb   :  { %7465 = vst.msk [vmem:[#allocation3 + $0x1c0] sm:$0xff] %vm5555_vm6, %v7445_v57  ;;  %7462 = vst.msk [vmem:[#allocation3 + $0x148] sm:$0xff] %vm5555_vm6, %v7439_v24  ;;  %v7865_v23 = vpack.c.bf16 %v7800_v25, %v7795_v9  ;;  %v14025_v61 = vpop.f32.mrf.mxu0  ;;  %v11185_v57 = vld [vmem:[%s14588_s4 + $0x98] sm:$0xff]  }
 0x5fc   :  { %7608 = vrot.lane.b32.xlu1 %v13800_v21, %s11335_s24  ;;  %5889 = vrot.lane.b32.xlu0 %v13876_v22, %s11327_s28  ;;  %v11176_v21 = vld [vmem:[%s14588_s4 + $0xf8] sm:$0xff]   ;;  %v14007_v22 = vpop.f32.mrf.mxu1 }
 0x5fd   :  { %8245 = vmatprep.mubr.bf16.mxu1 %v7865_v23  ;;  %10091 = vmatprep.subr.bf16.mxu0 %v11176_v21  ;;  %v14041_v6 = vpop.f32.mrf.mxu0  ;;  %v11187_v23 = vld [vmem:[%s14588_s4 + $0x90] sm:$0xff]  }
 0x5fe   :  { %v7441_v50 = vpop.permute.xlu1 %7440  ;;  %v7451_v53 = vpop.permute.xlu0 %7450  ;;  %8246 = vmatmul.mubr.bf16.gmra.mxu1 %v7864_v5  ;;  %10092 = vmatpush3.bf16.msra.mxu0 %v11177_v54 }
 0x5ff   :  { %7463 = vst.msk [vmem:[#allocation3 + $0x170] sm:$0xff] %vm5555_vm6, %v7441_v50  ;;  %7468 = vst.msk [vmem:[#allocation3 + $0x238] sm:$0xff] %vm5555_vm6, %v7451_v53  ;;  %8253 = vmatprep.mubr.bf16.mxu1 %v7870_v19  ;;  %v14023_v13 = vpop.f32.mrf.mxu1  ;;  %v11189_v50 = vld [vmem:[%s14588_s4 + $0x88] sm:$0xff]  }
 0x600   :  { %5891 = vrot.lane.b32.xlu1 %v13892_v8, %s11327_s28  ;;  %5885 = vrot.lane.b32.xlu0 %v13884_v18, %s11327_s28  ;;  %v7804_v8 = vld [vmem:[#allocation3 + $0xf0] sm:$0xff] }
 0x601   :  { %v11178_v18 = vld [vmem:[%s14588_s4 + $0xf0] sm:$0xff]   ;;  %v7869_v49 = vpack.c.bf16 %v7809_v30, %v7804_v8  ;;  %v11191_v30 = vld [vmem:[%s14588_s4 + $0x108] sm:$0xff]  }
 0x602   :  { %v7453_v11 = vpop.permute.xlu1 %7452  ;;  %v7447_v55 = vpop.permute.xlu0 %7446  ;;  %10093 = vmatprep.subr.bf16.mxu0 %v11178_v18  ;;  %10769 = vmatprep.subr.bf16.mxu1 %v11191_v30 }
 0x603   :  { %7469 = vst.msk [vmem:[#allocation3 + $0x260] sm:$0xff] %vm5555_vm6, %v7453_v11  ;;  %7466 = vst.msk [vmem:[#allocation3 + $0x1e8] sm:$0xff] %vm5555_vm6, %v7447_v55  ;;  %10094 = vmatpush3.bf16.msra.mxu0 %v11179_v31  ;;  %v7819_v11 = vld [vmem:[#allocation3 + $0x168] sm:$0xff]  ;;  %v11192_v55 = vld [vmem:[%s14588_s4 + $0x80] sm:$0xff]   ;;  %10770 = vmatpush3.bf16.msra.mxu1 %v11191_v30 }
 0x604   :  { %5887 = vrot.lane.b32.xlu1 %v13900_v16, %s11327_s28  ;;  %7614 = vrot.lane.b32.xlu0 %v13810_v36, %s11335_s24  ;;  %v14032_v16 = vpop.f32.mrf.mxu1  ;;  %v11180_v36 = vld [vmem:[%s14588_s4 + $0xe8] sm:$0xff]  }
 0x605   :  { %10095 = vmatprep.subr.bf16.mxu0 %v11180_v36 }
 0x606   :  { %v7449_v63 = vpop.permute.xlu1 %7448  ;;  %v5754_v51 = vpop.permute.xlu0 %5753  ;;  %8254 = vmatmul.mubr.bf16.gmra.mxu1 %v7869_v49 }
 0x607   :  { %7467 = vst.msk [vmem:[#allocation3 + $0x210] sm:$0xff] %vm5555_vm6, %v7449_v63  ;;  %v14048_v17 = vpop.f32.mrf.mxu1  ;;  %10096 = vmatpush3.bf16.msra.mxu0 %v11181_v7  ;;  %v11193_v7 = vld [vmem:[%s14588_s4 + $0x100] sm:$0xff]  }
 0x608   :  { %5775 = vst.msk [vmem:[#allocation3 + $0x60] sm:$0xff] %vm5514_vm5, %v5754_v51  ;;  %7616 = vrot.lane.b32.xlu1 %v13820_v37, %s11335_s24  ;;  %5921 = vrot.lane.b32.xlu0 %v13906_v29, %s11331_s12  ;;  %v11182_v37 = vld [vmem:[%s14588_s4 + $0xe0] sm:$0xff]   ;;  %v14057_v29 = vpop.f32.mrf.mxu0 }
 0x609   :  { %10097 = vmatprep.subr.bf16.mxu0 %v11182_v37  ;;  %v14064_v12 = vpop.f32.mrf.mxu1  ;;  %10771 = vmatprep.subr.bf16.mxu1 %v11193_v7 }
 0x60a   :  { %v5756_v59 = vpop.permute.xlu1 %5755  ;;  %v7483_v1 = vpop.permute.xlu0 %7482  ;;  %10772 = vmatpush3.bf16.msra.mxu1 %v11193_v7 }
 0x60b   :  { %5776 = vst.msk [vmem:[#allocation3 + $0x88] sm:$0xff] %vm5514_vm5, %v5756_v59  ;;  %10098 = vmatpush3.bf16.msra.mxu0 %v11183_v15  ;;  %v14080_v25 = vpop.f32.mrf.mxu1 }
 0x60c   :  { %7504 = vst.msk [vmem:[#allocation3 + $0x198] sm:$0xff] %vm5596_vm7, %v7483_v1  ;;  %5923 = vrot.lane.b32.xlu1 %v13924_v44, %s11331_s12  ;;  %5917 = vrot.lane.b32.xlu0 %v13914_v39, %s11331_s12  ;;  %v11184_v39 = vld [vmem:[%s14588_s4 + $0xd8] sm:$0xff]   ;;  %v14073_v44 = vpop.f32.mrf.mxu0 }
 0x60d   :  { %10099 = vmatprep.subr.bf16.mxu0 %v11184_v39  ;;  %v10619_v32 = vpop.f32.mrf.mxu1 }
 0x60e   :  { %v7485_v27 = vpop.permute.xlu1 %7484  ;;  %v5750_v14 = vpop.permute.xlu0 %5749  ;;  %5991 = vst.msk [vmem:[#allocation3 + $0x70] sm:$0xff] %vm5473_vm4, %v10619_v32 }
 0x60f   :  { %7505 = vst.msk [vmem:[#allocation3 + $0x1c0] sm:$0xff] %vm5596_vm7, %v7485_v27  ;;  %10100 = vmatpush3.bf16.msra.mxu0 %v11185_v57  ;;  %v7824_v57 = vld [vmem:[#allocation3 + $0x190] sm:$0xff] }
 0x610   :  { %5773 = vst.msk [vmem:[#allocation3 + $0x10] sm:$0xff] %vm5514_vm5, %v5750_v14  ;;  %5919 = vrot.lane.b32.xlu1 %v13934_v48, %s11331_s12  ;;  %5929 = vrot.lane.b32.xlu0 %v13944_v43, %s11331_s12  ;;  %v11186_v48 = vld [vmem:[%s14588_s4 + $0xd0] sm:$0xff]   ;;  %v14089_v43 = vpop.f32.mrf.mxu0 }
 0x611   :  { %10101 = vmatprep.subr.bf16.mxu0 %v11186_v48 }
 0x612   :  { %v5752_v24 = vpop.permute.xlu1 %5751  ;;  %v7479_v9 = vpop.permute.xlu0 %7478 }
 0x613   :  { %5774 = vst.msk [vmem:[#allocation3 + $0x38] sm:$0xff] %vm5514_vm5, %v5752_v24  ;;  %10102 = vmatpush3.bf16.msra.mxu0 %v11187_v23  ;;  %v14105_v26 = vpop.f32.mrf.mxu0  ;;  %v7825_v36 = vld [vmem:[#allocation3 + $0x198] sm:$0xff] }
 0x614   :  { %7502 = vst.msk [vmem:[#allocation3 + $0x148] sm:$0xff] %vm5596_vm7, %v7479_v9  ;;  %5931 = vrot.lane.b32.xlu1 %v13964_v4, %s11331_s12  ;;  %5925 = vrot.lane.b32.xlu0 %v13954_v20, %s11331_s12  ;;  %v5442_v4 = vpop.f32.mrf.mxu1  ;;  %v11188_v20 = vld [vmem:[%s14588_s4 + $0xc8] sm:$0xff]  }
 0x615   :  { %5989 = vst.msk [vmem:[#allocation3 + $0x20] sm:$0xff] %vm5473_vm4, %v5442_v4  ;;  %10103 = vmatprep.subr.bf16.mxu0 %v11188_v20  ;;  %v14124_v54 = vpop.f32.mrf.mxu0 }
 0x616   :  { %v7481_v42 = vpop.permute.xlu1 %7480  ;;  %v5762_v5 = vpop.permute.xlu0 %5761  ;;  %v7830_v63 = vld [vmem:[#allocation3 + $0x1c0] sm:$0xff] }
 0x617   :  { %7503 = vst.msk [vmem:[#allocation3 + $0x170] sm:$0xff] %vm5596_vm7, %v7481_v42  ;;  %v10620_v19 = vpop.f32.mrf.mxu1  ;;  %10104 = vmatpush3.bf16.msra.mxu0 %v11189_v50  ;;  %v14138_v59 = vpop.f32.mrf.mxu0  ;;  %v7880_v1 = vpack.c.bf16 %v7830_v63, %v7825_v36 }
 0x618   :  { %5779 = vst.msk [vmem:[#allocation3 + $0x100] sm:$0xff] %vm5514_vm5, %v5762_v5  ;;  %5927 = vrot.lane.b32.xlu1 %v13974_v33, %s11331_s12  ;;  %5961 = vrot.lane.b32.xlu0 %v13984_v47, %s11335_s24  ;;  %v11190_v47 = vld [vmem:[%s14588_s4 + $0xc0] sm:$0xff]  }
 0x619   :  { %5992 = vst.msk [vmem:[#allocation3 + $0x98] sm:$0xff] %vm5473_vm4, %v10620_v19  ;;  %v5445_v33 = vpop.f32.mrf.mxu1  ;;  %10105 = vmatprep.subr.bf16.mxu0 %v11190_v47 }
 0x61a   :  { %v5764_v53 = vpop.permute.xlu1 %5763  ;;  %v7491_v21 = vpop.permute.xlu0 %7490  ;;  %5990 = vst.msk [vmem:[#allocation3 + $0x48] sm:$0xff] %vm5473_vm4, %v5445_v33 }
 0x61b   :  { %5780 = vst.msk [vmem:[#allocation3 + $0x128] sm:$0xff] %vm5514_vm5, %v5764_v53  ;;  %v7815_v49 = vld [vmem:[#allocation3 + $0x148] sm:$0xff]  ;;  %10106 = vmatpush3.bf16.msra.mxu0 %v11192_v55  ;;  %v7849_v55 = vld [vmem:[#allocation3 + $0x258] sm:$0xff] }
 0x61c   :  { %7508 = vst.msk [vmem:[#allocation3 + $0x238] sm:$0xff] %vm5596_vm7, %v7491_v21  ;;  %5963 = vrot.lane.b32.xlu1 %v14007_v22, %s11335_s24  ;;  %7658 = vrot.lane.b32.xlu0 %v13918_v34, %s11327_s28  ;;  %v7814_v22 = vld [vmem:[#allocation3 + $0x140] sm:$0xff] }
 0x61d   :  { %v7874_v51 = vpack.c.bf16 %v7819_v11, %v7814_v22  ;;  %v10623_v27 = vpop.f32.mrf.mxu1  ;;  %v7834_v21 = vld [vmem:[#allocation3 + $0x1e0] sm:$0xff] }
 0x61e   :  { %v7493_v8 = vpop.permute.xlu1 %7492  ;;  %v5758_v18 = vpop.permute.xlu0 %5757  ;;  %v7820_v31 = vld [vmem:[#allocation3 + $0x170] sm:$0xff]  ;;  %5995 = vst.msk [vmem:[#allocation3 + $0x110] sm:$0xff] %vm5473_vm4, %v10623_v27 }
 0x61f   :  { %7509 = vst.msk [vmem:[#allocation3 + $0x260] sm:$0xff] %vm5596_vm7, %v7493_v8  ;;  %v7875_v34 = vpack.c.bf16 %v7820_v31, %v7815_v49  ;;  %v5458_v24 = vpop.f32.mrf.mxu1  ;;  %v7844_v31 = vld [vmem:[#allocation3 + $0x230] sm:$0xff] }
 0x620   :  { %5777 = vst.msk [vmem:[#allocation3 + $0xb0] sm:$0xff] %vm5514_vm5, %v5758_v18  ;;  %7660 = vrot.lane.b32.xlu1 %v13938_v10, %s11327_s28  ;;  %5957 = vrot.lane.b32.xlu0 %v13994_v2, %s11335_s24  ;;  %v14146_v10 = vpop.f32.mrf.mxu0  ;;  %v7829_v2 = vld [vmem:[#allocation3 + $0x1b8] sm:$0xff] }
 0x621   :  { %8261 = vmatprep.mubr.bf16.mxu1 %v7875_v34  ;;  %5993 = vst.msk [vmem:[#allocation3 + $0xc0] sm:$0xff] %vm5473_vm4, %v5458_v24  ;;  %v10624_v9 = vpop.f32.mrf.mxu1  ;;  %v7793_v36 = vld [vmem:[#allocation3 + $0x98] sm:$0xff] }
 0x622   :  { %v5760_v37 = vpop.permute.xlu1 %5759  ;;  %v7487_v15 = vpop.permute.xlu0 %7486  ;;  %8262 = vmatmul.mubr.bf16.gmra.mxu1 %v7874_v51  ;;  %5996 = vst.msk [vmem:[#allocation3 + $0x138] sm:$0xff] %vm5473_vm4, %v10624_v9  ;;  %v7788_v51 = vld [vmem:[#allocation3 + $0x70] sm:$0xff] }
 0x623   :  { %5778 = vst.msk [vmem:[#allocation3 + $0xd8] sm:$0xff] %vm5514_vm5, %v5760_v37  ;;  %8269 = vmatprep.mubr.bf16.mxu1 %v7880_v1 }
 0x624   :  { %7506 = vst.msk [vmem:[#allocation3 + $0x1e8] sm:$0xff] %vm5596_vm7, %v7487_v15  ;;  %5959 = vrot.lane.b32.xlu1 %v14023_v13, %s11335_s24  ;;  %7654 = vrot.lane.b32.xlu0 %v13928_v28, %s11327_s28  ;;  %v7879_v28 = vpack.c.bf16 %v7829_v2, %v7824_v57  ;;  %v14156_v13 = vpop.f32.mrf.mxu0  ;;  %v7863_v2 = vpack.c.bf16 %v7793_v36, %v7788_v51 }
 0x626   :  { %v7489_v14 = vpop.permute.xlu1 %7488  ;;  %v5794_v39 = vpop.permute.xlu0 %5793  ;;  %v7850_v19 = vld [vmem:[#allocation3 + $0x260] sm:$0xff] }
 0x627   :  { %7507 = vst.msk [vmem:[#allocation3 + $0x210] sm:$0xff] %vm5596_vm7, %v7489_v14  ;;  %v14161_v23 = vpop.f32.mrf.mxu0 }
 0x628   :  { %5815 = vst.msk [vmem:[#allocation3 + $0x60] sm:$0xff] %vm5555_vm6, %v5794_v39  ;;  %7656 = vrot.lane.b32.xlu1 %v13948_v58, %s11327_s28  ;;  %5969 = vrot.lane.b32.xlu0 %v14032_v16, %s11335_s24  ;;  %v5461_v58 = vpop.f32.mrf.mxu1  ;;  %v7839_v16 = vld [vmem:[#allocation3 + $0x208] sm:$0xff]  ;;  %v7808_v39 = vld [vmem:[#allocation3 + $0x110] sm:$0xff] }
 0x629   :  { %5994 = vst.msk [vmem:[#allocation3 + $0xe8] sm:$0xff] %vm5473_vm4, %v5461_v58  ;;  %v14170_v50 = vpop.f32.mrf.mxu0  ;;  %v7813_v57 = vld [vmem:[#allocation3 + $0x138] sm:$0xff] }
 0x62a   :  { %v5796_v48 = vpop.permute.xlu1 %5795  ;;  %v5790_v32 = vpop.permute.xlu0 %5789  ;;  %8270 = vmatmul.mubr.bf16.gmra.mxu1 %v7879_v28  ;;  %v7873_v24 = vpack.c.bf16 %v7813_v57, %v7808_v39 }
 0x62b   :  { %5816 = vst.msk [vmem:[#allocation3 + $0x88] sm:$0xff] %vm5555_vm6, %v5796_v48  ;;  %5813 = vst.msk [vmem:[#allocation3 + $0x10] sm:$0xff] %vm5555_vm6, %v5790_v32  ;;  %v7835_v4 = vld [vmem:[#allocation3 + $0x1e8] sm:$0xff]  ;;  %v14178_v11 = vpop.f32.mrf.mxu0 }
 0x62c   :  { %5971 = vrot.lane.b32.xlu1 %v14064_v12, %s11335_s24  ;;  %5965 = vrot.lane.b32.xlu0 %v14048_v17, %s11335_s24  ;;  %v7884_v17 = vpack.c.bf16 %v7839_v16, %v7834_v21  ;;  %v7845_v12 = vld [vmem:[#allocation3 + $0x238] sm:$0xff] }
 0x62d   :  { %v7890_v33 = vpack.c.bf16 %v7850_v19, %v7845_v12  ;;  %v14186_v49 = vpop.f32.mrf.mxu0 }
 0x62e   :  { %v5792_v42 = vpop.permute.xlu1 %5791  ;;  %v5802_v5 = vpop.permute.xlu0 %5801  ;;  %v7840_v20 = vld [vmem:[#allocation3 + $0x210] sm:$0xff] }
 0x62f   :  { %5814 = vst.msk [vmem:[#allocation3 + $0x38] sm:$0xff] %vm5555_vm6, %v5792_v42  ;;  %5819 = vst.msk [vmem:[#allocation3 + $0x100] sm:$0xff] %vm5555_vm6, %v5802_v5  ;;  %v7885_v53 = vpack.c.bf16 %v7840_v20, %v7835_v4 }
 0x630   :  { %5967 = vrot.lane.b32.xlu1 %v14080_v25, %s11335_s24  ;;  %7662 = vrot.lane.b32.xlu0 %v13966_v52, %s11327_s28  ;;  %v7778_v52 = vld [vmem:[#allocation3 + $0x20] sm:$0xff]  ;;  %v7783_v25 = vld [vmem:[#allocation3 + $0x48] sm:$0xff] }
 0x631   :  { %8277 = vmatprep.mubr.bf16.mxu1 %v7885_v53  ;;  %v7858_v63 = vpack.c.bf16 %v7783_v25, %v7778_v52 }
 0x632   :  { %v5804_v47 = vpop.permute.xlu1 %5803  ;;  %v5798_v30 = vpop.permute.xlu0 %5797  ;;  %8278 = vmatmul.mubr.bf16.gmra.mxu1 %v7884_v17 }
 0x633   :  { %5820 = vst.msk [vmem:[#allocation3 + $0x128] sm:$0xff] %vm5555_vm6, %v5804_v47  ;;  %5817 = vst.msk [vmem:[#allocation3 + $0xb0] sm:$0xff] %vm5555_vm6, %v5798_v30  ;;  %8285 = vmatprep.mubr.bf16.mxu1 %v7890_v33 }
 0x634   :  { %7664 = vrot.lane.b32.xlu1 %v13986_v56, %s11327_s28  ;;  %7698 = vrot.lane.b32.xlu0 %v13996_v40, %s11331_s12  ;;  %v7889_v56 = vpack.c.bf16 %v7849_v55, %v7844_v31 }
 0x635   :  { %v10763_v40 = vpop.f32.mrf.mxu0 }
 0x636   :  { %v5800_v8 = vpop.permute.xlu1 %5799  ;;  %v5834_v18 = vpop.permute.xlu0 %5833  ;;  %7768 = vst.msk [vmem:[#allocation3 + $0x1b0] sm:$0xff] %vm5473_vm4, %v10763_v40 }
 0x637   :  { %5818 = vst.msk [vmem:[#allocation3 + $0xd8] sm:$0xff] %vm5555_vm6, %v5800_v8  ;;  %v7223_v7 = vpop.f32.mrf.mxu0 }
 0x638   :  { %5855 = vst.msk [vmem:[#allocation3 + $0x60] sm:$0xff] %vm5596_vm7, %v5834_v18  ;;  %7700 = vrot.lane.b32.xlu1 %v14025_v61, %s11331_s12  ;;  %7694 = vrot.lane.b32.xlu0 %v14009_v46, %s11331_s12  ;;  %v7798_v46 = vld [vmem:[#allocation3 + $0xc0] sm:$0xff]  ;;  %v7803_v61 = vld [vmem:[#allocation3 + $0xe8] sm:$0xff] }
 0x639   :  { %7766 = vst.msk [vmem:[#allocation3 + $0x160] sm:$0xff] %vm5473_vm4, %v7223_v7  ;;  %v10764_v1 = vpop.f32.mrf.mxu0  ;;  %v7868_v27 = vpack.c.bf16 %v7803_v61, %v7798_v46 }
 0x63a   :  { %v5836_v34 = vpop.permute.xlu1 %5835  ;;  %v7531_v22 = vpop.permute.xlu0 %7530  ;;  %8286 = vmatmul.mubr.bf16.gmra.mxu1 %v7889_v56  ;;  %7769 = vst.msk [vmem:[#allocation3 + $0x1d8] sm:$0xff] %vm5473_vm4, %v10764_v1 }
 0x63b   :  { %5856 = vst.msk [vmem:[#allocation3 + $0x88] sm:$0xff] %vm5596_vm7, %v5836_v34  ;;  %10773 = vmatprep.mubr.msk.bf16.mxu1 %vm5473_vm4, %v7858_v63  ;;  %v7226_v14 = vpop.f32.mrf.mxu0 }
 0x63c   :  { %7552 = vst.msk [vmem:[#allocation3 + $0x1a0] sm:$0xff] %vm5514_vm5, %v7531_v22  ;;  %7696 = vrot.lane.b32.xlu1 %v14041_v6, %s11331_s12  ;;  %7702 = vrot.lane.b32.xlu0 %v14073_v44, %s11331_s12 }
 0x63d   :  { %7767 = vst.msk [vmem:[#allocation3 + $0x188] sm:$0xff] %vm5473_vm4, %v7226_v14  ;;  %v10767_v9 = vpop.f32.mrf.mxu0 }
 0x63e   :  { %v7533_v37 = vpop.permute.xlu1 %7532  ;;  %v5830_v15 = vpop.permute.xlu0 %5829  ;;  %7772 = vst.msk [vmem:[#allocation3 + $0x250] sm:$0xff] %vm5473_vm4, %v10767_v9 }
 0x63f   :  { %7553 = vst.msk [vmem:[#allocation3 + $0x1c8] sm:$0xff] %vm5514_vm5, %v7533_v37 }
 0x640   :  { %5853 = vst.msk [vmem:[#allocation3 + $0x10] sm:$0xff] %vm5596_vm7, %v5830_v15  ;;  %7704 = vrot.lane.b32.xlu1 %v14105_v26, %s11331_s12  ;;  %7738 = vrot.lane.b32.xlu0 %v14124_v54, %s11335_s24  ;;  %v7818_v28 = vld [vmem:[#allocation3 + $0x160] sm:$0xff] }
 0x641   :  { %v7833_v16 = vld [vmem:[#allocation3 + $0x1d8] sm:$0xff] }
 0x642   :  { %v5832_v6 = vpop.permute.xlu1 %5831  ;;  %v7527_v44 = vpop.permute.xlu0 %7526  ;;  %10774 = vmatmul.mubr.msk.bf16.vlgmr.msra.gmra.mxu1 %vm5473_vm4, %v7863_v2 }
 0x643   :  { %5854 = vst.msk [vmem:[#allocation3 + $0x38] sm:$0xff] %vm5596_vm7, %v5832_v6  ;;  %10777 = vmatprep.mubr.msk.bf16.mxu1 %vm5473_vm4, %v7868_v27 }
 0x644   :  { %7550 = vst.msk [vmem:[#allocation3 + $0x150] sm:$0xff] %vm5514_vm5, %v7527_v44  ;;  %7740 = vrot.lane.b32.xlu1 %v14146_v10, %s11335_s24  ;;  %7734 = vrot.lane.b32.xlu0 %v14138_v59, %s11335_s24  ;;  %v7823_v48 = vld [vmem:[#allocation3 + $0x188] sm:$0xff]  ;;  %v7239_v59 = vpop.f32.mrf.mxu0 }
 0x645   :  { %v7878_v10 = vpack.c.bf16 %v7823_v48, %v7818_v28  ;;  %7770 = vst.msk [vmem:[#allocation3 + $0x200] sm:$0xff] %vm5473_vm4, %v7239_v59  ;;  %v7848_v53 = vld [vmem:[#allocation3 + $0x250] sm:$0xff] }
 0x646   :  { %v7529_v26 = vpop.permute.xlu1 %7528  ;;  %v5842_v54 = vpop.permute.xlu0 %5841 }
 0x647   :  { %7551 = vst.msk [vmem:[#allocation3 + $0x178] sm:$0xff] %vm5514_vm5, %v7529_v26  ;;  %v10768_v42 = vpop.f32.mrf.mxu0  ;;  %v7776_v9 = vld [vmem:[#allocation3 + $0x10] sm:$0xff] }
 0x648   :  { %5859 = vst.msk [vmem:[#allocation3 + $0x100] sm:$0xff] %vm5596_vm7, %v5842_v54  ;;  %7736 = vrot.lane.b32.xlu1 %v14156_v13, %s11335_s24  ;;  %7666 = vrot.lane.b32.xlu0 %v13956_v62, %s11327_s28  ;;  %v7828_v13 = vld [vmem:[#allocation3 + $0x1b0] sm:$0xff] }
 0x649   :  { %7773 = vst.msk [vmem:[#allocation3 + $0x278] sm:$0xff] %vm5473_vm4, %v10768_v42  ;;  %v7242_v62 = vpop.f32.mrf.mxu0  ;;  %v7883_v20 = vpack.c.bf16 %v7833_v16, %v7828_v13  ;;  %v7791_v13 = vld [vmem:[#allocation3 + $0x88] sm:$0xff] }
 0x64a   :  { %v5844_v32 = vpop.permute.xlu1 %5843  ;;  %v5838_v58 = vpop.permute.xlu0 %5837  ;;  %10778 = vmatmul.mubr.msk.bf16.gmra.mxu1 %vm5473_vm4, %v7873_v24  ;;  %7771 = vst.msk [vmem:[#allocation3 + $0x228] sm:$0xff] %vm5473_vm4, %v7242_v62  ;;  %v7781_v44 = vld [vmem:[#allocation3 + $0x38] sm:$0xff]  ;;  %v7786_v62 = vld [vmem:[#allocation3 + $0x60] sm:$0xff] }
 0x64b   :  { %5860 = vst.msk [vmem:[#allocation3 + $0x128] sm:$0xff] %vm5596_vm7, %v5844_v32  ;;  %5857 = vst.msk [vmem:[#allocation3 + $0xb0] sm:$0xff] %vm5596_vm7, %v5838_v58  ;;  %10781 = vmatprep.mubr.msk.bf16.mxu1 %vm5473_vm4, %v7878_v10  ;;  %v7856_v48 = vpack.c.bf16 %v7781_v44, %v7776_v9 }
 0x64c   :  { %7668 = vrot.lane.b32.xlu1 %v13976_v35, %s11327_s28  ;;  %7538 = vrot.lane.b32.xlu0 %v13710_v38, %s11327_s28  ;;  %v7838_v19 = vld [vmem:[#allocation3 + $0x200] sm:$0xff] }
 0x64e   :  { %v5840_v5 = vpop.permute.xlu1 %5839  ;;  %v7535_v4 = vpop.permute.xlu0 %7534 }
 0x64f   :  { %5858 = vst.msk [vmem:[#allocation3 + $0xd8] sm:$0xff] %vm5596_vm7, %v5840_v5  ;;  %v7861_v5 = vpack.c.bf16 %v7791_v13, %v7786_v62 }
 0x650   :  { %7554 = vst.msk [vmem:[#allocation3 + $0x1f0] sm:$0xff] %vm5514_vm5, %v7535_v4  ;;  %7540 = vrot.lane.b32.xlu1 %v13724_v41, %s11327_s28  ;;  %7706 = vrot.lane.b32.xlu0 %v14057_v29, %s11331_s12  ;;  %v7853_v41 = vld [vmem:[#allocation3 + $0x278] sm:$0xff] }
 0x651   :  { %v7843_v21 = vld [vmem:[#allocation3 + $0x228] sm:$0xff]  ;;  %v7893_v33 = vpack.c.bf16 %v7853_v41, %v7848_v53 }
 0x652   :  { %v7537_v35 = vpop.permute.xlu1 %7536  ;;  %v7571_v38 = vpop.permute.xlu0 %7570  ;;  %10782 = vmatmul.mubr.msk.bf16.gmra.mxu1 %vm5473_vm4, %v7883_v20  ;;  %v7888_v12 = vpack.c.bf16 %v7843_v21, %v7838_v19 }
 0x653   :  { %7555 = vst.msk [vmem:[#allocation3 + $0x218] sm:$0xff] %vm5514_vm5, %v7537_v35 }
 0x654   :  { %7592 = vst.msk [vmem:[#allocation3 + $0x1a0] sm:$0xff] %vm5555_vm6, %v7571_v38  ;;  %7708 = vrot.lane.b32.xlu1 %v14089_v43, %s11331_s12  ;;  %7742 = vrot.lane.b32.xlu0 %v14170_v50, %s11335_s24 }
 0x655   :  { %10785 = vmatprep.mubr.msk.bf16.mxu1 %vm5473_vm4, %v7888_v12 }
 0x656   :  { %v7573_v17 = vpop.permute.xlu1 %7572  ;;  %v7567_v29 = vpop.permute.xlu0 %7566  ;;  %v7801_v53 = vld [vmem:[#allocation3 + $0xd8] sm:$0xff] }
 0x657   :  { %7593 = vst.msk [vmem:[#allocation3 + $0x1c8] sm:$0xff] %vm5555_vm6, %v7573_v17  ;;  %7590 = vst.msk [vmem:[#allocation3 + $0x150] sm:$0xff] %vm5555_vm6, %v7567_v29  ;;  %v7796_v29 = vld [vmem:[#allocation3 + $0xb0] sm:$0xff] }
 0x658   :  { %7744 = vrot.lane.b32.xlu1 %v14186_v49, %s11335_s24  ;;  %7578 = vrot.lane.b32.xlu0 %v13760_v60, %s11331_s12 }
 0x65a   :  { %v7569_v43 = vpop.permute.xlu1 %7568  ;;  %v7575_v50 = vpop.permute.xlu0 %7574  ;;  %10786 = vmatmul.mubr.msk.bf16.gmra.mxu1 %vm5473_vm4, %v7893_v33  ;;  %v7866_v33 = vpack.c.bf16 %v7801_v53, %v7796_v29 }
 0x65b   :  { %7591 = vst.msk [vmem:[#allocation3 + $0x178] sm:$0xff] %vm5555_vm6, %v7569_v43  ;;  %7594 = vst.msk [vmem:[#allocation3 + $0x1f0] sm:$0xff] %vm5555_vm6, %v7575_v50 }
 0x65c   :  { %7580 = vrot.lane.b32.xlu1 %v13772_v3, %s11331_s12  ;;  %7746 = vrot.lane.b32.xlu0 %v14161_v23, %s11335_s24 }
 0x65e   :  { %v7577_v47 = vpop.permute.xlu1 %7576  ;;  %v5882_v30 = vpop.permute.xlu0 %5881 }
 0x65f   :  { %7595 = vst.msk [vmem:[#allocation3 + $0x218] sm:$0xff] %vm5555_vm6, %v7577_v47 }
 0x660   :  { %5903 = vst.msk [vmem:[#allocation3 + $0x68] sm:$0xff] %vm5514_vm5, %v5882_v30  ;;  %7748 = vrot.lane.b32.xlu1 %v14178_v11, %s11335_s24  ;;  %7618 = vrot.lane.b32.xlu0 %v13804_v0, %s11335_s24 }
 0x662   :  { %v5884_v60 = vpop.permute.xlu1 %5883  ;;  %v7611_v52 = vpop.permute.xlu0 %7610 }
 0x663   :  { %5904 = vst.msk [vmem:[#allocation3 + $0x90] sm:$0xff] %vm5514_vm5, %v5884_v60 }
 0x664   :  { %7632 = vst.msk [vmem:[#allocation3 + $0x1a0] sm:$0xff] %vm5596_vm7, %v7611_v52  ;;  %7620 = vrot.lane.b32.xlu1 %v13814_v45, %s11335_s24 }
 0x666   :  { %v7613_v3 = vpop.permute.xlu1 %7612  ;;  %v5878_v23 = vpop.permute.xlu0 %5877 }
 0x667   :  { %7633 = vst.msk [vmem:[#allocation3 + $0x1c8] sm:$0xff] %vm5596_vm7, %v7613_v3  ;;  %v7811_v3 = vld [vmem:[#allocation3 + $0x128] sm:$0xff] }
 0x668   :  { %5901 = vst.msk [vmem:[#allocation3 + $0x18] sm:$0xff] %vm5514_vm5, %v5878_v23 }
 0x66a   :  { %v5880_v25 = vpop.permute.xlu1 %5879  ;;  %v7607_v11 = vpop.permute.xlu0 %7606 }
 0x66b   :  { %5902 = vst.msk [vmem:[#allocation3 + $0x40] sm:$0xff] %vm5514_vm5, %v5880_v25 }
 0x66c   :  { %7630 = vst.msk [vmem:[#allocation3 + $0x150] sm:$0xff] %vm5596_vm7, %v7607_v11 }
 0x66e   :  { %v7609_v0 = vpop.permute.xlu1 %7608  ;;  %v5890_v55 = vpop.permute.xlu0 %5889 }
 0x66f   :  { %7631 = vst.msk [vmem:[#allocation3 + $0x178] sm:$0xff] %vm5596_vm7, %v7609_v0  ;;  %v7806_v0 = vld [vmem:[#allocation3 + $0x100] sm:$0xff] }
 0x670   :  { %5907 = vst.msk [vmem:[#allocation3 + $0x108] sm:$0xff] %vm5514_vm5, %v5890_v55 }
 0x672   :  { %v5892_v8 = vpop.permute.xlu1 %5891  ;;  %v5886_v45 = vpop.permute.xlu0 %5885 }
 0x673   :  { %5908 = vst.msk [vmem:[#allocation3 + $0x130] sm:$0xff] %vm5514_vm5, %v5892_v8  ;;  %5905 = vst.msk [vmem:[#allocation3 + $0xb8] sm:$0xff] %vm5514_vm5, %v5886_v45  ;;  %v7871_v8 = vpack.c.bf16 %v7811_v3, %v7806_v0 }
 0x676   :  { %v5888_v18 = vpop.permute.xlu1 %5887  ;;  %v7615_v49 = vpop.permute.xlu0 %7614 }
 0x677   :  { %5906 = vst.msk [vmem:[#allocation3 + $0xe0] sm:$0xff] %vm5514_vm5, %v5888_v18 }
 0x678   :  { %7634 = vst.msk [vmem:[#allocation3 + $0x1f0] sm:$0xff] %vm5596_vm7, %v7615_v49 }
 0x67a   :  { %v7617_v31 = vpop.permute.xlu1 %7616  ;;  %v5922_v63 = vpop.permute.xlu0 %5921 }
 0x67b   :  { %7635 = vst.msk [vmem:[#allocation3 + $0x218] sm:$0xff] %vm5596_vm7, %v7617_v31 }
 0x67c   :  { %5943 = vst.msk [vmem:[#allocation3 + $0x68] sm:$0xff] %vm5555_vm6, %v5922_v63 }
 0x67e   :  { %v5924_v56 = vpop.permute.xlu1 %5923  ;;  %v5918_v40 = vpop.permute.xlu0 %5917 }
 0x67f   :  { %5944 = vst.msk [vmem:[#allocation3 + $0x90] sm:$0xff] %vm5555_vm6, %v5924_v56  ;;  %5941 = vst.msk [vmem:[#allocation3 + $0x18] sm:$0xff] %vm5555_vm6, %v5918_v40  ;;  %v7836_v62 = vld [vmem:[#allocation3 + $0x1f0] sm:$0xff] }
 0x682   :  { %v5920_v34 = vpop.permute.xlu1 %5919  ;;  %v5930_v22 = vpop.permute.xlu0 %5929 }
 0x683   :  { %5942 = vst.msk [vmem:[#allocation3 + $0x40] sm:$0xff] %vm5555_vm6, %v5920_v34  ;;  %5947 = vst.msk [vmem:[#allocation3 + $0x108] sm:$0xff] %vm5555_vm6, %v5930_v22  ;;  %v7821_v34 = vld [vmem:[#allocation3 + $0x178] sm:$0xff] }
 0x686   :  { %v5932_v51 = vpop.permute.xlu1 %5931  ;;  %v5926_v36 = vpop.permute.xlu0 %5925 }
 0x687   :  { %5948 = vst.msk [vmem:[#allocation3 + $0x130] sm:$0xff] %vm5555_vm6, %v5932_v51  ;;  %5945 = vst.msk [vmem:[#allocation3 + $0xb8] sm:$0xff] %vm5555_vm6, %v5926_v36 }
 0x68a   :  { %v5928_v7 = vpop.permute.xlu1 %5927  ;;  %v5962_v46 = vpop.permute.xlu0 %5961 }
 0x68b   :  { %5946 = vst.msk [vmem:[#allocation3 + $0xe0] sm:$0xff] %vm5555_vm6, %v5928_v7 }
 0x68c   :  { %5983 = vst.msk [vmem:[#allocation3 + $0x68] sm:$0xff] %vm5596_vm7, %v5962_v46 }
 0x68e   :  { %v5964_v61 = vpop.permute.xlu1 %5963  ;;  %v7659_v1 = vpop.permute.xlu0 %7658 }
 0x68f   :  { %5984 = vst.msk [vmem:[#allocation3 + $0x90] sm:$0xff] %vm5596_vm7, %v5964_v61 }
 0x690   :  { %7680 = vst.msk [vmem:[#allocation3 + $0x1a8] sm:$0xff] %vm5514_vm5, %v7659_v1  ;;  %v7816_v1 = vld [vmem:[#allocation3 + $0x150] sm:$0xff] }
 0x692   :  { %v7661_v37 = vpop.permute.xlu1 %7660  ;;  %v5958_v15 = vpop.permute.xlu0 %5957 }
 0x693   :  { %7681 = vst.msk [vmem:[#allocation3 + $0x1d0] sm:$0xff] %vm5514_vm5, %v7661_v37  ;;  %v7787_v10 = vld [vmem:[#allocation3 + $0x68] sm:$0xff]  ;;  %v7876_v37 = vpack.c.bf16 %v7821_v34, %v7816_v1 }
 0x694   :  { %5981 = vst.msk [vmem:[#allocation3 + $0x18] sm:$0xff] %vm5596_vm7, %v5958_v15 }
 0x696   :  { %v5960_v2 = vpop.permute.xlu1 %5959  ;;  %v7655_v27 = vpop.permute.xlu0 %7654  ;;  %v7792_v24 = vld [vmem:[#allocation3 + $0x90] sm:$0xff] }
 0x697   :  { %5982 = vst.msk [vmem:[#allocation3 + $0x40] sm:$0xff] %vm5596_vm7, %v5960_v2  ;;  %v7862_v59 = vpack.c.bf16 %v7792_v24, %v7787_v10 }
 0x698   :  { %7678 = vst.msk [vmem:[#allocation3 + $0x158] sm:$0xff] %vm5514_vm5, %v7655_v27 }
 0x69a   :  { %v7657_v14 = vpop.permute.xlu1 %7656  ;;  %v5970_v6 = vpop.permute.xlu0 %5969 }
 0x69b   :  { %7679 = vst.msk [vmem:[#allocation3 + $0x180] sm:$0xff] %vm5514_vm5, %v7657_v14  ;;  %v7777_v57 = vld [vmem:[#allocation3 + $0x18] sm:$0xff] }
 0x69c   :  { %5987 = vst.msk [vmem:[#allocation3 + $0x108] sm:$0xff] %vm5596_vm7, %v5970_v6 }
 0x69e   :  { %v5972_v39 = vpop.permute.xlu1 %5971  ;;  %v7782_v26 = vld [vmem:[#allocation3 + $0x40] sm:$0xff]  ;;  %v5966_v54 = vpop.permute.xlu0 %5965 }
 0x69f   :  { %5988 = vst.msk [vmem:[#allocation3 + $0x130] sm:$0xff] %vm5596_vm7, %v5972_v39  ;;  %v7857_v28 = vpack.c.bf16 %v7782_v26, %v7777_v57  ;;  %5985 = vst.msk [vmem:[#allocation3 + $0xb8] sm:$0xff] %vm5596_vm7, %v5966_v54  ;;  %v7831_v39 = vld [vmem:[#allocation3 + $0x1c8] sm:$0xff]  ;;  %v7826_v54 = vld [vmem:[#allocation3 + $0x1a0] sm:$0xff] }
 0x6a0   :  { %v7881_v24 = vpack.c.bf16 %v7831_v39, %v7826_v54 }
 0x6a1   :  { %8326 = vmatprep.mubr.bf16.mxu0 %v7857_v28 }
 0x6a2   :  { %8327 = vmatmul.mubr.bf16.vlgmr.msra.gmra.mxu0 %v7856_v48  ;;  %v5968_v32 = vpop.permute.xlu1 %5967  ;;  %v7663_v58 = vpop.permute.xlu0 %7662 }
 0x6a3   :  { %5986 = vst.msk [vmem:[#allocation3 + $0xe0] sm:$0xff] %vm5596_vm7, %v5968_v32  ;;  %8334 = vmatprep.mubr.bf16.mxu0 %v7862_v59  ;;  %v7807_v43 = vld [vmem:[#allocation3 + $0x108] sm:$0xff]  ;;  %v7841_v59 = vld [vmem:[#allocation3 + $0x218] sm:$0xff] }
 0x6a4   :  { %7682 = vst.msk [vmem:[#allocation3 + $0x1f8] sm:$0xff] %vm5514_vm5, %v7663_v58 }
 0x6a6   :  { %v7665_v16 = vpop.permute.xlu1 %7664  ;;  %v7699_v42 = vpop.permute.xlu0 %7698  ;;  %v7797_v35 = vld [vmem:[#allocation3 + $0xb8] sm:$0xff]  ;;  %v7812_v17 = vld [vmem:[#allocation3 + $0x130] sm:$0xff] }
 0x6a7   :  { %7683 = vst.msk [vmem:[#allocation3 + $0x220] sm:$0xff] %vm5514_vm5, %v7665_v16  ;;  %v7872_v50 = vpack.c.bf16 %v7812_v17, %v7807_v43 }
 0x6a8   :  { %7720 = vst.msk [vmem:[#allocation3 + $0x1a8] sm:$0xff] %vm5555_vm6, %v7699_v42 }
 0x6aa   :  { %8335 = vmatmul.mubr.bf16.gmra.mxu0 %v7861_v5  ;;  %v7701_v4 = vpop.permute.xlu1 %7700  ;;  %v7695_v20 = vpop.permute.xlu0 %7694  ;;  %v7802_v38 = vld [vmem:[#allocation3 + $0xe0] sm:$0xff]  ;;  %v7886_v5 = vpack.c.bf16 %v7841_v59, %v7836_v62 }
 0x6ab   :  { %7721 = vst.msk [vmem:[#allocation3 + $0x1d0] sm:$0xff] %vm5555_vm6, %v7701_v4  ;;  %7718 = vst.msk [vmem:[#allocation3 + $0x158] sm:$0xff] %vm5555_vm6, %v7695_v20  ;;  %v7867_v19 = vpack.c.bf16 %v7802_v38, %v7797_v35 }
 0x6ad   :  { %8342 = vmatprep.mubr.bf16.mxu0 %v7867_v19 }
 0x6ae   :  { %v7697_v41 = vpop.permute.xlu1 %7696  ;;  %v7703_v21 = vpop.permute.xlu0 %7702 }
 0x6af   :  { %7719 = vst.msk [vmem:[#allocation3 + $0x180] sm:$0xff] %vm5555_vm6, %v7697_v41  ;;  %7722 = vst.msk [vmem:[#allocation3 + $0x1f8] sm:$0xff] %vm5555_vm6, %v7703_v21  ;;  %v14310_v12 = vpop.f32.mrf.mxu1 }
 0x6b1   :  { %v14312_v47 = vpop.f32.mrf.mxu1 }
 0x6b2   :  { %8343 = vmatmul.mubr.bf16.gmra.mxu0 %v7866_v33  ;;  %v7705_v30 = vpop.permute.xlu1 %7704  ;;  %v7739_v60 = vpop.permute.xlu0 %7738  ;;  %v10045_v39 = vadd.f32 %v14312_v47, %v14310_v12 }
 0x6b3   :  { %7723 = vst.msk [vmem:[#allocation3 + $0x220] sm:$0xff] %vm5555_vm6, %v7705_v30  ;;  %8350 = vmatprep.mubr.bf16.mxu0 %v7872_v50  ;;  %v14316_v52 = vpop.f32.mrf.mxu1 }
 0x6b4   :  { %7760 = vst.msk [vmem:[#allocation3 + $0x1a8] sm:$0xff] %vm5596_vm7, %v7739_v60 }
 0x6b5   :  { %v14318_v23 = vpop.f32.mrf.mxu1 }
 0x6b6   :  { %v7741_v25 = vpop.permute.xlu1 %7740  ;;  %v7735_v11 = vpop.permute.xlu0 %7734 }
 0x6b7   :  { %7761 = vst.msk [vmem:[#allocation3 + $0x1d0] sm:$0xff] %vm5596_vm7, %v7741_v25  ;;  %7758 = vst.msk [vmem:[#allocation3 + $0x158] sm:$0xff] %vm5596_vm7, %v7735_v11  ;;  %v14322_v55 = vpop.f32.mrf.mxu1 }
 0x6b9   :  { %v14324_v45 = vpop.f32.mrf.mxu1 }
 0x6ba   :  { %8351 = vmatmul.mubr.bf16.gmra.mxu0 %v7871_v8  ;;  %v7737_v18 = vpop.permute.xlu1 %7736  ;;  %v7667_v49 = vpop.permute.xlu0 %7666  ;;  %v10051_v12 = vadd.f32 %v14324_v45, %v14322_v55 }
 0x6bb   :  { %7759 = vst.msk [vmem:[#allocation3 + $0x180] sm:$0xff] %vm5596_vm7, %v7737_v18  ;;  %v14328_v31 = vpop.f32.mrf.mxu1  ;;  %v7827_v15 = vld [vmem:[#allocation3 + $0x1a8] sm:$0xff] }
 0x6bc   :  { %7684 = vst.msk [vmem:[#allocation3 + $0x248] sm:$0xff] %vm5514_vm5, %v7667_v49 }
 0x6bd   :  { %v14332_v40 = vpop.f32.mrf.mxu1 }
 0x6be   :  { %v7669_v63 = vpop.permute.xlu1 %7668  ;;  %v7539_v56 = vpop.permute.xlu0 %7538  ;;  %v7817_v51 = vld [vmem:[#allocation3 + $0x158] sm:$0xff]  ;;  %v7832_v46 = vld [vmem:[#allocation3 + $0x1d0] sm:$0xff] }
 0x6bf   :  { %7685 = vst.msk [vmem:[#allocation3 + $0x270] sm:$0xff] %vm5514_vm5, %v7669_v63  ;;  %7556 = vst.msk [vmem:[#allocation3 + $0x240] sm:$0xff] %vm5514_vm5, %v7539_v56  ;;  %v14336_v2 = vpop.f32.mrf.mxu1  ;;  %v7882_v27 = vpack.c.bf16 %v7832_v46, %v7827_v15  ;;  %v11194_v46 = vld [vmem:[%s14590_s6 + $0x18] sm:$0xff]   ;;  %v11195_v15 = vld [vmem:[%s14590_s6 + $0x10] sm:$0xff]  }
 0x6c0   :  { %10789 = vmatprep.subr.bf16.mxu1 %v11194_v46 }
 0x6c1   :  { %v14340_v44 = vpop.f32.mrf.mxu1  ;;  %10790 = vmatpush3.bf16.msra.mxu1 %v11194_v46 }
 0x6c2   :  { %v7541_v22 = vpop.permute.xlu1 %7540  ;;  %v7822_v36 = vld [vmem:[#allocation3 + $0x180] sm:$0xff]  ;;  %v7707_v7 = vpop.permute.xlu0 %7706  ;;  %10791 = vmatprep.subr.bf16.mxu1 %v11195_v15 }
 0x6c3   :  { %7557 = vst.msk [vmem:[#allocation3 + $0x268] sm:$0xff] %vm5514_vm5, %v7541_v22  ;;  %v7877_v61 = vpack.c.bf16 %v7822_v36, %v7817_v51  ;;  %v14344_v28 = vpop.f32.mrf.mxu1 }
 0x6c4   :  { %7724 = vst.msk [vmem:[#allocation3 + $0x248] sm:$0xff] %vm5555_vm6, %v7707_v7 }
 0x6c5   :  { %8358 = vmatprep.mubr.bf16.mxu0 %v7877_v61  ;;  %v14348_v10 = vpop.f32.mrf.mxu1  ;;  %10792 = vmatpush3.bf16.msra.mxu1 %v11195_v15 }
 0x6c6   :  { %8359 = vmatmul.mubr.bf16.gmra.mxu0 %v7876_v37  ;;  %v7709_v14 = vpop.permute.xlu1 %7708  ;;  %v7743_v6 = vpop.permute.xlu0 %7742 }
 0x6c7   :  { %7725 = vst.msk [vmem:[#allocation3 + $0x270] sm:$0xff] %vm5555_vm6, %v7709_v14  ;;  %8366 = vmatprep.mubr.bf16.mxu0 %v7882_v27  ;;  %v14352_v4 = vpop.f32.mrf.mxu1  ;;  %v11196_v27 = vld [vmem:[%s14590_s6 + $0x8] sm:$0xff]   ;;  %v11197_v14 = vld [vmem:[%s14590_s6] sm:$0xff]  }
 0x6c8   :  { %7762 = vst.msk [vmem:[#allocation3 + $0x1f8] sm:$0xff] %vm5596_vm7, %v7743_v6  ;;  %10793 = vmatprep.subr.bf16.mxu1 %v11196_v27 }
 0x6c9   :  { %v14355_v35 = vpop.f32.mrf.mxu1  ;;  %10794 = vmatpush3.bf16.msra.mxu1 %v11196_v27  ;;  %v10060_v27 = vadd.f32 %v14348_v10, %v14344_v28 }
 0x6ca   :  { %v7745_v57 = vpop.permute.xlu1 %7744  ;;  %v7579_v26 = vpop.permute.xlu0 %7578  ;;  %10795 = vmatprep.subr.bf16.mxu1 %v11197_v14 }
 0x6cb   :  { %7763 = vst.msk [vmem:[#allocation3 + $0x220] sm:$0xff] %vm5596_vm7, %v7745_v57  ;;  %v14357_v41 = vpop.f32.mrf.mxu1  ;;  %v14400_v57 = vld [vmem:[%s14589_s5] ss:$0 sm:$0xff] }
 0x6cc   :  { %7596 = vst.msk [vmem:[#allocation3 + $0x240] sm:$0xff] %vm5555_vm6, %v7579_v26 }
 0x6cd   :  { %v14359_v33 = vpop.f32.mrf.mxu1  ;;  %10796 = vmatpush3.bf16.msra.mxu1 %v11197_v14 }
 0x6ce   :  { %8367 = vmatmul.mubr.bf16.gmra.mxu0 %v7881_v24  ;;  %v7581_v9 = vpop.permute.xlu1 %7580  ;;  %v7747_v48 = vpop.permute.xlu0 %7746 }
 0x6cf   :  { %7597 = vst.msk [vmem:[#allocation3 + $0x268] sm:$0xff] %vm5555_vm6, %v7581_v9  ;;  %v7837_v58 = vld [vmem:[#allocation3 + $0x1f8] sm:$0xff]  ;;  %v8232_v9 = vadd.f32 %v10045_v39, %v14400_v57 }
 0x6d0   :  { %7764 = vst.msk [vmem:[#allocation3 + $0x248] sm:$0xff] %vm5596_vm7, %v7747_v48  ;;  %v10048_v48 = vadd.f32 %v14318_v23, %v14316_v52  ;;  %v8240_v52 = vadd.f32 %v10051_v12, %v14400_v57 }
 0x6d2   :  { %v7749_v32 = vpop.permute.xlu1 %7748  ;;  %v7842_v13 = vld [vmem:[#allocation3 + $0x220] sm:$0xff]  ;;  %v7619_v16 = vpop.permute.xlu0 %7618 }
 0x6d3   :  { %7765 = vst.msk [vmem:[#allocation3 + $0x270] sm:$0xff] %vm5596_vm7, %v7749_v32  ;;  %v7887_v42 = vpack.c.bf16 %v7842_v13, %v7837_v58  ;;  %7636 = vst.msk [vmem:[#allocation3 + $0x240] sm:$0xff] %vm5596_vm7, %v7619_v16  ;;  %v8235_v16 = vadd.f32 %v10048_v48, %v14400_v57  ;;  %v8251_v48 = vadd.f32 %v10060_v27, %v14400_v57 }
 0x6d5   :  { %8374 = vmatprep.mubr.bf16.mxu0 %v7887_v42 }
 0x6d6   :  { %8375 = vmatmul.mubr.bf16.gmra.mxu0 %v7886_v5  ;;  %v7621_v20 = vpop.permute.xlu1 %7620 }
 0x6d7   :  { %7637 = vst.msk [vmem:[#allocation3 + $0x268] sm:$0xff] %vm5596_vm7, %v7621_v20  ;;  %v7847_v38 = vld [vmem:[#allocation3 + $0x248] sm:$0xff] }
 0x6da   :  { %v7852_v19 = vld [vmem:[#allocation3 + $0x270] sm:$0xff]  ;;  %v7846_v21 = vld [vmem:[#allocation3 + $0x240] sm:$0xff] }
 0x6db   :  { %v7892_v53 = vpack.c.bf16 %v7852_v19, %v7847_v38 }
 0x6dd   :  { %8382 = vmatprep.mubr.bf16.mxu0 %v7892_v53  ;;  %v10054_v53 = vadd.f32 %v14332_v40, %v14328_v31 }
 0x6de   :  { %v7851_v17 = vld [vmem:[#allocation3 + $0x268] sm:$0xff] }
 0x6df   :  { %v7891_v29 = vpack.c.bf16 %v7851_v17, %v7846_v21 }
 0x6e1   :  { %8383 = vmatmul.mubr.bf16.gmra.mxu0 %v7891_v29 }
 0x6e2   :  { %v10067_v43 = vpop.f32.mrf.mxu1 }
 0x6e4   :  { %v10068_v50 = vpop.f32.mrf.mxu1 }
 0x6e5   :  { %v14361_v30 = vadd.f32 %v10068_v50, %v10067_v43 }
 0x6e6   :  { %v14363_v60 = vpop.f32.mrf.mxu1 }
 0x6e8   :  { %v14365_v3 = vpop.f32.mrf.mxu1 }
 0x6ea   :  { %v10073_v25 = vpop.f32.mrf.mxu1 }
 0x6ec   :  { %v10074_v11 = vpop.f32.mrf.mxu1 }
 0x6ed   :  { %v14367_v0 = vadd.f32 %v10074_v11, %v10073_v25  ;;  %v10057_v25 = vadd.f32 %v14340_v44, %v14336_v2 }
 0x6ee   :  { %v14369_v8 = vpop.f32.mrf.mxu1 }
 0x6f0   :  { %v14371_v18 = vpop.f32.mrf.mxu1 }
 0x6f2   :  { %v10079_v49 = vpop.f32.mrf.mxu1 }
 0x6f4   :  { %v10080_v63 = vpop.f32.mrf.mxu1 }
 0x6f5   :  { %v14373_v56 = vadd.f32 %v10080_v63, %v10079_v49  ;;  %v8243_v49 = vadd.f32 %v10054_v53, %v14400_v57 }
 0x6f6   :  { %v14375_v34 = vpop.f32.mrf.mxu1 }
 0x6f8   :  { %v14377_v22 = vpop.f32.mrf.mxu1 }
 0x6fa   :  { %v10085_v51 = vpop.f32.mrf.mxu1 }
 0x6fc   :  { %v10086_v36 = vpop.f32.mrf.mxu1 }
 0x6fd   :  { %v14379_v7 = vadd.f32 %v10086_v36, %v10085_v51 }
 0x6fe   :  { %v10088_v61 = vpop.f32.mrf.mxu1 }
 0x700   :  { %v10089_v1 = vpop.f32.mrf.mxu1 }
 0x701   :  { %v14384_v37 = vadd.f32 %v10089_v1, %v10088_v61  ;;  %v8248_v1 = vadd.f32 %v10057_v25, %v14400_v57 }
 0x702   :  { %v10775_v6 = vpop.f32.mrf.mxu1 }
 0x704   :  { %v8425_v54 = vpop.f32.mrf.mxu1 }
 0x706   :  { %v10776_v58 = vpop.f32.mrf.mxu1 }
 0x708   :  { %v8428_v20 = vpop.f32.mrf.mxu1 }
 0x70a   :  { %v10779_v29 = vpop.f32.mrf.mxu1 }
 0x70c   :  { %v8441_v36 = vpop.f32.mrf.mxu1 }
 0x70e   :  { %v10780_v39 = vpop.f32.mrf.mxu1 }
 0x710   :  { %v8444_v10 = vpop.f32.mrf.mxu1 }
 0x762   :  { %v10107_v26 = vpop.f32.mrf.mxu0 }
 0x764   :  { %v10108_v24 = vpop.f32.mrf.mxu0 }
 0x765   :  { %v10109_v59 = vadd.f32 %v10108_v24, %v10107_v26  ;;  %v10063_v24 = vadd.f32 %v14355_v35, %v14352_v4  ;;  %v10066_v4 = vadd.f32 %v14359_v33, %v14357_v41  ;;  %v14446_v33 = vpop.f32.mrf.mxu1 }
 0x766   :  { %v10110_v32 = vpop.f32.mrf.mxu0 }
 0x767   :  { %v8329_v13 = vadd.f32 %v10109_v59, %v8232_v9 }
 0x768   :  { %v10111_v47 = vpop.f32.mrf.mxu0 }
 0x769   :  { %v10112_v42 = vadd.f32 %v10111_v47, %v10110_v32  ;;  %v14408_v62 = vadd.f32 %v8425_v54, %v8329_v13 }
 0x76a   :  { %v10113_v5 = vpop.f32.mrf.mxu0 }
 0x76b   :  { %v8504_v38 = vmin.f32 %v14408_v62, 0.0  ;;  %v8332_v19 = vadd.f32 %v10112_v42, %v8235_v16  ;;  %v8256_v16 = vadd.f32 %v10063_v24, %v14400_v57  ;;  %vm8488_vm8 = vcmp.gt.f32.partialorder %v14408_v62, 0.0 }
 0x76c   :  { %v10114_v23 = vpop.f32.mrf.mxu0 }
 0x76d   :  { %v8520_v21 = vmul.f32 1.442695, %v8504_v38  ;;  %v10115_v17 = vadd.f32 %v10114_v23, %v10113_v5  ;;  %v14414_v55 = vadd.f32 %v8428_v20, %v8332_v19 }
 0x76e   :  { %v10116_v45 = vpop.f32.mrf.mxu0 }
 0x76f   :  { %11238 = vpow2.f32 %v8520_v21  ;;  %v8337_v43 = vadd.f32 %v10115_v17, %v8240_v52  ;;  %v8505_v50 = vmin.f32 %v14414_v55, 0.0  ;;  %v8259_v17 = vadd.f32 %v10066_v4, %v14400_v57 }
 0x770   :  { %v10117_v11 = vpop.f32.mrf.mxu0  ;;  %vm8489_vm9 = vcmp.gt.f32.partialorder %v14414_v55, 0.0 }
 0x771   :  { %v14420_v63 = vadd.f32 %v10775_v6, %v8337_v43  ;;  %v8522_v51 = vmul.f32 1.442695, %v8505_v50  ;;  %v10118_v31 = vadd.f32 %v10117_v11, %v10116_v45 }
 0x772   :  { %v10119_v40 = vpop.f32.mrf.mxu0 }
 0x773   :  { %v8506_v46 = vmin.f32 %v14420_v63, 0.0  ;;  %11240 = vpow2.f32 %v8522_v51  ;;  %v8340_v61 = vadd.f32 %v10118_v31, %v8243_v49  ;;  %vm8490_vm10 = vcmp.gt.f32.partialorder %v14420_v63, 0.0 }
 0x774   :  { %v10120_v15 = vpop.f32.mrf.mxu0 }
 0x775   :  { %v8524_v2 = vmul.f32 1.442695, %v8506_v46  ;;  %v14426_v44 = vadd.f32 %v10776_v58, %v8340_v61  ;;  %v10121_v14 = vadd.f32 %v10120_v15, %v10119_v40  ;;  %v8457_v61 = vpop.f32.mrf.mxu1 }
 0x776   :  { %v10122_v6 = vpop.f32.mrf.mxu0 }
 0x777   :  { %11242 = vpow2.f32 %v8524_v2  ;;  %v8507_v26 = vmin.f32 %v14426_v44, 0.0  ;;  %v8345_v54 = vadd.f32 %v10121_v14, %v8248_v1  ;;  %v10072_v2 = vadd.f32 %v14365_v3, %v14363_v60 }
 0x778   :  { %v10123_v9 = vpop.f32.mrf.mxu0  ;;  %vm8491_vm11 = vcmp.gt.f32.partialorder %v14426_v44, 0.0 }
 0x779   :  { %v8526_v59 = vmul.f32 1.442695, %v8507_v26  ;;  %v10124_v32 = vadd.f32 %v10123_v9, %v10122_v6  ;;  %v14432_v13 = vadd.f32 %v8441_v36, %v8345_v54  ;;  %v10784_v54 = vpop.f32.mrf.mxu1  ;;  %v8267_v60 = vadd.f32 %v10072_v2, %v14400_v57 }
 0x77a   :  { %v10125_v28 = vpop.f32.mrf.mxu0 }
 0x77b   :  { %11244 = vpow2.f32 %v8526_v59  ;;  %v8508_v58 = vmin.f32 %v14432_v13, 0.0  ;;  %v8348_v12 = vadd.f32 %v10124_v32, %v8251_v48  ;;  %vm8492_vm12 = vcmp.gt.f32.partialorder %v14432_v13, 0.0 }
 0x77c   :  { %v11239_v47 = vpop.eup %11238  ;;  %v10126_v42 = vpop.f32.mrf.mxu0 }
 0x77d   :  { %v8528_v35 = vmul.f32 1.442695, %v8508_v58  ;;  %v10127_v5 = vadd.f32 %v10126_v42, %v10125_v28  ;;  %v14438_v20 = vadd.f32 %v8444_v10, %v8348_v12  ;;  %v9685_v19 = vadd.f32 -1.0, %v11239_v47  ;;  %v8460_v58 = vpop.f32.mrf.mxu1 }
 0x77e   :  { %v10128_v38 = vpop.f32.mrf.mxu0  ;;  %v8272_v42 = vadd.f32 %v14367_v0, %v14400_v57 }
 0x77f   :  { %v8353_v52 = vadd.f32 %v10127_v5, %v8256_v16  ;;  %11246 = vpow2.f32 %v8528_v35  ;;  %v8509_v53 = vmin.f32 %v14438_v20, 0.0  ;;  %v8568_v25 = vsel %vm8488_vm8, %v14408_v62, %v9685_v19 }
 0x780   :  { %v11241_v23 = vpop.eup %11240  ;;  %v10129_v21 = vpop.f32.mrf.mxu0  ;;  %vm8493_vm13 = vcmp.gt.f32.partialorder %v14438_v20, 0.0 }
 0x781   :  { %v9686_v45 = vadd.f32 -1.0, %v11241_v23  ;;  %v14442_v43 = vadd.f32 %v10779_v29, %v8353_v52  ;;  %v10130_v50 = vadd.f32 %v10129_v21, %v10128_v38  ;;  %v8530_v41 = vmul.f32 1.442695, %v8509_v53 }
 0x782   :  { %v10078_v38 = vadd.f32 %v14371_v18, %v14369_v8 }
 0x783   :  { %v8569_v11 = vsel %vm8489_vm9, %v14414_v55, %v9686_v45  ;;  %v8510_v49 = vmin.f32 %v14442_v43, 0.0  ;;  %v8356_v51 = vadd.f32 %v10130_v50, %v8259_v17  ;;  %11248 = vpow2.f32 %v8530_v41  ;;  %v14479_v50 = vpop.f32.mrf.mxu1 }
 0x784   :  { %v11243_v31 = vpop.eup %11242  ;;  %v8584_v40 = vpack.c.bf16 %v8569_v11, %v8568_v25  ;;  %v8264_v55 = vadd.f32 %v14361_v30, %v14400_v57  ;;  %v8275_v25 = vadd.f32 %v10078_v38, %v14400_v57  ;;  %vm8494_vm14 = vcmp.gt.f32.partialorder %v14442_v43, 0.0 }
 0x785   :  { %v8532_v29 = vmul.f32 1.442695, %v8510_v49  ;;  %v14451_v36 = vadd.f32 %v10780_v39, %v8356_v51  ;;  %v9687_v1 = vadd.f32 -1.0, %v11243_v31 }
 0x786   :  { %v10131_v46 = vpop.f32.mrf.mxu0  ;;  %10797 = vmatprep.mubr.msk.bf16.mxu1 %vm545_vm0, %v8584_v40 }
 0x787   :  { %11250 = vpow2.f32 %v8532_v29  ;;  %v8511_v15 = vmin.f32 %v14451_v36, 0.0  ;;  %v8570_v24 = vsel %vm8490_vm10, %v14420_v63, %v9687_v1  ;;  %vm8495_vm15 = vcmp.gt.f32.partialorder %v14451_v36, 0.0 }
 0x788   :  { %v11245_v62 = vpop.eup %11244  ;;  %v10132_v27 = vpop.f32.mrf.mxu0 }
 0x789   :  { %v9688_v14 = vadd.f32 -1.0, %v11245_v62  ;;  %v8534_v6 = vmul.f32 1.442695, %v8511_v15  ;;  %v10133_v39 = vadd.f32 %v10132_v27, %v10131_v46  ;;  %v8473_v46 = vpop.f32.mrf.mxu1 }
 0x78a   :  { %v10134_v26 = vpop.f32.mrf.mxu0 }
 0x78b   :  { %v8571_v9 = vsel %vm8491_vm11, %v14426_v44, %v9688_v14  ;;  %11252 = vpow2.f32 %v8534_v6  ;;  %v8361_v48 = vadd.f32 %v10133_v39, %v8264_v55 }
 0x78c   :  { %v8585_v30 = vpack.c.bf16 %v8571_v9, %v8570_v24  ;;  %v10135_v59 = vpop.f32.mrf.mxu0  ;;  %v11247_v32 = vpop.eup %11246 }
 0x78d   :  { %v10136_v3 = vadd.f32 %v10135_v59, %v10134_v26  ;;  %v14464_v28 = vadd.f32 %v8457_v61, %v8361_v48  ;;  %v9689_v63 = vadd.f32 -1.0, %v11247_v32  ;;  %v10788_v26 = vpop.f32.mrf.mxu1 }
 0x78e   :  { %v10137_v10 = vpop.f32.mrf.mxu0  ;;  %10798 = vmatmul.mubr.msk.bf16.vlgmr.msra.gmra.mxu1 %vm545_vm0, %v8585_v30 }
 0x78f   :  { %v8512_v12 = vmin.f32 %v14464_v28, 0.0  ;;  %v8364_v47 = vadd.f32 %v10136_v3, %v8267_v60  ;;  %v8572_v0 = vsel %vm8492_vm12, %v14432_v13, %v9689_v63  ;;  %vm8496_vm2 = vcmp.gt.f32.partialorder %v14464_v28, 0.0 }
 0x790   :  { %v10138_v16 = vpop.f32.mrf.mxu0  ;;  %v11249_v44 = vpop.eup %11248 }
 0x791   :  { %v8536_v4 = vmul.f32 1.442695, %v8512_v12  ;;  %v10139_v35 = vadd.f32 %v10138_v16, %v10137_v10  ;;  %v14470_v5 = vadd.f32 %v8460_v58, %v8364_v47  ;;  %v9690_v19 = vadd.f32 -1.0, %v11249_v44 }
 0x792   :  { %v10140_v52 = vpop.f32.mrf.mxu0  ;;  %v8288_v12 = vadd.f32 %v14379_v7, %v14400_v57 }
 0x793   :  { %11254 = vpow2.f32 %v8536_v4  ;;  %v8369_v23 = vadd.f32 %v10139_v35, %v8272_v42  ;;  %v8513_v53 = vmin.f32 %v14470_v5, 0.0  ;;  %v8573_v17 = vsel %vm8493_vm13, %v14438_v20, %v9690_v19 }
 0x794   :  { %v11251_v21 = vpop.eup %11250  ;;  %v10141_v45 = vpop.f32.mrf.mxu0  ;;  %v8586_v41 = vpack.c.bf16 %v8573_v17, %v8572_v0  ;;  %v8280_v20 = vadd.f32 %v14373_v56, %v14400_v57  ;;  %vm8497_vm3 = vcmp.gt.f32.partialorder %v14470_v5, 0.0  ;;  %v8291_v19 = vadd.f32 %v14384_v37, %v14400_v57 }
 0x795   :  { %v14482_v8 = vadd.f32 %v14446_v33, %v8369_v23  ;;  %v8538_v18 = vmul.f32 1.442695, %v8513_v53  ;;  %v10142_v11 = vadd.f32 %v10141_v45, %v10140_v52  ;;  %v9691_v51 = vadd.f32 -1.0, %v11251_v21 }
 0x796   :  { %v10143_v49 = vpop.f32.mrf.mxu0  ;;  %10801 = vmatprep.mubr.msk.bf16.mxu1 %vm545_vm0, %v8586_v41  ;;  %v10084_v33 = vadd.f32 %v14377_v22, %v14375_v34 }
 0x797   :  { %v8514_v31 = vmin.f32 %v14482_v8, 0.0  ;;  %11256 = vpow2.f32 %v8538_v18  ;;  %v8372_v40 = vadd.f32 %v10142_v11, %v8275_v25  ;;  %v8574_v27 = vsel %vm8494_vm14, %v14442_v43, %v9691_v51  ;;  %v8476_v43 = vpop.f32.mrf.mxu1 }
 0x798   :  { %v11253_v13 = vpop.eup %11252  ;;  %v10144_v29 = vpop.f32.mrf.mxu0  ;;  %v8283_v34 = vadd.f32 %v10084_v33, %v14400_v57  ;;  %vm8498_vm1 = vcmp.gt.f32.partialorder %v14482_v8, 0.0 }
 0x799   :  { %v9692_v61 = vadd.f32 -1.0, %v11253_v13  ;;  %v8540_v1 = vmul.f32 1.442695, %v8514_v31  ;;  %v10145_v15 = vadd.f32 %v10144_v29, %v10143_v49  ;;  %v8469_v62 = vadd.f32 %v10784_v54, %v8372_v40 }
 0x79a   :  { %v10146_v55 = vpop.f32.mrf.mxu0 }
 0x79b   :  { %v8575_v2 = vsel %vm8495_vm15, %v14451_v36, %v9692_v61  ;;  %v8377_v56 = vadd.f32 %v10145_v15, %v8280_v20  ;;  %11258 = vpow2.f32 %v8540_v1  ;;  %v8515_v6 = vmin.f32 %v8469_v62, 0.0 }
 0x79c   :  { %v8587_v14 = vpack.c.bf16 %v8575_v2, %v8574_v27  ;;  %v10147_v39 = vpop.f32.mrf.mxu0  ;;  %vm8499_vm4 = vcmp.gt.f32.partialorder %v8469_v62, 0.0  ;;  %v11200_v27 = vld [vmem:[%s14592_s8 + $0x28] sm:$0xff]   ;;  %v11201_v2 = vld [vmem:[%s14592_s8 + $0x20] sm:$0xff]  }
 0x79d   :  { %v10148_v22 = vadd.f32 %v10147_v39, %v10146_v55  ;;  %v8474_v24 = vadd.f32 %v8473_v46, %v8377_v56  ;;  %v8542_v9 = vmul.f32 1.442695, %v8515_v6  ;;  %v11199_v55 = vld [vmem:[%s14592_s8 + $0x30] sm:$0xff]   ;;  %v11202_v56 = vld [vmem:[%s14592_s8 + $0x18] sm:$0xff]   ;;  %v11204_v6 = vld [vmem:[%s14592_s8 + $0x8] sm:$0xff]  }
 0x79e   :  { %10802 = vmatmul.mubr.msk.bf16.gmra.mxu1 %vm545_vm0, %v8587_v14  ;;  %v11203_v14 = vld [vmem:[%s14592_s8 + $0x10] sm:$0xff]   ;;  %v11205_v39 = vld [vmem:[%s14592_s8] sm:$0xff]  }
 0x79f   :  { %v8516_v48 = vmin.f32 %v8474_v24, 0.0  ;;  %v8380_v54 = vadd.f32 %v10148_v22, %v8283_v34  ;;  %11260 = vpow2.f32 %v8542_v9  ;;  %vm8500_vm5 = vcmp.gt.f32.partialorder %v8474_v24, 0.0 }
 0x7a0   :  { %v11255_v30 = vpop.eup %11254 }
 0x7a1   :  { %v8544_v59 = vmul.f32 1.442695, %v8516_v48  ;;  %v8477_v36 = vadd.f32 %v8476_v43, %v8380_v54  ;;  %v10149_v32 = vpop.f32.mrf.mxu0  ;;  %v9693_v60 = vadd.f32 -1.0, %v11255_v30 }
 0x7a3   :  { %11262 = vpow2.f32 %v8544_v59  ;;  %v8517_v3 = vmin.f32 %v8477_v36, 0.0  ;;  %v10150_v10 = vpop.f32.mrf.mxu0  ;;  %v8576_v4 = vsel %vm8496_vm2, %v14464_v28, %v9693_v60  ;;  %vm8501_vm6 = vcmp.gt.f32.partialorder %v8477_v36, 0.0 }
 0x7a4   :  { %v11257_v58 = vpop.eup %11256  ;;  %v10151_v47 = vadd.f32 %v10150_v10, %v10149_v32 }
 0x7a5   :  { %v9694_v63 = vadd.f32 -1.0, %v11257_v58  ;;  %v8546_v16 = vmul.f32 1.442695, %v8517_v3  ;;  %v10152_v44 = vpop.f32.mrf.mxu0 }
 0x7a6   :  { %v8385_v42 = vadd.f32 %v10151_v47, %v8288_v12 }
 0x7a7   :  { %v8577_v35 = vsel %vm8497_vm3, %v14470_v5, %v9694_v63  ;;  %11264 = vpow2.f32 %v8546_v16  ;;  %v10153_v38 = vpop.f32.mrf.mxu0 }
 0x7a8   :  { %v8588_v52 = vpack.c.bf16 %v8577_v35, %v8576_v4  ;;  %v8482_v7 = vadd.f32 %v14479_v50, %v8385_v42  ;;  %v10154_v23 = vadd.f32 %v10153_v38, %v10152_v44  ;;  %v11259_v53 = vpop.eup %11258 }
 0x7a9   :  { %v9695_v17 = vadd.f32 -1.0, %v11259_v53 }
 0x7aa   :  { %v8518_v21 = vmin.f32 %v8482_v7, 0.0  ;;  %v8388_v0 = vadd.f32 %v10154_v23, %v8291_v19  ;;  %10805 = vmatprep.mubr.msk.bf16.mxu1 %vm545_vm0, %v8588_v52  ;;  %vm8502_vm7 = vcmp.gt.f32.partialorder %v8482_v7, 0.0 }
 0x7ab   :  { %v8578_v57 = vsel %vm8498_vm1, %v14482_v8, %v9695_v17 }
 0x7ac   :  { %v8548_v45 = vmul.f32 1.442695, %v8518_v21  ;;  %v8485_v41 = vadd.f32 %v10788_v26, %v8388_v0  ;;  %v11261_v28 = vpop.eup %11260  ;;  %v14539_v26 = vld [vmem:[%s14591_s7] ss:$0 sm:$0xff] }
 0x7ad   :  { %v9696_v18 = vadd.f32 -1.0, %v11261_v28 }
 0x7ae   :  { %11266 = vpow2.f32 %v8548_v45  ;;  %v8519_v5 = vmin.f32 %v8485_v41, 0.0  ;;  %vm8503_vm8 = vcmp.gt.f32.partialorder %v8485_v41, 0.0 }
 0x7af   :  { %v8579_v50 = vsel %vm8499_vm4, %v8469_v62, %v9696_v18  ;;  %v11198_v62 = vld [vmem:[%s14592_s8 + $0x38] sm:$0xff]  }
 0x7b0   :  { %v11263_v37 = vpop.eup %11262  ;;  %v8550_v25 = vmul.f32 1.442695, %v8519_v5  ;;  %v8589_v11 = vpack.c.bf16 %v8579_v50, %v8578_v57  ;;  %10813 = vmatprep.subr.bf16.mxu0 %v11198_v62 }
 0x7b1   :  { %v9697_v49 = vadd.f32 -1.0, %v11263_v37  ;;  %10814 = vmatpush3.bf16.msra.mxu0 %v11198_v62 }
 0x7b2   :  { %11268 = vpow2.f32 %v8550_v25  ;;  %10806 = vmatmul.mubr.msk.bf16.gmra.mxu1 %vm545_vm0, %v8589_v11  ;;  %10815 = vmatprep.subr.bf16.mxu0 %v11199_v55 }
 0x7b3   :  { %v8580_v13 = vsel %vm8500_vm5, %v8474_v24, %v9697_v49 }
 0x7b4   :  { %v11265_v51 = vpop.eup %11264 }
 0x7b5   :  { %v9698_v31 = vadd.f32 -1.0, %v11265_v51  ;;  %10816 = vmatpush3.bf16.msra.mxu0 %v11199_v55 }
 0x7b6   :  { %10817 = vmatprep.subr.bf16.mxu0 %v11200_v27 }
 0x7b7   :  { %v8581_v20 = vsel %vm8501_vm6, %v8477_v36, %v9698_v31 }
 0x7b8   :  { %v8590_v40 = vpack.c.bf16 %v8581_v20, %v8580_v13 }
 0x7b9   :  { %10818 = vmatpush3.bf16.msra.mxu0 %v11200_v27 }
 0x7ba   :  { %10809 = vmatprep.mubr.msk.bf16.mxu1 %vm545_vm0, %v8590_v40  ;;  %10819 = vmatprep.subr.bf16.mxu0 %v11201_v2 }
 0x7bb   :  { %v11267_v29 = vpop.eup %11266 }
 0x7bc   :  { %v9699_v46 = vadd.f32 -1.0, %v11267_v29 }
 0x7bd   :  { %10820 = vmatpush3.bf16.msra.mxu0 %v11201_v2 }
 0x7be   :  { %v8582_v61 = vsel %vm8502_vm7, %v8482_v7, %v9699_v46  ;;  %10821 = vmatprep.subr.bf16.mxu0 %v11202_v56 }
 0x7bf   :  { %v11269_v33 = vpop.eup %11268 }
 0x7c0   :  { %v9700_v8 = vadd.f32 -1.0, %v11269_v33 }
 0x7c1   :  { %10822 = vmatpush3.bf16.msra.mxu0 %v11202_v56 }
 0x7c2   :  { %v8583_v1 = vsel %vm8503_vm8, %v8485_v41, %v9700_v8  ;;  %10823 = vmatprep.subr.bf16.mxu0 %v11203_v14 }
 0x7c3   :  { %v8591_v15 = vpack.c.bf16 %v8583_v1, %v8582_v61 }
 0x7c5   :  { %10810 = vmatmul.mubr.msk.bf16.gmra.mxu1 %vm545_vm0, %v8591_v15  ;;  %10824 = vmatpush3.bf16.msra.mxu0 %v11203_v14 }
 0x7c6   :  { %10825 = vmatprep.subr.bf16.mxu0 %v11204_v6 }
 0x7c9   :  { %10826 = vmatpush3.bf16.msra.mxu0 %v11204_v6 }
 0x7ca   :  { %10827 = vmatprep.subr.bf16.mxu0 %v11205_v39 }
 0x7cd   :  { %10828 = vmatpush3.bf16.msra.mxu0 %v11205_v39 }
 0x84e   :  { %v10799_v34 = vpop.f32.mrf.mxu1 }
 0x84f   :  { %v8698_v22 = vadd.f32 %v10799_v34, %v14539_v26 }
 0x850   :  { %v8689_v24 = vpop.f32.mrf.mxu1 }
 0x851   :  { %v8770_v9 = vmin.f32 %v8698_v22, 0.0  ;;  %v8690_v48 = vadd.f32 %v14539_v26, %v8689_v24  ;;  %vm8754_vm11 = vcmp.gt.f32.partialorder %v8698_v22, 0.0 }
 0x852   :  { %v10800_v54 = vpop.f32.mrf.mxu1 }
 0x853   :  { %v8788_v30 = vmul.f32 1.442695, %v8770_v9  ;;  %v8768_v43 = vmin.f32 %v8690_v48, 0.0  ;;  %v8701_v59 = vadd.f32 %v10800_v54, %v14539_v26  ;;  %vm8752_vm9 = vcmp.gt.f32.partialorder %v8690_v48, 0.0 }
 0x854   :  { %v8692_v36 = vpop.f32.mrf.mxu1 }
 0x855   :  { %v8784_v32 = vmul.f32 1.442695, %v8768_v43  ;;  %v8771_v60 = vmin.f32 %v8701_v59, 0.0  ;;  %v8693_v3 = vadd.f32 %v14539_v26, %v8692_v36  ;;  %11270 = vpow2.f32 %v8788_v30 }
 0x856   :  { %vm8755_vm0 = vcmp.gt.f32.partialorder %v8701_v59, 0.0 }
 0x857   :  { %v8790_v10 = vmul.f32 1.442695, %v8771_v60  ;;  %11272 = vpow2.f32 %v8784_v32  ;;  %v8769_v58 = vmin.f32 %v8693_v3, 0.0  ;;  %vm8753_vm10 = vcmp.gt.f32.partialorder %v8693_v3, 0.0 }
 0x859   :  { %11274 = vpow2.f32 %v8790_v10  ;;  %v8786_v12 = vmul.f32 1.442695, %v8769_v58 }
 0x85b   :  { %11276 = vpow2.f32 %v8786_v12 }
 0x85e   :  { %v10803_v47 = vpop.f32.mrf.mxu1 }
 0x85f   :  { %v14546_v63 = vadd.f32 %v10803_v47, %v14539_v26 }
 0x860   :  { %v8705_v16 = vpop.f32.mrf.mxu1 }
 0x861   :  { %v8774_v44 = vmin.f32 %v14546_v63, 0.0  ;;  %v14550_v42 = vadd.f32 %v14539_v26, %v8705_v16  ;;  %vm8758_vm15 = vcmp.gt.f32.partialorder %v14546_v63, 0.0 }
 0x862   :  { %v10804_v4 = vpop.f32.mrf.mxu1  ;;  %v11271_v38 = vpop.eup %11270 }
 0x863   :  { %v8772_v35 = vmin.f32 %v14550_v42, 0.0  ;;  %v8796_v19 = vmul.f32 1.442695, %v8774_v44  ;;  %v8717_v52 = vadd.f32 %v10804_v4, %v14539_v26  ;;  %v9716_v37 = vadd.f32 -1.0, %v11271_v38 }
 0x864   :  { %v8708_v7 = vpop.f32.mrf.mxu1  ;;  %v11273_v23 = vpop.eup %11272  ;;  %vm8756_vm12 = vcmp.gt.f32.partialorder %v14550_v42, 0.0 }
 0x865   :  { %v8792_v53 = vmul.f32 1.442695, %v8772_v35  ;;  %v8709_v21 = vadd.f32 %v14539_v26, %v8708_v7  ;;  %v8775_v17 = vmin.f32 %v8717_v52, 0.0  ;;  %v9714_v18 = vadd.f32 -1.0, %v11273_v23 }
 0x866   :  { %v11275_v0 = vpop.eup %11274  ;;  %v8834_v51 = vsel %vm8754_vm11, %v8698_v22, %v9716_v37  ;;  %vm8759_vm13 = vcmp.gt.f32.partialorder %v8717_v52, 0.0 }
 0x867   :  { %v9717_v45 = vadd.f32 -1.0, %v11275_v0  ;;  %11278 = vpow2.f32 %v8792_v53  ;;  %v8773_v41 = vmin.f32 %v8709_v21, 0.0  ;;  %v8798_v28 = vmul.f32 1.442695, %v8775_v17 }
 0x868   :  { %11280 = vpow2.f32 %v8796_v19  ;;  %v11277_v5 = vpop.eup %11276  ;;  %v8832_v11 = vsel %vm8752_vm9, %v8690_v48, %v9714_v18  ;;  %vm8757_vm14 = vcmp.gt.f32.partialorder %v8709_v21, 0.0 }
 0x869   :  { %v8794_v57 = vmul.f32 1.442695, %v8773_v41  ;;  %11282 = vpow2.f32 %v8798_v28  ;;  %v9715_v50 = vadd.f32 -1.0, %v11277_v5  ;;  %v8835_v25 = vsel %vm8755_vm0, %v8701_v59, %v9717_v45 }
 0x86a   :  { %v8849_v13 = vpack.c.bf16 %v8835_v25, %v8834_v51 }
 0x86b   :  { %11284 = vpow2.f32 %v8794_v57  ;;  %v8833_v49 = vsel %vm8753_vm10, %v8693_v3, %v9715_v50 }
 0x86c   :  { %v8848_v31 = vpack.c.bf16 %v8833_v49, %v8832_v11 }
 0x86e   :  { %10829 = vmatprep.mubr.bf16.mxu0 %v8848_v31 }
 0x86f   :  { %10830 = vmatmul.mubr.bf16.vlgmr.msra.gmra.mxu0 %v8849_v13 }
 0x872   :  { %v10807_v20 = vpop.f32.mrf.mxu1 }
 0x873   :  { %v14556_v29 = vadd.f32 %v10807_v20, %v14539_v26 }
 0x874   :  { %v11279_v40 = vpop.eup %11278  ;;  %v8721_v33 = vpop.f32.mrf.mxu1 }
 0x875   :  { %v11281_v46 = vpop.eup %11280  ;;  %v8778_v8 = vmin.f32 %v14556_v29, 0.0  ;;  %v14560_v61 = vadd.f32 %v14539_v26, %v8721_v33  ;;  %v9718_v62 = vadd.f32 -1.0, %v11279_v40  ;;  %vm8762_vm4 = vcmp.gt.f32.partialorder %v14556_v29, 0.0 }
 0x876   :  { %v11283_v1 = vpop.eup %11282  ;;  %v10808_v15 = vpop.f32.mrf.mxu1  ;;  %v9720_v27 = vadd.f32 -1.0, %v11281_v46 }
 0x877   :  { %v9721_v2 = vadd.f32 -1.0, %v11283_v1  ;;  %v8776_v56 = vmin.f32 %v14560_v61, 0.0  ;;  %v8804_v14 = vmul.f32 1.442695, %v8778_v8  ;;  %v8733_v6 = vadd.f32 %v10808_v15, %v14539_v26 }
 0x878   :  { %v11285_v55 = vpop.eup %11284  ;;  %v8724_v39 = vpop.f32.mrf.mxu1  ;;  %v8836_v54 = vsel %vm8756_vm12, %v14550_v42, %v9718_v62  ;;  %v8838_v43 = vsel %vm8758_vm15, %v14546_v63, %v9720_v27  ;;  %vm8760_vm2 = vcmp.gt.f32.partialorder %v14560_v61, 0.0 }
 0x879   :  { %v9719_v34 = vadd.f32 -1.0, %v11285_v55  ;;  %v8839_v22 = vsel %vm8759_vm13, %v8717_v52, %v9721_v2  ;;  %v8800_v24 = vmul.f32 1.442695, %v8776_v56  ;;  %v8725_v9 = vadd.f32 %v14539_v26, %v8724_v39  ;;  %v9730_v55 = vld [vmem:[%s14593_s9] ss:$0 sm:$0xff]  ;;  %s11340_s9 = smov [#allocation4]  }
 0x87a   :  { %v8779_v48 = vmin.f32 %v8733_v6, 0.0  ;;  %v8851_v32 = vpack.c.bf16 %v8839_v22, %v8838_v43  ;;  %vm8763_vm3 = vcmp.gt.f32.partialorder %v8733_v6, 0.0  ;;  %s9045_s12 = sshll.u32 %s11340_s9, 4  ;;  %s9046_s12 = int_to_ptr.vmem [resolvable:$true] %s9045_s12 }
 0x87b   :  { %v8837_v30 = vsel %vm8757_vm14, %v8709_v21, %v9719_v34  ;;  %11286 = vpow2.f32 %v8800_v24  ;;  %v8777_v59 = vmin.f32 %v8725_v9, 0.0  ;;  %vm8761_vm1 = vcmp.gt.f32.partialorder %v8725_v9, 0.0  ;;  %s11302_s24 = scalar_lea.vmem %s9046_s12, 2048  ;;  %p11307_p1 = scmp.lt.s32.totalorder %s9046_s12, %s9046_s12 }
 0x87c   :  { %v8850_v36 = vpack.c.bf16 %v8837_v30, %v8836_v54  ;;  %11288 = vpow2.f32 %v8804_v14  ;;  %v8806_v60 = vmul.f32 1.442695, %v8779_v48  ;;  %p11303_p0 = scmp.ne.s32.totalorder %s9046_s12, %s11302_s24  ;;  %p11308_p2 = scmp.lt.s32.totalorder %s11302_s24, %s11302_s24 }
 0x87d   :  { %v8802_v3 = vmul.f32 1.442695, %v8777_v59 }
 0x87e   :  { %10833 = vmatprep.mubr.bf16.mxu0 %v8850_v36  ;;  %11290 = vpow2.f32 %v8806_v60  ;;  %p11309_p3 = por %p11308_p2, %p11307_p1 }
 0x87f   :  { %10834 = vmatmul.mubr.bf16.gmra.mxu0 %v8851_v32  ;;  %11292 = vpow2.f32 %v8802_v3 }
 0x880   :  { %p11310_p4 = pnand %p11309_p3, %p11303_p0 }
 0x885   :  { %v10811_v10 = vpop.f32.mrf.mxu1 }
 0x886   :  { %v8746_v58 = vadd.f32 %v10811_v10, %v14539_v26 }
 0x887   :  { %v8737_v12 = vpop.f32.mrf.mxu1 }
 0x888   :  { %v8782_v47 = vmin.f32 %v8746_v58, 0.0  ;;  %v8738_v16 = vadd.f32 %v14539_v26, %v8737_v12  ;;  %v11287_v44 = vpop.eup %11286  ;;  %vm8766_vm8 = vcmp.gt.f32.partialorder %v8746_v58, 0.0 }
 0x889   :  { %v10812_v63 = vpop.f32.mrf.mxu1  ;;  %v11289_v42 = vpop.eup %11288  ;;  %v9722_v53 = vadd.f32 -1.0, %v11287_v44 }
 0x88a   :  { %v8780_v4 = vmin.f32 %v8738_v16, 0.0  ;;  %v8812_v35 = vmul.f32 1.442695, %v8782_v47  ;;  %v8749_v38 = vadd.f32 %v10812_v63, %v14539_v26  ;;  %v9724_v0 = vadd.f32 -1.0, %v11289_v42 }
 0x88b   :  { %v8740_v19 = vpop.f32.mrf.mxu1  ;;  %v11291_v52 = vpop.eup %11290  ;;  %vm8764_vm6 = vcmp.gt.f32.partialorder %v8738_v16, 0.0 }
 0x88c   :  { %v8808_v7 = vmul.f32 1.442695, %v8780_v4  ;;  %v8741_v23 = vadd.f32 %v14539_v26, %v8740_v19  ;;  %v11293_v21 = vpop.eup %11292  ;;  %v9725_v17 = vadd.f32 -1.0, %v11291_v52  ;;  %v8783_v45 = vmin.f32 %v8749_v38, 0.0 }
 0x88d   :  { %v9723_v28 = vadd.f32 -1.0, %v11293_v21  ;;  %v8840_v26 = vsel %vm8760_vm2, %v14560_v61, %v9722_v53  ;;  %v8842_v50 = vsel %vm8762_vm4, %v14556_v29, %v9724_v0  ;;  %vm8767_vm5 = vcmp.gt.f32.partialorder %v8749_v38, 0.0 }
 0x88e   :  { %11294 = vpow2.f32 %v8808_v7  ;;  %v8781_v41 = vmin.f32 %v8741_v23, 0.0  ;;  %v8843_v18 = vsel %vm8763_vm3, %v8733_v6, %v9725_v17  ;;  %v8814_v5 = vmul.f32 1.442695, %v8783_v45 }
 0x88f   :  { %11296 = vpow2.f32 %v8812_v35  ;;  %v8841_v57 = vsel %vm8761_vm1, %v8725_v9, %v9723_v28  ;;  %v8853_v11 = vpack.c.bf16 %v8843_v18, %v8842_v50  ;;  %vm8765_vm7 = vcmp.gt.f32.partialorder %v8741_v23, 0.0 }
 0x890   :  { %v8810_v37 = vmul.f32 1.442695, %v8781_v41  ;;  %11298 = vpow2.f32 %v8814_v5  ;;  %v8852_v25 = vpack.c.bf16 %v8841_v57, %v8840_v26 }
 0x892   :  { %11300 = vpow2.f32 %v8810_v37  ;;  %10837 = vmatprep.mubr.bf16.mxu0 %v8852_v25 }
 0x893   :  { %10838 = vmatmul.mubr.bf16.gmra.mxu0 %v8853_v11 }
 0x89b   :  { %v11295_v49 = vpop.eup %11294 }
 0x89c   :  { %v11297_v51 = vpop.eup %11296  ;;  %v9726_v13 = vadd.f32 -1.0, %v11295_v49 }
 0x89d   :  { %v11299_v31 = vpop.eup %11298  ;;  %v9728_v40 = vadd.f32 -1.0, %v11297_v51 }
 0x89e   :  { %v9729_v46 = vadd.f32 -1.0, %v11299_v31  ;;  %v8844_v29 = vsel %vm8764_vm6, %v8738_v16, %v9726_v13 }
 0x89f   :  { %v11301_v20 = vpop.eup %11300  ;;  %v8846_v1 = vsel %vm8766_vm8, %v8746_v58, %v9728_v40 }
 0x8a0   :  { %v9727_v33 = vadd.f32 -1.0, %v11301_v20  ;;  %v8847_v8 = vsel %vm8767_vm5, %v8749_v38, %v9729_v46 }
 0x8a1   :  { %v8855_v62 = vpack.c.bf16 %v8847_v8, %v8846_v1 }
 0x8a2   :  { %v8845_v61 = vsel %vm8765_vm7, %v8741_v23, %v9727_v33 }
 0x8a3   :  { %v8854_v15 = vpack.c.bf16 %v8845_v61, %v8844_v29 }
 0x8a5   :  { %10841 = vmatprep.mubr.bf16.mxu0 %v8854_v15 }
 0x8a6   :  { %10842 = vmatmul.mubr.bf16.gmra.mxu0 %v8855_v62 }
 0x92f   :  { %v10831_v27 = vpop.f32.mrf.mxu0 }
 0x930   :  { %v8970_v2 = vadd.f32 %v10831_v27, %v9730_v55 }
 0x931   :  { %v8961_v56 = vpop.f32.mrf.mxu0 }
 0x932   :  { %9026 = vst [vmem:[#allocation4 + $0x10] sm:$0xff] %v8970_v2  ;;  %v8962_v14 = vadd.f32 %v9730_v55, %v8961_v56 }
 0x933   :  { %v10832_v6 = vpop.f32.mrf.mxu0 }
 0x934   :  { %9024 = vst [vmem:[#allocation4] sm:$0xff] %v8962_v14  ;;  %v8973_v39 = vadd.f32 %v10832_v6, %v9730_v55 }
 0x935   :  { %v8964_v34 = vpop.f32.mrf.mxu0 }
 0x936   :  { %9027 = vst [vmem:[#allocation4 + $0x18] sm:$0xff] %v8973_v39  ;;  %v8965_v22 = vadd.f32 %v9730_v55, %v8964_v34 }
 0x938   :  { %9025 = vst [vmem:[#allocation4 + $0x8] sm:$0xff] %v8965_v22 }
 0x93f   :  { %v10835_v24 = vpop.f32.mrf.mxu0 }
 0x940   :  { %v8986_v9 = vadd.f32 %v10835_v24, %v9730_v55 }
 0x941   :  { %v8977_v48 = vpop.f32.mrf.mxu0 }
 0x942   :  { %9030 = vst [vmem:[#allocation4 + $0x30] sm:$0xff] %v8986_v9  ;;  %v8978_v54 = vadd.f32 %v9730_v55, %v8977_v48 }
 0x943   :  { %v10836_v30 = vpop.f32.mrf.mxu0 }
 0x944   :  { %9028 = vst [vmem:[#allocation4 + $0x20] sm:$0xff] %v8978_v54  ;;  %v8989_v43 = vadd.f32 %v10836_v30, %v9730_v55 }
 0x945   :  { %v8980_v59 = vpop.f32.mrf.mxu0 }
 0x946   :  { %9031 = vst [vmem:[#allocation4 + $0x38] sm:$0xff] %v8989_v43  ;;  %v8981_v36 = vadd.f32 %v9730_v55, %v8980_v59 }
 0x948   :  { %9029 = vst [vmem:[#allocation4 + $0x28] sm:$0xff] %v8981_v36 }
 0x953   :  { %v10839_v32 = vpop.f32.mrf.mxu0 }
 0x954   :  { %v9002_v60 = vadd.f32 %v10839_v32, %v9730_v55 }
 0x955   :  { %v8993_v3 = vpop.f32.mrf.mxu0 }
 0x956   :  { %9034 = vst [vmem:[#allocation4 + $0x50] sm:$0xff] %v9002_v60  ;;  %v8994_v10 = vadd.f32 %v9730_v55, %v8993_v3 }
 0x957   :  { %v10840_v58 = vpop.f32.mrf.mxu0 }
 0x958   :  { %9032 = vst [vmem:[#allocation4 + $0x40] sm:$0xff] %v8994_v10  ;;  %v9005_v12 = vadd.f32 %v10840_v58, %v9730_v55 }
 0x959   :  { %v8996_v47 = vpop.f32.mrf.mxu0 }
 0x95a   :  { %9035 = vst [vmem:[#allocation4 + $0x58] sm:$0xff] %v9005_v12  ;;  %v8997_v16 = vadd.f32 %v9730_v55, %v8996_v47 }
 0x95c   :  { %9033 = vst [vmem:[#allocation4 + $0x48] sm:$0xff] %v8997_v16 }
 0x966   :  { %v10843_v44 = vpop.f32.mrf.mxu0 }
 0x967   :  { %v9018_v63 = vadd.f32 %v10843_v44, %v9730_v55 }
 0x968   :  { %v9009_v42 = vpop.f32.mrf.mxu0 }
 0x969   :  { %9038 = vst [vmem:[#allocation4 + $0x70] sm:$0xff] %v9018_v63  ;;  %v9010_v4 = vadd.f32 %v9730_v55, %v9009_v42 }
 0x96a   :  { %v10844_v35 = vpop.f32.mrf.mxu0 }
 0x96b   :  { %9036 = vst [vmem:[#allocation4 + $0x60] sm:$0xff] %v9010_v4  ;;  %v9021_v38 = vadd.f32 %v10844_v35, %v9730_v55 }
 0x96c   :  { %v9012_v19 = vpop.f32.mrf.mxu0 }
 0x96d   :  { %9039 = vst [vmem:[#allocation4 + $0x78] sm:$0xff] %v9021_v38  ;;  %v9013_v52 = vadd.f32 %v9730_v55, %v9012_v19 }
 0x96f   :  { %9037 = vst [vmem:[#allocation4 + $0x68] sm:$0xff] %v9013_v52 }
 0x970   :  { %11313 = shalt.err (!%p11310_p4)
}
 0x971   :  { %s11341_s15 = smov 128  }
 0x972   :  { %9051 = dma.vmem_to_hbm [thread:$0]  %s9046_s12, 2048, %s14594_s10, [#allocation5], %s11341_s15, %s11341_s15, %s11324_s26  }
 0x973   :  { %11322 = dma.done.wait [#allocation5], 2048  }
 0x974   :  { %11323 = vsyncadd [#allocation5], 4294965248 }
 0x975   :  { %9055 = vsyncpa [#allocation5], 1 }

</bundles_post_ra>
